<compile_context>
chip_gen: v6e
topology: v6e:2x2x1
jax: 0.10.0
libtpu: 0.0.40
codegen_flags: <defaults>
</compile_context>

<pallas_src>
import math

import jax
import jax.numpy as jnp
from jax.experimental import pallas as pl
from jax.experimental.pallas import tpu as pltpu


_VMEM = pl.BlockSpec(memory_space=pltpu.MemorySpace.VMEM)
_SMEM = pl.BlockSpec(memory_space=pltpu.MemorySpace.SMEM)


# --------------------------------------------------------------------------------------
# Fused kernel
# --------------------------------------------------------------------------------------
def _make_network_kernel(num_layers, seq_len, batch, hidden):
    T, B, H = seq_len, batch, hidden

    def kernel(*refs):
        it = iter(refs)
        x_ref = next(it)          # (T*B, Din)  f32, time-major rows (t*B + b)
        h0_ref = next(it)         # (2L, B, H)  f32
        layer_params = []
        for _l in range(num_layers):
            dirs = []
            for _d in range(2):
                wih_ref = next(it)   # (3, Din_l, H) bf16  (pre-transposed, per gate r/z/n)
                whh_ref = next(it)   # (3, H, H)     bf16
                bgi_ref = next(it)   # (3, 1, H)     f32   (bih + bhh for r,z ; bih for n)
                bhn_ref = next(it)   # (1, H)        f32   (bhh for n, stays under r*(..))
                dirs.append((wih_ref, whh_ref, bgi_ref, bhn_ref))
            layer_params.append(dirs)
        fcwf_ref = next(it)       # (1, H) f32   FC weights for forward half
        fcwb_ref = next(it)       # (1, H) f32   FC weights for backward half
        fcb_ref = next(it)        # (1,)   f32   FC bias in SMEM
        out_ref = next(it)        # (T*B, 1) f32 logits, time-major rows
        hT_ref = next(it)         # (2L, B, H) f32 final hidden states
        gi_f = next(it)           # scratch (3, T*B, H) f32  hoisted input projections (fwd)
        gi_b = next(it)           # scratch (3, T*B, H) f32  hoisted input projections (bwd)
        seq_f = next(it)          # scratch (T*B, H) f32     per-step outputs (fwd)
        seq_b = next(it)          # scratch (T*B, H) f32     per-step outputs (bwd)

        for l in range(num_layers):
            # ---- hoisted input projection: one big MXU matmul per gate & direction ----
            if l == 0:
                x_flat = x_ref[...]
            else:
                # previous layer's bidirectional output, concat along features
                x_flat = jnp.concatenate([seq_f[...], seq_b[...]], axis=-1)
            x_bf = x_flat.astype(jnp.bfloat16)

            for d in range(2):
                wih_ref, _, bgi_ref, _ = layer_params[l][d]
                gi_scr = gi_f if d == 0 else gi_b
                for g in range(3):
                    gi_scr[g] = (
                        jnp.dot(x_bf, wih_ref[g], preferred_element_type=jnp.float32)
                        + bgi_ref[g]
                    )

            # ---- recurrent weights loaded once per layer, stay in vregs ----
            whh_f = [layer_params[l][0][1][g] for g in range(3)]
            whh_b = [layer_params[l][1][1][g] for g in range(3)]
            bhn_f = layer_params[l][0][3][...]
            bhn_b = layer_params[l][1][3][...]

            h_f = h0_ref[2 * l]
            h_b = h0_ref[2 * l + 1]

            # ---- fully unrolled time loop; fwd & bwd directions share each step ----
            for s in range(T):
                tb = T - 1 - s                              # in-kernel time reversal
                rf = slice(s * B, (s + 1) * B)              # rows of time step s
                rb = slice(tb * B, (tb + 1) * B)            # rows of time step T-1-s

                hf_bf = h_f.astype(jnp.bfloat16)
                hb_bf = h_b.astype(jnp.bfloat16)

                # forward direction
                gr = jnp.dot(hf_bf, whh_f[0], preferred_element_type=jnp.float32)
                gz = jnp.dot(hf_bf, whh_f[1], preferred_element_type=jnp.float32)
                gn = jnp.dot(hf_bf, whh_f[2], preferred_element_type=jnp.float32)
                r = jax.nn.sigmoid(gi_f[0, rf, :] + gr)
                z = jax.nn.sigmoid(gi_f[1, rf, :] + gz)
                n = jnp.tanh(gi_f[2, rf, :] + r * (gn + bhn_f))
                h_f = (1.0 - z) * n + z * h_f

                # backward direction (scans original time in reverse)
                gr = jnp.dot(hb_bf, whh_b[0], preferred_element_type=jnp.float32)
                gz = jnp.dot(hb_bf, whh_b[1], preferred_element_type=jnp.float32)
                gn = jnp.dot(hb_bf, whh_b[2], preferred_element_type=jnp.float32)
                r = jax.nn.sigmoid(gi_b[0, rb, :] + gr)
                z = jax.nn.sigmoid(gi_b[1, rb, :] + gz)
                n = jnp.tanh(gi_b[2, rb, :] + r * (gn + bhn_b))
                h_b = (1.0 - z) * n + z * h_b

                seq_f[rf, :] = h_f
                seq_b[rb, :] = h_b

            hT_ref[2 * l] = h_f
            hT_ref[2 * l + 1] = h_b

        # ---- fused FC head: logit = <out_fwd, w_f> + <out_bwd, w_b> + b ----
        logits = (
            jnp.sum(seq_f[...] * fcwf_ref[...], axis=-1, keepdims=True)
            + jnp.sum(seq_b[...] * fcwb_ref[...], axis=-1, keepdims=True)
            + fcb_ref[0]
        )
        out_ref[...] = logits

    return kernel


# --------------------------------------------------------------------------------------
# Wrapper: "Network" forward pass (bidirectional GRU stack + Linear)
# --------------------------------------------------------------------------------------
def network_forward(x, hidden, gru_params, fc_params):
    """x: (B, T, Din) batch_first; hidden: (num_layers*2, B, H).

    Returns (out, hidden_out) with out: (B, T, 1), hidden_out: (num_layers*2, B, H),
    matching the PyTorch module (eval-mode forward).
    """
    B, T, Din = x.shape
    two_l, _, H = hidden.shape
    num_layers = two_l // 2

    # batch_first -> time-major flat rows (t*B + b); only boundary transpose in the model.
    x_flat = jnp.transpose(x, (1, 0, 2)).reshape(T * B, Din).astype(jnp.float32)

    flat_params = []
    for dirs in gru_params:
        for p in dirs:
            flat_params.extend(p)
    fcw_f, fcw_b, fc_b = fc_params

    kernel = _make_network_kernel(num_layers, T, B, H)
    n_vmem_inputs = 2 + len(flat_params) + 2          # x, h0, layer params, fcw_f, fcw_b

    logits, h_n = pl.pallas_call(
        kernel,
        out_shape=(
            jax.ShapeDtypeStruct((T * B, 1), jnp.float32),
            jax.ShapeDtypeStruct((2 * num_layers, B, H), jnp.float32),
        ),
        in_specs=[_VMEM] * n_vmem_inputs + [_SMEM],    # FC bias scalar lives in SMEM
        out_specs=(_VMEM, _VMEM),
        scratch_shapes=[
            pltpu.VMEM((3, T * B, H), jnp.float32),    # gi_f
            pltpu.VMEM((3, T * B, H), jnp.float32),    # gi_b
            pltpu.VMEM((T * B, H), jnp.float32),       # seq_f
            pltpu.VMEM((T * B, H), jnp.float32),       # seq_b
        ],
    )(x_flat, hidden.astype(jnp.float32), *flat_params, fcw_f, fcw_b, fc_b)

    out = jnp.transpose(logits.reshape(T, B), (1, 0)).reshape(B, T, 1)
    return out, h_n


# --------------------------------------------------------------------------------------
# Deterministic parameter init (same distributions/shapes as nn.GRU / nn.Linear)
# --------------------------------------------------------------------------------------
def init_params(key, input_dim, hidden_size, num_layers):
    H = hidden_size
    stdv = 1.0 / math.sqrt(H)
    layers = []
    for l in range(num_layers):
        d_in = input_dim if l == 0 else 2 * H
        dirs = []
        for _d in range(2):
            key, k0, k1, k2, k3 = jax.random.split(key, 5)
            wih = jax.random.uniform(k0, (3, d_in, H), minval=-stdv, maxval=stdv,
                                     dtype=jnp.float32)
            whh = jax.random.uniform(k1, (3, H, H), minval=-stdv, maxval=stdv,
                                     dtype=jnp.float32)
            bih = jax.random.uniform(k2, (3, 1, H), minval=-stdv, maxval=stdv,
                                     dtype=jnp.float32)
            bhh = jax.random.uniform(k3, (3, 1, H), minval=-stdv, maxval=stdv,
                                     dtype=jnp.float32)
            # fold b_hr, b_hz into the hoisted input-projection bias; b_hn stays separate
            bgi = bih.at[:2].add(bhh[:2])
            bhn = bhh[2]
            dirs.append((wih.astype(jnp.bfloat16), whh.astype(jnp.bfloat16), bgi, bhn))
        layers.append(dirs)

    fc_stdv = 1.0 / math.sqrt(2 * H)
    key, kw, kb = jax.random.split(key, 3)
    fcw = jax.random.uniform(kw, (2, 1, H), minval=-fc_stdv, maxval=fc_stdv,
                             dtype=jnp.float32)
    fc_b = jax.random.uniform(kb, (1,), minval=-fc_stdv, maxval=fc_stdv,
                              dtype=jnp.float32)
    return layers, (fcw[0], fcw[1], fc_b)


# --------------------------------------------------------------------------------------
if __name__ == "__main__":
    # Shapes consistent with the module: ARGS.inputdim=16 (CUI ints only),
    # hiddenDimSize=32, numLayers=2, bidirectional=True, batch=2, seq_len=8.
    BATCH, SEQ, INPUT_DIM, HIDDEN, NUM_LAYERS = 2, 8, 16, 32, 2

    key = jax.random.PRNGKey(0)
    key, kx, kh, kp = jax.random.split(key, 4)

    x = jax.random.normal(kx, (BATCH, SEQ, INPUT_DIM), dtype=jnp.float32)
    hidden = jax.random.normal(kh, (NUM_LAYERS * 2, BATCH, HIDDEN), dtype=jnp.float32)

    gru_params, fc_params = init_params(kp, INPUT_DIM, HIDDEN, NUM_LAYERS)

    fwd = jax.jit(network_forward)
    out, hidden_out = fwd(x, hidden, gru_params, fc_params)
    jax.block_until_ready((out, hidden_out))

    assert out.shape == (BATCH, SEQ, 1)
    assert hidden_out.shape == (NUM_LAYERS * 2, BATCH, HIDDEN)
    print("KERNEL_OK")
</pallas_src>

<mosaic_0001>
module attributes {stable_mosaic.version = 11 : i64} {
  func.func @kernel(%arg0: memref<16x16xf32, #tpu.memory_space<vmem>>, %arg1: memref<4x2x32xf32, #tpu.memory_space<vmem>>, %arg2: memref<3x16x32xbf16, #tpu.memory_space<vmem>>, %arg3: memref<3x32x32xbf16, #tpu.memory_space<vmem>>, %arg4: memref<3x1x32xf32, #tpu.memory_space<vmem>>, %arg5: memref<1x32xf32, #tpu.memory_space<vmem>>, %arg6: memref<3x16x32xbf16, #tpu.memory_space<vmem>>, %arg7: memref<3x32x32xbf16, #tpu.memory_space<vmem>>, %arg8: memref<3x1x32xf32, #tpu.memory_space<vmem>>, %arg9: memref<1x32xf32, #tpu.memory_space<vmem>>, %arg10: memref<3x64x32xbf16, #tpu.memory_space<vmem>>, %arg11: memref<3x32x32xbf16, #tpu.memory_space<vmem>>, %arg12: memref<3x1x32xf32, #tpu.memory_space<vmem>>, %arg13: memref<1x32xf32, #tpu.memory_space<vmem>>, %arg14: memref<3x64x32xbf16, #tpu.memory_space<vmem>>, %arg15: memref<3x32x32xbf16, #tpu.memory_space<vmem>>, %arg16: memref<3x1x32xf32, #tpu.memory_space<vmem>>, %arg17: memref<1x32xf32, #tpu.memory_space<vmem>>, %arg18: memref<1x32xf32, #tpu.memory_space<vmem>>, %arg19: memref<1x32xf32, #tpu.memory_space<vmem>>, %arg20: memref<1xf32, #tpu.memory_space<smem>>, %arg21: memref<16x1xf32, #tpu.memory_space<vmem>>, %arg22: memref<4x2x32xf32, #tpu.memory_space<vmem>>, %arg23: memref<3x16x32xf32, #tpu.memory_space<vmem>>, %arg24: memref<3x16x32xf32, #tpu.memory_space<vmem>>, %arg25: memref<16x32xf32, #tpu.memory_space<vmem>>, %arg26: memref<16x32xf32, #tpu.memory_space<vmem>>) attributes {dimension_semantics = [], scalar_prefetch = 0 : i64, scratch_operands = 4 : i64, tpu.core_type = #tpu.core_type<tc>} {
    %c0 = arith.constant 0 : index
    %c0_0 = arith.constant 0 : index
    %0 = vector.load %arg0[%c0, %c0_0] : memref<16x16xf32, #tpu.memory_space<vmem>>, vector<16x16xf32>
    %1 = arith.truncf %0 : vector<16x16xf32> to vector<16x16xbf16>
    %c0_1 = arith.constant 0 : index
    %c0_2 = arith.constant 0 : index
    %c0_3 = arith.constant 0 : index
    %2 = vector.load %arg2[%c0_1, %c0_2, %c0_3] : memref<3x16x32xbf16, #tpu.memory_space<vmem>>, vector<1x16x32xbf16>
    %3 = vector.shape_cast %2 : vector<1x16x32xbf16> to vector<16x32xbf16>
    %cst = arith.constant dense<0.000000e+00> : vector<16x32xf32>
    %4 = tpu.matmul %1, %3, %cst {dimension_numbers = #tpu.dot_dimension_numbers<[1], [0], [0], [1], [0, 0, 1, 1], [], []>} : vector<16x16xbf16>, vector<16x32xbf16>, vector<16x32xf32> -> vector<16x32xf32>
    %c0_4 = arith.constant 0 : index
    %c0_5 = arith.constant 0 : index
    %c0_6 = arith.constant 0 : index
    %5 = vector.load %arg4[%c0_4, %c0_5, %c0_6] : memref<3x1x32xf32, #tpu.memory_space<vmem>>, vector<1x1x32xf32>
    %6 = vector.shape_cast %5 : vector<1x1x32xf32> to vector<1x32xf32>
    %7 = vector.broadcast %6 : vector<1x32xf32> to vector<16x32xf32>
    %8 = arith.addf %4, %7 : vector<16x32xf32>
    %c0_7 = arith.constant 0 : index
    %c0_8 = arith.constant 0 : index
    %c0_9 = arith.constant 0 : index
    %9 = vector.load %arg23[%c0_7, %c0_8, %c0_9] : memref<3x16x32xf32, #tpu.memory_space<vmem>>, vector<1x16x32xf32>
    %10 = vector.shape_cast %9 : vector<1x16x32xf32> to vector<16x32xf32>
    %11 = vector.shape_cast %8 : vector<16x32xf32> to vector<1x16x32xf32>
    tpu.vector_store %arg23[%c0_7, %c0_8, %c0_9], %11 {strides = array<i32>} : memref<3x16x32xf32, #tpu.memory_space<vmem>>, vector<1x16x32xf32>,
    %c1 = arith.constant 1 : index
    %c0_10 = arith.constant 0 : index
    %c0_11 = arith.constant 0 : index
    %12 = vector.load %arg2[%c1, %c0_10, %c0_11] : memref<3x16x32xbf16, #tpu.memory_space<vmem>>, vector<1x16x32xbf16>
    %13 = vector.shape_cast %12 : vector<1x16x32xbf16> to vector<16x32xbf16>
    %cst_12 = arith.constant dense<0.000000e+00> : vector<16x32xf32>
    %14 = tpu.matmul %1, %13, %cst_12 {dimension_numbers = #tpu.dot_dimension_numbers<[1], [0], [0], [1], [0, 0, 1, 1], [], []>} : vector<16x16xbf16>, vector<16x32xbf16>, vector<16x32xf32> -> vector<16x32xf32>
    %c1_13 = arith.constant 1 : index
    %c0_14 = arith.constant 0 : index
    %c0_15 = arith.constant 0 : index
    %15 = vector.load %arg4[%c1_13, %c0_14, %c0_15] : memref<3x1x32xf32, #tpu.memory_space<vmem>>, vector<1x1x32xf32>
    %16 = vector.shape_cast %15 : vector<1x1x32xf32> to vector<1x32xf32>
    %17 = vector.broadcast %16 : vector<1x32xf32> to vector<16x32xf32>
    %18 = arith.addf %14, %17 : vector<16x32xf32>
    %c1_16 = arith.constant 1 : index
    %c0_17 = arith.constant 0 : index
    %c0_18 = arith.constant 0 : index
    %19 = vector.load %arg23[%c1_16, %c0_17, %c0_18] : memref<3x16x32xf32, #tpu.memory_space<vmem>>, vector<1x16x32xf32>
    %20 = vector.shape_cast %19 : vector<1x16x32xf32> to vector<16x32xf32>
    %21 = vector.shape_cast %18 : vector<16x32xf32> to vector<1x16x32xf32>
    tpu.vector_store %arg23[%c1_16, %c0_17, %c0_18], %21 {strides = array<i32>} : memref<3x16x32xf32, #tpu.memory_space<vmem>>, vector<1x16x32xf32>,
    %c2 = arith.constant 2 : index
    %c0_19 = arith.constant 0 : index
    %c0_20 = arith.constant 0 : index
    %22 = vector.load %arg2[%c2, %c0_19, %c0_20] : memref<3x16x32xbf16, #tpu.memory_space<vmem>>, vector<1x16x32xbf16>
    %23 = vector.shape_cast %22 : vector<1x16x32xbf16> to vector<16x32xbf16>
    %cst_21 = arith.constant dense<0.000000e+00> : vector<16x32xf32>
    %24 = tpu.matmul %1, %23, %cst_21 {dimension_numbers = #tpu.dot_dimension_numbers<[1], [0], [0], [1], [0, 0, 1, 1], [], []>} : vector<16x16xbf16>, vector<16x32xbf16>, vector<16x32xf32> -> vector<16x32xf32>
    %c2_22 = arith.constant 2 : index
    %c0_23 = arith.constant 0 : index
    %c0_24 = arith.constant 0 : index
    %25 = vector.load %arg4[%c2_22, %c0_23, %c0_24] : memref<3x1x32xf32, #tpu.memory_space<vmem>>, vector<1x1x32xf32>
    %26 = vector.shape_cast %25 : vector<1x1x32xf32> to vector<1x32xf32>
    %27 = vector.broadcast %26 : vector<1x32xf32> to vector<16x32xf32>
    %28 = arith.addf %24, %27 : vector<16x32xf32>
    %c2_25 = arith.constant 2 : index
    %c0_26 = arith.constant 0 : index
    %c0_27 = arith.constant 0 : index
    %29 = vector.load %arg23[%c2_25, %c0_26, %c0_27] : memref<3x16x32xf32, #tpu.memory_space<vmem>>, vector<1x16x32xf32>
    %30 = vector.shape_cast %29 : vector<1x16x32xf32> to vector<16x32xf32>
    %31 = vector.shape_cast %28 : vector<16x32xf32> to vector<1x16x32xf32>
    tpu.vector_store %arg23[%c2_25, %c0_26, %c0_27], %31 {strides = array<i32>} : memref<3x16x32xf32, #tpu.memory_space<vmem>>, vector<1x16x32xf32>,
    %c0_28 = arith.constant 0 : index
    %c0_29 = arith.constant 0 : index
    %c0_30 = arith.constant 0 : index
    %32 = vector.load %arg6[%c0_28, %c0_29, %c0_30] : memref<3x16x32xbf16, #tpu.memory_space<vmem>>, vector<1x16x32xbf16>
    %33 = vector.shape_cast %32 : vector<1x16x32xbf16> to vector<16x32xbf16>
    %cst_31 = arith.constant dense<0.000000e+00> : vector<16x32xf32>
    %34 = tpu.matmul %1, %33, %cst_31 {dimension_numbers = #tpu.dot_dimension_numbers<[1], [0], [0], [1], [0, 0, 1, 1], [], []>} : vector<16x16xbf16>, vector<16x32xbf16>, vector<16x32xf32> -> vector<16x32xf32>
    %c0_32 = arith.constant 0 : index
    %c0_33 = arith.constant 0 : index
    %c0_34 = arith.constant 0 : index
    %35 = vector.load %arg8[%c0_32, %c0_33, %c0_34] : memref<3x1x32xf32, #tpu.memory_space<vmem>>, vector<1x1x32xf32>
    %36 = vector.shape_cast %35 : vector<1x1x32xf32> to vector<1x32xf32>
    %37 = vector.broadcast %36 : vector<1x32xf32> to vector<16x32xf32>
    %38 = arith.addf %34, %37 : vector<16x32xf32>
    %c0_35 = arith.constant 0 : index
    %c0_36 = arith.constant 0 : index
    %c0_37 = arith.constant 0 : index
    %39 = vector.load %arg24[%c0_35, %c0_36, %c0_37] : memref<3x16x32xf32, #tpu.memory_space<vmem>>, vector<1x16x32xf32>
    %40 = vector.shape_cast %39 : vector<1x16x32xf32> to vector<16x32xf32>
    %41 = vector.shape_cast %38 : vector<16x32xf32> to vector<1x16x32xf32>
    tpu.vector_store %arg24[%c0_35, %c0_36, %c0_37], %41 {strides = array<i32>} : memref<3x16x32xf32, #tpu.memory_space<vmem>>, vector<1x16x32xf32>,
    %c1_38 = arith.constant 1 : index
    %c0_39 = arith.constant 0 : index
    %c0_40 = arith.constant 0 : index
    %42 = vector.load %arg6[%c1_38, %c0_39, %c0_40] : memref<3x16x32xbf16, #tpu.memory_space<vmem>>, vector<1x16x32xbf16>
    %43 = vector.shape_cast %42 : vector<1x16x32xbf16> to vector<16x32xbf16>
    %cst_41 = arith.constant dense<0.000000e+00> : vector<16x32xf32>
    %44 = tpu.matmul %1, %43, %cst_41 {dimension_numbers = #tpu.dot_dimension_numbers<[1], [0], [0], [1], [0, 0, 1, 1], [], []>} : vector<16x16xbf16>, vector<16x32xbf16>, vector<16x32xf32> -> vector<16x32xf32>
    %c1_42 = arith.constant 1 : index
    %c0_43 = arith.constant 0 : index
    %c0_44 = arith.constant 0 : index
    %45 = vector.load %arg8[%c1_42, %c0_43, %c0_44] : memref<3x1x32xf32, #tpu.memory_space<vmem>>, vector<1x1x32xf32>
    %46 = vector.shape_cast %45 : vector<1x1x32xf32> to vector<1x32xf32>
    %47 = vector.broadcast %46 : vector<1x32xf32> to vector<16x32xf32>
    %48 = arith.addf %44, %47 : vector<16x32xf32>
    %c1_45 = arith.constant 1 : index
    %c0_46 = arith.constant 0 : index
    %c0_47 = arith.constant 0 : index
    %49 = vector.load %arg24[%c1_45, %c0_46, %c0_47] : memref<3x16x32xf32, #tpu.memory_space<vmem>>, vector<1x16x32xf32>
    %50 = vector.shape_cast %49 : vector<1x16x32xf32> to vector<16x32xf32>
    %51 = vector.shape_cast %48 : vector<16x32xf32> to vector<1x16x32xf32>
    tpu.vector_store %arg24[%c1_45, %c0_46, %c0_47], %51 {strides = array<i32>} : memref<3x16x32xf32, #tpu.memory_space<vmem>>, vector<1x16x32xf32>,
    %c2_48 = arith.constant 2 : index
    %c0_49 = arith.constant 0 : index
    %c0_50 = arith.constant 0 : index
    %52 = vector.load %arg6[%c2_48, %c0_49, %c0_50] : memref<3x16x32xbf16, #tpu.memory_space<vmem>>, vector<1x16x32xbf16>
    %53 = vector.shape_cast %52 : vector<1x16x32xbf16> to vector<16x32xbf16>
    %cst_51 = arith.constant dense<0.000000e+00> : vector<16x32xf32>
    %54 = tpu.matmul %1, %53, %cst_51 {dimension_numbers = #tpu.dot_dimension_numbers<[1], [0], [0], [1], [0, 0, 1, 1], [], []>} : vector<16x16xbf16>, vector<16x32xbf16>, vector<16x32xf32> -> vector<16x32xf32>
    %c2_52 = arith.constant 2 : index
    %c0_53 = arith.constant 0 : index
    %c0_54 = arith.constant 0 : index
    %55 = vector.load %arg8[%c2_52, %c0_53, %c0_54] : memref<3x1x32xf32, #tpu.memory_space<vmem>>, vector<1x1x32xf32>
    %56 = vector.shape_cast %55 : vector<1x1x32xf32> to vector<1x32xf32>
    %57 = vector.broadcast %56 : vector<1x32xf32> to vector<16x32xf32>
    %58 = arith.addf %54, %57 : vector<16x32xf32>
    %c2_55 = arith.constant 2 : index
    %c0_56 = arith.constant 0 : index
    %c0_57 = arith.constant 0 : index
    %59 = vector.load %arg24[%c2_55, %c0_56, %c0_57] : memref<3x16x32xf32, #tpu.memory_space<vmem>>, vector<1x16x32xf32>
    %60 = vector.shape_cast %59 : vector<1x16x32xf32> to vector<16x32xf32>
    %61 = vector.shape_cast %58 : vector<16x32xf32> to vector<1x16x32xf32>
    tpu.vector_store %arg24[%c2_55, %c0_56, %c0_57], %61 {strides = array<i32>} : memref<3x16x32xf32, #tpu.memory_space<vmem>>, vector<1x16x32xf32>,
    %c0_58 = arith.constant 0 : index
    %c0_59 = arith.constant 0 : index
    %c0_60 = arith.constant 0 : index
    %62 = vector.load %arg3[%c0_58, %c0_59, %c0_60] : memref<3x32x32xbf16, #tpu.memory_space<vmem>>, vector<1x32x32xbf16>
    %63 = vector.shape_cast %62 : vector<1x32x32xbf16> to vector<32x32xbf16>
    %c1_61 = arith.constant 1 : index
    %c0_62 = arith.constant 0 : index
    %c0_63 = arith.constant 0 : index
    %64 = vector.load %arg3[%c1_61, %c0_62, %c0_63] : memref<3x32x32xbf16, #tpu.memory_space<vmem>>, vector<1x32x32xbf16>
    %65 = vector.shape_cast %64 : vector<1x32x32xbf16> to vector<32x32xbf16>
    %c2_64 = arith.constant 2 : index
    %c0_65 = arith.constant 0 : index
    %c0_66 = arith.constant 0 : index
    %66 = vector.load %arg3[%c2_64, %c0_65, %c0_66] : memref<3x32x32xbf16, #tpu.memory_space<vmem>>, vector<1x32x32xbf16>
    %67 = vector.shape_cast %66 : vector<1x32x32xbf16> to vector<32x32xbf16>
    %c0_67 = arith.constant 0 : index
    %c0_68 = arith.constant 0 : index
    %c0_69 = arith.constant 0 : index
    %68 = vector.load %arg7[%c0_67, %c0_68, %c0_69] : memref<3x32x32xbf16, #tpu.memory_space<vmem>>, vector<1x32x32xbf16>
    %69 = vector.shape_cast %68 : vector<1x32x32xbf16> to vector<32x32xbf16>
    %c1_70 = arith.constant 1 : index
    %c0_71 = arith.constant 0 : index
    %c0_72 = arith.constant 0 : index
    %70 = vector.load %arg7[%c1_70, %c0_71, %c0_72] : memref<3x32x32xbf16, #tpu.memory_space<vmem>>, vector<1x32x32xbf16>
    %71 = vector.shape_cast %70 : vector<1x32x32xbf16> to vector<32x32xbf16>
    %c2_73 = arith.constant 2 : index
    %c0_74 = arith.constant 0 : index
    %c0_75 = arith.constant 0 : index
    %72 = vector.load %arg7[%c2_73, %c0_74, %c0_75] : memref<3x32x32xbf16, #tpu.memory_space<vmem>>, vector<1x32x32xbf16>
    %73 = vector.shape_cast %72 : vector<1x32x32xbf16> to vector<32x32xbf16>
    %c0_76 = arith.constant 0 : index
    %c0_77 = arith.constant 0 : index
    %74 = vector.load %arg5[%c0_76, %c0_77] : memref<1x32xf32, #tpu.memory_space<vmem>>, vector<1x32xf32>
    %c0_78 = arith.constant 0 : index
    %c0_79 = arith.constant 0 : index
    %75 = vector.load %arg9[%c0_78, %c0_79] : memref<1x32xf32, #tpu.memory_space<vmem>>, vector<1x32xf32>
    %c0_80 = arith.constant 0 : index
    %c0_81 = arith.constant 0 : index
    %c0_82 = arith.constant 0 : index
    %76 = vector.load %arg1[%c0_80, %c0_81, %c0_82] : memref<4x2x32xf32, #tpu.memory_space<vmem>>, vector<1x2x32xf32>
    %77 = vector.shape_cast %76 : vector<1x2x32xf32> to vector<2x32xf32>
    %c1_83 = arith.constant 1 : index
    %c0_84 = arith.constant 0 : index
    %c0_85 = arith.constant 0 : index
    %78 = vector.load %arg1[%c1_83, %c0_84, %c0_85] : memref<4x2x32xf32, #tpu.memory_space<vmem>>, vector<1x2x32xf32>
    %79 = vector.shape_cast %78 : vector<1x2x32xf32> to vector<2x32xf32>
    %80 = arith.truncf %77 : vector<2x32xf32> to vector<2x32xbf16>
    %81 = arith.truncf %79 : vector<2x32xf32> to vector<2x32xbf16>
    %cst_86 = arith.constant dense<0.000000e+00> : vector<2x32xf32>
    %82 = tpu.matmul %80, %63, %cst_86 {dimension_numbers = #tpu.dot_dimension_numbers<[1], [0], [0], [1], [0, 0, 1, 1], [], []>} : vector<2x32xbf16>, vector<32x32xbf16>, vector<2x32xf32> -> vector<2x32xf32>
    %cst_87 = arith.constant dense<0.000000e+00> : vector<2x32xf32>
    %83 = tpu.matmul %80, %65, %cst_87 {dimension_numbers = #tpu.dot_dimension_numbers<[1], [0], [0], [1], [0, 0, 1, 1], [], []>} : vector<2x32xbf16>, vector<32x32xbf16>, vector<2x32xf32> -> vector<2x32xf32>
    %cst_88 = arith.constant dense<0.000000e+00> : vector<2x32xf32>
    %84 = tpu.matmul %80, %67, %cst_88 {dimension_numbers = #tpu.dot_dimension_numbers<[1], [0], [0], [1], [0, 0, 1, 1], [], []>} : vector<2x32xbf16>, vector<32x32xbf16>, vector<2x32xf32> -> vector<2x32xf32>
    %c0_89 = arith.constant 0 : index
    %c0_90 = arith.constant 0 : index
    %c0_91 = arith.constant 0 : index
    %85 = vector.load %arg23[%c0_89, %c0_90, %c0_91] : memref<3x16x32xf32, #tpu.memory_space<vmem>>, vector<1x2x32xf32>
    %86 = vector.shape_cast %85 : vector<1x2x32xf32> to vector<2x32xf32>
    %87 = arith.addf %86, %82 : vector<2x32xf32>
    %88 = arith.negf %87 : vector<2x32xf32>
    %89 = math.exp %88 : vector<2x32xf32>
    %cst_92 = arith.constant 1.000000e+00 : f32
    %90 = vector.broadcast %cst_92 : f32 to vector<2x32xf32>
    %91 = arith.addf %90, %89 : vector<2x32xf32>
    %92 = arith.divf %90, %91 : vector<2x32xf32>
    %c1_93 = arith.constant 1 : index
    %c0_94 = arith.constant 0 : index
    %c0_95 = arith.constant 0 : index
    %93 = vector.load %arg23[%c1_93, %c0_94, %c0_95] : memref<3x16x32xf32, #tpu.memory_space<vmem>>, vector<1x2x32xf32>
    %94 = vector.shape_cast %93 : vector<1x2x32xf32> to vector<2x32xf32>
    %95 = arith.addf %94, %83 : vector<2x32xf32>
    %96 = arith.negf %95 : vector<2x32xf32>
    %97 = math.exp %96 : vector<2x32xf32>
    %cst_96 = arith.constant 1.000000e+00 : f32
    %98 = vector.broadcast %cst_96 : f32 to vector<2x32xf32>
    %99 = arith.addf %98, %97 : vector<2x32xf32>
    %100 = arith.divf %98, %99 : vector<2x32xf32>
    %c2_97 = arith.constant 2 : index
    %c0_98 = arith.constant 0 : index
    %c0_99 = arith.constant 0 : index
    %101 = vector.load %arg23[%c2_97, %c0_98, %c0_99] : memref<3x16x32xf32, #tpu.memory_space<vmem>>, vector<1x2x32xf32>
    %102 = vector.shape_cast %101 : vector<1x2x32xf32> to vector<2x32xf32>
    %103 = vector.broadcast %74 : vector<1x32xf32> to vector<2x32xf32>
    %104 = arith.addf %84, %103 : vector<2x32xf32>
    %105 = arith.mulf %92, %104 : vector<2x32xf32>
    %106 = arith.addf %102, %105 : vector<2x32xf32>
    %107 = math.tanh %106 : vector<2x32xf32>
    %cst_100 = arith.constant 1.000000e+00 : f32
    %108 = vector.broadcast %cst_100 : f32 to vector<2x32xf32>
    %109 = arith.subf %108, %100 : vector<2x32xf32>
    %110 = arith.mulf %109, %107 : vector<2x32xf32>
    %111 = arith.mulf %100, %77 : vector<2x32xf32>
    %112 = arith.addf %110, %111 : vector<2x32xf32>
    %cst_101 = arith.constant dense<0.000000e+00> : vector<2x32xf32>
    %113 = tpu.matmul %81, %69, %cst_101 {dimension_numbers = #tpu.dot_dimension_numbers<[1], [0], [0], [1], [0, 0, 1, 1], [], []>} : vector<2x32xbf16>, vector<32x32xbf16>, vector<2x32xf32> -> vector<2x32xf32>
    %cst_102 = arith.constant dense<0.000000e+00> : vector<2x32xf32>
    %114 = tpu.matmul %81, %71, %cst_102 {dimension_numbers = #tpu.dot_dimension_numbers<[1], [0], [0], [1], [0, 0, 1, 1], [], []>} : vector<2x32xbf16>, vector<32x32xbf16>, vector<2x32xf32> -> vector<2x32xf32>
    %cst_103 = arith.constant dense<0.000000e+00> : vector<2x32xf32>
    %115 = tpu.matmul %81, %73, %cst_103 {dimension_numbers = #tpu.dot_dimension_numbers<[1], [0], [0], [1], [0, 0, 1, 1], [], []>} : vector<2x32xbf16>, vector<32x32xbf16>, vector<2x32xf32> -> vector<2x32xf32>
    %c0_104 = arith.constant 0 : index
    %c14 = arith.constant 14 : index
    %c0_105 = arith.constant 0 : index
    %116 = vector.load %arg24[%c0_104, %c14, %c0_105] : memref<3x16x32xf32, #tpu.memory_space<vmem>>, vector<1x2x32xf32>
    %117 = vector.shape_cast %116 : vector<1x2x32xf32> to vector<2x32xf32>
    %118 = arith.addf %117, %113 : vector<2x32xf32>
    %119 = arith.negf %118 : vector<2x32xf32>
    %120 = math.exp %119 : vector<2x32xf32>
    %cst_106 = arith.constant 1.000000e+00 : f32
    %121 = vector.broadcast %cst_106 : f32 to vector<2x32xf32>
    %122 = arith.addf %121, %120 : vector<2x32xf32>
    %123 = arith.divf %121, %122 : vector<2x32xf32>
    %c1_107 = arith.constant 1 : index
    %c14_108 = arith.constant 14 : index
    %c0_109 = arith.constant 0 : index
    %124 = vector.load %arg24[%c1_107, %c14_108, %c0_109] : memref<3x16x32xf32, #tpu.memory_space<vmem>>, vector<1x2x32xf32>
    %125 = vector.shape_cast %124 : vector<1x2x32xf32> to vector<2x32xf32>
    %126 = arith.addf %125, %114 : vector<2x32xf32>
    %127 = arith.negf %126 : vector<2x32xf32>
    %128 = math.exp %127 : vector<2x32xf32>
    %cst_110 = arith.constant 1.000000e+00 : f32
    %129 = vector.broadcast %cst_110 : f32 to vector<2x32xf32>
    %130 = arith.addf %129, %128 : vector<2x32xf32>
    %131 = arith.divf %129, %130 : vector<2x32xf32>
    %c2_111 = arith.constant 2 : index
    %c14_112 = arith.constant 14 : index
    %c0_113 = arith.constant 0 : index
    %132 = vector.load %arg24[%c2_111, %c14_112, %c0_113] : memref<3x16x32xf32, #tpu.memory_space<vmem>>, vector<1x2x32xf32>
    %133 = vector.shape_cast %132 : vector<1x2x32xf32> to vector<2x32xf32>
    %134 = vector.broadcast %75 : vector<1x32xf32> to vector<2x32xf32>
    %135 = arith.addf %115, %134 : vector<2x32xf32>
    %136 = arith.mulf %123, %135 : vector<2x32xf32>
    %137 = arith.addf %133, %136 : vector<2x32xf32>
    %138 = math.tanh %137 : vector<2x32xf32>
    %cst_114 = arith.constant 1.000000e+00 : f32
    %139 = vector.broadcast %cst_114 : f32 to vector<2x32xf32>
    %140 = arith.subf %139, %131 : vector<2x32xf32>
    %141 = arith.mulf %140, %138 : vector<2x32xf32>
    %142 = arith.mulf %131, %79 : vector<2x32xf32>
    %143 = arith.addf %141, %142 : vector<2x32xf32>
    %c0_115 = arith.constant 0 : index
    %c0_116 = arith.constant 0 : index
    %144 = vector.load %arg25[%c0_115, %c0_116] : memref<16x32xf32, #tpu.memory_space<vmem>>, vector<2x32xf32>
    tpu.vector_store %arg25[%c0_115, %c0_116], %112 {strides = array<i32>} : memref<16x32xf32, #tpu.memory_space<vmem>>, vector<2x32xf32>,
    %c14_117 = arith.constant 14 : index
    %c0_118 = arith.constant 0 : index
    %145 = vector.load %arg26[%c14_117, %c0_118] : memref<16x32xf32, #tpu.memory_space<vmem>>, vector<2x32xf32>
    tpu.vector_store %arg26[%c14_117, %c0_118], %143 {strides = array<i32>} : memref<16x32xf32, #tpu.memory_space<vmem>>, vector<2x32xf32>,
    %146 = arith.truncf %112 : vector<2x32xf32> to vector<2x32xbf16>
    %147 = arith.truncf %143 : vector<2x32xf32> to vector<2x32xbf16>
    %cst_119 = arith.constant dense<0.000000e+00> : vector<2x32xf32>
    %148 = tpu.matmul %146, %63, %cst_119 {dimension_numbers = #tpu.dot_dimension_numbers<[1], [0], [0], [1], [0, 0, 1, 1], [], []>} : vector<2x32xbf16>, vector<32x32xbf16>, vector<2x32xf32> -> vector<2x32xf32>
    %cst_120 = arith.constant dense<0.000000e+00> : vector<2x32xf32>
    %149 = tpu.matmul %146, %65, %cst_120 {dimension_numbers = #tpu.dot_dimension_numbers<[1], [0], [0], [1], [0, 0, 1, 1], [], []>} : vector<2x32xbf16>, vector<32x32xbf16>, vector<2x32xf32> -> vector<2x32xf32>
    %cst_121 = arith.constant dense<0.000000e+00> : vector<2x32xf32>
    %150 = tpu.matmul %146, %67, %cst_121 {dimension_numbers = #tpu.dot_dimension_numbers<[1], [0], [0], [1], [0, 0, 1, 1], [], []>} : vector<2x32xbf16>, vector<32x32xbf16>, vector<2x32xf32> -> vector<2x32xf32>
    %c0_122 = arith.constant 0 : index
    %c2_123 = arith.constant 2 : index
    %c0_124 = arith.constant 0 : index
    %151 = vector.load %arg23[%c0_122, %c2_123, %c0_124] : memref<3x16x32xf32, #tpu.memory_space<vmem>>, vector<1x2x32xf32>
    %152 = vector.shape_cast %151 : vector<1x2x32xf32> to vector<2x32xf32>
    %153 = arith.addf %152, %148 : vector<2x32xf32>
    %154 = arith.negf %153 : vector<2x32xf32>
    %155 = math.exp %154 : vector<2x32xf32>
    %cst_125 = arith.constant 1.000000e+00 : f32
    %156 = vector.broadcast %cst_125 : f32 to vector<2x32xf32>
    %157 = arith.addf %156, %155 : vector<2x32xf32>
    %158 = arith.divf %156, %157 : vector<2x32xf32>
    %c1_126 = arith.constant 1 : index
    %c2_127 = arith.constant 2 : index
    %c0_128 = arith.constant 0 : index
    %159 = vector.load %arg23[%c1_126, %c2_127, %c0_128] : memref<3x16x32xf32, #tpu.memory_space<vmem>>, vector<1x2x32xf32>
    %160 = vector.shape_cast %159 : vector<1x2x32xf32> to vector<2x32xf32>
    %161 = arith.addf %160, %149 : vector<2x32xf32>
    %162 = arith.negf %161 : vector<2x32xf32>
    %163 = math.exp %162 : vector<2x32xf32>
    %cst_129 = arith.constant 1.000000e+00 : f32
    %164 = vector.broadcast %cst_129 : f32 to vector<2x32xf32>
    %165 = arith.addf %164, %163 : vector<2x32xf32>
    %166 = arith.divf %164, %165 : vector<2x32xf32>
    %c2_130 = arith.constant 2 : index
    %c2_131 = arith.constant 2 : index
    %c0_132 = arith.constant 0 : index
    %167 = vector.load %arg23[%c2_130, %c2_131, %c0_132] : memref<3x16x32xf32, #tpu.memory_space<vmem>>, vector<1x2x32xf32>
    %168 = vector.shape_cast %167 : vector<1x2x32xf32> to vector<2x32xf32>
    %169 = vector.broadcast %74 : vector<1x32xf32> to vector<2x32xf32>
    %170 = arith.addf %150, %169 : vector<2x32xf32>
    %171 = arith.mulf %158, %170 : vector<2x32xf32>
    %172 = arith.addf %168, %171 : vector<2x32xf32>
    %173 = math.tanh %172 : vector<2x32xf32>
    %cst_133 = arith.constant 1.000000e+00 : f32
    %174 = vector.broadcast %cst_133 : f32 to vector<2x32xf32>
    %175 = arith.subf %174, %166 : vector<2x32xf32>
    %176 = arith.mulf %175, %173 : vector<2x32xf32>
    %177 = arith.mulf %166, %112 : vector<2x32xf32>
    %178 = arith.addf %176, %177 : vector<2x32xf32>
    %cst_134 = arith.constant dense<0.000000e+00> : vector<2x32xf32>
    %179 = tpu.matmul %147, %69, %cst_134 {dimension_numbers = #tpu.dot_dimension_numbers<[1], [0], [0], [1], [0, 0, 1, 1], [], []>} : vector<2x32xbf16>, vector<32x32xbf16>, vector<2x32xf32> -> vector<2x32xf32>
    %cst_135 = arith.constant dense<0.000000e+00> : vector<2x32xf32>
    %180 = tpu.matmul %147, %71, %cst_135 {dimension_numbers = #tpu.dot_dimension_numbers<[1], [0], [0], [1], [0, 0, 1, 1], [], []>} : vector<2x32xbf16>, vector<32x32xbf16>, vector<2x32xf32> -> vector<2x32xf32>
    %cst_136 = arith.constant dense<0.000000e+00> : vector<2x32xf32>
    %181 = tpu.matmul %147, %73, %cst_136 {dimension_numbers = #tpu.dot_dimension_numbers<[1], [0], [0], [1], [0, 0, 1, 1], [], []>} : vector<2x32xbf16>, vector<32x32xbf16>, vector<2x32xf32> -> vector<2x32xf32>
    %c0_137 = arith.constant 0 : index
    %c12 = arith.constant 12 : index
    %c0_138 = arith.constant 0 : index
    %182 = vector.load %arg24[%c0_137, %c12, %c0_138] : memref<3x16x32xf32, #tpu.memory_space<vmem>>, vector<1x2x32xf32>
    %183 = vector.shape_cast %182 : vector<1x2x32xf32> to vector<2x32xf32>
    %184 = arith.addf %183, %179 : vector<2x32xf32>
    %185 = arith.negf %184 : vector<2x32xf32>
    %186 = math.exp %185 : vector<2x32xf32>
    %cst_139 = arith.constant 1.000000e+00 : f32
    %187 = vector.broadcast %cst_139 : f32 to vector<2x32xf32>
    %188 = arith.addf %187, %186 : vector<2x32xf32>
    %189 = arith.divf %187, %188 : vector<2x32xf32>
    %c1_140 = arith.constant 1 : index
    %c12_141 = arith.constant 12 : index
    %c0_142 = arith.constant 0 : index
    %190 = vector.load %arg24[%c1_140, %c12_141, %c0_142] : memref<3x16x32xf32, #tpu.memory_space<vmem>>, vector<1x2x32xf32>
    %191 = vector.shape_cast %190 : vector<1x2x32xf32> to vector<2x32xf32>
    %192 = arith.addf %191, %180 : vector<2x32xf32>
    %193 = arith.negf %192 : vector<2x32xf32>
    %194 = math.exp %193 : vector<2x32xf32>
    %cst_143 = arith.constant 1.000000e+00 : f32
    %195 = vector.broadcast %cst_143 : f32 to vector<2x32xf32>
    %196 = arith.addf %195, %194 : vector<2x32xf32>
    %197 = arith.divf %195, %196 : vector<2x32xf32>
    %c2_144 = arith.constant 2 : index
    %c12_145 = arith.constant 12 : index
    %c0_146 = arith.constant 0 : index
    %198 = vector.load %arg24[%c2_144, %c12_145, %c0_146] : memref<3x16x32xf32, #tpu.memory_space<vmem>>, vector<1x2x32xf32>
    %199 = vector.shape_cast %198 : vector<1x2x32xf32> to vector<2x32xf32>
    %200 = vector.broadcast %75 : vector<1x32xf32> to vector<2x32xf32>
    %201 = arith.addf %181, %200 : vector<2x32xf32>
    %202 = arith.mulf %189, %201 : vector<2x32xf32>
    %203 = arith.addf %199, %202 : vector<2x32xf32>
    %204 = math.tanh %203 : vector<2x32xf32>
    %cst_147 = arith.constant 1.000000e+00 : f32
    %205 = vector.broadcast %cst_147 : f32 to vector<2x32xf32>
    %206 = arith.subf %205, %197 : vector<2x32xf32>
    %207 = arith.mulf %206, %204 : vector<2x32xf32>
    %208 = arith.mulf %197, %143 : vector<2x32xf32>
    %209 = arith.addf %207, %208 : vector<2x32xf32>
    %c2_148 = arith.constant 2 : index
    %c0_149 = arith.constant 0 : index
    %210 = vector.load %arg25[%c2_148, %c0_149] : memref<16x32xf32, #tpu.memory_space<vmem>>, vector<2x32xf32>
    tpu.vector_store %arg25[%c2_148, %c0_149], %178 {strides = array<i32>} : memref<16x32xf32, #tpu.memory_space<vmem>>, vector<2x32xf32>,
    %c12_150 = arith.constant 12 : index
    %c0_151 = arith.constant 0 : index
    %211 = vector.load %arg26[%c12_150, %c0_151] : memref<16x32xf32, #tpu.memory_space<vmem>>, vector<2x32xf32>
    tpu.vector_store %arg26[%c12_150, %c0_151], %209 {strides = array<i32>} : memref<16x32xf32, #tpu.memory_space<vmem>>, vector<2x32xf32>,
    %212 = arith.truncf %178 : vector<2x32xf32> to vector<2x32xbf16>
    %213 = arith.truncf %209 : vector<2x32xf32> to vector<2x32xbf16>
    %cst_152 = arith.constant dense<0.000000e+00> : vector<2x32xf32>
    %214 = tpu.matmul %212, %63, %cst_152 {dimension_numbers = #tpu.dot_dimension_numbers<[1], [0], [0], [1], [0, 0, 1, 1], [], []>} : vector<2x32xbf16>, vector<32x32xbf16>, vector<2x32xf32> -> vector<2x32xf32>
    %cst_153 = arith.constant dense<0.000000e+00> : vector<2x32xf32>
    %215 = tpu.matmul %212, %65, %cst_153 {dimension_numbers = #tpu.dot_dimension_numbers<[1], [0], [0], [1], [0, 0, 1, 1], [], []>} : vector<2x32xbf16>, vector<32x32xbf16>, vector<2x32xf32> -> vector<2x32xf32>
    %cst_154 = arith.constant dense<0.000000e+00> : vector<2x32xf32>
    %216 = tpu.matmul %212, %67, %cst_154 {dimension_numbers = #tpu.dot_dimension_numbers<[1], [0], [0], [1], [0, 0, 1, 1], [], []>} : vector<2x32xbf16>, vector<32x32xbf16>, vector<2x32xf32> -> vector<2x32xf32>
    %c0_155 = arith.constant 0 : index
    %c4 = arith.constant 4 : index
    %c0_156 = arith.constant 0 : index
    %217 = vector.load %arg23[%c0_155, %c4, %c0_156] : memref<3x16x32xf32, #tpu.memory_space<vmem>>, vector<1x2x32xf32>
    %218 = vector.shape_cast %217 : vector<1x2x32xf32> to vector<2x32xf32>
    %219 = arith.addf %218, %214 : vector<2x32xf32>
    %220 = arith.negf %219 : vector<2x32xf32>
    %221 = math.exp %220 : vector<2x32xf32>
    %cst_157 = arith.constant 1.000000e+00 : f32
    %222 = vector.broadcast %cst_157 : f32 to vector<2x32xf32>
    %223 = arith.addf %222, %221 : vector<2x32xf32>
    %224 = arith.divf %222, %223 : vector<2x32xf32>
    %c1_158 = arith.constant 1 : index
    %c4_159 = arith.constant 4 : index
    %c0_160 = arith.constant 0 : index
    %225 = vector.load %arg23[%c1_158, %c4_159, %c0_160] : memref<3x16x32xf32, #tpu.memory_space<vmem>>, vector<1x2x32xf32>
    %226 = vector.shape_cast %225 : vector<1x2x32xf32> to vector<2x32xf32>
    %227 = arith.addf %226, %215 : vector<2x32xf32>
    %228 = arith.negf %227 : vector<2x32xf32>
    %229 = math.exp %228 : vector<2x32xf32>
    %cst_161 = arith.constant 1.000000e+00 : f32
    %230 = vector.broadcast %cst_161 : f32 to vector<2x32xf32>
    %231 = arith.addf %230, %229 : vector<2x32xf32>
    %232 = arith.divf %230, %231 : vector<2x32xf32>
    %c2_162 = arith.constant 2 : index
    %c4_163 = arith.constant 4 : index
    %c0_164 = arith.constant 0 : index
    %233 = vector.load %arg23[%c2_162, %c4_163, %c0_164] : memref<3x16x32xf32, #tpu.memory_space<vmem>>, vector<1x2x32xf32>
    %234 = vector.shape_cast %233 : vector<1x2x32xf32> to vector<2x32xf32>
    %235 = vector.broadcast %74 : vector<1x32xf32> to vector<2x32xf32>
    %236 = arith.addf %216, %235 : vector<2x32xf32>
    %237 = arith.mulf %224, %236 : vector<2x32xf32>
    %238 = arith.addf %234, %237 : vector<2x32xf32>
    %239 = math.tanh %238 : vector<2x32xf32>
    %cst_165 = arith.constant 1.000000e+00 : f32
    %240 = vector.broadcast %cst_165 : f32 to vector<2x32xf32>
    %241 = arith.subf %240, %232 : vector<2x32xf32>
    %242 = arith.mulf %241, %239 : vector<2x32xf32>
    %243 = arith.mulf %232, %178 : vector<2x32xf32>
    %244 = arith.addf %242, %243 : vector<2x32xf32>
    %cst_166 = arith.constant dense<0.000000e+00> : vector<2x32xf32>
    %245 = tpu.matmul %213, %69, %cst_166 {dimension_numbers = #tpu.dot_dimension_numbers<[1], [0], [0], [1], [0, 0, 1, 1], [], []>} : vector<2x32xbf16>, vector<32x32xbf16>, vector<2x32xf32> -> vector<2x32xf32>
    %cst_167 = arith.constant dense<0.000000e+00> : vector<2x32xf32>
    %246 = tpu.matmul %213, %71, %cst_167 {dimension_numbers = #tpu.dot_dimension_numbers<[1], [0], [0], [1], [0, 0, 1, 1], [], []>} : vector<2x32xbf16>, vector<32x32xbf16>, vector<2x32xf32> -> vector<2x32xf32>
    %cst_168 = arith.constant dense<0.000000e+00> : vector<2x32xf32>
    %247 = tpu.matmul %213, %73, %cst_168 {dimension_numbers = #tpu.dot_dimension_numbers<[1], [0], [0], [1], [0, 0, 1, 1], [], []>} : vector<2x32xbf16>, vector<32x32xbf16>, vector<2x32xf32> -> vector<2x32xf32>
    %c0_169 = arith.constant 0 : index
    %c10 = arith.constant 10 : index
    %c0_170 = arith.constant 0 : index
    %248 = vector.load %arg24[%c0_169, %c10, %c0_170] : memref<3x16x32xf32, #tpu.memory_space<vmem>>, vector<1x2x32xf32>
    %249 = vector.shape_cast %248 : vector<1x2x32xf32> to vector<2x32xf32>
    %250 = arith.addf %249, %245 : vector<2x32xf32>
    %251 = arith.negf %250 : vector<2x32xf32>
    %252 = math.exp %251 : vector<2x32xf32>
    %cst_171 = arith.constant 1.000000e+00 : f32
    %253 = vector.broadcast %cst_171 : f32 to vector<2x32xf32>
    %254 = arith.addf %253, %252 : vector<2x32xf32>
    %255 = arith.divf %253, %254 : vector<2x32xf32>
    %c1_172 = arith.constant 1 : index
    %c10_173 = arith.constant 10 : index
    %c0_174 = arith.constant 0 : index
    %256 = vector.load %arg24[%c1_172, %c10_173, %c0_174] : memref<3x16x32xf32, #tpu.memory_space<vmem>>, vector<1x2x32xf32>
    %257 = vector.shape_cast %256 : vector<1x2x32xf32> to vector<2x32xf32>
    %258 = arith.addf %257, %246 : vector<2x32xf32>
    %259 = arith.negf %258 : vector<2x32xf32>
    %260 = math.exp %259 : vector<2x32xf32>
    %cst_175 = arith.constant 1.000000e+00 : f32
    %261 = vector.broadcast %cst_175 : f32 to vector<2x32xf32>
    %262 = arith.addf %261, %260 : vector<2x32xf32>
    %263 = arith.divf %261, %262 : vector<2x32xf32>
    %c2_176 = arith.constant 2 : index
    %c10_177 = arith.constant 10 : index
    %c0_178 = arith.constant 0 : index
    %264 = vector.load %arg24[%c2_176, %c10_177, %c0_178] : memref<3x16x32xf32, #tpu.memory_space<vmem>>, vector<1x2x32xf32>
    %265 = vector.shape_cast %264 : vector<1x2x32xf32> to vector<2x32xf32>
    %266 = vector.broadcast %75 : vector<1x32xf32> to vector<2x32xf32>
    %267 = arith.addf %247, %266 : vector<2x32xf32>
    %268 = arith.mulf %255, %267 : vector<2x32xf32>
    %269 = arith.addf %265, %268 : vector<2x32xf32>
    %270 = math.tanh %269 : vector<2x32xf32>
    %cst_179 = arith.constant 1.000000e+00 : f32
    %271 = vector.broadcast %cst_179 : f32 to vector<2x32xf32>
    %272 = arith.subf %271, %263 : vector<2x32xf32>
    %273 = arith.mulf %272, %270 : vector<2x32xf32>
    %274 = arith.mulf %263, %209 : vector<2x32xf32>
    %275 = arith.addf %273, %274 : vector<2x32xf32>
    %c4_180 = arith.constant 4 : index
    %c0_181 = arith.constant 0 : index
    %276 = vector.load %arg25[%c4_180, %c0_181] : memref<16x32xf32, #tpu.memory_space<vmem>>, vector<2x32xf32>
    tpu.vector_store %arg25[%c4_180, %c0_181], %244 {strides = array<i32>} : memref<16x32xf32, #tpu.memory_space<vmem>>, vector<2x32xf32>,
    %c10_182 = arith.constant 10 : index
    %c0_183 = arith.constant 0 : index
    %277 = vector.load %arg26[%c10_182, %c0_183] : memref<16x32xf32, #tpu.memory_space<vmem>>, vector<2x32xf32>
    tpu.vector_store %arg26[%c10_182, %c0_183], %275 {strides = array<i32>} : memref<16x32xf32, #tpu.memory_space<vmem>>, vector<2x32xf32>,
    %278 = arith.truncf %244 : vector<2x32xf32> to vector<2x32xbf16>
    %279 = arith.truncf %275 : vector<2x32xf32> to vector<2x32xbf16>
    %cst_184 = arith.constant dense<0.000000e+00> : vector<2x32xf32>
    %280 = tpu.matmul %278, %63, %cst_184 {dimension_numbers = #tpu.dot_dimension_numbers<[1], [0], [0], [1], [0, 0, 1, 1], [], []>} : vector<2x32xbf16>, vector<32x32xbf16>, vector<2x32xf32> -> vector<2x32xf32>
    %cst_185 = arith.constant dense<0.000000e+00> : vector<2x32xf32>
    %281 = tpu.matmul %278, %65, %cst_185 {dimension_numbers = #tpu.dot_dimension_numbers<[1], [0], [0], [1], [0, 0, 1, 1], [], []>} : vector<2x32xbf16>, vector<32x32xbf16>, vector<2x32xf32> -> vector<2x32xf32>
    %cst_186 = arith.constant dense<0.000000e+00> : vector<2x32xf32>
    %282 = tpu.matmul %278, %67, %cst_186 {dimension_numbers = #tpu.dot_dimension_numbers<[1], [0], [0], [1], [0, 0, 1, 1], [], []>} : vector<2x32xbf16>, vector<32x32xbf16>, vector<2x32xf32> -> vector<2x32xf32>
    %c0_187 = arith.constant 0 : index
    %c6 = arith.constant 6 : index
    %c0_188 = arith.constant 0 : index
    %283 = vector.load %arg23[%c0_187, %c6, %c0_188] : memref<3x16x32xf32, #tpu.memory_space<vmem>>, vector<1x2x32xf32>
    %284 = vector.shape_cast %283 : vector<1x2x32xf32> to vector<2x32xf32>
    %285 = arith.addf %284, %280 : vector<2x32xf32>
    %286 = arith.negf %285 : vector<2x32xf32>
    %287 = math.exp %286 : vector<2x32xf32>
    %cst_189 = arith.constant 1.000000e+00 : f32
    %288 = vector.broadcast %cst_189 : f32 to vector<2x32xf32>
    %289 = arith.addf %288, %287 : vector<2x32xf32>
    %290 = arith.divf %288, %289 : vector<2x32xf32>
    %c1_190 = arith.constant 1 : index
    %c6_191 = arith.constant 6 : index
    %c0_192 = arith.constant 0 : index
    %291 = vector.load %arg23[%c1_190, %c6_191, %c0_192] : memref<3x16x32xf32, #tpu.memory_space<vmem>>, vector<1x2x32xf32>
    %292 = vector.shape_cast %291 : vector<1x2x32xf32> to vector<2x32xf32>
    %293 = arith.addf %292, %281 : vector<2x32xf32>
    %294 = arith.negf %293 : vector<2x32xf32>
    %295 = math.exp %294 : vector<2x32xf32>
    %cst_193 = arith.constant 1.000000e+00 : f32
    %296 = vector.broadcast %cst_193 : f32 to vector<2x32xf32>
    %297 = arith.addf %296, %295 : vector<2x32xf32>
    %298 = arith.divf %296, %297 : vector<2x32xf32>
    %c2_194 = arith.constant 2 : index
    %c6_195 = arith.constant 6 : index
    %c0_196 = arith.constant 0 : index
    %299 = vector.load %arg23[%c2_194, %c6_195, %c0_196] : memref<3x16x32xf32, #tpu.memory_space<vmem>>, vector<1x2x32xf32>
    %300 = vector.shape_cast %299 : vector<1x2x32xf32> to vector<2x32xf32>
    %301 = vector.broadcast %74 : vector<1x32xf32> to vector<2x32xf32>
    %302 = arith.addf %282, %301 : vector<2x32xf32>
    %303 = arith.mulf %290, %302 : vector<2x32xf32>
    %304 = arith.addf %300, %303 : vector<2x32xf32>
    %305 = math.tanh %304 : vector<2x32xf32>
    %cst_197 = arith.constant 1.000000e+00 : f32
    %306 = vector.broadcast %cst_197 : f32 to vector<2x32xf32>
    %307 = arith.subf %306, %298 : vector<2x32xf32>
    %308 = arith.mulf %307, %305 : vector<2x32xf32>
    %309 = arith.mulf %298, %244 : vector<2x32xf32>
    %310 = arith.addf %308, %309 : vector<2x32xf32>
    %cst_198 = arith.constant dense<0.000000e+00> : vector<2x32xf32>
    %311 = tpu.matmul %279, %69, %cst_198 {dimension_numbers = #tpu.dot_dimension_numbers<[1], [0], [0], [1], [0, 0, 1, 1], [], []>} : vector<2x32xbf16>, vector<32x32xbf16>, vector<2x32xf32> -> vector<2x32xf32>
    %cst_199 = arith.constant dense<0.000000e+00> : vector<2x32xf32>
    %312 = tpu.matmul %279, %71, %cst_199 {dimension_numbers = #tpu.dot_dimension_numbers<[1], [0], [0], [1], [0, 0, 1, 1], [], []>} : vector<2x32xbf16>, vector<32x32xbf16>, vector<2x32xf32> -> vector<2x32xf32>
    %cst_200 = arith.constant dense<0.000000e+00> : vector<2x32xf32>
    %313 = tpu.matmul %279, %73, %cst_200 {dimension_numbers = #tpu.dot_dimension_numbers<[1], [0], [0], [1], [0, 0, 1, 1], [], []>} : vector<2x32xbf16>, vector<32x32xbf16>, vector<2x32xf32> -> vector<2x32xf32>
    %c0_201 = arith.constant 0 : index
    %c8 = arith.constant 8 : index
    %c0_202 = arith.constant 0 : index
    %314 = vector.load %arg24[%c0_201, %c8, %c0_202] : memref<3x16x32xf32, #tpu.memory_space<vmem>>, vector<1x2x32xf32>
    %315 = vector.shape_cast %314 : vector<1x2x32xf32> to vector<2x32xf32>
    %316 = arith.addf %315, %311 : vector<2x32xf32>
    %317 = arith.negf %316 : vector<2x32xf32>
    %318 = math.exp %317 : vector<2x32xf32>
    %cst_203 = arith.constant 1.000000e+00 : f32
    %319 = vector.broadcast %cst_203 : f32 to vector<2x32xf32>
    %320 = arith.addf %319, %318 : vector<2x32xf32>
    %321 = arith.divf %319, %320 : vector<2x32xf32>
    %c1_204 = arith.constant 1 : index
    %c8_205 = arith.constant 8 : index
    %c0_206 = arith.constant 0 : index
    %322 = vector.load %arg24[%c1_204, %c8_205, %c0_206] : memref<3x16x32xf32, #tpu.memory_space<vmem>>, vector<1x2x32xf32>
    %323 = vector.shape_cast %322 : vector<1x2x32xf32> to vector<2x32xf32>
    %324 = arith.addf %323, %312 : vector<2x32xf32>
    %325 = arith.negf %324 : vector<2x32xf32>
    %326 = math.exp %325 : vector<2x32xf32>
    %cst_207 = arith.constant 1.000000e+00 : f32
    %327 = vector.broadcast %cst_207 : f32 to vector<2x32xf32>
    %328 = arith.addf %327, %326 : vector<2x32xf32>
    %329 = arith.divf %327, %328 : vector<2x32xf32>
    %c2_208 = arith.constant 2 : index
    %c8_209 = arith.constant 8 : index
    %c0_210 = arith.constant 0 : index
    %330 = vector.load %arg24[%c2_208, %c8_209, %c0_210] : memref<3x16x32xf32, #tpu.memory_space<vmem>>, vector<1x2x32xf32>
    %331 = vector.shape_cast %330 : vector<1x2x32xf32> to vector<2x32xf32>
    %332 = vector.broadcast %75 : vector<1x32xf32> to vector<2x32xf32>
    %333 = arith.addf %313, %332 : vector<2x32xf32>
    %334 = arith.mulf %321, %333 : vector<2x32xf32>
    %335 = arith.addf %331, %334 : vector<2x32xf32>
    %336 = math.tanh %335 : vector<2x32xf32>
    %cst_211 = arith.constant 1.000000e+00 : f32
    %337 = vector.broadcast %cst_211 : f32 to vector<2x32xf32>
    %338 = arith.subf %337, %329 : vector<2x32xf32>
    %339 = arith.mulf %338, %336 : vector<2x32xf32>
    %340 = arith.mulf %329, %275 : vector<2x32xf32>
    %341 = arith.addf %339, %340 : vector<2x32xf32>
    %c6_212 = arith.constant 6 : index
    %c0_213 = arith.constant 0 : index
    %342 = vector.load %arg25[%c6_212, %c0_213] : memref<16x32xf32, #tpu.memory_space<vmem>>, vector<2x32xf32>
    tpu.vector_store %arg25[%c6_212, %c0_213], %310 {strides = array<i32>} : memref<16x32xf32, #tpu.memory_space<vmem>>, vector<2x32xf32>,
    %c8_214 = arith.constant 8 : index
    %c0_215 = arith.constant 0 : index
    %343 = vector.load %arg26[%c8_214, %c0_215] : memref<16x32xf32, #tpu.memory_space<vmem>>, vector<2x32xf32>
    tpu.vector_store %arg26[%c8_214, %c0_215], %341 {strides = array<i32>} : memref<16x32xf32, #tpu.memory_space<vmem>>, vector<2x32xf32>,
    %344 = arith.truncf %310 : vector<2x32xf32> to vector<2x32xbf16>
    %345 = arith.truncf %341 : vector<2x32xf32> to vector<2x32xbf16>
    %cst_216 = arith.constant dense<0.000000e+00> : vector<2x32xf32>
    %346 = tpu.matmul %344, %63, %cst_216 {dimension_numbers = #tpu.dot_dimension_numbers<[1], [0], [0], [1], [0, 0, 1, 1], [], []>} : vector<2x32xbf16>, vector<32x32xbf16>, vector<2x32xf32> -> vector<2x32xf32>
    %cst_217 = arith.constant dense<0.000000e+00> : vector<2x32xf32>
    %347 = tpu.matmul %344, %65, %cst_217 {dimension_numbers = #tpu.dot_dimension_numbers<[1], [0], [0], [1], [0, 0, 1, 1], [], []>} : vector<2x32xbf16>, vector<32x32xbf16>, vector<2x32xf32> -> vector<2x32xf32>
    %cst_218 = arith.constant dense<0.000000e+00> : vector<2x32xf32>
    %348 = tpu.matmul %344, %67, %cst_218 {dimension_numbers = #tpu.dot_dimension_numbers<[1], [0], [0], [1], [0, 0, 1, 1], [], []>} : vector<2x32xbf16>, vector<32x32xbf16>, vector<2x32xf32> -> vector<2x32xf32>
    %c0_219 = arith.constant 0 : index
    %c8_220 = arith.constant 8 : index
    %c0_221 = arith.constant 0 : index
    %349 = vector.load %arg23[%c0_219, %c8_220, %c0_221] : memref<3x16x32xf32, #tpu.memory_space<vmem>>, vector<1x2x32xf32>
    %350 = vector.shape_cast %349 : vector<1x2x32xf32> to vector<2x32xf32>
    %351 = arith.addf %350, %346 : vector<2x32xf32>
    %352 = arith.negf %351 : vector<2x32xf32>
    %353 = math.exp %352 : vector<2x32xf32>
    %cst_222 = arith.constant 1.000000e+00 : f32
    %354 = vector.broadcast %cst_222 : f32 to vector<2x32xf32>
    %355 = arith.addf %354, %353 : vector<2x32xf32>
    %356 = arith.divf %354, %355 : vector<2x32xf32>
    %c1_223 = arith.constant 1 : index
    %c8_224 = arith.constant 8 : index
    %c0_225 = arith.constant 0 : index
    %357 = vector.load %arg23[%c1_223, %c8_224, %c0_225] : memref<3x16x32xf32, #tpu.memory_space<vmem>>, vector<1x2x32xf32>
    %358 = vector.shape_cast %357 : vector<1x2x32xf32> to vector<2x32xf32>
    %359 = arith.addf %358, %347 : vector<2x32xf32>
    %360 = arith.negf %359 : vector<2x32xf32>
    %361 = math.exp %360 : vector<2x32xf32>
    %cst_226 = arith.constant 1.000000e+00 : f32
    %362 = vector.broadcast %cst_226 : f32 to vector<2x32xf32>
    %363 = arith.addf %362, %361 : vector<2x32xf32>
    %364 = arith.divf %362, %363 : vector<2x32xf32>
    %c2_227 = arith.constant 2 : index
    %c8_228 = arith.constant 8 : index
    %c0_229 = arith.constant 0 : index
    %365 = vector.load %arg23[%c2_227, %c8_228, %c0_229] : memref<3x16x32xf32, #tpu.memory_space<vmem>>, vector<1x2x32xf32>
    %366 = vector.shape_cast %365 : vector<1x2x32xf32> to vector<2x32xf32>
    %367 = vector.broadcast %74 : vector<1x32xf32> to vector<2x32xf32>
    %368 = arith.addf %348, %367 : vector<2x32xf32>
    %369 = arith.mulf %356, %368 : vector<2x32xf32>
    %370 = arith.addf %366, %369 : vector<2x32xf32>
    %371 = math.tanh %370 : vector<2x32xf32>
    %cst_230 = arith.constant 1.000000e+00 : f32
    %372 = vector.broadcast %cst_230 : f32 to vector<2x32xf32>
    %373 = arith.subf %372, %364 : vector<2x32xf32>
    %374 = arith.mulf %373, %371 : vector<2x32xf32>
    %375 = arith.mulf %364, %310 : vector<2x32xf32>
    %376 = arith.addf %374, %375 : vector<2x32xf32>
    %cst_231 = arith.constant dense<0.000000e+00> : vector<2x32xf32>
    %377 = tpu.matmul %345, %69, %cst_231 {dimension_numbers = #tpu.dot_dimension_numbers<[1], [0], [0], [1], [0, 0, 1, 1], [], []>} : vector<2x32xbf16>, vector<32x32xbf16>, vector<2x32xf32> -> vector<2x32xf32>
    %cst_232 = arith.constant dense<0.000000e+00> : vector<2x32xf32>
    %378 = tpu.matmul %345, %71, %cst_232 {dimension_numbers = #tpu.dot_dimension_numbers<[1], [0], [0], [1], [0, 0, 1, 1], [], []>} : vector<2x32xbf16>, vector<32x32xbf16>, vector<2x32xf32> -> vector<2x32xf32>
    %cst_233 = arith.constant dense<0.000000e+00> : vector<2x32xf32>
    %379 = tpu.matmul %345, %73, %cst_233 {dimension_numbers = #tpu.dot_dimension_numbers<[1], [0], [0], [1], [0, 0, 1, 1], [], []>} : vector<2x32xbf16>, vector<32x32xbf16>, vector<2x32xf32> -> vector<2x32xf32>
    %c0_234 = arith.constant 0 : index
    %c6_235 = arith.constant 6 : index
    %c0_236 = arith.constant 0 : index
    %380 = vector.load %arg24[%c0_234, %c6_235, %c0_236] : memref<3x16x32xf32, #tpu.memory_space<vmem>>, vector<1x2x32xf32>
    %381 = vector.shape_cast %380 : vector<1x2x32xf32> to vector<2x32xf32>
    %382 = arith.addf %381, %377 : vector<2x32xf32>
    %383 = arith.negf %382 : vector<2x32xf32>
    %384 = math.exp %383 : vector<2x32xf32>
    %cst_237 = arith.constant 1.000000e+00 : f32
    %385 = vector.broadcast %cst_237 : f32 to vector<2x32xf32>
    %386 = arith.addf %385, %384 : vector<2x32xf32>
    %387 = arith.divf %385, %386 : vector<2x32xf32>
    %c1_238 = arith.constant 1 : index
    %c6_239 = arith.constant 6 : index
    %c0_240 = arith.constant 0 : index
    %388 = vector.load %arg24[%c1_238, %c6_239, %c0_240] : memref<3x16x32xf32, #tpu.memory_space<vmem>>, vector<1x2x32xf32>
    %389 = vector.shape_cast %388 : vector<1x2x32xf32> to vector<2x32xf32>
    %390 = arith.addf %389, %378 : vector<2x32xf32>
    %391 = arith.negf %390 : vector<2x32xf32>
    %392 = math.exp %391 : vector<2x32xf32>
    %cst_241 = arith.constant 1.000000e+00 : f32
    %393 = vector.broadcast %cst_241 : f32 to vector<2x32xf32>
    %394 = arith.addf %393, %392 : vector<2x32xf32>
    %395 = arith.divf %393, %394 : vector<2x32xf32>
    %c2_242 = arith.constant 2 : index
    %c6_243 = arith.constant 6 : index
    %c0_244 = arith.constant 0 : index
    %396 = vector.load %arg24[%c2_242, %c6_243, %c0_244] : memref<3x16x32xf32, #tpu.memory_space<vmem>>, vector<1x2x32xf32>
    %397 = vector.shape_cast %396 : vector<1x2x32xf32> to vector<2x32xf32>
    %398 = vector.broadcast %75 : vector<1x32xf32> to vector<2x32xf32>
    %399 = arith.addf %379, %398 : vector<2x32xf32>
    %400 = arith.mulf %387, %399 : vector<2x32xf32>
    %401 = arith.addf %397, %400 : vector<2x32xf32>
    %402 = math.tanh %401 : vector<2x32xf32>
    %cst_245 = arith.constant 1.000000e+00 : f32
    %403 = vector.broadcast %cst_245 : f32 to vector<2x32xf32>
    %404 = arith.subf %403, %395 : vector<2x32xf32>
    %405 = arith.mulf %404, %402 : vector<2x32xf32>
    %406 = arith.mulf %395, %341 : vector<2x32xf32>
    %407 = arith.addf %405, %406 : vector<2x32xf32>
    %c8_246 = arith.constant 8 : index
    %c0_247 = arith.constant 0 : index
    %408 = vector.load %arg25[%c8_246, %c0_247] : memref<16x32xf32, #tpu.memory_space<vmem>>, vector<2x32xf32>
    tpu.vector_store %arg25[%c8_246, %c0_247], %376 {strides = array<i32>} : memref<16x32xf32, #tpu.memory_space<vmem>>, vector<2x32xf32>,
    %c6_248 = arith.constant 6 : index
    %c0_249 = arith.constant 0 : index
    %409 = vector.load %arg26[%c6_248, %c0_249] : memref<16x32xf32, #tpu.memory_space<vmem>>, vector<2x32xf32>
    tpu.vector_store %arg26[%c6_248, %c0_249], %407 {strides = array<i32>} : memref<16x32xf32, #tpu.memory_space<vmem>>, vector<2x32xf32>,
    %410 = arith.truncf %376 : vector<2x32xf32> to vector<2x32xbf16>
    %411 = arith.truncf %407 : vector<2x32xf32> to vector<2x32xbf16>
    %cst_250 = arith.constant dense<0.000000e+00> : vector<2x32xf32>
    %412 = tpu.matmul %410, %63, %cst_250 {dimension_numbers = #tpu.dot_dimension_numbers<[1], [0], [0], [1], [0, 0, 1, 1], [], []>} : vector<2x32xbf16>, vector<32x32xbf16>, vector<2x32xf32> -> vector<2x32xf32>
    %cst_251 = arith.constant dense<0.000000e+00> : vector<2x32xf32>
    %413 = tpu.matmul %410, %65, %cst_251 {dimension_numbers = #tpu.dot_dimension_numbers<[1], [0], [0], [1], [0, 0, 1, 1], [], []>} : vector<2x32xbf16>, vector<32x32xbf16>, vector<2x32xf32> -> vector<2x32xf32>
    %cst_252 = arith.constant dense<0.000000e+00> : vector<2x32xf32>
    %414 = tpu.matmul %410, %67, %cst_252 {dimension_numbers = #tpu.dot_dimension_numbers<[1], [0], [0], [1], [0, 0, 1, 1], [], []>} : vector<2x32xbf16>, vector<32x32xbf16>, vector<2x32xf32> -> vector<2x32xf32>
    %c0_253 = arith.constant 0 : index
    %c10_254 = arith.constant 10 : index
    %c0_255 = arith.constant 0 : index
    %415 = vector.load %arg23[%c0_253, %c10_254, %c0_255] : memref<3x16x32xf32, #tpu.memory_space<vmem>>, vector<1x2x32xf32>
    %416 = vector.shape_cast %415 : vector<1x2x32xf32> to vector<2x32xf32>
    %417 = arith.addf %416, %412 : vector<2x32xf32>
    %418 = arith.negf %417 : vector<2x32xf32>
    %419 = math.exp %418 : vector<2x32xf32>
    %cst_256 = arith.constant 1.000000e+00 : f32
    %420 = vector.broadcast %cst_256 : f32 to vector<2x32xf32>
    %421 = arith.addf %420, %419 : vector<2x32xf32>
    %422 = arith.divf %420, %421 : vector<2x32xf32>
    %c1_257 = arith.constant 1 : index
    %c10_258 = arith.constant 10 : index
    %c0_259 = arith.constant 0 : index
    %423 = vector.load %arg23[%c1_257, %c10_258, %c0_259] : memref<3x16x32xf32, #tpu.memory_space<vmem>>, vector<1x2x32xf32>
    %424 = vector.shape_cast %423 : vector<1x2x32xf32> to vector<2x32xf32>
    %425 = arith.addf %424, %413 : vector<2x32xf32>
    %426 = arith.negf %425 : vector<2x32xf32>
    %427 = math.exp %426 : vector<2x32xf32>
    %cst_260 = arith.constant 1.000000e+00 : f32
    %428 = vector.broadcast %cst_260 : f32 to vector<2x32xf32>
    %429 = arith.addf %428, %427 : vector<2x32xf32>
    %430 = arith.divf %428, %429 : vector<2x32xf32>
    %c2_261 = arith.constant 2 : index
    %c10_262 = arith.constant 10 : index
    %c0_263 = arith.constant 0 : index
    %431 = vector.load %arg23[%c2_261, %c10_262, %c0_263] : memref<3x16x32xf32, #tpu.memory_space<vmem>>, vector<1x2x32xf32>
    %432 = vector.shape_cast %431 : vector<1x2x32xf32> to vector<2x32xf32>
    %433 = vector.broadcast %74 : vector<1x32xf32> to vector<2x32xf32>
    %434 = arith.addf %414, %433 : vector<2x32xf32>
    %435 = arith.mulf %422, %434 : vector<2x32xf32>
    %436 = arith.addf %432, %435 : vector<2x32xf32>
    %437 = math.tanh %436 : vector<2x32xf32>
    %cst_264 = arith.constant 1.000000e+00 : f32
    %438 = vector.broadcast %cst_264 : f32 to vector<2x32xf32>
    %439 = arith.subf %438, %430 : vector<2x32xf32>
    %440 = arith.mulf %439, %437 : vector<2x32xf32>
    %441 = arith.mulf %430, %376 : vector<2x32xf32>
    %442 = arith.addf %440, %441 : vector<2x32xf32>
    %cst_265 = arith.constant dense<0.000000e+00> : vector<2x32xf32>
    %443 = tpu.matmul %411, %69, %cst_265 {dimension_numbers = #tpu.dot_dimension_numbers<[1], [0], [0], [1], [0, 0, 1, 1], [], []>} : vector<2x32xbf16>, vector<32x32xbf16>, vector<2x32xf32> -> vector<2x32xf32>
    %cst_266 = arith.constant dense<0.000000e+00> : vector<2x32xf32>
    %444 = tpu.matmul %411, %71, %cst_266 {dimension_numbers = #tpu.dot_dimension_numbers<[1], [0], [0], [1], [0, 0, 1, 1], [], []>} : vector<2x32xbf16>, vector<32x32xbf16>, vector<2x32xf32> -> vector<2x32xf32>
    %cst_267 = arith.constant dense<0.000000e+00> : vector<2x32xf32>
    %445 = tpu.matmul %411, %73, %cst_267 {dimension_numbers = #tpu.dot_dimension_numbers<[1], [0], [0], [1], [0, 0, 1, 1], [], []>} : vector<2x32xbf16>, vector<32x32xbf16>, vector<2x32xf32> -> vector<2x32xf32>
    %c0_268 = arith.constant 0 : index
    %c4_269 = arith.constant 4 : index
    %c0_270 = arith.constant 0 : index
    %446 = vector.load %arg24[%c0_268, %c4_269, %c0_270] : memref<3x16x32xf32, #tpu.memory_space<vmem>>, vector<1x2x32xf32>
    %447 = vector.shape_cast %446 : vector<1x2x32xf32> to vector<2x32xf32>
    %448 = arith.addf %447, %443 : vector<2x32xf32>
    %449 = arith.negf %448 : vector<2x32xf32>
    %450 = math.exp %449 : vector<2x32xf32>
    %cst_271 = arith.constant 1.000000e+00 : f32
    %451 = vector.broadcast %cst_271 : f32 to vector<2x32xf32>
    %452 = arith.addf %451, %450 : vector<2x32xf32>
    %453 = arith.divf %451, %452 : vector<2x32xf32>
    %c1_272 = arith.constant 1 : index
    %c4_273 = arith.constant 4 : index
    %c0_274 = arith.constant 0 : index
    %454 = vector.load %arg24[%c1_272, %c4_273, %c0_274] : memref<3x16x32xf32, #tpu.memory_space<vmem>>, vector<1x2x32xf32>
    %455 = vector.shape_cast %454 : vector<1x2x32xf32> to vector<2x32xf32>
    %456 = arith.addf %455, %444 : vector<2x32xf32>
    %457 = arith.negf %456 : vector<2x32xf32>
    %458 = math.exp %457 : vector<2x32xf32>
    %cst_275 = arith.constant 1.000000e+00 : f32
    %459 = vector.broadcast %cst_275 : f32 to vector<2x32xf32>
    %460 = arith.addf %459, %458 : vector<2x32xf32>
    %461 = arith.divf %459, %460 : vector<2x32xf32>
    %c2_276 = arith.constant 2 : index
    %c4_277 = arith.constant 4 : index
    %c0_278 = arith.constant 0 : index
    %462 = vector.load %arg24[%c2_276, %c4_277, %c0_278] : memref<3x16x32xf32, #tpu.memory_space<vmem>>, vector<1x2x32xf32>
    %463 = vector.shape_cast %462 : vector<1x2x32xf32> to vector<2x32xf32>
    %464 = vector.broadcast %75 : vector<1x32xf32> to vector<2x32xf32>
    %465 = arith.addf %445, %464 : vector<2x32xf32>
    %466 = arith.mulf %453, %465 : vector<2x32xf32>
    %467 = arith.addf %463, %466 : vector<2x32xf32>
    %468 = math.tanh %467 : vector<2x32xf32>
    %cst_279 = arith.constant 1.000000e+00 : f32
    %469 = vector.broadcast %cst_279 : f32 to vector<2x32xf32>
    %470 = arith.subf %469, %461 : vector<2x32xf32>
    %471 = arith.mulf %470, %468 : vector<2x32xf32>
    %472 = arith.mulf %461, %407 : vector<2x32xf32>
    %473 = arith.addf %471, %472 : vector<2x32xf32>
    %c10_280 = arith.constant 10 : index
    %c0_281 = arith.constant 0 : index
    %474 = vector.load %arg25[%c10_280, %c0_281] : memref<16x32xf32, #tpu.memory_space<vmem>>, vector<2x32xf32>
    tpu.vector_store %arg25[%c10_280, %c0_281], %442 {strides = array<i32>} : memref<16x32xf32, #tpu.memory_space<vmem>>, vector<2x32xf32>,
    %c4_282 = arith.constant 4 : index
    %c0_283 = arith.constant 0 : index
    %475 = vector.load %arg26[%c4_282, %c0_283] : memref<16x32xf32, #tpu.memory_space<vmem>>, vector<2x32xf32>
    tpu.vector_store %arg26[%c4_282, %c0_283], %473 {strides = array<i32>} : memref<16x32xf32, #tpu.memory_space<vmem>>, vector<2x32xf32>,
    %476 = arith.truncf %442 : vector<2x32xf32> to vector<2x32xbf16>
    %477 = arith.truncf %473 : vector<2x32xf32> to vector<2x32xbf16>
    %cst_284 = arith.constant dense<0.000000e+00> : vector<2x32xf32>
    %478 = tpu.matmul %476, %63, %cst_284 {dimension_numbers = #tpu.dot_dimension_numbers<[1], [0], [0], [1], [0, 0, 1, 1], [], []>} : vector<2x32xbf16>, vector<32x32xbf16>, vector<2x32xf32> -> vector<2x32xf32>
    %cst_285 = arith.constant dense<0.000000e+00> : vector<2x32xf32>
    %479 = tpu.matmul %476, %65, %cst_285 {dimension_numbers = #tpu.dot_dimension_numbers<[1], [0], [0], [1], [0, 0, 1, 1], [], []>} : vector<2x32xbf16>, vector<32x32xbf16>, vector<2x32xf32> -> vector<2x32xf32>
    %cst_286 = arith.constant dense<0.000000e+00> : vector<2x32xf32>
    %480 = tpu.matmul %476, %67, %cst_286 {dimension_numbers = #tpu.dot_dimension_numbers<[1], [0], [0], [1], [0, 0, 1, 1], [], []>} : vector<2x32xbf16>, vector<32x32xbf16>, vector<2x32xf32> -> vector<2x32xf32>
    %c0_287 = arith.constant 0 : index
    %c12_288 = arith.constant 12 : index
    %c0_289 = arith.constant 0 : index
    %481 = vector.load %arg23[%c0_287, %c12_288, %c0_289] : memref<3x16x32xf32, #tpu.memory_space<vmem>>, vector<1x2x32xf32>
    %482 = vector.shape_cast %481 : vector<1x2x32xf32> to vector<2x32xf32>
    %483 = arith.addf %482, %478 : vector<2x32xf32>
    %484 = arith.negf %483 : vector<2x32xf32>
    %485 = math.exp %484 : vector<2x32xf32>
    %cst_290 = arith.constant 1.000000e+00 : f32
    %486 = vector.broadcast %cst_290 : f32 to vector<2x32xf32>
    %487 = arith.addf %486, %485 : vector<2x32xf32>
    %488 = arith.divf %486, %487 : vector<2x32xf32>
    %c1_291 = arith.constant 1 : index
    %c12_292 = arith.constant 12 : index
    %c0_293 = arith.constant 0 : index
    %489 = vector.load %arg23[%c1_291, %c12_292, %c0_293] : memref<3x16x32xf32, #tpu.memory_space<vmem>>, vector<1x2x32xf32>
    %490 = vector.shape_cast %489 : vector<1x2x32xf32> to vector<2x32xf32>
    %491 = arith.addf %490, %479 : vector<2x32xf32>
    %492 = arith.negf %491 : vector<2x32xf32>
    %493 = math.exp %492 : vector<2x32xf32>
    %cst_294 = arith.constant 1.000000e+00 : f32
    %494 = vector.broadcast %cst_294 : f32 to vector<2x32xf32>
    %495 = arith.addf %494, %493 : vector<2x32xf32>
    %496 = arith.divf %494, %495 : vector<2x32xf32>
    %c2_295 = arith.constant 2 : index
    %c12_296 = arith.constant 12 : index
    %c0_297 = arith.constant 0 : index
    %497 = vector.load %arg23[%c2_295, %c12_296, %c0_297] : memref<3x16x32xf32, #tpu.memory_space<vmem>>, vector<1x2x32xf32>
    %498 = vector.shape_cast %497 : vector<1x2x32xf32> to vector<2x32xf32>
    %499 = vector.broadcast %74 : vector<1x32xf32> to vector<2x32xf32>
    %500 = arith.addf %480, %499 : vector<2x32xf32>
    %501 = arith.mulf %488, %500 : vector<2x32xf32>
    %502 = arith.addf %498, %501 : vector<2x32xf32>
    %503 = math.tanh %502 : vector<2x32xf32>
    %cst_298 = arith.constant 1.000000e+00 : f32
    %504 = vector.broadcast %cst_298 : f32 to vector<2x32xf32>
    %505 = arith.subf %504, %496 : vector<2x32xf32>
    %506 = arith.mulf %505, %503 : vector<2x32xf32>
    %507 = arith.mulf %496, %442 : vector<2x32xf32>
    %508 = arith.addf %506, %507 : vector<2x32xf32>
    %cst_299 = arith.constant dense<0.000000e+00> : vector<2x32xf32>
    %509 = tpu.matmul %477, %69, %cst_299 {dimension_numbers = #tpu.dot_dimension_numbers<[1], [0], [0], [1], [0, 0, 1, 1], [], []>} : vector<2x32xbf16>, vector<32x32xbf16>, vector<2x32xf32> -> vector<2x32xf32>
    %cst_300 = arith.constant dense<0.000000e+00> : vector<2x32xf32>
    %510 = tpu.matmul %477, %71, %cst_300 {dimension_numbers = #tpu.dot_dimension_numbers<[1], [0], [0], [1], [0, 0, 1, 1], [], []>} : vector<2x32xbf16>, vector<32x32xbf16>, vector<2x32xf32> -> vector<2x32xf32>
    %cst_301 = arith.constant dense<0.000000e+00> : vector<2x32xf32>
    %511 = tpu.matmul %477, %73, %cst_301 {dimension_numbers = #tpu.dot_dimension_numbers<[1], [0], [0], [1], [0, 0, 1, 1], [], []>} : vector<2x32xbf16>, vector<32x32xbf16>, vector<2x32xf32> -> vector<2x32xf32>
    %c0_302 = arith.constant 0 : index
    %c2_303 = arith.constant 2 : index
    %c0_304 = arith.constant 0 : index
    %512 = vector.load %arg24[%c0_302, %c2_303, %c0_304] : memref<3x16x32xf32, #tpu.memory_space<vmem>>, vector<1x2x32xf32>
    %513 = vector.shape_cast %512 : vector<1x2x32xf32> to vector<2x32xf32>
    %514 = arith.addf %513, %509 : vector<2x32xf32>
    %515 = arith.negf %514 : vector<2x32xf32>
    %516 = math.exp %515 : vector<2x32xf32>
    %cst_305 = arith.constant 1.000000e+00 : f32
    %517 = vector.broadcast %cst_305 : f32 to vector<2x32xf32>
    %518 = arith.addf %517, %516 : vector<2x32xf32>
    %519 = arith.divf %517, %518 : vector<2x32xf32>
    %c1_306 = arith.constant 1 : index
    %c2_307 = arith.constant 2 : index
    %c0_308 = arith.constant 0 : index
    %520 = vector.load %arg24[%c1_306, %c2_307, %c0_308] : memref<3x16x32xf32, #tpu.memory_space<vmem>>, vector<1x2x32xf32>
    %521 = vector.shape_cast %520 : vector<1x2x32xf32> to vector<2x32xf32>
    %522 = arith.addf %521, %510 : vector<2x32xf32>
    %523 = arith.negf %522 : vector<2x32xf32>
    %524 = math.exp %523 : vector<2x32xf32>
    %cst_309 = arith.constant 1.000000e+00 : f32
    %525 = vector.broadcast %cst_309 : f32 to vector<2x32xf32>
    %526 = arith.addf %525, %524 : vector<2x32xf32>
    %527 = arith.divf %525, %526 : vector<2x32xf32>
    %c2_310 = arith.constant 2 : index
    %c2_311 = arith.constant 2 : index
    %c0_312 = arith.constant 0 : index
    %528 = vector.load %arg24[%c2_310, %c2_311, %c0_312] : memref<3x16x32xf32, #tpu.memory_space<vmem>>, vector<1x2x32xf32>
    %529 = vector.shape_cast %528 : vector<1x2x32xf32> to vector<2x32xf32>
    %530 = vector.broadcast %75 : vector<1x32xf32> to vector<2x32xf32>
    %531 = arith.addf %511, %530 : vector<2x32xf32>
    %532 = arith.mulf %519, %531 : vector<2x32xf32>
    %533 = arith.addf %529, %532 : vector<2x32xf32>
    %534 = math.tanh %533 : vector<2x32xf32>
    %cst_313 = arith.constant 1.000000e+00 : f32
    %535 = vector.broadcast %cst_313 : f32 to vector<2x32xf32>
    %536 = arith.subf %535, %527 : vector<2x32xf32>
    %537 = arith.mulf %536, %534 : vector<2x32xf32>
    %538 = arith.mulf %527, %473 : vector<2x32xf32>
    %539 = arith.addf %537, %538 : vector<2x32xf32>
    %c12_314 = arith.constant 12 : index
    %c0_315 = arith.constant 0 : index
    %540 = vector.load %arg25[%c12_314, %c0_315] : memref<16x32xf32, #tpu.memory_space<vmem>>, vector<2x32xf32>
    tpu.vector_store %arg25[%c12_314, %c0_315], %508 {strides = array<i32>} : memref<16x32xf32, #tpu.memory_space<vmem>>, vector<2x32xf32>,
    %c2_316 = arith.constant 2 : index
    %c0_317 = arith.constant 0 : index
    %541 = vector.load %arg26[%c2_316, %c0_317] : memref<16x32xf32, #tpu.memory_space<vmem>>, vector<2x32xf32>
    tpu.vector_store %arg26[%c2_316, %c0_317], %539 {strides = array<i32>} : memref<16x32xf32, #tpu.memory_space<vmem>>, vector<2x32xf32>,
    %542 = arith.truncf %508 : vector<2x32xf32> to vector<2x32xbf16>
    %543 = arith.truncf %539 : vector<2x32xf32> to vector<2x32xbf16>
    %cst_318 = arith.constant dense<0.000000e+00> : vector<2x32xf32>
    %544 = tpu.matmul %542, %63, %cst_318 {dimension_numbers = #tpu.dot_dimension_numbers<[1], [0], [0], [1], [0, 0, 1, 1], [], []>} : vector<2x32xbf16>, vector<32x32xbf16>, vector<2x32xf32> -> vector<2x32xf32>
    %cst_319 = arith.constant dense<0.000000e+00> : vector<2x32xf32>
    %545 = tpu.matmul %542, %65, %cst_319 {dimension_numbers = #tpu.dot_dimension_numbers<[1], [0], [0], [1], [0, 0, 1, 1], [], []>} : vector<2x32xbf16>, vector<32x32xbf16>, vector<2x32xf32> -> vector<2x32xf32>
    %cst_320 = arith.constant dense<0.000000e+00> : vector<2x32xf32>
    %546 = tpu.matmul %542, %67, %cst_320 {dimension_numbers = #tpu.dot_dimension_numbers<[1], [0], [0], [1], [0, 0, 1, 1], [], []>} : vector<2x32xbf16>, vector<32x32xbf16>, vector<2x32xf32> -> vector<2x32xf32>
    %c0_321 = arith.constant 0 : index
    %c14_322 = arith.constant 14 : index
    %c0_323 = arith.constant 0 : index
    %547 = vector.load %arg23[%c0_321, %c14_322, %c0_323] : memref<3x16x32xf32, #tpu.memory_space<vmem>>, vector<1x2x32xf32>
    %548 = vector.shape_cast %547 : vector<1x2x32xf32> to vector<2x32xf32>
    %549 = arith.addf %548, %544 : vector<2x32xf32>
    %550 = arith.negf %549 : vector<2x32xf32>
    %551 = math.exp %550 : vector<2x32xf32>
    %cst_324 = arith.constant 1.000000e+00 : f32
    %552 = vector.broadcast %cst_324 : f32 to vector<2x32xf32>
    %553 = arith.addf %552, %551 : vector<2x32xf32>
    %554 = arith.divf %552, %553 : vector<2x32xf32>
    %c1_325 = arith.constant 1 : index
    %c14_326 = arith.constant 14 : index
    %c0_327 = arith.constant 0 : index
    %555 = vector.load %arg23[%c1_325, %c14_326, %c0_327] : memref<3x16x32xf32, #tpu.memory_space<vmem>>, vector<1x2x32xf32>
    %556 = vector.shape_cast %555 : vector<1x2x32xf32> to vector<2x32xf32>
    %557 = arith.addf %556, %545 : vector<2x32xf32>
    %558 = arith.negf %557 : vector<2x32xf32>
    %559 = math.exp %558 : vector<2x32xf32>
    %cst_328 = arith.constant 1.000000e+00 : f32
    %560 = vector.broadcast %cst_328 : f32 to vector<2x32xf32>
    %561 = arith.addf %560, %559 : vector<2x32xf32>
    %562 = arith.divf %560, %561 : vector<2x32xf32>
    %c2_329 = arith.constant 2 : index
    %c14_330 = arith.constant 14 : index
    %c0_331 = arith.constant 0 : index
    %563 = vector.load %arg23[%c2_329, %c14_330, %c0_331] : memref<3x16x32xf32, #tpu.memory_space<vmem>>, vector<1x2x32xf32>
    %564 = vector.shape_cast %563 : vector<1x2x32xf32> to vector<2x32xf32>
    %565 = vector.broadcast %74 : vector<1x32xf32> to vector<2x32xf32>
    %566 = arith.addf %546, %565 : vector<2x32xf32>
    %567 = arith.mulf %554, %566 : vector<2x32xf32>
    %568 = arith.addf %564, %567 : vector<2x32xf32>
    %569 = math.tanh %568 : vector<2x32xf32>
    %cst_332 = arith.constant 1.000000e+00 : f32
    %570 = vector.broadcast %cst_332 : f32 to vector<2x32xf32>
    %571 = arith.subf %570, %562 : vector<2x32xf32>
    %572 = arith.mulf %571, %569 : vector<2x32xf32>
    %573 = arith.mulf %562, %508 : vector<2x32xf32>
    %574 = arith.addf %572, %573 : vector<2x32xf32>
    %cst_333 = arith.constant dense<0.000000e+00> : vector<2x32xf32>
    %575 = tpu.matmul %543, %69, %cst_333 {dimension_numbers = #tpu.dot_dimension_numbers<[1], [0], [0], [1], [0, 0, 1, 1], [], []>} : vector<2x32xbf16>, vector<32x32xbf16>, vector<2x32xf32> -> vector<2x32xf32>
    %cst_334 = arith.constant dense<0.000000e+00> : vector<2x32xf32>
    %576 = tpu.matmul %543, %71, %cst_334 {dimension_numbers = #tpu.dot_dimension_numbers<[1], [0], [0], [1], [0, 0, 1, 1], [], []>} : vector<2x32xbf16>, vector<32x32xbf16>, vector<2x32xf32> -> vector<2x32xf32>
    %cst_335 = arith.constant dense<0.000000e+00> : vector<2x32xf32>
    %577 = tpu.matmul %543, %73, %cst_335 {dimension_numbers = #tpu.dot_dimension_numbers<[1], [0], [0], [1], [0, 0, 1, 1], [], []>} : vector<2x32xbf16>, vector<32x32xbf16>, vector<2x32xf32> -> vector<2x32xf32>
    %c0_336 = arith.constant 0 : index
    %c0_337 = arith.constant 0 : index
    %c0_338 = arith.constant 0 : index
    %578 = vector.load %arg24[%c0_336, %c0_337, %c0_338] : memref<3x16x32xf32, #tpu.memory_space<vmem>>, vector<1x2x32xf32>
    %579 = vector.shape_cast %578 : vector<1x2x32xf32> to vector<2x32xf32>
    %580 = arith.addf %579, %575 : vector<2x32xf32>
    %581 = arith.negf %580 : vector<2x32xf32>
    %582 = math.exp %581 : vector<2x32xf32>
    %cst_339 = arith.constant 1.000000e+00 : f32
    %583 = vector.broadcast %cst_339 : f32 to vector<2x32xf32>
    %584 = arith.addf %583, %582 : vector<2x32xf32>
    %585 = arith.divf %583, %584 : vector<2x32xf32>
    %c1_340 = arith.constant 1 : index
    %c0_341 = arith.constant 0 : index
    %c0_342 = arith.constant 0 : index
    %586 = vector.load %arg24[%c1_340, %c0_341, %c0_342] : memref<3x16x32xf32, #tpu.memory_space<vmem>>, vector<1x2x32xf32>
    %587 = vector.shape_cast %586 : vector<1x2x32xf32> to vector<2x32xf32>
    %588 = arith.addf %587, %576 : vector<2x32xf32>
    %589 = arith.negf %588 : vector<2x32xf32>
    %590 = math.exp %589 : vector<2x32xf32>
    %cst_343 = arith.constant 1.000000e+00 : f32
    %591 = vector.broadcast %cst_343 : f32 to vector<2x32xf32>
    %592 = arith.addf %591, %590 : vector<2x32xf32>
    %593 = arith.divf %591, %592 : vector<2x32xf32>
    %c2_344 = arith.constant 2 : index
    %c0_345 = arith.constant 0 : index
    %c0_346 = arith.constant 0 : index
    %594 = vector.load %arg24[%c2_344, %c0_345, %c0_346] : memref<3x16x32xf32, #tpu.memory_space<vmem>>, vector<1x2x32xf32>
    %595 = vector.shape_cast %594 : vector<1x2x32xf32> to vector<2x32xf32>
    %596 = vector.broadcast %75 : vector<1x32xf32> to vector<2x32xf32>
    %597 = arith.addf %577, %596 : vector<2x32xf32>
    %598 = arith.mulf %585, %597 : vector<2x32xf32>
    %599 = arith.addf %595, %598 : vector<2x32xf32>
    %600 = math.tanh %599 : vector<2x32xf32>
    %cst_347 = arith.constant 1.000000e+00 : f32
    %601 = vector.broadcast %cst_347 : f32 to vector<2x32xf32>
    %602 = arith.subf %601, %593 : vector<2x32xf32>
    %603 = arith.mulf %602, %600 : vector<2x32xf32>
    %604 = arith.mulf %593, %539 : vector<2x32xf32>
    %605 = arith.addf %603, %604 : vector<2x32xf32>
    %c14_348 = arith.constant 14 : index
    %c0_349 = arith.constant 0 : index
    %606 = vector.load %arg25[%c14_348, %c0_349] : memref<16x32xf32, #tpu.memory_space<vmem>>, vector<2x32xf32>
    tpu.vector_store %arg25[%c14_348, %c0_349], %574 {strides = array<i32>} : memref<16x32xf32, #tpu.memory_space<vmem>>, vector<2x32xf32>,
    %c0_350 = arith.constant 0 : index
    %c0_351 = arith.constant 0 : index
    %607 = vector.load %arg26[%c0_350, %c0_351] : memref<16x32xf32, #tpu.memory_space<vmem>>, vector<2x32xf32>
    tpu.vector_store %arg26[%c0_350, %c0_351], %605 {strides = array<i32>} : memref<16x32xf32, #tpu.memory_space<vmem>>, vector<2x32xf32>,
    %c0_352 = arith.constant 0 : index
    %c0_353 = arith.constant 0 : index
    %c0_354 = arith.constant 0 : index
    %608 = vector.load %arg22[%c0_352, %c0_353, %c0_354] : memref<4x2x32xf32, #tpu.memory_space<vmem>>, vector<1x2x32xf32>
    %609 = vector.shape_cast %608 : vector<1x2x32xf32> to vector<2x32xf32>
    %610 = vector.shape_cast %574 : vector<2x32xf32> to vector<1x2x32xf32>
    tpu.vector_store %arg22[%c0_352, %c0_353, %c0_354], %610 {strides = array<i32>} : memref<4x2x32xf32, #tpu.memory_space<vmem>>, vector<1x2x32xf32>,
    %c1_355 = arith.constant 1 : index
    %c0_356 = arith.constant 0 : index
    %c0_357 = arith.constant 0 : index
    %611 = vector.load %arg22[%c1_355, %c0_356, %c0_357] : memref<4x2x32xf32, #tpu.memory_space<vmem>>, vector<1x2x32xf32>
    %612 = vector.shape_cast %611 : vector<1x2x32xf32> to vector<2x32xf32>
    %613 = vector.shape_cast %605 : vector<2x32xf32> to vector<1x2x32xf32>
    tpu.vector_store %arg22[%c1_355, %c0_356, %c0_357], %613 {strides = array<i32>} : memref<4x2x32xf32, #tpu.memory_space<vmem>>, vector<1x2x32xf32>,
    %c0_358 = arith.constant 0 : index
    %c0_359 = arith.constant 0 : index
    %614 = vector.load %arg25[%c0_358, %c0_359] : memref<16x32xf32, #tpu.memory_space<vmem>>, vector<16x32xf32>
    %c0_360 = arith.constant 0 : index
    %c0_361 = arith.constant 0 : index
    %615 = vector.load %arg26[%c0_360, %c0_361] : memref<16x32xf32, #tpu.memory_space<vmem>>, vector<16x32xf32>
    %616 = tpu.concatenate %614, %615 in 1 : vector<16x32xf32>, vector<16x32xf32> -> vector<16x64xf32>
    %617 = arith.truncf %616 : vector<16x64xf32> to vector<16x64xbf16>
    %c0_362 = arith.constant 0 : index
    %c0_363 = arith.constant 0 : index
    %c0_364 = arith.constant 0 : index
    %618 = vector.load %arg10[%c0_362, %c0_363, %c0_364] : memref<3x64x32xbf16, #tpu.memory_space<vmem>>, vector<1x64x32xbf16>
    %619 = vector.shape_cast %618 : vector<1x64x32xbf16> to vector<64x32xbf16>
    %cst_365 = arith.constant dense<0.000000e+00> : vector<16x32xf32>
    %620 = tpu.matmul %617, %619, %cst_365 {dimension_numbers = #tpu.dot_dimension_numbers<[1], [0], [0], [1], [0, 0, 1, 1], [], []>} : vector<16x64xbf16>, vector<64x32xbf16>, vector<16x32xf32> -> vector<16x32xf32>
    %c0_366 = arith.constant 0 : index
    %c0_367 = arith.constant 0 : index
    %c0_368 = arith.constant 0 : index
    %621 = vector.load %arg12[%c0_366, %c0_367, %c0_368] : memref<3x1x32xf32, #tpu.memory_space<vmem>>, vector<1x1x32xf32>
    %622 = vector.shape_cast %621 : vector<1x1x32xf32> to vector<1x32xf32>
    %623 = vector.broadcast %622 : vector<1x32xf32> to vector<16x32xf32>
    %624 = arith.addf %620, %623 : vector<16x32xf32>
    %c0_369 = arith.constant 0 : index
    %c0_370 = arith.constant 0 : index
    %c0_371 = arith.constant 0 : index
    %625 = vector.load %arg23[%c0_369, %c0_370, %c0_371] : memref<3x16x32xf32, #tpu.memory_space<vmem>>, vector<1x16x32xf32>
    %626 = vector.shape_cast %625 : vector<1x16x32xf32> to vector<16x32xf32>
    %627 = vector.shape_cast %624 : vector<16x32xf32> to vector<1x16x32xf32>
    tpu.vector_store %arg23[%c0_369, %c0_370, %c0_371], %627 {strides = array<i32>} : memref<3x16x32xf32, #tpu.memory_space<vmem>>, vector<1x16x32xf32>,
    %c1_372 = arith.constant 1 : index
    %c0_373 = arith.constant 0 : index
    %c0_374 = arith.constant 0 : index
    %628 = vector.load %arg10[%c1_372, %c0_373, %c0_374] : memref<3x64x32xbf16, #tpu.memory_space<vmem>>, vector<1x64x32xbf16>
    %629 = vector.shape_cast %628 : vector<1x64x32xbf16> to vector<64x32xbf16>
    %cst_375 = arith.constant dense<0.000000e+00> : vector<16x32xf32>
    %630 = tpu.matmul %617, %629, %cst_375 {dimension_numbers = #tpu.dot_dimension_numbers<[1], [0], [0], [1], [0, 0, 1, 1], [], []>} : vector<16x64xbf16>, vector<64x32xbf16>, vector<16x32xf32> -> vector<16x32xf32>
    %c1_376 = arith.constant 1 : index
    %c0_377 = arith.constant 0 : index
    %c0_378 = arith.constant 0 : index
    %631 = vector.load %arg12[%c1_376, %c0_377, %c0_378] : memref<3x1x32xf32, #tpu.memory_space<vmem>>, vector<1x1x32xf32>
    %632 = vector.shape_cast %631 : vector<1x1x32xf32> to vector<1x32xf32>
    %633 = vector.broadcast %632 : vector<1x32xf32> to vector<16x32xf32>
    %634 = arith.addf %630, %633 : vector<16x32xf32>
    %c1_379 = arith.constant 1 : index
    %c0_380 = arith.constant 0 : index
    %c0_381 = arith.constant 0 : index
    %635 = vector.load %arg23[%c1_379, %c0_380, %c0_381] : memref<3x16x32xf32, #tpu.memory_space<vmem>>, vector<1x16x32xf32>
    %636 = vector.shape_cast %635 : vector<1x16x32xf32> to vector<16x32xf32>
    %637 = vector.shape_cast %634 : vector<16x32xf32> to vector<1x16x32xf32>
    tpu.vector_store %arg23[%c1_379, %c0_380, %c0_381], %637 {strides = array<i32>} : memref<3x16x32xf32, #tpu.memory_space<vmem>>, vector<1x16x32xf32>,
    %c2_382 = arith.constant 2 : index
    %c0_383 = arith.constant 0 : index
    %c0_384 = arith.constant 0 : index
    %638 = vector.load %arg10[%c2_382, %c0_383, %c0_384] : memref<3x64x32xbf16, #tpu.memory_space<vmem>>, vector<1x64x32xbf16>
    %639 = vector.shape_cast %638 : vector<1x64x32xbf16> to vector<64x32xbf16>
    %cst_385 = arith.constant dense<0.000000e+00> : vector<16x32xf32>
    %640 = tpu.matmul %617, %639, %cst_385 {dimension_numbers = #tpu.dot_dimension_numbers<[1], [0], [0], [1], [0, 0, 1, 1], [], []>} : vector<16x64xbf16>, vector<64x32xbf16>, vector<16x32xf32> -> vector<16x32xf32>
    %c2_386 = arith.constant 2 : index
    %c0_387 = arith.constant 0 : index
    %c0_388 = arith.constant 0 : index
    %641 = vector.load %arg12[%c2_386, %c0_387, %c0_388] : memref<3x1x32xf32, #tpu.memory_space<vmem>>, vector<1x1x32xf32>
    %642 = vector.shape_cast %641 : vector<1x1x32xf32> to vector<1x32xf32>
    %643 = vector.broadcast %642 : vector<1x32xf32> to vector<16x32xf32>
    %644 = arith.addf %640, %643 : vector<16x32xf32>
    %c2_389 = arith.constant 2 : index
    %c0_390 = arith.constant 0 : index
    %c0_391 = arith.constant 0 : index
    %645 = vector.load %arg23[%c2_389, %c0_390, %c0_391] : memref<3x16x32xf32, #tpu.memory_space<vmem>>, vector<1x16x32xf32>
    %646 = vector.shape_cast %645 : vector<1x16x32xf32> to vector<16x32xf32>
    %647 = vector.shape_cast %644 : vector<16x32xf32> to vector<1x16x32xf32>
    tpu.vector_store %arg23[%c2_389, %c0_390, %c0_391], %647 {strides = array<i32>} : memref<3x16x32xf32, #tpu.memory_space<vmem>>, vector<1x16x32xf32>,
    %c0_392 = arith.constant 0 : index
    %c0_393 = arith.constant 0 : index
    %c0_394 = arith.constant 0 : index
    %648 = vector.load %arg14[%c0_392, %c0_393, %c0_394] : memref<3x64x32xbf16, #tpu.memory_space<vmem>>, vector<1x64x32xbf16>
    %649 = vector.shape_cast %648 : vector<1x64x32xbf16> to vector<64x32xbf16>
    %cst_395 = arith.constant dense<0.000000e+00> : vector<16x32xf32>
    %650 = tpu.matmul %617, %649, %cst_395 {dimension_numbers = #tpu.dot_dimension_numbers<[1], [0], [0], [1], [0, 0, 1, 1], [], []>} : vector<16x64xbf16>, vector<64x32xbf16>, vector<16x32xf32> -> vector<16x32xf32>
    %c0_396 = arith.constant 0 : index
    %c0_397 = arith.constant 0 : index
    %c0_398 = arith.constant 0 : index
    %651 = vector.load %arg16[%c0_396, %c0_397, %c0_398] : memref<3x1x32xf32, #tpu.memory_space<vmem>>, vector<1x1x32xf32>
    %652 = vector.shape_cast %651 : vector<1x1x32xf32> to vector<1x32xf32>
    %653 = vector.broadcast %652 : vector<1x32xf32> to vector<16x32xf32>
    %654 = arith.addf %650, %653 : vector<16x32xf32>
    %c0_399 = arith.constant 0 : index
    %c0_400 = arith.constant 0 : index
    %c0_401 = arith.constant 0 : index
    %655 = vector.load %arg24[%c0_399, %c0_400, %c0_401] : memref<3x16x32xf32, #tpu.memory_space<vmem>>, vector<1x16x32xf32>
    %656 = vector.shape_cast %655 : vector<1x16x32xf32> to vector<16x32xf32>
    %657 = vector.shape_cast %654 : vector<16x32xf32> to vector<1x16x32xf32>
    tpu.vector_store %arg24[%c0_399, %c0_400, %c0_401], %657 {strides = array<i32>} : memref<3x16x32xf32, #tpu.memory_space<vmem>>, vector<1x16x32xf32>,
    %c1_402 = arith.constant 1 : index
    %c0_403 = arith.constant 0 : index
    %c0_404 = arith.constant 0 : index
    %658 = vector.load %arg14[%c1_402, %c0_403, %c0_404] : memref<3x64x32xbf16, #tpu.memory_space<vmem>>, vector<1x64x32xbf16>
    %659 = vector.shape_cast %658 : vector<1x64x32xbf16> to vector<64x32xbf16>
    %cst_405 = arith.constant dense<0.000000e+00> : vector<16x32xf32>
    %660 = tpu.matmul %617, %659, %cst_405 {dimension_numbers = #tpu.dot_dimension_numbers<[1], [0], [0], [1], [0, 0, 1, 1], [], []>} : vector<16x64xbf16>, vector<64x32xbf16>, vector<16x32xf32> -> vector<16x32xf32>
    %c1_406 = arith.constant 1 : index
    %c0_407 = arith.constant 0 : index
    %c0_408 = arith.constant 0 : index
    %661 = vector.load %arg16[%c1_406, %c0_407, %c0_408] : memref<3x1x32xf32, #tpu.memory_space<vmem>>, vector<1x1x32xf32>
    %662 = vector.shape_cast %661 : vector<1x1x32xf32> to vector<1x32xf32>
    %663 = vector.broadcast %662 : vector<1x32xf32> to vector<16x32xf32>
    %664 = arith.addf %660, %663 : vector<16x32xf32>
    %c1_409 = arith.constant 1 : index
    %c0_410 = arith.constant 0 : index
    %c0_411 = arith.constant 0 : index
    %665 = vector.load %arg24[%c1_409, %c0_410, %c0_411] : memref<3x16x32xf32, #tpu.memory_space<vmem>>, vector<1x16x32xf32>
    %666 = vector.shape_cast %665 : vector<1x16x32xf32> to vector<16x32xf32>
    %667 = vector.shape_cast %664 : vector<16x32xf32> to vector<1x16x32xf32>
    tpu.vector_store %arg24[%c1_409, %c0_410, %c0_411], %667 {strides = array<i32>} : memref<3x16x32xf32, #tpu.memory_space<vmem>>, vector<1x16x32xf32>,
    %c2_412 = arith.constant 2 : index
    %c0_413 = arith.constant 0 : index
    %c0_414 = arith.constant 0 : index
    %668 = vector.load %arg14[%c2_412, %c0_413, %c0_414] : memref<3x64x32xbf16, #tpu.memory_space<vmem>>, vector<1x64x32xbf16>
    %669 = vector.shape_cast %668 : vector<1x64x32xbf16> to vector<64x32xbf16>
    %cst_415 = arith.constant dense<0.000000e+00> : vector<16x32xf32>
    %670 = tpu.matmul %617, %669, %cst_415 {dimension_numbers = #tpu.dot_dimension_numbers<[1], [0], [0], [1], [0, 0, 1, 1], [], []>} : vector<16x64xbf16>, vector<64x32xbf16>, vector<16x32xf32> -> vector<16x32xf32>
    %c2_416 = arith.constant 2 : index
    %c0_417 = arith.constant 0 : index
    %c0_418 = arith.constant 0 : index
    %671 = vector.load %arg16[%c2_416, %c0_417, %c0_418] : memref<3x1x32xf32, #tpu.memory_space<vmem>>, vector<1x1x32xf32>
    %672 = vector.shape_cast %671 : vector<1x1x32xf32> to vector<1x32xf32>
    %673 = vector.broadcast %672 : vector<1x32xf32> to vector<16x32xf32>
    %674 = arith.addf %670, %673 : vector<16x32xf32>
    %c2_419 = arith.constant 2 : index
    %c0_420 = arith.constant 0 : index
    %c0_421 = arith.constant 0 : index
    %675 = vector.load %arg24[%c2_419, %c0_420, %c0_421] : memref<3x16x32xf32, #tpu.memory_space<vmem>>, vector<1x16x32xf32>
    %676 = vector.shape_cast %675 : vector<1x16x32xf32> to vector<16x32xf32>
    %677 = vector.shape_cast %674 : vector<16x32xf32> to vector<1x16x32xf32>
    tpu.vector_store %arg24[%c2_419, %c0_420, %c0_421], %677 {strides = array<i32>} : memref<3x16x32xf32, #tpu.memory_space<vmem>>, vector<1x16x32xf32>,
    %c0_422 = arith.constant 0 : index
    %c0_423 = arith.constant 0 : index
    %c0_424 = arith.constant 0 : index
    %678 = vector.load %arg11[%c0_422, %c0_423, %c0_424] : memref<3x32x32xbf16, #tpu.memory_space<vmem>>, vector<1x32x32xbf16>
    %679 = vector.shape_cast %678 : vector<1x32x32xbf16> to vector<32x32xbf16>
    %c1_425 = arith.constant 1 : index
    %c0_426 = arith.constant 0 : index
    %c0_427 = arith.constant 0 : index
    %680 = vector.load %arg11[%c1_425, %c0_426, %c0_427] : memref<3x32x32xbf16, #tpu.memory_space<vmem>>, vector<1x32x32xbf16>
    %681 = vector.shape_cast %680 : vector<1x32x32xbf16> to vector<32x32xbf16>
    %c2_428 = arith.constant 2 : index
    %c0_429 = arith.constant 0 : index
    %c0_430 = arith.constant 0 : index
    %682 = vector.load %arg11[%c2_428, %c0_429, %c0_430] : memref<3x32x32xbf16, #tpu.memory_space<vmem>>, vector<1x32x32xbf16>
    %683 = vector.shape_cast %682 : vector<1x32x32xbf16> to vector<32x32xbf16>
    %c0_431 = arith.constant 0 : index
    %c0_432 = arith.constant 0 : index
    %c0_433 = arith.constant 0 : index
    %684 = vector.load %arg15[%c0_431, %c0_432, %c0_433] : memref<3x32x32xbf16, #tpu.memory_space<vmem>>, vector<1x32x32xbf16>
    %685 = vector.shape_cast %684 : vector<1x32x32xbf16> to vector<32x32xbf16>
    %c1_434 = arith.constant 1 : index
    %c0_435 = arith.constant 0 : index
    %c0_436 = arith.constant 0 : index
    %686 = vector.load %arg15[%c1_434, %c0_435, %c0_436] : memref<3x32x32xbf16, #tpu.memory_space<vmem>>, vector<1x32x32xbf16>
    %687 = vector.shape_cast %686 : vector<1x32x32xbf16> to vector<32x32xbf16>
    %c2_437 = arith.constant 2 : index
    %c0_438 = arith.constant 0 : index
    %c0_439 = arith.constant 0 : index
    %688 = vector.load %arg15[%c2_437, %c0_438, %c0_439] : memref<3x32x32xbf16, #tpu.memory_space<vmem>>, vector<1x32x32xbf16>
    %689 = vector.shape_cast %688 : vector<1x32x32xbf16> to vector<32x32xbf16>
    %c0_440 = arith.constant 0 : index
    %c0_441 = arith.constant 0 : index
    %690 = vector.load %arg13[%c0_440, %c0_441] : memref<1x32xf32, #tpu.memory_space<vmem>>, vector<1x32xf32>
    %c0_442 = arith.constant 0 : index
    %c0_443 = arith.constant 0 : index
    %691 = vector.load %arg17[%c0_442, %c0_443] : memref<1x32xf32, #tpu.memory_space<vmem>>, vector<1x32xf32>
    %c2_444 = arith.constant 2 : index
    %c0_445 = arith.constant 0 : index
    %c0_446 = arith.constant 0 : index
    %692 = vector.load %arg1[%c2_444, %c0_445, %c0_446] : memref<4x2x32xf32, #tpu.memory_space<vmem>>, vector<1x2x32xf32>
    %693 = vector.shape_cast %692 : vector<1x2x32xf32> to vector<2x32xf32>
    %c3 = arith.constant 3 : index
    %c0_447 = arith.constant 0 : index
    %c0_448 = arith.constant 0 : index
    %694 = vector.load %arg1[%c3, %c0_447, %c0_448] : memref<4x2x32xf32, #tpu.memory_space<vmem>>, vector<1x2x32xf32>
    %695 = vector.shape_cast %694 : vector<1x2x32xf32> to vector<2x32xf32>
    %696 = arith.truncf %693 : vector<2x32xf32> to vector<2x32xbf16>
    %697 = arith.truncf %695 : vector<2x32xf32> to vector<2x32xbf16>
    %cst_449 = arith.constant dense<0.000000e+00> : vector<2x32xf32>
    %698 = tpu.matmul %696, %679, %cst_449 {dimension_numbers = #tpu.dot_dimension_numbers<[1], [0], [0], [1], [0, 0, 1, 1], [], []>} : vector<2x32xbf16>, vector<32x32xbf16>, vector<2x32xf32> -> vector<2x32xf32>
    %cst_450 = arith.constant dense<0.000000e+00> : vector<2x32xf32>
    %699 = tpu.matmul %696, %681, %cst_450 {dimension_numbers = #tpu.dot_dimension_numbers<[1], [0], [0], [1], [0, 0, 1, 1], [], []>} : vector<2x32xbf16>, vector<32x32xbf16>, vector<2x32xf32> -> vector<2x32xf32>
    %cst_451 = arith.constant dense<0.000000e+00> : vector<2x32xf32>
    %700 = tpu.matmul %696, %683, %cst_451 {dimension_numbers = #tpu.dot_dimension_numbers<[1], [0], [0], [1], [0, 0, 1, 1], [], []>} : vector<2x32xbf16>, vector<32x32xbf16>, vector<2x32xf32> -> vector<2x32xf32>
    %c0_452 = arith.constant 0 : index
    %c0_453 = arith.constant 0 : index
    %c0_454 = arith.constant 0 : index
    %701 = vector.load %arg23[%c0_452, %c0_453, %c0_454] : memref<3x16x32xf32, #tpu.memory_space<vmem>>, vector<1x2x32xf32>
    %702 = vector.shape_cast %701 : vector<1x2x32xf32> to vector<2x32xf32>
    %703 = arith.addf %702, %698 : vector<2x32xf32>
    %704 = arith.negf %703 : vector<2x32xf32>
    %705 = math.exp %704 : vector<2x32xf32>
    %cst_455 = arith.constant 1.000000e+00 : f32
    %706 = vector.broadcast %cst_455 : f32 to vector<2x32xf32>
    %707 = arith.addf %706, %705 : vector<2x32xf32>
    %708 = arith.divf %706, %707 : vector<2x32xf32>
    %c1_456 = arith.constant 1 : index
    %c0_457 = arith.constant 0 : index
    %c0_458 = arith.constant 0 : index
    %709 = vector.load %arg23[%c1_456, %c0_457, %c0_458] : memref<3x16x32xf32, #tpu.memory_space<vmem>>, vector<1x2x32xf32>
    %710 = vector.shape_cast %709 : vector<1x2x32xf32> to vector<2x32xf32>
    %711 = arith.addf %710, %699 : vector<2x32xf32>
    %712 = arith.negf %711 : vector<2x32xf32>
    %713 = math.exp %712 : vector<2x32xf32>
    %cst_459 = arith.constant 1.000000e+00 : f32
    %714 = vector.broadcast %cst_459 : f32 to vector<2x32xf32>
    %715 = arith.addf %714, %713 : vector<2x32xf32>
    %716 = arith.divf %714, %715 : vector<2x32xf32>
    %c2_460 = arith.constant 2 : index
    %c0_461 = arith.constant 0 : index
    %c0_462 = arith.constant 0 : index
    %717 = vector.load %arg23[%c2_460, %c0_461, %c0_462] : memref<3x16x32xf32, #tpu.memory_space<vmem>>, vector<1x2x32xf32>
    %718 = vector.shape_cast %717 : vector<1x2x32xf32> to vector<2x32xf32>
    %719 = vector.broadcast %690 : vector<1x32xf32> to vector<2x32xf32>
    %720 = arith.addf %700, %719 : vector<2x32xf32>
    %721 = arith.mulf %708, %720 : vector<2x32xf32>
    %722 = arith.addf %718, %721 : vector<2x32xf32>
    %723 = math.tanh %722 : vector<2x32xf32>
    %cst_463 = arith.constant 1.000000e+00 : f32
    %724 = vector.broadcast %cst_463 : f32 to vector<2x32xf32>
    %725 = arith.subf %724, %716 : vector<2x32xf32>
    %726 = arith.mulf %725, %723 : vector<2x32xf32>
    %727 = arith.mulf %716, %693 : vector<2x32xf32>
    %728 = arith.addf %726, %727 : vector<2x32xf32>
    %cst_464 = arith.constant dense<0.000000e+00> : vector<2x32xf32>
    %729 = tpu.matmul %697, %685, %cst_464 {dimension_numbers = #tpu.dot_dimension_numbers<[1], [0], [0], [1], [0, 0, 1, 1], [], []>} : vector<2x32xbf16>, vector<32x32xbf16>, vector<2x32xf32> -> vector<2x32xf32>
    %cst_465 = arith.constant dense<0.000000e+00> : vector<2x32xf32>
    %730 = tpu.matmul %697, %687, %cst_465 {dimension_numbers = #tpu.dot_dimension_numbers<[1], [0], [0], [1], [0, 0, 1, 1], [], []>} : vector<2x32xbf16>, vector<32x32xbf16>, vector<2x32xf32> -> vector<2x32xf32>
    %cst_466 = arith.constant dense<0.000000e+00> : vector<2x32xf32>
    %731 = tpu.matmul %697, %689, %cst_466 {dimension_numbers = #tpu.dot_dimension_numbers<[1], [0], [0], [1], [0, 0, 1, 1], [], []>} : vector<2x32xbf16>, vector<32x32xbf16>, vector<2x32xf32> -> vector<2x32xf32>
    %c0_467 = arith.constant 0 : index
    %c14_468 = arith.constant 14 : index
    %c0_469 = arith.constant 0 : index
    %732 = vector.load %arg24[%c0_467, %c14_468, %c0_469] : memref<3x16x32xf32, #tpu.memory_space<vmem>>, vector<1x2x32xf32>
    %733 = vector.shape_cast %732 : vector<1x2x32xf32> to vector<2x32xf32>
    %734 = arith.addf %733, %729 : vector<2x32xf32>
    %735 = arith.negf %734 : vector<2x32xf32>
    %736 = math.exp %735 : vector<2x32xf32>
    %cst_470 = arith.constant 1.000000e+00 : f32
    %737 = vector.broadcast %cst_470 : f32 to vector<2x32xf32>
    %738 = arith.addf %737, %736 : vector<2x32xf32>
    %739 = arith.divf %737, %738 : vector<2x32xf32>
    %c1_471 = arith.constant 1 : index
    %c14_472 = arith.constant 14 : index
    %c0_473 = arith.constant 0 : index
    %740 = vector.load %arg24[%c1_471, %c14_472, %c0_473] : memref<3x16x32xf32, #tpu.memory_space<vmem>>, vector<1x2x32xf32>
    %741 = vector.shape_cast %740 : vector<1x2x32xf32> to vector<2x32xf32>
    %742 = arith.addf %741, %730 : vector<2x32xf32>
    %743 = arith.negf %742 : vector<2x32xf32>
    %744 = math.exp %743 : vector<2x32xf32>
    %cst_474 = arith.constant 1.000000e+00 : f32
    %745 = vector.broadcast %cst_474 : f32 to vector<2x32xf32>
    %746 = arith.addf %745, %744 : vector<2x32xf32>
    %747 = arith.divf %745, %746 : vector<2x32xf32>
    %c2_475 = arith.constant 2 : index
    %c14_476 = arith.constant 14 : index
    %c0_477 = arith.constant 0 : index
    %748 = vector.load %arg24[%c2_475, %c14_476, %c0_477] : memref<3x16x32xf32, #tpu.memory_space<vmem>>, vector<1x2x32xf32>
    %749 = vector.shape_cast %748 : vector<1x2x32xf32> to vector<2x32xf32>
    %750 = vector.broadcast %691 : vector<1x32xf32> to vector<2x32xf32>
    %751 = arith.addf %731, %750 : vector<2x32xf32>
    %752 = arith.mulf %739, %751 : vector<2x32xf32>
    %753 = arith.addf %749, %752 : vector<2x32xf32>
    %754 = math.tanh %753 : vector<2x32xf32>
    %cst_478 = arith.constant 1.000000e+00 : f32
    %755 = vector.broadcast %cst_478 : f32 to vector<2x32xf32>
    %756 = arith.subf %755, %747 : vector<2x32xf32>
    %757 = arith.mulf %756, %754 : vector<2x32xf32>
    %758 = arith.mulf %747, %695 : vector<2x32xf32>
    %759 = arith.addf %757, %758 : vector<2x32xf32>
    %c0_479 = arith.constant 0 : index
    %c0_480 = arith.constant 0 : index
    %760 = vector.load %arg25[%c0_479, %c0_480] : memref<16x32xf32, #tpu.memory_space<vmem>>, vector<2x32xf32>
    tpu.vector_store %arg25[%c0_479, %c0_480], %728 {strides = array<i32>} : memref<16x32xf32, #tpu.memory_space<vmem>>, vector<2x32xf32>,
    %c14_481 = arith.constant 14 : index
    %c0_482 = arith.constant 0 : index
    %761 = vector.load %arg26[%c14_481, %c0_482] : memref<16x32xf32, #tpu.memory_space<vmem>>, vector<2x32xf32>
    tpu.vector_store %arg26[%c14_481, %c0_482], %759 {strides = array<i32>} : memref<16x32xf32, #tpu.memory_space<vmem>>, vector<2x32xf32>,
    %762 = arith.truncf %728 : vector<2x32xf32> to vector<2x32xbf16>
    %763 = arith.truncf %759 : vector<2x32xf32> to vector<2x32xbf16>
    %cst_483 = arith.constant dense<0.000000e+00> : vector<2x32xf32>
    %764 = tpu.matmul %762, %679, %cst_483 {dimension_numbers = #tpu.dot_dimension_numbers<[1], [0], [0], [1], [0, 0, 1, 1], [], []>} : vector<2x32xbf16>, vector<32x32xbf16>, vector<2x32xf32> -> vector<2x32xf32>
    %cst_484 = arith.constant dense<0.000000e+00> : vector<2x32xf32>
    %765 = tpu.matmul %762, %681, %cst_484 {dimension_numbers = #tpu.dot_dimension_numbers<[1], [0], [0], [1], [0, 0, 1, 1], [], []>} : vector<2x32xbf16>, vector<32x32xbf16>, vector<2x32xf32> -> vector<2x32xf32>
    %cst_485 = arith.constant dense<0.000000e+00> : vector<2x32xf32>
    %766 = tpu.matmul %762, %683, %cst_485 {dimension_numbers = #tpu.dot_dimension_numbers<[1], [0], [0], [1], [0, 0, 1, 1], [], []>} : vector<2x32xbf16>, vector<32x32xbf16>, vector<2x32xf32> -> vector<2x32xf32>
    %c0_486 = arith.constant 0 : index
    %c2_487 = arith.constant 2 : index
    %c0_488 = arith.constant 0 : index
    %767 = vector.load %arg23[%c0_486, %c2_487, %c0_488] : memref<3x16x32xf32, #tpu.memory_space<vmem>>, vector<1x2x32xf32>
    %768 = vector.shape_cast %767 : vector<1x2x32xf32> to vector<2x32xf32>
    %769 = arith.addf %768, %764 : vector<2x32xf32>
    %770 = arith.negf %769 : vector<2x32xf32>
    %771 = math.exp %770 : vector<2x32xf32>
    %cst_489 = arith.constant 1.000000e+00 : f32
    %772 = vector.broadcast %cst_489 : f32 to vector<2x32xf32>
    %773 = arith.addf %772, %771 : vector<2x32xf32>
    %774 = arith.divf %772, %773 : vector<2x32xf32>
    %c1_490 = arith.constant 1 : index
    %c2_491 = arith.constant 2 : index
    %c0_492 = arith.constant 0 : index
    %775 = vector.load %arg23[%c1_490, %c2_491, %c0_492] : memref<3x16x32xf32, #tpu.memory_space<vmem>>, vector<1x2x32xf32>
    %776 = vector.shape_cast %775 : vector<1x2x32xf32> to vector<2x32xf32>
    %777 = arith.addf %776, %765 : vector<2x32xf32>
    %778 = arith.negf %777 : vector<2x32xf32>
    %779 = math.exp %778 : vector<2x32xf32>
    %cst_493 = arith.constant 1.000000e+00 : f32
    %780 = vector.broadcast %cst_493 : f32 to vector<2x32xf32>
    %781 = arith.addf %780, %779 : vector<2x32xf32>
    %782 = arith.divf %780, %781 : vector<2x32xf32>
    %c2_494 = arith.constant 2 : index
    %c2_495 = arith.constant 2 : index
    %c0_496 = arith.constant 0 : index
    %783 = vector.load %arg23[%c2_494, %c2_495, %c0_496] : memref<3x16x32xf32, #tpu.memory_space<vmem>>, vector<1x2x32xf32>
    %784 = vector.shape_cast %783 : vector<1x2x32xf32> to vector<2x32xf32>
    %785 = vector.broadcast %690 : vector<1x32xf32> to vector<2x32xf32>
    %786 = arith.addf %766, %785 : vector<2x32xf32>
    %787 = arith.mulf %774, %786 : vector<2x32xf32>
    %788 = arith.addf %784, %787 : vector<2x32xf32>
    %789 = math.tanh %788 : vector<2x32xf32>
    %cst_497 = arith.constant 1.000000e+00 : f32
    %790 = vector.broadcast %cst_497 : f32 to vector<2x32xf32>
    %791 = arith.subf %790, %782 : vector<2x32xf32>
    %792 = arith.mulf %791, %789 : vector<2x32xf32>
    %793 = arith.mulf %782, %728 : vector<2x32xf32>
    %794 = arith.addf %792, %793 : vector<2x32xf32>
    %cst_498 = arith.constant dense<0.000000e+00> : vector<2x32xf32>
    %795 = tpu.matmul %763, %685, %cst_498 {dimension_numbers = #tpu.dot_dimension_numbers<[1], [0], [0], [1], [0, 0, 1, 1], [], []>} : vector<2x32xbf16>, vector<32x32xbf16>, vector<2x32xf32> -> vector<2x32xf32>
    %cst_499 = arith.constant dense<0.000000e+00> : vector<2x32xf32>
    %796 = tpu.matmul %763, %687, %cst_499 {dimension_numbers = #tpu.dot_dimension_numbers<[1], [0], [0], [1], [0, 0, 1, 1], [], []>} : vector<2x32xbf16>, vector<32x32xbf16>, vector<2x32xf32> -> vector<2x32xf32>
    %cst_500 = arith.constant dense<0.000000e+00> : vector<2x32xf32>
    %797 = tpu.matmul %763, %689, %cst_500 {dimension_numbers = #tpu.dot_dimension_numbers<[1], [0], [0], [1], [0, 0, 1, 1], [], []>} : vector<2x32xbf16>, vector<32x32xbf16>, vector<2x32xf32> -> vector<2x32xf32>
    %c0_501 = arith.constant 0 : index
    %c12_502 = arith.constant 12 : index
    %c0_503 = arith.constant 0 : index
    %798 = vector.load %arg24[%c0_501, %c12_502, %c0_503] : memref<3x16x32xf32, #tpu.memory_space<vmem>>, vector<1x2x32xf32>
    %799 = vector.shape_cast %798 : vector<1x2x32xf32> to vector<2x32xf32>
    %800 = arith.addf %799, %795 : vector<2x32xf32>
    %801 = arith.negf %800 : vector<2x32xf32>
    %802 = math.exp %801 : vector<2x32xf32>
    %cst_504 = arith.constant 1.000000e+00 : f32
    %803 = vector.broadcast %cst_504 : f32 to vector<2x32xf32>
    %804 = arith.addf %803, %802 : vector<2x32xf32>
    %805 = arith.divf %803, %804 : vector<2x32xf32>
    %c1_505 = arith.constant 1 : index
    %c12_506 = arith.constant 12 : index
    %c0_507 = arith.constant 0 : index
    %806 = vector.load %arg24[%c1_505, %c12_506, %c0_507] : memref<3x16x32xf32, #tpu.memory_space<vmem>>, vector<1x2x32xf32>
    %807 = vector.shape_cast %806 : vector<1x2x32xf32> to vector<2x32xf32>
    %808 = arith.addf %807, %796 : vector<2x32xf32>
    %809 = arith.negf %808 : vector<2x32xf32>
    %810 = math.exp %809 : vector<2x32xf32>
    %cst_508 = arith.constant 1.000000e+00 : f32
    %811 = vector.broadcast %cst_508 : f32 to vector<2x32xf32>
    %812 = arith.addf %811, %810 : vector<2x32xf32>
    %813 = arith.divf %811, %812 : vector<2x32xf32>
    %c2_509 = arith.constant 2 : index
    %c12_510 = arith.constant 12 : index
    %c0_511 = arith.constant 0 : index
    %814 = vector.load %arg24[%c2_509, %c12_510, %c0_511] : memref<3x16x32xf32, #tpu.memory_space<vmem>>, vector<1x2x32xf32>
    %815 = vector.shape_cast %814 : vector<1x2x32xf32> to vector<2x32xf32>
    %816 = vector.broadcast %691 : vector<1x32xf32> to vector<2x32xf32>
    %817 = arith.addf %797, %816 : vector<2x32xf32>
    %818 = arith.mulf %805, %817 : vector<2x32xf32>
    %819 = arith.addf %815, %818 : vector<2x32xf32>
    %820 = math.tanh %819 : vector<2x32xf32>
    %cst_512 = arith.constant 1.000000e+00 : f32
    %821 = vector.broadcast %cst_512 : f32 to vector<2x32xf32>
    %822 = arith.subf %821, %813 : vector<2x32xf32>
    %823 = arith.mulf %822, %820 : vector<2x32xf32>
    %824 = arith.mulf %813, %759 : vector<2x32xf32>
    %825 = arith.addf %823, %824 : vector<2x32xf32>
    %c2_513 = arith.constant 2 : index
    %c0_514 = arith.constant 0 : index
    %826 = vector.load %arg25[%c2_513, %c0_514] : memref<16x32xf32, #tpu.memory_space<vmem>>, vector<2x32xf32>
    tpu.vector_store %arg25[%c2_513, %c0_514], %794 {strides = array<i32>} : memref<16x32xf32, #tpu.memory_space<vmem>>, vector<2x32xf32>,
    %c12_515 = arith.constant 12 : index
    %c0_516 = arith.constant 0 : index
    %827 = vector.load %arg26[%c12_515, %c0_516] : memref<16x32xf32, #tpu.memory_space<vmem>>, vector<2x32xf32>
    tpu.vector_store %arg26[%c12_515, %c0_516], %825 {strides = array<i32>} : memref<16x32xf32, #tpu.memory_space<vmem>>, vector<2x32xf32>,
    %828 = arith.truncf %794 : vector<2x32xf32> to vector<2x32xbf16>
    %829 = arith.truncf %825 : vector<2x32xf32> to vector<2x32xbf16>
    %cst_517 = arith.constant dense<0.000000e+00> : vector<2x32xf32>
    %830 = tpu.matmul %828, %679, %cst_517 {dimension_numbers = #tpu.dot_dimension_numbers<[1], [0], [0], [1], [0, 0, 1, 1], [], []>} : vector<2x32xbf16>, vector<32x32xbf16>, vector<2x32xf32> -> vector<2x32xf32>
    %cst_518 = arith.constant dense<0.000000e+00> : vector<2x32xf32>
    %831 = tpu.matmul %828, %681, %cst_518 {dimension_numbers = #tpu.dot_dimension_numbers<[1], [0], [0], [1], [0, 0, 1, 1], [], []>} : vector<2x32xbf16>, vector<32x32xbf16>, vector<2x32xf32> -> vector<2x32xf32>
    %cst_519 = arith.constant dense<0.000000e+00> : vector<2x32xf32>
    %832 = tpu.matmul %828, %683, %cst_519 {dimension_numbers = #tpu.dot_dimension_numbers<[1], [0], [0], [1], [0, 0, 1, 1], [], []>} : vector<2x32xbf16>, vector<32x32xbf16>, vector<2x32xf32> -> vector<2x32xf32>
    %c0_520 = arith.constant 0 : index
    %c4_521 = arith.constant 4 : index
    %c0_522 = arith.constant 0 : index
    %833 = vector.load %arg23[%c0_520, %c4_521, %c0_522] : memref<3x16x32xf32, #tpu.memory_space<vmem>>, vector<1x2x32xf32>
    %834 = vector.shape_cast %833 : vector<1x2x32xf32> to vector<2x32xf32>
    %835 = arith.addf %834, %830 : vector<2x32xf32>
    %836 = arith.negf %835 : vector<2x32xf32>
    %837 = math.exp %836 : vector<2x32xf32>
    %cst_523 = arith.constant 1.000000e+00 : f32
    %838 = vector.broadcast %cst_523 : f32 to vector<2x32xf32>
    %839 = arith.addf %838, %837 : vector<2x32xf32>
    %840 = arith.divf %838, %839 : vector<2x32xf32>
    %c1_524 = arith.constant 1 : index
    %c4_525 = arith.constant 4 : index
    %c0_526 = arith.constant 0 : index
    %841 = vector.load %arg23[%c1_524, %c4_525, %c0_526] : memref<3x16x32xf32, #tpu.memory_space<vmem>>, vector<1x2x32xf32>
    %842 = vector.shape_cast %841 : vector<1x2x32xf32> to vector<2x32xf32>
    %843 = arith.addf %842, %831 : vector<2x32xf32>
    %844 = arith.negf %843 : vector<2x32xf32>
    %845 = math.exp %844 : vector<2x32xf32>
    %cst_527 = arith.constant 1.000000e+00 : f32
    %846 = vector.broadcast %cst_527 : f32 to vector<2x32xf32>
    %847 = arith.addf %846, %845 : vector<2x32xf32>
    %848 = arith.divf %846, %847 : vector<2x32xf32>
    %c2_528 = arith.constant 2 : index
    %c4_529 = arith.constant 4 : index
    %c0_530 = arith.constant 0 : index
    %849 = vector.load %arg23[%c2_528, %c4_529, %c0_530] : memref<3x16x32xf32, #tpu.memory_space<vmem>>, vector<1x2x32xf32>
    %850 = vector.shape_cast %849 : vector<1x2x32xf32> to vector<2x32xf32>
    %851 = vector.broadcast %690 : vector<1x32xf32> to vector<2x32xf32>
    %852 = arith.addf %832, %851 : vector<2x32xf32>
    %853 = arith.mulf %840, %852 : vector<2x32xf32>
    %854 = arith.addf %850, %853 : vector<2x32xf32>
    %855 = math.tanh %854 : vector<2x32xf32>
    %cst_531 = arith.constant 1.000000e+00 : f32
    %856 = vector.broadcast %cst_531 : f32 to vector<2x32xf32>
    %857 = arith.subf %856, %848 : vector<2x32xf32>
    %858 = arith.mulf %857, %855 : vector<2x32xf32>
    %859 = arith.mulf %848, %794 : vector<2x32xf32>
    %860 = arith.addf %858, %859 : vector<2x32xf32>
    %cst_532 = arith.constant dense<0.000000e+00> : vector<2x32xf32>
    %861 = tpu.matmul %829, %685, %cst_532 {dimension_numbers = #tpu.dot_dimension_numbers<[1], [0], [0], [1], [0, 0, 1, 1], [], []>} : vector<2x32xbf16>, vector<32x32xbf16>, vector<2x32xf32> -> vector<2x32xf32>
    %cst_533 = arith.constant dense<0.000000e+00> : vector<2x32xf32>
    %862 = tpu.matmul %829, %687, %cst_533 {dimension_numbers = #tpu.dot_dimension_numbers<[1], [0], [0], [1], [0, 0, 1, 1], [], []>} : vector<2x32xbf16>, vector<32x32xbf16>, vector<2x32xf32> -> vector<2x32xf32>
    %cst_534 = arith.constant dense<0.000000e+00> : vector<2x32xf32>
    %863 = tpu.matmul %829, %689, %cst_534 {dimension_numbers = #tpu.dot_dimension_numbers<[1], [0], [0], [1], [0, 0, 1, 1], [], []>} : vector<2x32xbf16>, vector<32x32xbf16>, vector<2x32xf32> -> vector<2x32xf32>
    %c0_535 = arith.constant 0 : index
    %c10_536 = arith.constant 10 : index
    %c0_537 = arith.constant 0 : index
    %864 = vector.load %arg24[%c0_535, %c10_536, %c0_537] : memref<3x16x32xf32, #tpu.memory_space<vmem>>, vector<1x2x32xf32>
    %865 = vector.shape_cast %864 : vector<1x2x32xf32> to vector<2x32xf32>
    %866 = arith.addf %865, %861 : vector<2x32xf32>
    %867 = arith.negf %866 : vector<2x32xf32>
    %868 = math.exp %867 : vector<2x32xf32>
    %cst_538 = arith.constant 1.000000e+00 : f32
    %869 = vector.broadcast %cst_538 : f32 to vector<2x32xf32>
    %870 = arith.addf %869, %868 : vector<2x32xf32>
    %871 = arith.divf %869, %870 : vector<2x32xf32>
    %c1_539 = arith.constant 1 : index
    %c10_540 = arith.constant 10 : index
    %c0_541 = arith.constant 0 : index
    %872 = vector.load %arg24[%c1_539, %c10_540, %c0_541] : memref<3x16x32xf32, #tpu.memory_space<vmem>>, vector<1x2x32xf32>
    %873 = vector.shape_cast %872 : vector<1x2x32xf32> to vector<2x32xf32>
    %874 = arith.addf %873, %862 : vector<2x32xf32>
    %875 = arith.negf %874 : vector<2x32xf32>
    %876 = math.exp %875 : vector<2x32xf32>
    %cst_542 = arith.constant 1.000000e+00 : f32
    %877 = vector.broadcast %cst_542 : f32 to vector<2x32xf32>
    %878 = arith.addf %877, %876 : vector<2x32xf32>
    %879 = arith.divf %877, %878 : vector<2x32xf32>
    %c2_543 = arith.constant 2 : index
    %c10_544 = arith.constant 10 : index
    %c0_545 = arith.constant 0 : index
    %880 = vector.load %arg24[%c2_543, %c10_544, %c0_545] : memref<3x16x32xf32, #tpu.memory_space<vmem>>, vector<1x2x32xf32>
    %881 = vector.shape_cast %880 : vector<1x2x32xf32> to vector<2x32xf32>
    %882 = vector.broadcast %691 : vector<1x32xf32> to vector<2x32xf32>
    %883 = arith.addf %863, %882 : vector<2x32xf32>
    %884 = arith.mulf %871, %883 : vector<2x32xf32>
    %885 = arith.addf %881, %884 : vector<2x32xf32>
    %886 = math.tanh %885 : vector<2x32xf32>
    %cst_546 = arith.constant 1.000000e+00 : f32
    %887 = vector.broadcast %cst_546 : f32 to vector<2x32xf32>
    %888 = arith.subf %887, %879 : vector<2x32xf32>
    %889 = arith.mulf %888, %886 : vector<2x32xf32>
    %890 = arith.mulf %879, %825 : vector<2x32xf32>
    %891 = arith.addf %889, %890 : vector<2x32xf32>
    %c4_547 = arith.constant 4 : index
    %c0_548 = arith.constant 0 : index
    %892 = vector.load %arg25[%c4_547, %c0_548] : memref<16x32xf32, #tpu.memory_space<vmem>>, vector<2x32xf32>
    tpu.vector_store %arg25[%c4_547, %c0_548], %860 {strides = array<i32>} : memref<16x32xf32, #tpu.memory_space<vmem>>, vector<2x32xf32>,
    %c10_549 = arith.constant 10 : index
    %c0_550 = arith.constant 0 : index
    %893 = vector.load %arg26[%c10_549, %c0_550] : memref<16x32xf32, #tpu.memory_space<vmem>>, vector<2x32xf32>
    tpu.vector_store %arg26[%c10_549, %c0_550], %891 {strides = array<i32>} : memref<16x32xf32, #tpu.memory_space<vmem>>, vector<2x32xf32>,
    %894 = arith.truncf %860 : vector<2x32xf32> to vector<2x32xbf16>
    %895 = arith.truncf %891 : vector<2x32xf32> to vector<2x32xbf16>
    %cst_551 = arith.constant dense<0.000000e+00> : vector<2x32xf32>
    %896 = tpu.matmul %894, %679, %cst_551 {dimension_numbers = #tpu.dot_dimension_numbers<[1], [0], [0], [1], [0, 0, 1, 1], [], []>} : vector<2x32xbf16>, vector<32x32xbf16>, vector<2x32xf32> -> vector<2x32xf32>
    %cst_552 = arith.constant dense<0.000000e+00> : vector<2x32xf32>
    %897 = tpu.matmul %894, %681, %cst_552 {dimension_numbers = #tpu.dot_dimension_numbers<[1], [0], [0], [1], [0, 0, 1, 1], [], []>} : vector<2x32xbf16>, vector<32x32xbf16>, vector<2x32xf32> -> vector<2x32xf32>
    %cst_553 = arith.constant dense<0.000000e+00> : vector<2x32xf32>
    %898 = tpu.matmul %894, %683, %cst_553 {dimension_numbers = #tpu.dot_dimension_numbers<[1], [0], [0], [1], [0, 0, 1, 1], [], []>} : vector<2x32xbf16>, vector<32x32xbf16>, vector<2x32xf32> -> vector<2x32xf32>
    %c0_554 = arith.constant 0 : index
    %c6_555 = arith.constant 6 : index
    %c0_556 = arith.constant 0 : index
    %899 = vector.load %arg23[%c0_554, %c6_555, %c0_556] : memref<3x16x32xf32, #tpu.memory_space<vmem>>, vector<1x2x32xf32>
    %900 = vector.shape_cast %899 : vector<1x2x32xf32> to vector<2x32xf32>
    %901 = arith.addf %900, %896 : vector<2x32xf32>
    %902 = arith.negf %901 : vector<2x32xf32>
    %903 = math.exp %902 : vector<2x32xf32>
    %cst_557 = arith.constant 1.000000e+00 : f32
    %904 = vector.broadcast %cst_557 : f32 to vector<2x32xf32>
    %905 = arith.addf %904, %903 : vector<2x32xf32>
    %906 = arith.divf %904, %905 : vector<2x32xf32>
    %c1_558 = arith.constant 1 : index
    %c6_559 = arith.constant 6 : index
    %c0_560 = arith.constant 0 : index
    %907 = vector.load %arg23[%c1_558, %c6_559, %c0_560] : memref<3x16x32xf32, #tpu.memory_space<vmem>>, vector<1x2x32xf32>
    %908 = vector.shape_cast %907 : vector<1x2x32xf32> to vector<2x32xf32>
    %909 = arith.addf %908, %897 : vector<2x32xf32>
    %910 = arith.negf %909 : vector<2x32xf32>
    %911 = math.exp %910 : vector<2x32xf32>
    %cst_561 = arith.constant 1.000000e+00 : f32
    %912 = vector.broadcast %cst_561 : f32 to vector<2x32xf32>
    %913 = arith.addf %912, %911 : vector<2x32xf32>
    %914 = arith.divf %912, %913 : vector<2x32xf32>
    %c2_562 = arith.constant 2 : index
    %c6_563 = arith.constant 6 : index
    %c0_564 = arith.constant 0 : index
    %915 = vector.load %arg23[%c2_562, %c6_563, %c0_564] : memref<3x16x32xf32, #tpu.memory_space<vmem>>, vector<1x2x32xf32>
    %916 = vector.shape_cast %915 : vector<1x2x32xf32> to vector<2x32xf32>
    %917 = vector.broadcast %690 : vector<1x32xf32> to vector<2x32xf32>
    %918 = arith.addf %898, %917 : vector<2x32xf32>
    %919 = arith.mulf %906, %918 : vector<2x32xf32>
    %920 = arith.addf %916, %919 : vector<2x32xf32>
    %921 = math.tanh %920 : vector<2x32xf32>
    %cst_565 = arith.constant 1.000000e+00 : f32
    %922 = vector.broadcast %cst_565 : f32 to vector<2x32xf32>
    %923 = arith.subf %922, %914 : vector<2x32xf32>
    %924 = arith.mulf %923, %921 : vector<2x32xf32>
    %925 = arith.mulf %914, %860 : vector<2x32xf32>
    %926 = arith.addf %924, %925 : vector<2x32xf32>
    %cst_566 = arith.constant dense<0.000000e+00> : vector<2x32xf32>
    %927 = tpu.matmul %895, %685, %cst_566 {dimension_numbers = #tpu.dot_dimension_numbers<[1], [0], [0], [1], [0, 0, 1, 1], [], []>} : vector<2x32xbf16>, vector<32x32xbf16>, vector<2x32xf32> -> vector<2x32xf32>
    %cst_567 = arith.constant dense<0.000000e+00> : vector<2x32xf32>
    %928 = tpu.matmul %895, %687, %cst_567 {dimension_numbers = #tpu.dot_dimension_numbers<[1], [0], [0], [1], [0, 0, 1, 1], [], []>} : vector<2x32xbf16>, vector<32x32xbf16>, vector<2x32xf32> -> vector<2x32xf32>
    %cst_568 = arith.constant dense<0.000000e+00> : vector<2x32xf32>
    %929 = tpu.matmul %895, %689, %cst_568 {dimension_numbers = #tpu.dot_dimension_numbers<[1], [0], [0], [1], [0, 0, 1, 1], [], []>} : vector<2x32xbf16>, vector<32x32xbf16>, vector<2x32xf32> -> vector<2x32xf32>
    %c0_569 = arith.constant 0 : index
    %c8_570 = arith.constant 8 : index
    %c0_571 = arith.constant 0 : index
    %930 = vector.load %arg24[%c0_569, %c8_570, %c0_571] : memref<3x16x32xf32, #tpu.memory_space<vmem>>, vector<1x2x32xf32>
    %931 = vector.shape_cast %930 : vector<1x2x32xf32> to vector<2x32xf32>
    %932 = arith.addf %931, %927 : vector<2x32xf32>
    %933 = arith.negf %932 : vector<2x32xf32>
    %934 = math.exp %933 : vector<2x32xf32>
    %cst_572 = arith.constant 1.000000e+00 : f32
    %935 = vector.broadcast %cst_572 : f32 to vector<2x32xf32>
    %936 = arith.addf %935, %934 : vector<2x32xf32>
    %937 = arith.divf %935, %936 : vector<2x32xf32>
    %c1_573 = arith.constant 1 : index
    %c8_574 = arith.constant 8 : index
    %c0_575 = arith.constant 0 : index
    %938 = vector.load %arg24[%c1_573, %c8_574, %c0_575] : memref<3x16x32xf32, #tpu.memory_space<vmem>>, vector<1x2x32xf32>
    %939 = vector.shape_cast %938 : vector<1x2x32xf32> to vector<2x32xf32>
    %940 = arith.addf %939, %928 : vector<2x32xf32>
    %941 = arith.negf %940 : vector<2x32xf32>
    %942 = math.exp %941 : vector<2x32xf32>
    %cst_576 = arith.constant 1.000000e+00 : f32
    %943 = vector.broadcast %cst_576 : f32 to vector<2x32xf32>
    %944 = arith.addf %943, %942 : vector<2x32xf32>
    %945 = arith.divf %943, %944 : vector<2x32xf32>
    %c2_577 = arith.constant 2 : index
    %c8_578 = arith.constant 8 : index
    %c0_579 = arith.constant 0 : index
    %946 = vector.load %arg24[%c2_577, %c8_578, %c0_579] : memref<3x16x32xf32, #tpu.memory_space<vmem>>, vector<1x2x32xf32>
    %947 = vector.shape_cast %946 : vector<1x2x32xf32> to vector<2x32xf32>
    %948 = vector.broadcast %691 : vector<1x32xf32> to vector<2x32xf32>
    %949 = arith.addf %929, %948 : vector<2x32xf32>
    %950 = arith.mulf %937, %949 : vector<2x32xf32>
    %951 = arith.addf %947, %950 : vector<2x32xf32>
    %952 = math.tanh %951 : vector<2x32xf32>
    %cst_580 = arith.constant 1.000000e+00 : f32
    %953 = vector.broadcast %cst_580 : f32 to vector<2x32xf32>
    %954 = arith.subf %953, %945 : vector<2x32xf32>
    %955 = arith.mulf %954, %952 : vector<2x32xf32>
    %956 = arith.mulf %945, %891 : vector<2x32xf32>
    %957 = arith.addf %955, %956 : vector<2x32xf32>
    %c6_581 = arith.constant 6 : index
    %c0_582 = arith.constant 0 : index
    %958 = vector.load %arg25[%c6_581, %c0_582] : memref<16x32xf32, #tpu.memory_space<vmem>>, vector<2x32xf32>
    tpu.vector_store %arg25[%c6_581, %c0_582], %926 {strides = array<i32>} : memref<16x32xf32, #tpu.memory_space<vmem>>, vector<2x32xf32>,
    %c8_583 = arith.constant 8 : index
    %c0_584 = arith.constant 0 : index
    %959 = vector.load %arg26[%c8_583, %c0_584] : memref<16x32xf32, #tpu.memory_space<vmem>>, vector<2x32xf32>
    tpu.vector_store %arg26[%c8_583, %c0_584], %957 {strides = array<i32>} : memref<16x32xf32, #tpu.memory_space<vmem>>, vector<2x32xf32>,
    %960 = arith.truncf %926 : vector<2x32xf32> to vector<2x32xbf16>
    %961 = arith.truncf %957 : vector<2x32xf32> to vector<2x32xbf16>
    %cst_585 = arith.constant dense<0.000000e+00> : vector<2x32xf32>
    %962 = tpu.matmul %960, %679, %cst_585 {dimension_numbers = #tpu.dot_dimension_numbers<[1], [0], [0], [1], [0, 0, 1, 1], [], []>} : vector<2x32xbf16>, vector<32x32xbf16>, vector<2x32xf32> -> vector<2x32xf32>
    %cst_586 = arith.constant dense<0.000000e+00> : vector<2x32xf32>
    %963 = tpu.matmul %960, %681, %cst_586 {dimension_numbers = #tpu.dot_dimension_numbers<[1], [0], [0], [1], [0, 0, 1, 1], [], []>} : vector<2x32xbf16>, vector<32x32xbf16>, vector<2x32xf32> -> vector<2x32xf32>
    %cst_587 = arith.constant dense<0.000000e+00> : vector<2x32xf32>
    %964 = tpu.matmul %960, %683, %cst_587 {dimension_numbers = #tpu.dot_dimension_numbers<[1], [0], [0], [1], [0, 0, 1, 1], [], []>} : vector<2x32xbf16>, vector<32x32xbf16>, vector<2x32xf32> -> vector<2x32xf32>
    %c0_588 = arith.constant 0 : index
    %c8_589 = arith.constant 8 : index
    %c0_590 = arith.constant 0 : index
    %965 = vector.load %arg23[%c0_588, %c8_589, %c0_590] : memref<3x16x32xf32, #tpu.memory_space<vmem>>, vector<1x2x32xf32>
    %966 = vector.shape_cast %965 : vector<1x2x32xf32> to vector<2x32xf32>
    %967 = arith.addf %966, %962 : vector<2x32xf32>
    %968 = arith.negf %967 : vector<2x32xf32>
    %969 = math.exp %968 : vector<2x32xf32>
    %cst_591 = arith.constant 1.000000e+00 : f32
    %970 = vector.broadcast %cst_591 : f32 to vector<2x32xf32>
    %971 = arith.addf %970, %969 : vector<2x32xf32>
    %972 = arith.divf %970, %971 : vector<2x32xf32>
    %c1_592 = arith.constant 1 : index
    %c8_593 = arith.constant 8 : index
    %c0_594 = arith.constant 0 : index
    %973 = vector.load %arg23[%c1_592, %c8_593, %c0_594] : memref<3x16x32xf32, #tpu.memory_space<vmem>>, vector<1x2x32xf32>
    %974 = vector.shape_cast %973 : vector<1x2x32xf32> to vector<2x32xf32>
    %975 = arith.addf %974, %963 : vector<2x32xf32>
    %976 = arith.negf %975 : vector<2x32xf32>
    %977 = math.exp %976 : vector<2x32xf32>
    %cst_595 = arith.constant 1.000000e+00 : f32
    %978 = vector.broadcast %cst_595 : f32 to vector<2x32xf32>
    %979 = arith.addf %978, %977 : vector<2x32xf32>
    %980 = arith.divf %978, %979 : vector<2x32xf32>
    %c2_596 = arith.constant 2 : index
    %c8_597 = arith.constant 8 : index
    %c0_598 = arith.constant 0 : index
    %981 = vector.load %arg23[%c2_596, %c8_597, %c0_598] : memref<3x16x32xf32, #tpu.memory_space<vmem>>, vector<1x2x32xf32>
    %982 = vector.shape_cast %981 : vector<1x2x32xf32> to vector<2x32xf32>
    %983 = vector.broadcast %690 : vector<1x32xf32> to vector<2x32xf32>
    %984 = arith.addf %964, %983 : vector<2x32xf32>
    %985 = arith.mulf %972, %984 : vector<2x32xf32>
    %986 = arith.addf %982, %985 : vector<2x32xf32>
    %987 = math.tanh %986 : vector<2x32xf32>
    %cst_599 = arith.constant 1.000000e+00 : f32
    %988 = vector.broadcast %cst_599 : f32 to vector<2x32xf32>
    %989 = arith.subf %988, %980 : vector<2x32xf32>
    %990 = arith.mulf %989, %987 : vector<2x32xf32>
    %991 = arith.mulf %980, %926 : vector<2x32xf32>
    %992 = arith.addf %990, %991 : vector<2x32xf32>
    %cst_600 = arith.constant dense<0.000000e+00> : vector<2x32xf32>
    %993 = tpu.matmul %961, %685, %cst_600 {dimension_numbers = #tpu.dot_dimension_numbers<[1], [0], [0], [1], [0, 0, 1, 1], [], []>} : vector<2x32xbf16>, vector<32x32xbf16>, vector<2x32xf32> -> vector<2x32xf32>
    %cst_601 = arith.constant dense<0.000000e+00> : vector<2x32xf32>
    %994 = tpu.matmul %961, %687, %cst_601 {dimension_numbers = #tpu.dot_dimension_numbers<[1], [0], [0], [1], [0, 0, 1, 1], [], []>} : vector<2x32xbf16>, vector<32x32xbf16>, vector<2x32xf32> -> vector<2x32xf32>
    %cst_602 = arith.constant dense<0.000000e+00> : vector<2x32xf32>
    %995 = tpu.matmul %961, %689, %cst_602 {dimension_numbers = #tpu.dot_dimension_numbers<[1], [0], [0], [1], [0, 0, 1, 1], [], []>} : vector<2x32xbf16>, vector<32x32xbf16>, vector<2x32xf32> -> vector<2x32xf32>
    %c0_603 = arith.constant 0 : index
    %c6_604 = arith.constant 6 : index
    %c0_605 = arith.constant 0 : index
    %996 = vector.load %arg24[%c0_603, %c6_604, %c0_605] : memref<3x16x32xf32, #tpu.memory_space<vmem>>, vector<1x2x32xf32>
    %997 = vector.shape_cast %996 : vector<1x2x32xf32> to vector<2x32xf32>
    %998 = arith.addf %997, %993 : vector<2x32xf32>
    %999 = arith.negf %998 : vector<2x32xf32>
    %1000 = math.exp %999 : vector<2x32xf32>
    %cst_606 = arith.constant 1.000000e+00 : f32
    %1001 = vector.broadcast %cst_606 : f32 to vector<2x32xf32>
    %1002 = arith.addf %1001, %1000 : vector<2x32xf32>
    %1003 = arith.divf %1001, %1002 : vector<2x32xf32>
    %c1_607 = arith.constant 1 : index
    %c6_608 = arith.constant 6 : index
    %c0_609 = arith.constant 0 : index
    %1004 = vector.load %arg24[%c1_607, %c6_608, %c0_609] : memref<3x16x32xf32, #tpu.memory_space<vmem>>, vector<1x2x32xf32>
    %1005 = vector.shape_cast %1004 : vector<1x2x32xf32> to vector<2x32xf32>
    %1006 = arith.addf %1005, %994 : vector<2x32xf32>
    %1007 = arith.negf %1006 : vector<2x32xf32>
    %1008 = math.exp %1007 : vector<2x32xf32>
    %cst_610 = arith.constant 1.000000e+00 : f32
    %1009 = vector.broadcast %cst_610 : f32 to vector<2x32xf32>
    %1010 = arith.addf %1009, %1008 : vector<2x32xf32>
    %1011 = arith.divf %1009, %1010 : vector<2x32xf32>
    %c2_611 = arith.constant 2 : index
    %c6_612 = arith.constant 6 : index
    %c0_613 = arith.constant 0 : index
    %1012 = vector.load %arg24[%c2_611, %c6_612, %c0_613] : memref<3x16x32xf32, #tpu.memory_space<vmem>>, vector<1x2x32xf32>
    %1013 = vector.shape_cast %1012 : vector<1x2x32xf32> to vector<2x32xf32>
    %1014 = vector.broadcast %691 : vector<1x32xf32> to vector<2x32xf32>
    %1015 = arith.addf %995, %1014 : vector<2x32xf32>
    %1016 = arith.mulf %1003, %1015 : vector<2x32xf32>
    %1017 = arith.addf %1013, %1016 : vector<2x32xf32>
    %1018 = math.tanh %1017 : vector<2x32xf32>
    %cst_614 = arith.constant 1.000000e+00 : f32
    %1019 = vector.broadcast %cst_614 : f32 to vector<2x32xf32>
    %1020 = arith.subf %1019, %1011 : vector<2x32xf32>
    %1021 = arith.mulf %1020, %1018 : vector<2x32xf32>
    %1022 = arith.mulf %1011, %957 : vector<2x32xf32>
    %1023 = arith.addf %1021, %1022 : vector<2x32xf32>
    %c8_615 = arith.constant 8 : index
    %c0_616 = arith.constant 0 : index
    %1024 = vector.load %arg25[%c8_615, %c0_616] : memref<16x32xf32, #tpu.memory_space<vmem>>, vector<2x32xf32>
    tpu.vector_store %arg25[%c8_615, %c0_616], %992 {strides = array<i32>} : memref<16x32xf32, #tpu.memory_space<vmem>>, vector<2x32xf32>,
    %c6_617 = arith.constant 6 : index
    %c0_618 = arith.constant 0 : index
    %1025 = vector.load %arg26[%c6_617, %c0_618] : memref<16x32xf32, #tpu.memory_space<vmem>>, vector<2x32xf32>
    tpu.vector_store %arg26[%c6_617, %c0_618], %1023 {strides = array<i32>} : memref<16x32xf32, #tpu.memory_space<vmem>>, vector<2x32xf32>,
    %1026 = arith.truncf %992 : vector<2x32xf32> to vector<2x32xbf16>
    %1027 = arith.truncf %1023 : vector<2x32xf32> to vector<2x32xbf16>
    %cst_619 = arith.constant dense<0.000000e+00> : vector<2x32xf32>
    %1028 = tpu.matmul %1026, %679, %cst_619 {dimension_numbers = #tpu.dot_dimension_numbers<[1], [0], [0], [1], [0, 0, 1, 1], [], []>} : vector<2x32xbf16>, vector<32x32xbf16>, vector<2x32xf32> -> vector<2x32xf32>
    %cst_620 = arith.constant dense<0.000000e+00> : vector<2x32xf32>
    %1029 = tpu.matmul %1026, %681, %cst_620 {dimension_numbers = #tpu.dot_dimension_numbers<[1], [0], [0], [1], [0, 0, 1, 1], [], []>} : vector<2x32xbf16>, vector<32x32xbf16>, vector<2x32xf32> -> vector<2x32xf32>
    %cst_621 = arith.constant dense<0.000000e+00> : vector<2x32xf32>
    %1030 = tpu.matmul %1026, %683, %cst_621 {dimension_numbers = #tpu.dot_dimension_numbers<[1], [0], [0], [1], [0, 0, 1, 1], [], []>} : vector<2x32xbf16>, vector<32x32xbf16>, vector<2x32xf32> -> vector<2x32xf32>
    %c0_622 = arith.constant 0 : index
    %c10_623 = arith.constant 10 : index
    %c0_624 = arith.constant 0 : index
    %1031 = vector.load %arg23[%c0_622, %c10_623, %c0_624] : memref<3x16x32xf32, #tpu.memory_space<vmem>>, vector<1x2x32xf32>
    %1032 = vector.shape_cast %1031 : vector<1x2x32xf32> to vector<2x32xf32>
    %1033 = arith.addf %1032, %1028 : vector<2x32xf32>
    %1034 = arith.negf %1033 : vector<2x32xf32>
    %1035 = math.exp %1034 : vector<2x32xf32>
    %cst_625 = arith.constant 1.000000e+00 : f32
    %1036 = vector.broadcast %cst_625 : f32 to vector<2x32xf32>
    %1037 = arith.addf %1036, %1035 : vector<2x32xf32>
    %1038 = arith.divf %1036, %1037 : vector<2x32xf32>
    %c1_626 = arith.constant 1 : index
    %c10_627 = arith.constant 10 : index
    %c0_628 = arith.constant 0 : index
    %1039 = vector.load %arg23[%c1_626, %c10_627, %c0_628] : memref<3x16x32xf32, #tpu.memory_space<vmem>>, vector<1x2x32xf32>
    %1040 = vector.shape_cast %1039 : vector<1x2x32xf32> to vector<2x32xf32>
    %1041 = arith.addf %1040, %1029 : vector<2x32xf32>
    %1042 = arith.negf %1041 : vector<2x32xf32>
    %1043 = math.exp %1042 : vector<2x32xf32>
    %cst_629 = arith.constant 1.000000e+00 : f32
    %1044 = vector.broadcast %cst_629 : f32 to vector<2x32xf32>
    %1045 = arith.addf %1044, %1043 : vector<2x32xf32>
    %1046 = arith.divf %1044, %1045 : vector<2x32xf32>
    %c2_630 = arith.constant 2 : index
    %c10_631 = arith.constant 10 : index
    %c0_632 = arith.constant 0 : index
    %1047 = vector.load %arg23[%c2_630, %c10_631, %c0_632] : memref<3x16x32xf32, #tpu.memory_space<vmem>>, vector<1x2x32xf32>
    %1048 = vector.shape_cast %1047 : vector<1x2x32xf32> to vector<2x32xf32>
    %1049 = vector.broadcast %690 : vector<1x32xf32> to vector<2x32xf32>
    %1050 = arith.addf %1030, %1049 : vector<2x32xf32>
    %1051 = arith.mulf %1038, %1050 : vector<2x32xf32>
    %1052 = arith.addf %1048, %1051 : vector<2x32xf32>
    %1053 = math.tanh %1052 : vector<2x32xf32>
    %cst_633 = arith.constant 1.000000e+00 : f32
    %1054 = vector.broadcast %cst_633 : f32 to vector<2x32xf32>
    %1055 = arith.subf %1054, %1046 : vector<2x32xf32>
    %1056 = arith.mulf %1055, %1053 : vector<2x32xf32>
    %1057 = arith.mulf %1046, %992 : vector<2x32xf32>
    %1058 = arith.addf %1056, %1057 : vector<2x32xf32>
    %cst_634 = arith.constant dense<0.000000e+00> : vector<2x32xf32>
    %1059 = tpu.matmul %1027, %685, %cst_634 {dimension_numbers = #tpu.dot_dimension_numbers<[1], [0], [0], [1], [0, 0, 1, 1], [], []>} : vector<2x32xbf16>, vector<32x32xbf16>, vector<2x32xf32> -> vector<2x32xf32>
    %cst_635 = arith.constant dense<0.000000e+00> : vector<2x32xf32>
    %1060 = tpu.matmul %1027, %687, %cst_635 {dimension_numbers = #tpu.dot_dimension_numbers<[1], [0], [0], [1], [0, 0, 1, 1], [], []>} : vector<2x32xbf16>, vector<32x32xbf16>, vector<2x32xf32> -> vector<2x32xf32>
    %cst_636 = arith.constant dense<0.000000e+00> : vector<2x32xf32>
    %1061 = tpu.matmul %1027, %689, %cst_636 {dimension_numbers = #tpu.dot_dimension_numbers<[1], [0], [0], [1], [0, 0, 1, 1], [], []>} : vector<2x32xbf16>, vector<32x32xbf16>, vector<2x32xf32> -> vector<2x32xf32>
    %c0_637 = arith.constant 0 : index
    %c4_638 = arith.constant 4 : index
    %c0_639 = arith.constant 0 : index
    %1062 = vector.load %arg24[%c0_637, %c4_638, %c0_639] : memref<3x16x32xf32, #tpu.memory_space<vmem>>, vector<1x2x32xf32>
    %1063 = vector.shape_cast %1062 : vector<1x2x32xf32> to vector<2x32xf32>
    %1064 = arith.addf %1063, %1059 : vector<2x32xf32>
    %1065 = arith.negf %1064 : vector<2x32xf32>
    %1066 = math.exp %1065 : vector<2x32xf32>
    %cst_640 = arith.constant 1.000000e+00 : f32
    %1067 = vector.broadcast %cst_640 : f32 to vector<2x32xf32>
    %1068 = arith.addf %1067, %1066 : vector<2x32xf32>
    %1069 = arith.divf %1067, %1068 : vector<2x32xf32>
    %c1_641 = arith.constant 1 : index
    %c4_642 = arith.constant 4 : index
    %c0_643 = arith.constant 0 : index
    %1070 = vector.load %arg24[%c1_641, %c4_642, %c0_643] : memref<3x16x32xf32, #tpu.memory_space<vmem>>, vector<1x2x32xf32>
    %1071 = vector.shape_cast %1070 : vector<1x2x32xf32> to vector<2x32xf32>
    %1072 = arith.addf %1071, %1060 : vector<2x32xf32>
    %1073 = arith.negf %1072 : vector<2x32xf32>
    %1074 = math.exp %1073 : vector<2x32xf32>
    %cst_644 = arith.constant 1.000000e+00 : f32
    %1075 = vector.broadcast %cst_644 : f32 to vector<2x32xf32>
    %1076 = arith.addf %1075, %1074 : vector<2x32xf32>
    %1077 = arith.divf %1075, %1076 : vector<2x32xf32>
    %c2_645 = arith.constant 2 : index
    %c4_646 = arith.constant 4 : index
    %c0_647 = arith.constant 0 : index
    %1078 = vector.load %arg24[%c2_645, %c4_646, %c0_647] : memref<3x16x32xf32, #tpu.memory_space<vmem>>, vector<1x2x32xf32>
    %1079 = vector.shape_cast %1078 : vector<1x2x32xf32> to vector<2x32xf32>
    %1080 = vector.broadcast %691 : vector<1x32xf32> to vector<2x32xf32>
    %1081 = arith.addf %1061, %1080 : vector<2x32xf32>
    %1082 = arith.mulf %1069, %1081 : vector<2x32xf32>
    %1083 = arith.addf %1079, %1082 : vector<2x32xf32>
    %1084 = math.tanh %1083 : vector<2x32xf32>
    %cst_648 = arith.constant 1.000000e+00 : f32
    %1085 = vector.broadcast %cst_648 : f32 to vector<2x32xf32>
    %1086 = arith.subf %1085, %1077 : vector<2x32xf32>
    %1087 = arith.mulf %1086, %1084 : vector<2x32xf32>
    %1088 = arith.mulf %1077, %1023 : vector<2x32xf32>
    %1089 = arith.addf %1087, %1088 : vector<2x32xf32>
    %c10_649 = arith.constant 10 : index
    %c0_650 = arith.constant 0 : index
    %1090 = vector.load %arg25[%c10_649, %c0_650] : memref<16x32xf32, #tpu.memory_space<vmem>>, vector<2x32xf32>
    tpu.vector_store %arg25[%c10_649, %c0_650], %1058 {strides = array<i32>} : memref<16x32xf32, #tpu.memory_space<vmem>>, vector<2x32xf32>,
    %c4_651 = arith.constant 4 : index
    %c0_652 = arith.constant 0 : index
    %1091 = vector.load %arg26[%c4_651, %c0_652] : memref<16x32xf32, #tpu.memory_space<vmem>>, vector<2x32xf32>
    tpu.vector_store %arg26[%c4_651, %c0_652], %1089 {strides = array<i32>} : memref<16x32xf32, #tpu.memory_space<vmem>>, vector<2x32xf32>,
    %1092 = arith.truncf %1058 : vector<2x32xf32> to vector<2x32xbf16>
    %1093 = arith.truncf %1089 : vector<2x32xf32> to vector<2x32xbf16>
    %cst_653 = arith.constant dense<0.000000e+00> : vector<2x32xf32>
    %1094 = tpu.matmul %1092, %679, %cst_653 {dimension_numbers = #tpu.dot_dimension_numbers<[1], [0], [0], [1], [0, 0, 1, 1], [], []>} : vector<2x32xbf16>, vector<32x32xbf16>, vector<2x32xf32> -> vector<2x32xf32>
    %cst_654 = arith.constant dense<0.000000e+00> : vector<2x32xf32>
    %1095 = tpu.matmul %1092, %681, %cst_654 {dimension_numbers = #tpu.dot_dimension_numbers<[1], [0], [0], [1], [0, 0, 1, 1], [], []>} : vector<2x32xbf16>, vector<32x32xbf16>, vector<2x32xf32> -> vector<2x32xf32>
    %cst_655 = arith.constant dense<0.000000e+00> : vector<2x32xf32>
    %1096 = tpu.matmul %1092, %683, %cst_655 {dimension_numbers = #tpu.dot_dimension_numbers<[1], [0], [0], [1], [0, 0, 1, 1], [], []>} : vector<2x32xbf16>, vector<32x32xbf16>, vector<2x32xf32> -> vector<2x32xf32>
    %c0_656 = arith.constant 0 : index
    %c12_657 = arith.constant 12 : index
    %c0_658 = arith.constant 0 : index
    %1097 = vector.load %arg23[%c0_656, %c12_657, %c0_658] : memref<3x16x32xf32, #tpu.memory_space<vmem>>, vector<1x2x32xf32>
    %1098 = vector.shape_cast %1097 : vector<1x2x32xf32> to vector<2x32xf32>
    %1099 = arith.addf %1098, %1094 : vector<2x32xf32>
    %1100 = arith.negf %1099 : vector<2x32xf32>
    %1101 = math.exp %1100 : vector<2x32xf32>
    %cst_659 = arith.constant 1.000000e+00 : f32
    %1102 = vector.broadcast %cst_659 : f32 to vector<2x32xf32>
    %1103 = arith.addf %1102, %1101 : vector<2x32xf32>
    %1104 = arith.divf %1102, %1103 : vector<2x32xf32>
    %c1_660 = arith.constant 1 : index
    %c12_661 = arith.constant 12 : index
    %c0_662 = arith.constant 0 : index
    %1105 = vector.load %arg23[%c1_660, %c12_661, %c0_662] : memref<3x16x32xf32, #tpu.memory_space<vmem>>, vector<1x2x32xf32>
    %1106 = vector.shape_cast %1105 : vector<1x2x32xf32> to vector<2x32xf32>
    %1107 = arith.addf %1106, %1095 : vector<2x32xf32>
    %1108 = arith.negf %1107 : vector<2x32xf32>
    %1109 = math.exp %1108 : vector<2x32xf32>
    %cst_663 = arith.constant 1.000000e+00 : f32
    %1110 = vector.broadcast %cst_663 : f32 to vector<2x32xf32>
    %1111 = arith.addf %1110, %1109 : vector<2x32xf32>
    %1112 = arith.divf %1110, %1111 : vector<2x32xf32>
    %c2_664 = arith.constant 2 : index
    %c12_665 = arith.constant 12 : index
    %c0_666 = arith.constant 0 : index
    %1113 = vector.load %arg23[%c2_664, %c12_665, %c0_666] : memref<3x16x32xf32, #tpu.memory_space<vmem>>, vector<1x2x32xf32>
    %1114 = vector.shape_cast %1113 : vector<1x2x32xf32> to vector<2x32xf32>
    %1115 = vector.broadcast %690 : vector<1x32xf32> to vector<2x32xf32>
    %1116 = arith.addf %1096, %1115 : vector<2x32xf32>
    %1117 = arith.mulf %1104, %1116 : vector<2x32xf32>
    %1118 = arith.addf %1114, %1117 : vector<2x32xf32>
    %1119 = math.tanh %1118 : vector<2x32xf32>
    %cst_667 = arith.constant 1.000000e+00 : f32
    %1120 = vector.broadcast %cst_667 : f32 to vector<2x32xf32>
    %1121 = arith.subf %1120, %1112 : vector<2x32xf32>
    %1122 = arith.mulf %1121, %1119 : vector<2x32xf32>
    %1123 = arith.mulf %1112, %1058 : vector<2x32xf32>
    %1124 = arith.addf %1122, %1123 : vector<2x32xf32>
    %cst_668 = arith.constant dense<0.000000e+00> : vector<2x32xf32>
    %1125 = tpu.matmul %1093, %685, %cst_668 {dimension_numbers = #tpu.dot_dimension_numbers<[1], [0], [0], [1], [0, 0, 1, 1], [], []>} : vector<2x32xbf16>, vector<32x32xbf16>, vector<2x32xf32> -> vector<2x32xf32>
    %cst_669 = arith.constant dense<0.000000e+00> : vector<2x32xf32>
    %1126 = tpu.matmul %1093, %687, %cst_669 {dimension_numbers = #tpu.dot_dimension_numbers<[1], [0], [0], [1], [0, 0, 1, 1], [], []>} : vector<2x32xbf16>, vector<32x32xbf16>, vector<2x32xf32> -> vector<2x32xf32>
    %cst_670 = arith.constant dense<0.000000e+00> : vector<2x32xf32>
    %1127 = tpu.matmul %1093, %689, %cst_670 {dimension_numbers = #tpu.dot_dimension_numbers<[1], [0], [0], [1], [0, 0, 1, 1], [], []>} : vector<2x32xbf16>, vector<32x32xbf16>, vector<2x32xf32> -> vector<2x32xf32>
    %c0_671 = arith.constant 0 : index
    %c2_672 = arith.constant 2 : index
    %c0_673 = arith.constant 0 : index
    %1128 = vector.load %arg24[%c0_671, %c2_672, %c0_673] : memref<3x16x32xf32, #tpu.memory_space<vmem>>, vector<1x2x32xf32>
    %1129 = vector.shape_cast %1128 : vector<1x2x32xf32> to vector<2x32xf32>
    %1130 = arith.addf %1129, %1125 : vector<2x32xf32>
    %1131 = arith.negf %1130 : vector<2x32xf32>
    %1132 = math.exp %1131 : vector<2x32xf32>
    %cst_674 = arith.constant 1.000000e+00 : f32
    %1133 = vector.broadcast %cst_674 : f32 to vector<2x32xf32>
    %1134 = arith.addf %1133, %1132 : vector<2x32xf32>
    %1135 = arith.divf %1133, %1134 : vector<2x32xf32>
    %c1_675 = arith.constant 1 : index
    %c2_676 = arith.constant 2 : index
    %c0_677 = arith.constant 0 : index
    %1136 = vector.load %arg24[%c1_675, %c2_676, %c0_677] : memref<3x16x32xf32, #tpu.memory_space<vmem>>, vector<1x2x32xf32>
    %1137 = vector.shape_cast %1136 : vector<1x2x32xf32> to vector<2x32xf32>
    %1138 = arith.addf %1137, %1126 : vector<2x32xf32>
    %1139 = arith.negf %1138 : vector<2x32xf32>
    %1140 = math.exp %1139 : vector<2x32xf32>
    %cst_678 = arith.constant 1.000000e+00 : f32
    %1141 = vector.broadcast %cst_678 : f32 to vector<2x32xf32>
    %1142 = arith.addf %1141, %1140 : vector<2x32xf32>
    %1143 = arith.divf %1141, %1142 : vector<2x32xf32>
    %c2_679 = arith.constant 2 : index
    %c2_680 = arith.constant 2 : index
    %c0_681 = arith.constant 0 : index
    %1144 = vector.load %arg24[%c2_679, %c2_680, %c0_681] : memref<3x16x32xf32, #tpu.memory_space<vmem>>, vector<1x2x32xf32>
    %1145 = vector.shape_cast %1144 : vector<1x2x32xf32> to vector<2x32xf32>
    %1146 = vector.broadcast %691 : vector<1x32xf32> to vector<2x32xf32>
    %1147 = arith.addf %1127, %1146 : vector<2x32xf32>
    %1148 = arith.mulf %1135, %1147 : vector<2x32xf32>
    %1149 = arith.addf %1145, %1148 : vector<2x32xf32>
    %1150 = math.tanh %1149 : vector<2x32xf32>
    %cst_682 = arith.constant 1.000000e+00 : f32
    %1151 = vector.broadcast %cst_682 : f32 to vector<2x32xf32>
    %1152 = arith.subf %1151, %1143 : vector<2x32xf32>
    %1153 = arith.mulf %1152, %1150 : vector<2x32xf32>
    %1154 = arith.mulf %1143, %1089 : vector<2x32xf32>
    %1155 = arith.addf %1153, %1154 : vector<2x32xf32>
    %c12_683 = arith.constant 12 : index
    %c0_684 = arith.constant 0 : index
    %1156 = vector.load %arg25[%c12_683, %c0_684] : memref<16x32xf32, #tpu.memory_space<vmem>>, vector<2x32xf32>
    tpu.vector_store %arg25[%c12_683, %c0_684], %1124 {strides = array<i32>} : memref<16x32xf32, #tpu.memory_space<vmem>>, vector<2x32xf32>,
    %c2_685 = arith.constant 2 : index
    %c0_686 = arith.constant 0 : index
    %1157 = vector.load %arg26[%c2_685, %c0_686] : memref<16x32xf32, #tpu.memory_space<vmem>>, vector<2x32xf32>
    tpu.vector_store %arg26[%c2_685, %c0_686], %1155 {strides = array<i32>} : memref<16x32xf32, #tpu.memory_space<vmem>>, vector<2x32xf32>,
    %1158 = arith.truncf %1124 : vector<2x32xf32> to vector<2x32xbf16>
    %1159 = arith.truncf %1155 : vector<2x32xf32> to vector<2x32xbf16>
    %cst_687 = arith.constant dense<0.000000e+00> : vector<2x32xf32>
    %1160 = tpu.matmul %1158, %679, %cst_687 {dimension_numbers = #tpu.dot_dimension_numbers<[1], [0], [0], [1], [0, 0, 1, 1], [], []>} : vector<2x32xbf16>, vector<32x32xbf16>, vector<2x32xf32> -> vector<2x32xf32>
    %cst_688 = arith.constant dense<0.000000e+00> : vector<2x32xf32>
    %1161 = tpu.matmul %1158, %681, %cst_688 {dimension_numbers = #tpu.dot_dimension_numbers<[1], [0], [0], [1], [0, 0, 1, 1], [], []>} : vector<2x32xbf16>, vector<32x32xbf16>, vector<2x32xf32> -> vector<2x32xf32>
    %cst_689 = arith.constant dense<0.000000e+00> : vector<2x32xf32>
    %1162 = tpu.matmul %1158, %683, %cst_689 {dimension_numbers = #tpu.dot_dimension_numbers<[1], [0], [0], [1], [0, 0, 1, 1], [], []>} : vector<2x32xbf16>, vector<32x32xbf16>, vector<2x32xf32> -> vector<2x32xf32>
    %c0_690 = arith.constant 0 : index
    %c14_691 = arith.constant 14 : index
    %c0_692 = arith.constant 0 : index
    %1163 = vector.load %arg23[%c0_690, %c14_691, %c0_692] : memref<3x16x32xf32, #tpu.memory_space<vmem>>, vector<1x2x32xf32>
    %1164 = vector.shape_cast %1163 : vector<1x2x32xf32> to vector<2x32xf32>
    %1165 = arith.addf %1164, %1160 : vector<2x32xf32>
    %1166 = arith.negf %1165 : vector<2x32xf32>
    %1167 = math.exp %1166 : vector<2x32xf32>
    %cst_693 = arith.constant 1.000000e+00 : f32
    %1168 = vector.broadcast %cst_693 : f32 to vector<2x32xf32>
    %1169 = arith.addf %1168, %1167 : vector<2x32xf32>
    %1170 = arith.divf %1168, %1169 : vector<2x32xf32>
    %c1_694 = arith.constant 1 : index
    %c14_695 = arith.constant 14 : index
    %c0_696 = arith.constant 0 : index
    %1171 = vector.load %arg23[%c1_694, %c14_695, %c0_696] : memref<3x16x32xf32, #tpu.memory_space<vmem>>, vector<1x2x32xf32>
    %1172 = vector.shape_cast %1171 : vector<1x2x32xf32> to vector<2x32xf32>
    %1173 = arith.addf %1172, %1161 : vector<2x32xf32>
    %1174 = arith.negf %1173 : vector<2x32xf32>
    %1175 = math.exp %1174 : vector<2x32xf32>
    %cst_697 = arith.constant 1.000000e+00 : f32
    %1176 = vector.broadcast %cst_697 : f32 to vector<2x32xf32>
    %1177 = arith.addf %1176, %1175 : vector<2x32xf32>
    %1178 = arith.divf %1176, %1177 : vector<2x32xf32>
    %c2_698 = arith.constant 2 : index
    %c14_699 = arith.constant 14 : index
    %c0_700 = arith.constant 0 : index
    %1179 = vector.load %arg23[%c2_698, %c14_699, %c0_700] : memref<3x16x32xf32, #tpu.memory_space<vmem>>, vector<1x2x32xf32>
    %1180 = vector.shape_cast %1179 : vector<1x2x32xf32> to vector<2x32xf32>
    %1181 = vector.broadcast %690 : vector<1x32xf32> to vector<2x32xf32>
    %1182 = arith.addf %1162, %1181 : vector<2x32xf32>
    %1183 = arith.mulf %1170, %1182 : vector<2x32xf32>
    %1184 = arith.addf %1180, %1183 : vector<2x32xf32>
    %1185 = math.tanh %1184 : vector<2x32xf32>
    %cst_701 = arith.constant 1.000000e+00 : f32
    %1186 = vector.broadcast %cst_701 : f32 to vector<2x32xf32>
    %1187 = arith.subf %1186, %1178 : vector<2x32xf32>
    %1188 = arith.mulf %1187, %1185 : vector<2x32xf32>
    %1189 = arith.mulf %1178, %1124 : vector<2x32xf32>
    %1190 = arith.addf %1188, %1189 : vector<2x32xf32>
    %cst_702 = arith.constant dense<0.000000e+00> : vector<2x32xf32>
    %1191 = tpu.matmul %1159, %685, %cst_702 {dimension_numbers = #tpu.dot_dimension_numbers<[1], [0], [0], [1], [0, 0, 1, 1], [], []>} : vector<2x32xbf16>, vector<32x32xbf16>, vector<2x32xf32> -> vector<2x32xf32>
    %cst_703 = arith.constant dense<0.000000e+00> : vector<2x32xf32>
    %1192 = tpu.matmul %1159, %687, %cst_703 {dimension_numbers = #tpu.dot_dimension_numbers<[1], [0], [0], [1], [0, 0, 1, 1], [], []>} : vector<2x32xbf16>, vector<32x32xbf16>, vector<2x32xf32> -> vector<2x32xf32>
    %cst_704 = arith.constant dense<0.000000e+00> : vector<2x32xf32>
    %1193 = tpu.matmul %1159, %689, %cst_704 {dimension_numbers = #tpu.dot_dimension_numbers<[1], [0], [0], [1], [0, 0, 1, 1], [], []>} : vector<2x32xbf16>, vector<32x32xbf16>, vector<2x32xf32> -> vector<2x32xf32>
    %c0_705 = arith.constant 0 : index
    %c0_706 = arith.constant 0 : index
    %c0_707 = arith.constant 0 : index
    %1194 = vector.load %arg24[%c0_705, %c0_706, %c0_707] : memref<3x16x32xf32, #tpu.memory_space<vmem>>, vector<1x2x32xf32>
    %1195 = vector.shape_cast %1194 : vector<1x2x32xf32> to vector<2x32xf32>
    %1196 = arith.addf %1195, %1191 : vector<2x32xf32>
    %1197 = arith.negf %1196 : vector<2x32xf32>
    %1198 = math.exp %1197 : vector<2x32xf32>
    %cst_708 = arith.constant 1.000000e+00 : f32
    %1199 = vector.broadcast %cst_708 : f32 to vector<2x32xf32>
    %1200 = arith.addf %1199, %1198 : vector<2x32xf32>
    %1201 = arith.divf %1199, %1200 : vector<2x32xf32>
    %c1_709 = arith.constant 1 : index
    %c0_710 = arith.constant 0 : index
    %c0_711 = arith.constant 0 : index
    %1202 = vector.load %arg24[%c1_709, %c0_710, %c0_711] : memref<3x16x32xf32, #tpu.memory_space<vmem>>, vector<1x2x32xf32>
    %1203 = vector.shape_cast %1202 : vector<1x2x32xf32> to vector<2x32xf32>
    %1204 = arith.addf %1203, %1192 : vector<2x32xf32>
    %1205 = arith.negf %1204 : vector<2x32xf32>
    %1206 = math.exp %1205 : vector<2x32xf32>
    %cst_712 = arith.constant 1.000000e+00 : f32
    %1207 = vector.broadcast %cst_712 : f32 to vector<2x32xf32>
    %1208 = arith.addf %1207, %1206 : vector<2x32xf32>
    %1209 = arith.divf %1207, %1208 : vector<2x32xf32>
    %c2_713 = arith.constant 2 : index
    %c0_714 = arith.constant 0 : index
    %c0_715 = arith.constant 0 : index
    %1210 = vector.load %arg24[%c2_713, %c0_714, %c0_715] : memref<3x16x32xf32, #tpu.memory_space<vmem>>, vector<1x2x32xf32>
    %1211 = vector.shape_cast %1210 : vector<1x2x32xf32> to vector<2x32xf32>
    %1212 = vector.broadcast %691 : vector<1x32xf32> to vector<2x32xf32>
    %1213 = arith.addf %1193, %1212 : vector<2x32xf32>
    %1214 = arith.mulf %1201, %1213 : vector<2x32xf32>
    %1215 = arith.addf %1211, %1214 : vector<2x32xf32>
    %1216 = math.tanh %1215 : vector<2x32xf32>
    %cst_716 = arith.constant 1.000000e+00 : f32
    %1217 = vector.broadcast %cst_716 : f32 to vector<2x32xf32>
    %1218 = arith.subf %1217, %1209 : vector<2x32xf32>
    %1219 = arith.mulf %1218, %1216 : vector<2x32xf32>
    %1220 = arith.mulf %1209, %1155 : vector<2x32xf32>
    %1221 = arith.addf %1219, %1220 : vector<2x32xf32>
    %c14_717 = arith.constant 14 : index
    %c0_718 = arith.constant 0 : index
    %1222 = vector.load %arg25[%c14_717, %c0_718] : memref<16x32xf32, #tpu.memory_space<vmem>>, vector<2x32xf32>
    tpu.vector_store %arg25[%c14_717, %c0_718], %1190 {strides = array<i32>} : memref<16x32xf32, #tpu.memory_space<vmem>>, vector<2x32xf32>,
    %c0_719 = arith.constant 0 : index
    %c0_720 = arith.constant 0 : index
    %1223 = vector.load %arg26[%c0_719, %c0_720] : memref<16x32xf32, #tpu.memory_space<vmem>>, vector<2x32xf32>
    tpu.vector_store %arg26[%c0_719, %c0_720], %1221 {strides = array<i32>} : memref<16x32xf32, #tpu.memory_space<vmem>>, vector<2x32xf32>,
    %c2_721 = arith.constant 2 : index
    %c0_722 = arith.constant 0 : index
    %c0_723 = arith.constant 0 : index
    %1224 = vector.load %arg22[%c2_721, %c0_722, %c0_723] : memref<4x2x32xf32, #tpu.memory_space<vmem>>, vector<1x2x32xf32>
    %1225 = vector.shape_cast %1224 : vector<1x2x32xf32> to vector<2x32xf32>
    %1226 = vector.shape_cast %1190 : vector<2x32xf32> to vector<1x2x32xf32>
    tpu.vector_store %arg22[%c2_721, %c0_722, %c0_723], %1226 {strides = array<i32>} : memref<4x2x32xf32, #tpu.memory_space<vmem>>, vector<1x2x32xf32>,
    %c3_724 = arith.constant 3 : index
    %c0_725 = arith.constant 0 : index
    %c0_726 = arith.constant 0 : index
    %1227 = vector.load %arg22[%c3_724, %c0_725, %c0_726] : memref<4x2x32xf32, #tpu.memory_space<vmem>>, vector<1x2x32xf32>
    %1228 = vector.shape_cast %1227 : vector<1x2x32xf32> to vector<2x32xf32>
    %1229 = vector.shape_cast %1221 : vector<2x32xf32> to vector<1x2x32xf32>
    tpu.vector_store %arg22[%c3_724, %c0_725, %c0_726], %1229 {strides = array<i32>} : memref<4x2x32xf32, #tpu.memory_space<vmem>>, vector<1x2x32xf32>,
    %c0_727 = arith.constant 0 : index
    %c0_728 = arith.constant 0 : index
    %1230 = vector.load %arg25[%c0_727, %c0_728] : memref<16x32xf32, #tpu.memory_space<vmem>>, vector<16x32xf32>
    %c0_729 = arith.constant 0 : index
    %c0_730 = arith.constant 0 : index
    %1231 = vector.load %arg18[%c0_729, %c0_730] : memref<1x32xf32, #tpu.memory_space<vmem>>, vector<1x32xf32>
    %1232 = vector.broadcast %1231 : vector<1x32xf32> to vector<16x32xf32>
    %1233 = arith.mulf %1230, %1232 : vector<16x32xf32>
    %cst_731 = arith.constant dense<0.000000e+00> : vector<16xf32>
    %1234 = vector.multi_reduction <add>, %1233, %cst_731 [1] : vector<16x32xf32> to vector<16xf32>
    %1235 = vector.shape_cast %1234 : vector<16xf32> to vector<16x1xf32>
    %c0_732 = arith.constant 0 : index
    %c0_733 = arith.constant 0 : index
    %1236 = vector.load %arg26[%c0_732, %c0_733] : memref<16x32xf32, #tpu.memory_space<vmem>>, vector<16x32xf32>
    %c0_734 = arith.constant 0 : index
    %c0_735 = arith.constant 0 : index
    %1237 = vector.load %arg19[%c0_734, %c0_735] : memref<1x32xf32, #tpu.memory_space<vmem>>, vector<1x32xf32>
    %1238 = vector.broadcast %1237 : vector<1x32xf32> to vector<16x32xf32>
    %1239 = arith.mulf %1236, %1238 : vector<16x32xf32>
    %cst_736 = arith.constant dense<0.000000e+00> : vector<16xf32>
    %1240 = vector.multi_reduction <add>, %1239, %cst_736 [1] : vector<16x32xf32> to vector<16xf32>
    %1241 = vector.shape_cast %1240 : vector<16xf32> to vector<16x1xf32>
    %1242 = arith.addf %1235, %1241 : vector<16x1xf32>
    %c0_737 = arith.constant 0 : index
    %1243 = memref.load %arg20[%c0_737] : memref<1xf32, #tpu.memory_space<smem>>
    %1244 = vector.broadcast %1243 : f32 to vector<16x1xf32>
    %1245 = arith.addf %1242, %1244 : vector<16x1xf32>
    %c0_738 = arith.constant 0 : index
    %c0_739 = arith.constant 0 : index
    %1246 = vector.load %arg21[%c0_738, %c0_739] : memref<16x1xf32, #tpu.memory_space<vmem>>, vector<16x1xf32>
    tpu.vector_store %arg21[%c0_738, %c0_739], %1245 {strides = array<i32>} : memref<16x1xf32, #tpu.memory_space<vmem>>, vector<16x1xf32>,
    return
  }
}

</mosaic_0001>

<bundles_post_ra>
// kernel: network_forward.1
= control target key start
LH: loop header
LB: loop body
LE: loop exit
PB: predicated region body
PF: predicated region fallthrough
CT: control target
= control target key end

     0   :  { %s9659_s0 = inlined_call_operand.vmem [shape: f32[16,16], index: 0, kind: input, shape index: {}]   ;;  %s9660_s1 = inlined_call_operand.hbm [shape: f32[4,2,32], index: 1, kind: input, shape index: {}]   ;;  %s9661_s2 = inlined_call_operand.vmem [shape: bf16[3,16,32], index: 2, kind: input, shape index: {}]   ;;  %s9662_s3 = inlined_call_operand.vmem [shape: bf16[3,32,32], index: 3, kind: input, shape index: {}]   ;;  %s9663_s4 = inlined_call_operand.vmem [shape: f32[3,1,32], index: 4, kind: input, shape index: {}]   ;;  %s9664_s5 = inlined_call_operand.vmem [shape: f32[1,32], index: 5, kind: input, shape index: {}]   ;;  %s9665_s6 = inlined_call_operand.vmem [shape: bf16[3,16,32], index: 6, kind: input, shape index: {}]   ;;  %s9666_s7 = inlined_call_operand.vmem [shape: bf16[3,32,32], index: 7, kind: input, shape index: {}]   ;;  %s9667_s8 = inlined_call_operand.vmem [shape: f32[3,1,32], index: 8, kind: input, shape index: {}]   ;;  %s9668_s9 = inlined_call_operand.hbm [shape: f32[1,32], index: 9, kind: input, shape index: {}]   ;;  %s9669_s10 = inlined_call_operand.vmem [shape: bf16[3,64,32], index: 10, kind: input, shape index: {}]   ;;  %s9670_s11 = inlined_call_operand.vmem [shape: bf16[3,32,32], index: 11, kind: input, shape index: {}]   ;;  %s9671_s12 = inlined_call_operand.vmem [shape: f32[3,1,32], index: 12, kind: input, shape index: {}]   ;;  %s9672_s13 = inlined_call_operand.vmem [shape: f32[1,32], index: 13, kind: input, shape index: {}]   ;;  %s9673_s14 = inlined_call_operand.vmem [shape: bf16[3,64,32], index: 14, kind: input, shape index: {}]   ;;  %s9674_s15 = inlined_call_operand.vmem [shape: bf16[3,32,32], index: 15, kind: input, shape index: {}]   ;;  %s9675_s16 = inlined_call_operand.vmem [shape: f32[3,1,32], index: 16, kind: input, shape index: {}]   ;;  %s9676_s17 = inlined_call_operand.vmem [shape: f32[1,32], index: 17, kind: input, shape index: {}]   ;;  %s9677_s18 = inlined_call_operand.vmem [shape: f32[1,32], index: 18, kind: input, shape index: {}]   ;;  %s9678_s19 = inlined_call_operand.vmem [shape: f32[1,32], index: 19, kind: input, shape index: {}]   ;;  %s9679_s20 = inlined_call_operand.<no memory space> [shape: f32[1], index: 20, kind: input, shape index: {}]   ;;  %s9680_s21 = inlined_call_operand.vmem [shape: f32[16,1], index: 21, kind: output, shape index: {0}]   ;;  %s9681_s22 = inlined_call_operand.hbm [shape: f32[4,2,32], index: 22, kind: output, shape index: {1}]  }
   0x1   :  { %9688 = sst [smem:[#allocation16_spill]] %s9659_s0 }
   0x2   :  { %9689 = sst [smem:[#allocation17_spill]] %s9660_s1 }
   0x3   :  { %9690 = sst [smem:[#allocation18_spill]] %s9661_s2 }
   0x4   :  { %9691 = sst [smem:[#allocation19_spill]] %s9662_s3 }
   0x5   :  { %9692 = sst [smem:[#allocation20_spill]] %s9663_s4 }
   0x6   :  { %9693 = sst [smem:[#allocation21_spill]] %s9664_s5 }
   0x7   :  { %9694 = sst [smem:[#allocation22_spill]] %s9665_s6 }
   0x8   :  { %29 = vsyncpa [#allocation8], 0 }
   0x9   :  { %30 = vsyncpa [#allocation11], 0 }
   0xa   :  { %31 = vsyncpa [#allocation9], 0  ;;  %s8072_s3 = smov [#allocation7]  }
   0xb   :  { %s39_s28 = sshll.u32 %s8072_s3, 4  ;;  %s40_s28 = int_to_ptr.vmem [resolvable:$true] %s39_s28 }
   0xc   :  { %s8014_s29 = scalar_lea.vmem %s40_s28, 128  ;;  %p8019_p1 = scmp.lt.s32.totalorder %s40_s28, %s40_s28 }
   0xd   :  { %p8015_p0 = scmp.ne.s32.totalorder %s40_s28, %s8014_s29  ;;  %p8020_p2 = scmp.lt.s32.totalorder %s8014_s29, %s8014_s29 }
   0xf   :  { %p8021_p3 = por %p8020_p2, %p8019_p1 }
  0x11   :  { %p8022_p4 = pnand %p8021_p3, %p8015_p0 }
  0x13   :  { %8025 = shalt.err (!%p8022_p4)
}
  0x14   :  { %s8073_s30 = smov 32   ;;  %s8074_s4 = smov 2  }
  0x15   :  { %s9695_s1 = sld [smem:[#allocation17_spill]]  ;;  %s8075_s5 = smov [#allocation10]  }
  0x16   :  { %s66_s24 = sshll.u32 %s8075_s5, 4  ;;  %s67_s24 = int_to_ptr.vmem [resolvable:$true] %s66_s24 }
  0x17   :  { %s8034_s6 = scalar_lea.vmem %s67_s24, 16  ;;  %s8038_s25 = scalar_lea.vmem %s67_s24, 32 }
  0x18   :  { %p8035_p5 = scmp.ne.s32.totalorder %s67_s24, %s8034_s6  ;;  %p8039_p6 = scmp.lt.s32.totalorder %s67_s24, %s67_s24 }
  0x19   :  { %p8040_p7 = scmp.lt.s32.totalorder %s8038_s25, %s8034_s6 }
  0x1b   :  { %45 = dma.hbm_to_vmem [thread:$0]  %s9695_s1, 128, %s40_s28, [#allocation8], %s8073_s30, %s8073_s30, %s8074_s4  }
  0x1c   :  { %p8041_p8 = por %p8040_p7, %p8039_p6 }
  0x1e   :  { %p8042_p9 = pnand %p8041_p8, %p8035_p5 }
  0x20   :  { %8045 = shalt.err (!%p8042_p9)
}
  0x21   :  { %69 = dma.hbm_to_vmem [thread:$0]  %s9668_s9, 16, %s67_s24, [#allocation11]  }
  0x22   :  { %8066 = dma.done.wait [#allocation8], 128  }
  0x23   :  { %8067 = vsyncadd [#allocation8], 4294967168 }
  0x24   :  { %8068 = dma.done.wait [#allocation11], 16  }
  0x25   :  { %8069 = vsyncadd [#allocation11], 4294967280  ;;  %v8076_v0 = vmov 0.0   ;;  %vm8077_vm0 = vmmov 0   ;;  %s9696_s28 = sld [smem:[#allocation18_spill]]  ;;  %vm117_vm1 = vcmask 130048  }
  0x26   :  { %6716 = vmatprep.subr.bf16.mxu0 %v8076_v0  ;;  %6722 = vmatprep.subr.bf16.mxu1 %v8076_v0  ;;  %s9697_s1 = sld [smem:[#allocation16_spill]]  ;;  %vm162_vm2 = vcmask 261120   ;;  %v8266_v13 = vld [vmem:[#allocation7] sm:$0x3]  ;;  %v8293_v17 = vld [vmem:[%s9666_s7 + $0x8] sm:$0xff]   ;;  %v8322_v21 = vld [vmem:[%s9666_s7 + $0x18] sm:$0xff]  }
  0x27   :  { %6718 = vmatprep.mubr.msk.bf16.mxu0 %vm8077_vm0, %v8076_v0  ;;  %6724 = vmatprep.mubr.msk.bf16.mxu1 %vm8077_vm0, %v8076_v0  ;;  %s9698_s27 = sld [smem:[#allocation22_spill]]  ;;  %v500_v16 = vpack.c.bf16 %v8266_v13, %v8266_v13  ;;  %v8308_v19 = vld [vmem:[%s9666_s7] sm:$0xff]   ;;  %v8332_v23 = vld [vmem:[%s9666_s7 + $0x28] sm:$0xff]   ;;  %v8339_v24 = vld [vmem:[%s9666_s7 + $0x10] sm:$0xff]   ;;  %vm880_vm3 = vcmask 254976   ;;  %vm3026_vm4 = vcmask 523264  }
  0x28   :  { %v8310_v20 = vld [vmem:[#allocation7 + $0x2] sm:$0x3]  ;;  %s9700_s0 = sld [smem:[#allocation20_spill]]  ;;  %v6077_v41 = vld [vmem:[%s9667_s8] ss:$0 sm:$0xff] }
  0x29   :  { %v501_v22 = vpack.c.bf16 %v8310_v20, %v8310_v20  ;;  %v8348_v25 = vld [vmem:[%s9666_s7 + $0x20] sm:$0xff]   ;;  %s9701_s29 = sld [smem:[#allocation21_spill]] }
  0x2a   :  { %v6083_v53 = vld [vmem:[%s9667_s8 + $0x1] ss:$0 sm:$0xff]  ;;  %v6089_v55 = vld [vmem:[%s9667_s8 + $0x2] ss:$0 sm:$0xff] }
  0x2b   :  { %v7604_v1 = vld [vmem:[%s9696_s28] sm:$0xff]   ;;  %v7605_v2 = vld [vmem:[%s9696_s28 + $0x8] sm:$0xff]   ;;  %v7606_v6 = vld [vmem:[%s9696_s28 + $0x10] sm:$0xff]  }
  0x2c   :  { %6717 = vmatpush3.bf16.msra.mxu0 %v7604_v1  ;;  %v99_v3 = vld [vmem:[%s9697_s1] sm:$0xff]  ;;  %v100_v4 = vld [vmem:[%s9697_s1 + $0x8] sm:$0xff]  ;;  %6723 = vmatpush3.bf16.msra.mxu1 %v7605_v2  ;;  %s9699_s1 = sld [smem:[#allocation19_spill]] }
  0x2d   :  { %v101_v5 = vpack.c.bf16 %v100_v4, %v99_v3  ;;  %6728 = vmatprep.subr.bf16.mxu0 %v8076_v0  ;;  %6734 = vmatprep.subr.bf16.mxu1 %v8076_v0  ;;  %v7607_v7 = vld [vmem:[%s9698_s27] sm:$0xff]   ;;  %v7608_v8 = vld [vmem:[%s9698_s27 + $0x8] sm:$0xff]   ;;  %v7609_v9 = vld [vmem:[%s9698_s27 + $0x10] sm:$0xff]  }
  0x2e   :  { %v6062_v26 = vld [vmem:[%s9700_s0] ss:$0 sm:$0xff]  ;;  %v6068_v27 = vld [vmem:[%s9700_s0 + $0x1] ss:$0 sm:$0xff]  ;;  %v6074_v39 = vld [vmem:[%s9700_s0 + $0x2] ss:$0 sm:$0xff] }
  0x2f   :  { %6719 = vmatmul.mubr.msk.bf16.vlgmr.msra.gmra.mxu0 %vm117_vm1, %v101_v5  ;;  %6725 = vmatmul.mubr.msk.bf16.vlgmr.msra.gmra.mxu1 %vm117_vm1, %v101_v5 }
  0x30   :  { %6729 = vmatpush3.bf16.msra.mxu0 %v7606_v6  ;;  %6735 = vmatpush3.bf16.msra.mxu1 %v7607_v7 }
  0x31   :  { %6730 = vmatprep.mubr.msk.bf16.mxu0 %vm8077_vm0, %v8076_v0  ;;  %6736 = vmatprep.mubr.msk.bf16.mxu1 %vm8077_vm0, %v8076_v0 }
  0x32   :  { %6740 = vmatprep.subr.bf16.mxu0 %v8076_v0  ;;  %6746 = vmatprep.subr.bf16.mxu1 %v8076_v0  ;;  %v8254_v10 = vld [vmem:[%s9699_s1 + $0x8] sm:$0xff]   ;;  %v8259_v11 = vld [vmem:[%s9699_s1 + $0x18] sm:$0xff]   ;;  %v8264_v12 = vld [vmem:[%s9699_s1] sm:$0xff]  }
  0x33   :  { %v8272_v14 = vld [vmem:[%s9699_s1 + $0x10] sm:$0xff]   ;;  %v8284_v15 = vld [vmem:[%s9699_s1 + $0x28] sm:$0xff]   ;;  %v8302_v18 = vld [vmem:[%s9699_s1 + $0x20] sm:$0xff]  }
  0x37   :  { %6731 = vmatmul.mubr.msk.bf16.vlgmr.msra.gmra.mxu0 %vm117_vm1, %v101_v5  ;;  %6737 = vmatmul.mubr.msk.bf16.vlgmr.msra.gmra.mxu1 %vm117_vm1, %v101_v5 }
  0x38   :  { %6741 = vmatpush3.bf16.msra.mxu0 %v7608_v8  ;;  %6747 = vmatpush3.bf16.msra.mxu1 %v7609_v9 }
  0x39   :  { %6742 = vmatprep.mubr.msk.bf16.mxu0 %vm8077_vm0, %v8076_v0  ;;  %6748 = vmatprep.mubr.msk.bf16.mxu1 %vm8077_vm0, %v8076_v0 }
  0x3a   :  { %6752 = vmatprep.subr.bf16.mxu0 %v8076_v0  ;;  %6760 = vmatprep.subr.bf16.mxu1 %v8076_v0 }
  0x3f   :  { %6743 = vmatmul.mubr.msk.bf16.vlgmr.msra.gmra.mxu0 %vm117_vm1, %v101_v5  ;;  %6749 = vmatmul.mubr.msk.bf16.vlgmr.msra.gmra.mxu1 %vm117_vm1, %v101_v5 }
  0x40   :  { %6753 = vmatpush3.bf16.msra.mxu0 %v8254_v10  ;;  %6761 = vmatpush3.bf16.msra.mxu1 %v8259_v11 }
  0x41   :  { %6754 = vmatprep.subr.bf16.mxu0 %v8076_v0  ;;  %6762 = vmatprep.subr.bf16.mxu1 %v8076_v0 }
  0x42   :  { %6756 = vmatprep.mubr.msk.bf16.mxu0 %vm8077_vm0, %v8076_v0  ;;  %6764 = vmatprep.mubr.msk.bf16.mxu1 %vm8077_vm0, %v8076_v0 }
  0x44   :  { %6755 = vmatpush3.bf16.msra.mxu0 %v8264_v12  ;;  %6763 = vmatpush3.bf16.msra.mxu1 %v8272_v14 }
  0x45   :  { %6768 = vmatprep.subr.bf16.mxu0 %v8076_v0  ;;  %6776 = vmatprep.subr.bf16.mxu1 %v8076_v0 }
  0x47   :  { %6757 = vmatmul.mubr.msk.bf16.vlgmr.msra.gmra.mxu0 %vm162_vm2, %v500_v16  ;;  %6765 = vmatmul.mubr.msk.bf16.vlgmr.msra.gmra.mxu1 %vm162_vm2, %v500_v16 }
  0x48   :  { %6769 = vmatpush3.bf16.msra.mxu0 %v8284_v15  ;;  %6777 = vmatpush3.bf16.msra.mxu1 %v8293_v17 }
  0x49   :  { %6770 = vmatprep.subr.bf16.mxu0 %v8076_v0  ;;  %6778 = vmatprep.subr.bf16.mxu1 %v8076_v0 }
  0x4a   :  { %6772 = vmatprep.mubr.msk.bf16.mxu0 %vm8077_vm0, %v8076_v0  ;;  %6780 = vmatprep.mubr.msk.bf16.mxu1 %vm8077_vm0, %v8076_v0 }
  0x4c   :  { %6771 = vmatpush3.bf16.msra.mxu0 %v8302_v18  ;;  %6779 = vmatpush3.bf16.msra.mxu1 %v8308_v19 }
  0x4d   :  { %6784 = vmatprep.subr.bf16.mxu0 %v8076_v0  ;;  %6792 = vmatprep.subr.bf16.mxu1 %v8076_v0 }
  0x4f   :  { %6773 = vmatmul.mubr.msk.bf16.vlgmr.msra.gmra.mxu0 %vm162_vm2, %v500_v16  ;;  %6781 = vmatmul.mubr.msk.bf16.vlgmr.msra.gmra.mxu1 %vm162_vm2, %v501_v22 }
  0x50   :  { %6785 = vmatpush3.bf16.msra.mxu0 %v8322_v21  ;;  %6788 = vmatprep.mubr.msk.bf16.mxu0 %vm8077_vm0, %v8076_v0 }
  0x51   :  { %6786 = vmatprep.subr.bf16.mxu0 %v8076_v0  ;;  %6793 = vmatpush3.bf16.msra.mxu1 %v8332_v23 }
  0x52   :  { %6796 = vmatprep.mubr.msk.bf16.mxu1 %vm8077_vm0, %v8076_v0  ;;  %6794 = vmatprep.subr.bf16.mxu1 %v8076_v0 }
  0x54   :  { %6787 = vmatpush3.bf16.msra.mxu0 %v8339_v24 }
  0x55   :  { %6800 = vmatprep.subr.bf16.mxu0 %v8076_v0  ;;  %6795 = vmatpush3.bf16.msra.mxu1 %v8348_v25 }
  0x56   :  { %6808 = vmatprep.subr.bf16.mxu1 %v8076_v0 }
  0x57   :  { %6789 = vmatmul.mubr.msk.bf16.vlgmr.msra.gmra.mxu0 %vm162_vm2, %v501_v22 }
  0x58   :  { %6801 = vmatpush3.bf16.msra.mxu0 %v8254_v10  ;;  %6804 = vmatprep.mubr.msk.bf16.mxu0 %vm8077_vm0, %v8076_v0 }
  0x59   :  { %6797 = vmatmul.mubr.msk.bf16.vlgmr.msra.gmra.mxu1 %vm162_vm2, %v501_v22  ;;  %6802 = vmatprep.subr.bf16.mxu0 %v8076_v0 }
  0x5a   :  { %6809 = vmatpush3.bf16.msra.mxu1 %v8259_v11  ;;  %6812 = vmatprep.mubr.msk.bf16.mxu1 %vm8077_vm0, %v8076_v0 }
  0x5b   :  { %6810 = vmatprep.subr.bf16.mxu1 %v8076_v0 }
  0x5c   :  { %6803 = vmatpush3.bf16.msra.mxu0 %v8264_v12 }
  0x5d   :  { %6816 = vmatprep.subr.bf16.mxu0 %v8076_v0 }
  0x5e   :  { %6811 = vmatpush3.bf16.msra.mxu1 %v8272_v14 }
  0x5f   :  { %6824 = vmatprep.subr.bf16.mxu1 %v8076_v0 }
  0xef   :  { %v155_v28 = vpop.f32.mrf.mxu0  ;;  %v216_v30 = vpop.f32.mrf.mxu1 }
  0xf0   :  { %v156_v29 = vadd.f32 %v6062_v26, %v155_v28  ;;  %v217_v31 = vadd.f32 %v6068_v27, %v216_v30 }
  0xf1   :  { %v6720_v32 = vpop.f32.mrf.mxu0  ;;  %v6726_v33 = vpop.f32.mrf.mxu1 }
  0xf2   :  { %163 = vst.msk [vmem:[#allocation2] sm:$0xff] %vm162_vm2, %v156_v29  ;;  %224 = vst.msk [vmem:[#allocation2 + $0x10] sm:$0xff] %vm162_vm2, %v217_v31 }
  0xf3   :  { %v158_v34 = vpop.f32.mrf.mxu0  ;;  %v219_v36 = vpop.f32.mrf.mxu1 }
  0xf4   :  { %v159_v35 = vadd.f32 %v6062_v26, %v158_v34  ;;  %v220_v37 = vadd.f32 %v6068_v27, %v219_v36 }
  0xf5   :  { %v6721_v38 = vpop.f32.mrf.mxu0  ;;  %v6727_v40 = vpop.f32.mrf.mxu1 }
  0xf6   :  { %164 = vst.msk [vmem:[#allocation2 + $0x8] sm:$0xff] %vm162_vm2, %v159_v35  ;;  %225 = vst.msk [vmem:[#allocation2 + $0x18] sm:$0xff] %vm162_vm2, %v220_v37 }
  0xf7   :  { %v277_v42 = vpop.f32.mrf.mxu0  ;;  %v336_v44 = vpop.f32.mrf.mxu1 }
  0xf8   :  { %v278_v43 = vadd.f32 %v6074_v39, %v277_v42  ;;  %v337_v45 = vadd.f32 %v6077_v41, %v336_v44 }
  0xf9   :  { %v6732_v46 = vpop.f32.mrf.mxu0  ;;  %v6738_v47 = vpop.f32.mrf.mxu1  ;;  %v609_v6 = vld [vmem:[#allocation2] sm:$0x3]  ;;  %v617_v28 = vld [vmem:[#allocation2 + $0x10] sm:$0x3] }
  0xfa   :  { %285 = vst.msk [vmem:[#allocation2 + $0x20] sm:$0xff] %vm162_vm2, %v278_v43  ;;  %343 = vst.msk [vmem:[#allocation3] sm:$0xff] %vm162_vm2, %v337_v45 }
  0xfb   :  { %v280_v48 = vpop.f32.mrf.mxu0  ;;  %v339_v50 = vpop.f32.mrf.mxu1 }
  0xfc   :  { %v281_v49 = vadd.f32 %v6074_v39, %v280_v48  ;;  %v340_v51 = vadd.f32 %v6077_v41, %v339_v50 }
  0xfd   :  { %v6733_v52 = vpop.f32.mrf.mxu0  ;;  %v6739_v54 = vpop.f32.mrf.mxu1 }
  0xfe   :  { %286 = vst.msk [vmem:[#allocation2 + $0x28] sm:$0xff] %vm162_vm2, %v281_v49  ;;  %344 = vst.msk [vmem:[#allocation3 + $0x8] sm:$0xff] %vm162_vm2, %v340_v51 }
  0xff   :  { %v396_v56 = vpop.f32.mrf.mxu0  ;;  %v457_v58 = vpop.f32.mrf.mxu1 }
 0x100   :  { %v397_v57 = vadd.f32 %v6083_v53, %v396_v56  ;;  %v458_v59 = vadd.f32 %v6089_v55, %v457_v58 }
 0x101   :  { %v6744_v60 = vpop.f32.mrf.mxu0  ;;  %v6750_v61 = vpop.f32.mrf.mxu1 }
 0x102   :  { %404 = vst.msk [vmem:[#allocation3 + $0x10] sm:$0xff] %vm162_vm2, %v397_v57  ;;  %465 = vst.msk [vmem:[#allocation3 + $0x20] sm:$0xff] %vm162_vm2, %v458_v59  ;;  %v8408_v60 = vld [vmem:[%s9701_s29] ss:$0 sm:$0xff] }
 0x103   :  { %v399_v62 = vpop.f32.mrf.mxu0  ;;  %v460_v1 = vpop.f32.mrf.mxu1 }
 0x104   :  { %v400_v63 = vadd.f32 %v6083_v53, %v399_v62  ;;  %v461_v2 = vadd.f32 %v6089_v55, %v460_v1 }
 0x105   :  { %v6745_v3 = vpop.f32.mrf.mxu0  ;;  %v6751_v4 = vpop.f32.mrf.mxu1  ;;  %v798_v34 = vld [vmem:[#allocation3 + $0xe] sm:$0x3] }
 0x106   :  { %405 = vst.msk [vmem:[#allocation3 + $0x18] sm:$0xff] %vm162_vm2, %v400_v63  ;;  %466 = vst.msk [vmem:[#allocation3 + $0x28] sm:$0xff] %vm162_vm2, %v461_v2  ;;  %v625_v2 = vld [vmem:[#allocation2 + $0x20] sm:$0x3] }
 0x107   :  { %v551_v5 = vpop.f32.mrf.mxu0  ;;  %v603_v8 = vpop.f32.mrf.mxu1 }
 0x108   :  { %v610_v7 = vadd.f32 %v609_v6, %v551_v5  ;;  %v618_v30 = vadd.f32 %v617_v28, %v603_v8  ;;  %v8411_v5 = vld [vmem:[#allocation10] ss:$0 sm:$0xff] }
 0x109   :  { %v6758_v9 = vpop.f32.mrf.mxu0  ;;  %v6766_v22 = vpop.f32.mrf.mxu1 }
 0x10a   :  { %v6114_v16 = vmul.f32 -1.442695, %v610_v7  ;;  %v6115_v37 = vmul.f32 -1.442695, %v618_v30 }
 0x10b   :  { %v554_v26 = vpop.f32.mrf.mxu0  ;;  %v606_v27 = vpop.f32.mrf.mxu1 }
 0x10c   :  { %7658 = vpow2.f32 %v6114_v16 }
 0x10d   :  { %v6759_v29 = vpop.f32.mrf.mxu0  ;;  %v6767_v31 = vpop.f32.mrf.mxu1  ;;  %v806_v45 = vld [vmem:[#allocation3 + $0x1e] sm:$0x3]  ;;  %v814_v16 = vld [vmem:[#allocation3 + $0x2e] sm:$0x3] }
 0x10f   :  { %v678_v32 = vpop.f32.mrf.mxu0  ;;  %v740_v33 = vpop.f32.mrf.mxu1 }
 0x110   :  { %v799_v35 = vadd.f32 %v798_v34, %v740_v33  ;;  %v679_v62 = vadd.f32 %v8408_v60, %v678_v32 }
 0x111   :  { %v6774_v36 = vpop.f32.mrf.mxu0  ;;  %v6782_v38 = vpop.f32.mrf.mxu1 }
 0x112   :  { %v6126_v39 = vmul.f32 -1.442695, %v799_v35 }
 0x113   :  { %v681_v40 = vpop.f32.mrf.mxu0  ;;  %v743_v41 = vpop.f32.mrf.mxu1 }
 0x114   :  { %7660 = vpow2.f32 %v6126_v39  ;;  %v968_v39 = vld [vmem:[#allocation2 + $0x2] sm:$0x3] }
 0x115   :  { %v6775_v42 = vpop.f32.mrf.mxu0  ;;  %7662 = vpow2.f32 %v6115_v37  ;;  %v6783_v43 = vpop.f32.mrf.mxu1 }
 0x117   :  { %v792_v44 = vpop.f32.mrf.mxu0 }
 0x118   :  { %v807_v46 = vadd.f32 %v806_v45, %v792_v44 }
 0x119   :  { %v7659_v47 = vpop.eup %7658  ;;  %v6790_v48 = vpop.f32.mrf.mxu0 }
 0x11a   :  { %v867_v49 = vpop.f32.mrf.mxu1  ;;  %v614_v50 = vadd.f32 1.0, %v7659_v47  ;;  %v6127_v51 = vmul.f32 -1.442695, %v807_v46  ;;  %v976_v47 = vld [vmem:[#allocation2 + $0x12] sm:$0x3] }
 0x11b   :  { %v795_v52 = vpop.f32.mrf.mxu0  ;;  %v868_v7 = vadd.f32 %v8411_v5, %v867_v49 }
 0x11c   :  { %v6798_v53 = vpop.f32.mrf.mxu1  ;;  %7664 = vrcp.f32 %v614_v50 }
 0x11d   :  { %v6791_v54 = vpop.f32.mrf.mxu0  ;;  %7666 = vpow2.f32 %v6127_v51  ;;  %v1115_v53 = vld [vmem:[#allocation3 + $0xc] sm:$0x3] }
 0x11e   :  { %v870_v55 = vpop.f32.mrf.mxu1 }
 0x120   :  { %v6799_v56 = vpop.f32.mrf.mxu1 }
 0x121   :  { %v7661_v57 = vpop.eup %7660 }
 0x122   :  { %v7663_v58 = vpop.eup %7662  ;;  %v803_v59 = vadd.f32 1.0, %v7661_v57 }
 0x123   :  { %v622_v61 = vadd.f32 1.0, %v7663_v58 }
 0x124   :  { %7668 = vrcp.f32 %v803_v59 }
 0x125   :  { %7670 = vrcp.f32 %v622_v61 }
 0x129   :  { %v7665_v63 = vpop.eup %7664 }
 0x12a   :  { %v684_v1 = vmul.f32 %v7665_v63, %v679_v62  ;;  %v7667_v3 = vpop.eup %7666 }
 0x12b   :  { %v811_v6 = vadd.f32 1.0, %v7667_v3 }
 0x12c   :  { %v685_v4 = vadd.f32 %v684_v1, %v625_v2  ;;  %v1123_v2 = vld [vmem:[#allocation3 + $0x1c] sm:$0x3] }
 0x12e   :  { %7672 = vtanh.f32 %v685_v4 }
 0x12f   :  { %7674 = vrcp.f32 %v811_v6 }
 0x131   :  { %v7669_v8 = vpop.eup %7668 }
 0x132   :  { %v873_v9 = vmul.f32 %v7669_v8, %v868_v7  ;;  %v7671_v26 = vpop.eup %7670 }
 0x133   :  { %v687_v27 = vsub.f32 1.0, %v7671_v26  ;;  %v689_v30 = vmul.f32 %v7671_v26, %v8266_v13 }
 0x134   :  { %v874_v22 = vadd.f32 %v873_v9, %v814_v16 }
 0x136   :  { %7676 = vtanh.f32 %v874_v22 }
 0x13b   :  { %v7673_v28 = vpop.eup %7672 }
 0x13c   :  { %v688_v29 = vmul.f32 %v7673_v28, %v687_v27  ;;  %v7675_v32 = vpop.eup %7674 }
 0x13d   :  { %v876_v34 = vsub.f32 1.0, %v7675_v32  ;;  %v878_v36 = vmul.f32 %v7675_v32, %v8310_v20 }
 0x13e   :  { %v8415_v31 = vadd.f32 %v689_v30, %v688_v29 }
 0x140   :  { %881 = vst.msk [vmem:[#allocation4] sm:$0x3] %vm880_vm3, %v8415_v31  ;;  %v883_v33 = vpack.c.bf16 %v8415_v31, %v8415_v31 }
 0x142   :  { %6805 = vmatmul.mubr.msk.bf16.vlgmr.msra.gmra.mxu0 %vm162_vm2, %v883_v33  ;;  %6813 = vmatmul.mubr.msk.bf16.vlgmr.msra.gmra.mxu1 %vm162_vm2, %v883_v33 }
 0x143   :  { %6817 = vmatpush3.bf16.msra.mxu0 %v8284_v15  ;;  %6825 = vmatpush3.bf16.msra.mxu1 %v8293_v17  ;;  %v7677_v13 = vpop.eup %7676 }
 0x144   :  { %6818 = vmatprep.subr.bf16.mxu0 %v8076_v0  ;;  %6826 = vmatprep.subr.bf16.mxu1 %v8076_v0  ;;  %v877_v35 = vmul.f32 %v7677_v13, %v876_v34 }
 0x145   :  { %6820 = vmatprep.mubr.msk.bf16.mxu0 %vm8077_vm0, %v8076_v0  ;;  %6828 = vmatprep.mubr.msk.bf16.mxu1 %vm8077_vm0, %v8076_v0 }
 0x146   :  { %v8434_v37 = vadd.f32 %v878_v36, %v877_v35  ;;  %v984_v36 = vld [vmem:[#allocation2 + $0x22] sm:$0x3] }
 0x147   :  { %6819 = vmatpush3.bf16.msra.mxu0 %v8302_v18  ;;  %6827 = vmatpush3.bf16.msra.mxu1 %v8308_v19 }
 0x148   :  { %6832 = vmatprep.subr.bf16.mxu0 %v8076_v0  ;;  %6840 = vmatprep.subr.bf16.mxu1 %v8076_v0  ;;  %882 = vst.msk [vmem:[#allocation5 + $0xe] sm:$0x3] %vm880_vm3, %v8434_v37  ;;  %v884_v38 = vpack.c.bf16 %v8434_v37, %v8434_v37 }
 0x14a   :  { %6821 = vmatmul.mubr.msk.bf16.vlgmr.msra.gmra.mxu0 %vm162_vm2, %v883_v33  ;;  %6829 = vmatmul.mubr.msk.bf16.vlgmr.msra.gmra.mxu1 %vm162_vm2, %v884_v38 }
 0x14b   :  { %6833 = vmatpush3.bf16.msra.mxu0 %v8322_v21  ;;  %6841 = vmatpush3.bf16.msra.mxu1 %v8332_v23 }
 0x14c   :  { %6834 = vmatprep.subr.bf16.mxu0 %v8076_v0  ;;  %6842 = vmatprep.subr.bf16.mxu1 %v8076_v0 }
 0x14d   :  { %6836 = vmatprep.mubr.msk.bf16.mxu0 %vm8077_vm0, %v8076_v0  ;;  %6844 = vmatprep.mubr.msk.bf16.mxu1 %vm8077_vm0, %v8076_v0 }
 0x14f   :  { %6835 = vmatpush3.bf16.msra.mxu0 %v8339_v24  ;;  %6843 = vmatpush3.bf16.msra.mxu1 %v8348_v25 }
 0x150   :  { %6848 = vmatprep.subr.bf16.mxu0 %v8076_v0  ;;  %6856 = vmatprep.subr.bf16.mxu1 %v8076_v0 }
 0x152   :  { %6837 = vmatmul.mubr.msk.bf16.vlgmr.msra.gmra.mxu0 %vm162_vm2, %v884_v38  ;;  %6845 = vmatmul.mubr.msk.bf16.vlgmr.msra.gmra.mxu1 %vm162_vm2, %v884_v38 }
 0x153   :  { %6849 = vmatpush3.bf16.msra.mxu0 %v8254_v10  ;;  %6857 = vmatpush3.bf16.msra.mxu1 %v8259_v11 }
 0x154   :  { %6850 = vmatprep.subr.bf16.mxu0 %v8076_v0  ;;  %6858 = vmatprep.subr.bf16.mxu1 %v8076_v0 }
 0x155   :  { %6852 = vmatprep.mubr.msk.bf16.mxu0 %vm8077_vm0, %v8076_v0  ;;  %6860 = vmatprep.mubr.msk.bf16.mxu1 %vm8077_vm0, %v8076_v0 }
 0x157   :  { %6851 = vmatpush3.bf16.msra.mxu0 %v8264_v12  ;;  %6859 = vmatpush3.bf16.msra.mxu1 %v8272_v14 }
 0x158   :  { %6864 = vmatprep.subr.bf16.mxu0 %v8076_v0  ;;  %6872 = vmatprep.subr.bf16.mxu1 %v8076_v0 }
 0x202   :  { %v922_v20 = vpop.f32.mrf.mxu0  ;;  %v962_v40 = vpop.f32.mrf.mxu1 }
 0x203   :  { %v969_v41 = vadd.f32 %v968_v39, %v922_v20  ;;  %v977_v50 = vadd.f32 %v976_v47, %v962_v40 }
 0x204   :  { %v6806_v42 = vpop.f32.mrf.mxu0  ;;  %v6814_v43 = vpop.f32.mrf.mxu1 }
 0x205   :  { %v6134_v44 = vmul.f32 -1.442695, %v969_v41  ;;  %v6135_v56 = vmul.f32 -1.442695, %v977_v50  ;;  %v1131_v43 = vld [vmem:[#allocation3 + $0x2c] sm:$0x3] }
 0x206   :  { %v925_v45 = vpop.f32.mrf.mxu0  ;;  %v965_v46 = vpop.f32.mrf.mxu1 }
 0x207   :  { %7678 = vpow2.f32 %v6134_v44 }
 0x208   :  { %v6807_v48 = vpop.f32.mrf.mxu0  ;;  %v6815_v49 = vpop.f32.mrf.mxu1 }
 0x20a   :  { %v1019_v51 = vpop.f32.mrf.mxu0  ;;  %v1069_v52 = vpop.f32.mrf.mxu1 }
 0x20b   :  { %v1116_v54 = vadd.f32 %v1115_v53, %v1069_v52  ;;  %v1020_v34 = vadd.f32 %v8408_v60, %v1019_v51 }
 0x20c   :  { %v6822_v55 = vpop.f32.mrf.mxu0  ;;  %v6830_v57 = vpop.f32.mrf.mxu1 }
 0x20d   :  { %v6139_v58 = vmul.f32 -1.442695, %v1116_v54 }
 0x20e   :  { %v1022_v59 = vpop.f32.mrf.mxu0  ;;  %v1072_v61 = vpop.f32.mrf.mxu1 }
 0x20f   :  { %7680 = vpow2.f32 %v6139_v58 }
 0x210   :  { %v6823_v62 = vpop.f32.mrf.mxu0  ;;  %7682 = vpow2.f32 %v6135_v56  ;;  %v6831_v63 = vpop.f32.mrf.mxu1 }
 0x212   :  { %v1109_v1 = vpop.f32.mrf.mxu0  ;;  %v1166_v4 = vpop.f32.mrf.mxu1 }
 0x213   :  { %v1124_v3 = vadd.f32 %v1123_v2, %v1109_v1  ;;  %v1167_v40 = vadd.f32 %v8411_v5, %v1166_v4  ;;  %v1274_v2 = vld [vmem:[#allocation2 + $0x14] sm:$0x3] }
 0x214   :  { %v7679_v6 = vpop.eup %7678  ;;  %v6838_v7 = vpop.f32.mrf.mxu0 }
 0x215   :  { %v973_v8 = vadd.f32 1.0, %v7679_v6  ;;  %v6846_v9 = vpop.f32.mrf.mxu1  ;;  %v6140_v16 = vmul.f32 -1.442695, %v1124_v3  ;;  %v1413_v7 = vld [vmem:[#allocation3 + $0xa] sm:$0x3] }
 0x216   :  { %v1112_v22 = vpop.f32.mrf.mxu0 }
 0x217   :  { %7684 = vrcp.f32 %v973_v8  ;;  %v1169_v26 = vpop.f32.mrf.mxu1 }
 0x218   :  { %v6839_v27 = vpop.f32.mrf.mxu0  ;;  %7686 = vpow2.f32 %v6140_v16 }
 0x219   :  { %v6847_v28 = vpop.f32.mrf.mxu1 }
 0x21c   :  { %v7681_v29 = vpop.eup %7680 }
 0x21d   :  { %v7683_v30 = vpop.eup %7682  ;;  %v1120_v32 = vadd.f32 1.0, %v7681_v29 }
 0x21e   :  { %v981_v33 = vadd.f32 1.0, %v7683_v30 }
 0x21f   :  { %7688 = vrcp.f32 %v1120_v32 }
 0x220   :  { %7690 = vrcp.f32 %v981_v33  ;;  %v1421_v33 = vld [vmem:[#allocation3 + $0x1a] sm:$0x3] }
 0x224   :  { %v7685_v13 = vpop.eup %7684 }
 0x225   :  { %v1025_v35 = vmul.f32 %v7685_v13, %v1020_v34  ;;  %v7687_v38 = vpop.eup %7686 }
 0x226   :  { %v1128_v39 = vadd.f32 1.0, %v7687_v38 }
 0x227   :  { %v1026_v20 = vadd.f32 %v1025_v35, %v984_v36 }
 0x229   :  { %7692 = vtanh.f32 %v1026_v20 }
 0x22a   :  { %7694 = vrcp.f32 %v1128_v39 }
 0x22c   :  { %v7689_v41 = vpop.eup %7688 }
 0x22d   :  { %v1172_v42 = vmul.f32 %v7689_v41, %v1167_v40  ;;  %v7691_v45 = vpop.eup %7690 }
 0x22e   :  { %v1028_v46 = vsub.f32 1.0, %v7691_v45  ;;  %v1030_v49 = vmul.f32 %v7691_v45, %v8415_v31 }
 0x22f   :  { %v1173_v44 = vadd.f32 %v1172_v42, %v1131_v43 }
 0x231   :  { %7696 = vtanh.f32 %v1173_v44 }
 0x236   :  { %v7693_v47 = vpop.eup %7692 }
 0x237   :  { %v1029_v48 = vmul.f32 %v7693_v47, %v1028_v46  ;;  %v7695_v51 = vpop.eup %7694 }
 0x238   :  { %v1175_v53 = vsub.f32 1.0, %v7695_v51  ;;  %v1177_v55 = vmul.f32 %v7695_v51, %v8434_v37 }
 0x239   :  { %v8473_v50 = vadd.f32 %v1030_v49, %v1029_v48 }
 0x23b   :  { %1179 = vst.msk [vmem:[#allocation4 + $0x2] sm:$0x3] %vm880_vm3, %v8473_v50  ;;  %v1181_v52 = vpack.c.bf16 %v8473_v50, %v8473_v50 }
 0x23d   :  { %6853 = vmatmul.mubr.msk.bf16.vlgmr.msra.gmra.mxu0 %vm162_vm2, %v1181_v52  ;;  %6861 = vmatmul.mubr.msk.bf16.vlgmr.msra.gmra.mxu1 %vm162_vm2, %v1181_v52 }
 0x23e   :  { %6865 = vmatpush3.bf16.msra.mxu0 %v8284_v15  ;;  %6873 = vmatpush3.bf16.msra.mxu1 %v8293_v17  ;;  %v7697_v54 = vpop.eup %7696 }
 0x23f   :  { %6866 = vmatprep.subr.bf16.mxu0 %v8076_v0  ;;  %6874 = vmatprep.subr.bf16.mxu1 %v8076_v0  ;;  %v1176_v31 = vmul.f32 %v7697_v54, %v1175_v53 }
 0x240   :  { %6868 = vmatprep.mubr.msk.bf16.mxu0 %vm8077_vm0, %v8076_v0  ;;  %6876 = vmatprep.mubr.msk.bf16.mxu1 %vm8077_vm0, %v8076_v0 }
 0x241   :  { %v8492_v56 = vadd.f32 %v1177_v55, %v1176_v31 }
 0x242   :  { %6867 = vmatpush3.bf16.msra.mxu0 %v8302_v18  ;;  %6875 = vmatpush3.bf16.msra.mxu1 %v8308_v19 }
 0x243   :  { %6880 = vmatprep.subr.bf16.mxu0 %v8076_v0  ;;  %6888 = vmatprep.subr.bf16.mxu1 %v8076_v0  ;;  %1180 = vst.msk [vmem:[#allocation5 + $0xc] sm:$0x3] %vm880_vm3, %v8492_v56  ;;  %v1182_v57 = vpack.c.bf16 %v8492_v56, %v8492_v56 }
 0x245   :  { %6869 = vmatmul.mubr.msk.bf16.vlgmr.msra.gmra.mxu0 %vm162_vm2, %v1181_v52  ;;  %6877 = vmatmul.mubr.msk.bf16.vlgmr.msra.gmra.mxu1 %vm162_vm2, %v1182_v57  ;;  %v1282_v52 = vld [vmem:[#allocation2 + $0x24] sm:$0x3] }
 0x246   :  { %6881 = vmatpush3.bf16.msra.mxu0 %v8322_v21  ;;  %6889 = vmatpush3.bf16.msra.mxu1 %v8332_v23 }
 0x247   :  { %6882 = vmatprep.subr.bf16.mxu0 %v8076_v0  ;;  %6890 = vmatprep.subr.bf16.mxu1 %v8076_v0 }
 0x248   :  { %6884 = vmatprep.mubr.msk.bf16.mxu0 %vm8077_vm0, %v8076_v0  ;;  %6892 = vmatprep.mubr.msk.bf16.mxu1 %vm8077_vm0, %v8076_v0 }
 0x24a   :  { %6883 = vmatpush3.bf16.msra.mxu0 %v8339_v24  ;;  %6891 = vmatpush3.bf16.msra.mxu1 %v8348_v25 }
 0x24b   :  { %6896 = vmatprep.subr.bf16.mxu0 %v8076_v0  ;;  %6904 = vmatprep.subr.bf16.mxu1 %v8076_v0 }
 0x24d   :  { %6885 = vmatmul.mubr.msk.bf16.vlgmr.msra.gmra.mxu0 %vm162_vm2, %v1182_v57  ;;  %6893 = vmatmul.mubr.msk.bf16.vlgmr.msra.gmra.mxu1 %vm162_vm2, %v1182_v57 }
 0x24e   :  { %6897 = vmatpush3.bf16.msra.mxu0 %v8254_v10  ;;  %6905 = vmatpush3.bf16.msra.mxu1 %v8259_v11  ;;  %v1266_v11 = vld [vmem:[#allocation2 + $0x4] sm:$0x3] }
 0x24f   :  { %6898 = vmatprep.subr.bf16.mxu0 %v8076_v0  ;;  %6906 = vmatprep.subr.bf16.mxu1 %v8076_v0 }
 0x250   :  { %6900 = vmatprep.mubr.msk.bf16.mxu0 %vm8077_vm0, %v8076_v0  ;;  %6908 = vmatprep.mubr.msk.bf16.mxu1 %vm8077_vm0, %v8076_v0 }
 0x252   :  { %6899 = vmatpush3.bf16.msra.mxu0 %v8264_v12  ;;  %6907 = vmatpush3.bf16.msra.mxu1 %v8272_v14 }
 0x253   :  { %6912 = vmatprep.subr.bf16.mxu0 %v8076_v0  ;;  %6920 = vmatprep.subr.bf16.mxu1 %v8076_v0 }
 0x2fd   :  { %v1220_v10 = vpop.f32.mrf.mxu0  ;;  %v1260_v37 = vpop.f32.mrf.mxu1 }
 0x2fe   :  { %v1267_v58 = vadd.f32 %v1266_v11, %v1220_v10  ;;  %v1275_v12 = vadd.f32 %v1274_v2, %v1260_v37  ;;  %v1429_v11 = vld [vmem:[#allocation3 + $0x2a] sm:$0x3] }
 0x2ff   :  { %v6854_v59 = vpop.f32.mrf.mxu0  ;;  %v6862_v61 = vpop.f32.mrf.mxu1 }
 0x300   :  { %v6144_v62 = vmul.f32 -1.442695, %v1267_v58  ;;  %v6145_v16 = vmul.f32 -1.442695, %v1275_v12 }
 0x301   :  { %v1223_v63 = vpop.f32.mrf.mxu0  ;;  %v1263_v1 = vpop.f32.mrf.mxu1 }
 0x302   :  { %7698 = vpow2.f32 %v6144_v62 }
 0x303   :  { %v6855_v3 = vpop.f32.mrf.mxu0  ;;  %v6863_v4 = vpop.f32.mrf.mxu1 }
 0x305   :  { %v1317_v6 = vpop.f32.mrf.mxu0  ;;  %v1367_v14 = vpop.f32.mrf.mxu1 }
 0x306   :  { %v1414_v8 = vadd.f32 %v1413_v7, %v1367_v14  ;;  %v1318_v48 = vadd.f32 %v8408_v60, %v1317_v6 }
 0x307   :  { %v6870_v9 = vpop.f32.mrf.mxu0  ;;  %v6878_v22 = vpop.f32.mrf.mxu1 }
 0x308   :  { %v6149_v26 = vmul.f32 -1.442695, %v1414_v8 }
 0x309   :  { %v1320_v27 = vpop.f32.mrf.mxu0  ;;  %v1370_v28 = vpop.f32.mrf.mxu1 }
 0x30a   :  { %7700 = vpow2.f32 %v6149_v26  ;;  %v1572_v26 = vld [vmem:[#allocation2 + $0x16] sm:$0x3] }
 0x30b   :  { %v6871_v29 = vpop.f32.mrf.mxu0  ;;  %7702 = vpow2.f32 %v6145_v16  ;;  %v6879_v30 = vpop.f32.mrf.mxu1 }
 0x30d   :  { %v1407_v32 = vpop.f32.mrf.mxu0  ;;  %v1464_v13 = vpop.f32.mrf.mxu1 }
 0x30e   :  { %v1422_v34 = vadd.f32 %v1421_v33, %v1407_v32  ;;  %v1465_v55 = vadd.f32 %v8411_v5, %v1464_v13  ;;  %v1711_v33 = vld [vmem:[#allocation3 + $0x8] sm:$0x3] }
 0x30f   :  { %v7699_v35 = vpop.eup %7698  ;;  %v6886_v36 = vpop.f32.mrf.mxu0 }
 0x310   :  { %v1271_v38 = vadd.f32 1.0, %v7699_v35  ;;  %v6894_v20 = vpop.f32.mrf.mxu1  ;;  %v6150_v39 = vmul.f32 -1.442695, %v1422_v34 }
 0x311   :  { %v1410_v40 = vpop.f32.mrf.mxu0 }
 0x312   :  { %7704 = vrcp.f32 %v1271_v38  ;;  %v1467_v41 = vpop.f32.mrf.mxu1 }
 0x313   :  { %v6887_v42 = vpop.f32.mrf.mxu0  ;;  %7706 = vpow2.f32 %v6150_v39 }
 0x314   :  { %v6895_v43 = vpop.f32.mrf.mxu1 }
 0x315   :  { %v1719_v43 = vld [vmem:[#allocation3 + $0x18] sm:$0x3] }
 0x317   :  { %v7701_v44 = vpop.eup %7700 }
 0x318   :  { %v7703_v45 = vpop.eup %7702  ;;  %v1418_v46 = vadd.f32 1.0, %v7701_v44 }
 0x319   :  { %v1279_v47 = vadd.f32 1.0, %v7703_v45 }
 0x31a   :  { %7708 = vrcp.f32 %v1418_v46 }
 0x31b   :  { %7710 = vrcp.f32 %v1279_v47 }
 0x31f   :  { %v7705_v49 = vpop.eup %7704 }
 0x320   :  { %v1323_v51 = vmul.f32 %v7705_v49, %v1318_v48  ;;  %v7707_v53 = vpop.eup %7706 }
 0x321   :  { %v1426_v31 = vadd.f32 1.0, %v7707_v53 }
 0x322   :  { %v1324_v54 = vadd.f32 %v1323_v51, %v1282_v52 }
 0x324   :  { %7712 = vtanh.f32 %v1324_v54 }
 0x325   :  { %7714 = vrcp.f32 %v1426_v31 }
 0x327   :  { %v7709_v57 = vpop.eup %7708 }
 0x328   :  { %v1470_v10 = vmul.f32 %v7709_v57, %v1465_v55  ;;  %v7711_v58 = vpop.eup %7710 }
 0x329   :  { %v1326_v59 = vsub.f32 1.0, %v7711_v58  ;;  %v1328_v63 = vmul.f32 %v7711_v58, %v8473_v50 }
 0x32a   :  { %v1471_v37 = vadd.f32 %v1470_v10, %v1429_v11 }
 0x32c   :  { %7716 = vtanh.f32 %v1471_v37 }
 0x331   :  { %v7713_v61 = vpop.eup %7712 }
 0x332   :  { %v1327_v62 = vmul.f32 %v7713_v61, %v1326_v59  ;;  %v7715_v2 = vpop.eup %7714  ;;  %v1580_v61 = vld [vmem:[#allocation2 + $0x26] sm:$0x3] }
 0x333   :  { %v1473_v4 = vsub.f32 1.0, %v7715_v2  ;;  %v1475_v6 = vmul.f32 %v7715_v2, %v8492_v56 }
 0x334   :  { %v8531_v1 = vadd.f32 %v1328_v63, %v1327_v62 }
 0x336   :  { %1477 = vst.msk [vmem:[#allocation4 + $0x4] sm:$0x3] %vm880_vm3, %v8531_v1  ;;  %v1479_v3 = vpack.c.bf16 %v8531_v1, %v8531_v1 }
 0x338   :  { %6901 = vmatmul.mubr.msk.bf16.vlgmr.msra.gmra.mxu0 %vm162_vm2, %v1479_v3  ;;  %6909 = vmatmul.mubr.msk.bf16.vlgmr.msra.gmra.mxu1 %vm162_vm2, %v1479_v3 }
 0x339   :  { %6913 = vmatpush3.bf16.msra.mxu0 %v8284_v15  ;;  %6921 = vmatpush3.bf16.msra.mxu1 %v8293_v17  ;;  %v7717_v12 = vpop.eup %7716 }
 0x33a   :  { %6914 = vmatprep.subr.bf16.mxu0 %v8076_v0  ;;  %6922 = vmatprep.subr.bf16.mxu1 %v8076_v0  ;;  %v1474_v50 = vmul.f32 %v7717_v12, %v1473_v4 }
 0x33b   :  { %6916 = vmatprep.mubr.msk.bf16.mxu0 %vm8077_vm0, %v8076_v0  ;;  %6924 = vmatprep.mubr.msk.bf16.mxu1 %vm8077_vm0, %v8076_v0 }
 0x33c   :  { %v8550_v15 = vadd.f32 %v1475_v6, %v1474_v50  ;;  %v1727_v50 = vld [vmem:[#allocation3 + $0x28] sm:$0x3] }
 0x33d   :  { %6915 = vmatpush3.bf16.msra.mxu0 %v8302_v18  ;;  %6923 = vmatpush3.bf16.msra.mxu1 %v8308_v19  ;;  %v8577_v18 = vld [vmem:[%s9699_s1 + $0x8] sm:$0xff]   ;;  %v8583_v19 = vld [vmem:[%s9699_s1 + $0x18] sm:$0xff]  }
 0x33e   :  { %6928 = vmatprep.subr.bf16.mxu0 %v8076_v0  ;;  %6936 = vmatprep.subr.bf16.mxu1 %v8076_v0  ;;  %1478 = vst.msk [vmem:[#allocation5 + $0xa] sm:$0x3] %vm880_vm3, %v8550_v15  ;;  %v1480_v17 = vpack.c.bf16 %v8550_v15, %v8550_v15 }
 0x340   :  { %6917 = vmatmul.mubr.msk.bf16.vlgmr.msra.gmra.mxu0 %vm162_vm2, %v1479_v3  ;;  %6925 = vmatmul.mubr.msk.bf16.vlgmr.msra.gmra.mxu1 %vm162_vm2, %v1480_v17 }
 0x341   :  { %6929 = vmatpush3.bf16.msra.mxu0 %v8322_v21  ;;  %6937 = vmatpush3.bf16.msra.mxu1 %v8332_v23  ;;  %v8595_v21 = vld [vmem:[%s9699_s1] sm:$0xff]   ;;  %v8601_v23 = vld [vmem:[%s9699_s1 + $0x10] sm:$0xff]  }
 0x342   :  { %6930 = vmatprep.subr.bf16.mxu0 %v8076_v0  ;;  %6938 = vmatprep.subr.bf16.mxu1 %v8076_v0 }
 0x343   :  { %6932 = vmatprep.mubr.msk.bf16.mxu0 %vm8077_vm0, %v8076_v0  ;;  %6940 = vmatprep.mubr.msk.bf16.mxu1 %vm8077_vm0, %v8076_v0 }
 0x345   :  { %6931 = vmatpush3.bf16.msra.mxu0 %v8339_v24  ;;  %6939 = vmatpush3.bf16.msra.mxu1 %v8348_v25  ;;  %v1564_v25 = vld [vmem:[#allocation2 + $0x6] sm:$0x3] }
 0x346   :  { %6944 = vmatprep.subr.bf16.mxu0 %v8076_v0  ;;  %6952 = vmatprep.subr.bf16.mxu1 %v8076_v0 }
 0x348   :  { %6933 = vmatmul.mubr.msk.bf16.vlgmr.msra.gmra.mxu0 %vm162_vm2, %v1480_v17  ;;  %6941 = vmatmul.mubr.msk.bf16.vlgmr.msra.gmra.mxu1 %vm162_vm2, %v1480_v17 }
 0x349   :  { %6945 = vmatpush3.bf16.msra.mxu0 %v8577_v18  ;;  %6953 = vmatpush3.bf16.msra.mxu1 %v8583_v19 }
 0x34a   :  { %6946 = vmatprep.subr.bf16.mxu0 %v8076_v0  ;;  %6954 = vmatprep.subr.bf16.mxu1 %v8076_v0 }
 0x34b   :  { %6948 = vmatprep.mubr.msk.bf16.mxu0 %vm8077_vm0, %v8076_v0  ;;  %6956 = vmatprep.mubr.msk.bf16.mxu1 %vm8077_vm0, %v8076_v0 }
 0x34d   :  { %6947 = vmatpush3.bf16.msra.mxu0 %v8595_v21  ;;  %6955 = vmatpush3.bf16.msra.mxu1 %v8601_v23 }
 0x34e   :  { %6960 = vmatprep.subr.bf16.mxu0 %v8076_v0  ;;  %6968 = vmatprep.subr.bf16.mxu1 %v8076_v0 }
 0x3f8   :  { %v1518_v24 = vpop.f32.mrf.mxu0  ;;  %v1558_v56 = vpop.f32.mrf.mxu1 }
 0x3f9   :  { %v1565_v14 = vadd.f32 %v1564_v25, %v1518_v24  ;;  %v1573_v29 = vadd.f32 %v1572_v26, %v1558_v56 }
 0x3fa   :  { %v6902_v7 = vpop.f32.mrf.mxu0  ;;  %v6910_v8 = vpop.f32.mrf.mxu1 }
 0x3fb   :  { %v6154_v9 = vmul.f32 -1.442695, %v1565_v14  ;;  %v6155_v35 = vmul.f32 -1.442695, %v1573_v29  ;;  %v8639_v29 = vld [vmem:[%s9699_s1 + $0x20] sm:$0xff]  }
 0x3fc   :  { %v1521_v16 = vpop.f32.mrf.mxu0  ;;  %v1561_v22 = vpop.f32.mrf.mxu1 }
 0x3fd   :  { %7718 = vpow2.f32 %v6154_v9  ;;  %v8620_v22 = vld [vmem:[%s9699_s1 + $0x28] sm:$0xff]   ;;  %s8078_s1 = smov [#allocation12]  }
 0x3fe   :  { %v6903_v27 = vpop.f32.mrf.mxu0  ;;  %v6911_v28 = vpop.f32.mrf.mxu1  ;;  %s6047_s24 = sshll.u32 %s8078_s1, 4  ;;  %s6048_s24 = int_to_ptr.vmem [resolvable:$true] %s6047_s24 }
 0x3ff   :  { %s8046_s6 = scalar_lea.vmem %s6048_s24, 128  ;;  %p8051_p11 = scmp.lt.s32.totalorder %s6048_s24, %s6048_s24 }
 0x400   :  { %v1615_v30 = vpop.f32.mrf.mxu0  ;;  %v1665_v32 = vpop.f32.mrf.mxu1  ;;  %p8047_p10 = scmp.ne.s32.totalorder %s6048_s24, %s8046_s6  ;;  %p8052_p12 = scmp.lt.s32.totalorder %s8046_s6, %s8046_s6 }
 0x401   :  { %v1712_v34 = vadd.f32 %v1711_v33, %v1665_v32  ;;  %v1616_v37 = vadd.f32 %v8408_v60, %v1615_v30  ;;  %v8645_v30 = vld [vmem:[%s9666_s7] sm:$0xff]   ;;  %v8661_v33 = vld [vmem:[%s9666_s7 + $0x18] sm:$0xff]  }
 0x402   :  { %v6918_v13 = vpop.f32.mrf.mxu0  ;;  %v6926_v36 = vpop.f32.mrf.mxu1  ;;  %p8053_p13 = por %p8052_p12, %p8051_p11 }
 0x403   :  { %v6159_v38 = vmul.f32 -1.442695, %v1712_v34  ;;  %v8667_v34 = vld [vmem:[%s9666_s7 + $0x28] sm:$0xff]   ;;  %v8679_v13 = vld [vmem:[%s9666_s7 + $0x10] sm:$0xff]  }
 0x404   :  { %v1618_v20 = vpop.f32.mrf.mxu0  ;;  %v1668_v39 = vpop.f32.mrf.mxu1  ;;  %p8054_p0 = pnand %p8053_p13, %p8047_p10 }
 0x405   :  { %7720 = vpow2.f32 %v6159_v38  ;;  %v1862_v38 = vld [vmem:[#allocation2 + $0x8] sm:$0x3] }
 0x406   :  { %v6919_v40 = vpop.f32.mrf.mxu0  ;;  %7722 = vpow2.f32 %v6155_v35  ;;  %v6927_v41 = vpop.f32.mrf.mxu1  ;;  %v8685_v35 = vld [vmem:[%s9666_s7 + $0x20] sm:$0xff]  }
 0x408   :  { %v1705_v42 = vpop.f32.mrf.mxu0  ;;  %v1762_v45 = vpop.f32.mrf.mxu1 }
 0x409   :  { %v1720_v44 = vadd.f32 %v1719_v43, %v1705_v42  ;;  %v1763_v3 = vadd.f32 %v8411_v5, %v1762_v45  ;;  %v1870_v45 = vld [vmem:[#allocation2 + $0x18] sm:$0x3] }
 0x40a   :  { %v7719_v46 = vpop.eup %7718  ;;  %v6934_v47 = vpop.f32.mrf.mxu0 }
 0x40b   :  { %v1569_v48 = vadd.f32 1.0, %v7719_v46  ;;  %v6942_v49 = vpop.f32.mrf.mxu1  ;;  %v6160_v51 = vmul.f32 -1.442695, %v1720_v44 }
 0x40c   :  { %v1708_v52 = vpop.f32.mrf.mxu0 }
 0x40d   :  { %7724 = vrcp.f32 %v1569_v48  ;;  %v1765_v53 = vpop.f32.mrf.mxu1  ;;  %v2009_v52 = vld [vmem:[#allocation3 + $0x6] sm:$0x3] }
 0x40e   :  { %v6935_v54 = vpop.f32.mrf.mxu0  ;;  %7726 = vpow2.f32 %v6160_v51 }
 0x40f   :  { %v6943_v31 = vpop.f32.mrf.mxu1 }
 0x412   :  { %v7721_v55 = vpop.eup %7720 }
 0x413   :  { %v7723_v57 = vpop.eup %7722  ;;  %v1716_v10 = vadd.f32 1.0, %v7721_v55 }
 0x414   :  { %v1577_v11 = vadd.f32 1.0, %v7723_v57 }
 0x415   :  { %7728 = vrcp.f32 %v1716_v10 }
 0x416   :  { %7730 = vrcp.f32 %v1577_v11 }
 0x41a   :  { %v7725_v58 = vpop.eup %7724 }
 0x41b   :  { %v1621_v59 = vmul.f32 %v7725_v58, %v1616_v37  ;;  %v7727_v62 = vpop.eup %7726 }
 0x41c   :  { %v1724_v2 = vadd.f32 1.0, %v7727_v62 }
 0x41d   :  { %v1622_v63 = vadd.f32 %v1621_v59, %v1580_v61  ;;  %v2017_v61 = vld [vmem:[#allocation3 + $0x16] sm:$0x3] }
 0x41f   :  { %7732 = vtanh.f32 %v1622_v63 }
 0x420   :  { %7734 = vrcp.f32 %v1724_v2 }
 0x422   :  { %v7729_v4 = vpop.eup %7728 }
 0x423   :  { %v1768_v12 = vmul.f32 %v7729_v4, %v1763_v3  ;;  %v7731_v17 = vpop.eup %7730 }
 0x424   :  { %v1624_v24 = vsub.f32 1.0, %v7731_v17  ;;  %v1626_v14 = vmul.f32 %v7731_v17, %v8531_v1  ;;  %v8626_v1 = vld [vmem:[%s9666_s7 + $0x8] sm:$0xff]  }
 0x425   :  { %v1769_v6 = vadd.f32 %v1768_v12, %v1727_v50 }
 0x427   :  { %7736 = vtanh.f32 %v1769_v6 }
 0x42c   :  { %v7733_v25 = vpop.eup %7732 }
 0x42d   :  { %v1625_v56 = vmul.f32 %v7733_v25, %v1624_v24  ;;  %v7735_v8 = vpop.eup %7734 }
 0x42e   :  { %v1771_v16 = vsub.f32 1.0, %v7735_v8  ;;  %v1773_v28 = vmul.f32 %v7735_v8, %v8550_v15 }
 0x42f   :  { %v8609_v7 = vadd.f32 %v1626_v14, %v1625_v56 }
 0x431   :  { %1775 = vst.msk [vmem:[#allocation4 + $0x6] sm:$0x3] %vm880_vm3, %v8609_v7  ;;  %v1777_v9 = vpack.c.bf16 %v8609_v7, %v8609_v7 }
 0x433   :  { %6949 = vmatmul.mubr.msk.bf16.vlgmr.msra.gmra.mxu0 %vm162_vm2, %v1777_v9  ;;  %6957 = vmatmul.mubr.msk.bf16.vlgmr.msra.gmra.mxu1 %vm162_vm2, %v1777_v9 }
 0x434   :  { %6961 = vmatpush3.bf16.msra.mxu0 %v8620_v22  ;;  %6969 = vmatpush3.bf16.msra.mxu1 %v8626_v1  ;;  %v7737_v26 = vpop.eup %7736 }
 0x435   :  { %6962 = vmatprep.subr.bf16.mxu0 %v8076_v0  ;;  %6970 = vmatprep.subr.bf16.mxu1 %v8076_v0  ;;  %v1772_v27 = vmul.f32 %v7737_v26, %v1771_v16 }
 0x436   :  { %6964 = vmatprep.mubr.msk.bf16.mxu0 %vm8077_vm0, %v8076_v0  ;;  %6972 = vmatprep.mubr.msk.bf16.mxu1 %vm8077_vm0, %v8076_v0 }
 0x437   :  { %v8648_v32 = vadd.f32 %v1773_v28, %v1772_v27  ;;  %v1878_v28 = vld [vmem:[#allocation2 + $0x28] sm:$0x3] }
 0x438   :  { %6963 = vmatpush3.bf16.msra.mxu0 %v8639_v29  ;;  %6971 = vmatpush3.bf16.msra.mxu1 %v8645_v30 }
 0x439   :  { %6976 = vmatprep.subr.bf16.mxu0 %v8076_v0  ;;  %6984 = vmatprep.subr.bf16.mxu1 %v8076_v0  ;;  %1776 = vst.msk [vmem:[#allocation5 + $0x8] sm:$0x3] %vm880_vm3, %v8648_v32  ;;  %v1778_v15 = vpack.c.bf16 %v8648_v32, %v8648_v32 }
 0x43b   :  { %6965 = vmatmul.mubr.msk.bf16.vlgmr.msra.gmra.mxu0 %vm162_vm2, %v1777_v9  ;;  %6973 = vmatmul.mubr.msk.bf16.vlgmr.msra.gmra.mxu1 %vm162_vm2, %v1778_v15 }
 0x43c   :  { %6977 = vmatpush3.bf16.msra.mxu0 %v8661_v33  ;;  %6985 = vmatpush3.bf16.msra.mxu1 %v8667_v34 }
 0x43d   :  { %6978 = vmatprep.subr.bf16.mxu0 %v8076_v0  ;;  %6986 = vmatprep.subr.bf16.mxu1 %v8076_v0 }
 0x43e   :  { %6980 = vmatprep.mubr.msk.bf16.mxu0 %vm8077_vm0, %v8076_v0  ;;  %6988 = vmatprep.mubr.msk.bf16.mxu1 %vm8077_vm0, %v8076_v0 }
 0x440   :  { %6979 = vmatpush3.bf16.msra.mxu0 %v8679_v13  ;;  %6987 = vmatpush3.bf16.msra.mxu1 %v8685_v35 }
 0x441   :  { %6992 = vmatprep.subr.bf16.mxu0 %v8076_v0  ;;  %7000 = vmatprep.subr.bf16.mxu1 %v8076_v0 }
 0x443   :  { %6981 = vmatmul.mubr.msk.bf16.vlgmr.msra.gmra.mxu0 %vm162_vm2, %v1778_v15  ;;  %6989 = vmatmul.mubr.msk.bf16.vlgmr.msra.gmra.mxu1 %vm162_vm2, %v1778_v15 }
 0x444   :  { %6993 = vmatpush3.bf16.msra.mxu0 %v8577_v18  ;;  %7001 = vmatpush3.bf16.msra.mxu1 %v8583_v19 }
 0x445   :  { %6994 = vmatprep.subr.bf16.mxu0 %v8076_v0  ;;  %7002 = vmatprep.subr.bf16.mxu1 %v8076_v0 }
 0x446   :  { %6996 = vmatprep.mubr.msk.bf16.mxu0 %vm8077_vm0, %v8076_v0  ;;  %7004 = vmatprep.mubr.msk.bf16.mxu1 %vm8077_vm0, %v8076_v0 }
 0x448   :  { %6995 = vmatpush3.bf16.msra.mxu0 %v8595_v21  ;;  %7003 = vmatpush3.bf16.msra.mxu1 %v8601_v23 }
 0x449   :  { %7008 = vmatprep.subr.bf16.mxu0 %v8076_v0  ;;  %7016 = vmatprep.subr.bf16.mxu1 %v8076_v0 }
 0x4f3   :  { %v1816_v36 = vpop.f32.mrf.mxu0  ;;  %v1856_v20 = vpop.f32.mrf.mxu1 }
 0x4f4   :  { %v1863_v39 = vadd.f32 %v1862_v38, %v1816_v36  ;;  %v1871_v48 = vadd.f32 %v1870_v45, %v1856_v20 }
 0x4f5   :  { %v6950_v40 = vpop.f32.mrf.mxu0  ;;  %v6958_v41 = vpop.f32.mrf.mxu1 }
 0x4f6   :  { %v6164_v42 = vmul.f32 -1.442695, %v1863_v39  ;;  %v6165_v31 = vmul.f32 -1.442695, %v1871_v48  ;;  %v2025_v41 = vld [vmem:[#allocation3 + $0x26] sm:$0x3] }
 0x4f7   :  { %v1819_v43 = vpop.f32.mrf.mxu0  ;;  %v1859_v44 = vpop.f32.mrf.mxu1 }
 0x4f8   :  { %7738 = vpow2.f32 %v6164_v42 }
 0x4f9   :  { %v6951_v46 = vpop.f32.mrf.mxu0  ;;  %v6959_v47 = vpop.f32.mrf.mxu1 }
 0x4fb   :  { %v1913_v49 = vpop.f32.mrf.mxu0  ;;  %v1963_v51 = vpop.f32.mrf.mxu1 }
 0x4fc   :  { %v2010_v53 = vadd.f32 %v2009_v52, %v1963_v51  ;;  %v1914_v16 = vadd.f32 %v8408_v60, %v1913_v49 }
 0x4fd   :  { %v6966_v54 = vpop.f32.mrf.mxu0  ;;  %v6974_v55 = vpop.f32.mrf.mxu1 }
 0x4fe   :  { %v6169_v57 = vmul.f32 -1.442695, %v2010_v53 }
 0x4ff   :  { %v1916_v10 = vpop.f32.mrf.mxu0  ;;  %v1966_v11 = vpop.f32.mrf.mxu1 }
 0x500   :  { %7740 = vpow2.f32 %v6169_v57 }
 0x501   :  { %v6967_v37 = vpop.f32.mrf.mxu0  ;;  %7742 = vpow2.f32 %v6165_v31  ;;  %v6975_v58 = vpop.f32.mrf.mxu1  ;;  %v2160_v31 = vld [vmem:[#allocation2 + $0xa] sm:$0x3] }
 0x503   :  { %v2003_v59 = vpop.f32.mrf.mxu0  ;;  %v2060_v63 = vpop.f32.mrf.mxu1 }
 0x504   :  { %v2018_v62 = vadd.f32 %v2017_v61, %v2003_v59  ;;  %v2061_v20 = vadd.f32 %v8411_v5, %v2060_v63  ;;  %v2168_v61 = vld [vmem:[#allocation2 + $0x1a] sm:$0x3] }
 0x505   :  { %v7739_v2 = vpop.eup %7738  ;;  %v6982_v3 = vpop.f32.mrf.mxu0 }
 0x506   :  { %v1867_v4 = vadd.f32 1.0, %v7739_v2  ;;  %v6990_v12 = vpop.f32.mrf.mxu1  ;;  %v6170_v50 = vmul.f32 -1.442695, %v2018_v62 }
 0x507   :  { %v2006_v6 = vpop.f32.mrf.mxu0  ;;  %v2307_v12 = vld [vmem:[#allocation3 + $0x4] sm:$0x3] }
 0x508   :  { %7744 = vrcp.f32 %v1867_v4  ;;  %v2063_v17 = vpop.f32.mrf.mxu1 }
 0x509   :  { %v6983_v24 = vpop.f32.mrf.mxu0  ;;  %7746 = vpow2.f32 %v6170_v50 }
 0x50a   :  { %v6991_v25 = vpop.f32.mrf.mxu1 }
 0x50d   :  { %v7741_v56 = vpop.eup %7740 }
 0x50e   :  { %v7743_v14 = vpop.eup %7742  ;;  %v2014_v8 = vadd.f32 1.0, %v7741_v56 }
 0x50f   :  { %v1875_v9 = vadd.f32 1.0, %v7743_v14 }
 0x510   :  { %7748 = vrcp.f32 %v2014_v8 }
 0x511   :  { %7750 = vrcp.f32 %v1875_v9 }
 0x515   :  { %v7745_v26 = vpop.eup %7744 }
 0x516   :  { %v1919_v27 = vmul.f32 %v7745_v26, %v1914_v16  ;;  %v7747_v15 = vpop.eup %7746  ;;  %v2315_v26 = vld [vmem:[#allocation3 + $0x14] sm:$0x3] }
 0x517   :  { %v2022_v38 = vadd.f32 1.0, %v7747_v15 }
 0x518   :  { %v1920_v36 = vadd.f32 %v1919_v27, %v1878_v28 }
 0x51a   :  { %7752 = vtanh.f32 %v1920_v36 }
 0x51b   :  { %7754 = vrcp.f32 %v2022_v38 }
 0x51d   :  { %v7749_v39 = vpop.eup %7748 }
 0x51e   :  { %v2066_v40 = vmul.f32 %v7749_v39, %v2061_v20  ;;  %v7751_v43 = vpop.eup %7750 }
 0x51f   :  { %v1922_v44 = vsub.f32 1.0, %v7751_v43  ;;  %v1924_v46 = vmul.f32 %v7751_v43, %v8609_v7 }
 0x520   :  { %v2067_v42 = vadd.f32 %v2066_v40, %v2025_v41 }
 0x522   :  { %7756 = vtanh.f32 %v2067_v42 }
 0x527   :  { %v7753_v45 = vpop.eup %7752 }
 0x528   :  { %v1923_v60 = vmul.f32 %v7753_v45, %v1922_v44  ;;  %v7755_v48 = vpop.eup %7754 }
 0x529   :  { %v2069_v49 = vsub.f32 1.0, %v7755_v48  ;;  %v2071_v52 = vmul.f32 %v7755_v48, %v8648_v32  ;;  %v8765_v48 = vld [vmem:[%s9701_s29] ss:$0 sm:$0xff] }
 0x52a   :  { %v8707_v47 = vadd.f32 %v1924_v46, %v1923_v60 }
 0x52c   :  { %2073 = vst.msk [vmem:[#allocation4 + $0x8] sm:$0x3] %vm880_vm3, %v8707_v47  ;;  %v2075_v5 = vpack.c.bf16 %v8707_v47, %v8707_v47 }
 0x52e   :  { %6997 = vmatmul.mubr.msk.bf16.vlgmr.msra.gmra.mxu0 %vm162_vm2, %v2075_v5  ;;  %7005 = vmatmul.mubr.msk.bf16.vlgmr.msra.gmra.mxu1 %vm162_vm2, %v2075_v5 }
 0x52f   :  { %7009 = vmatpush3.bf16.msra.mxu0 %v8620_v22  ;;  %7017 = vmatpush3.bf16.msra.mxu1 %v8626_v1  ;;  %v7757_v51 = vpop.eup %7756 }
 0x530   :  { %7010 = vmatprep.subr.bf16.mxu0 %v8076_v0  ;;  %7018 = vmatprep.subr.bf16.mxu1 %v8076_v0  ;;  %v2070_v7 = vmul.f32 %v7757_v51, %v2069_v49 }
 0x531   :  { %7012 = vmatprep.mubr.msk.bf16.mxu0 %vm8077_vm0, %v8076_v0  ;;  %7020 = vmatprep.mubr.msk.bf16.mxu1 %vm8077_vm0, %v8076_v0 }
 0x532   :  { %v8726_v53 = vadd.f32 %v2071_v52, %v2070_v7  ;;  %v2176_v7 = vld [vmem:[#allocation2 + $0x2a] sm:$0x3] }
 0x533   :  { %7011 = vmatpush3.bf16.msra.mxu0 %v8639_v29  ;;  %7019 = vmatpush3.bf16.msra.mxu1 %v8645_v30 }
 0x534   :  { %7024 = vmatprep.subr.bf16.mxu0 %v8076_v0  ;;  %7032 = vmatprep.subr.bf16.mxu1 %v8076_v0  ;;  %2074 = vst.msk [vmem:[#allocation5 + $0x6] sm:$0x3] %vm880_vm3, %v8726_v53  ;;  %v2076_v54 = vpack.c.bf16 %v8726_v53, %v8726_v53 }
 0x536   :  { %7013 = vmatmul.mubr.msk.bf16.vlgmr.msra.gmra.mxu0 %vm162_vm2, %v2075_v5  ;;  %7021 = vmatmul.mubr.msk.bf16.vlgmr.msra.gmra.mxu1 %vm162_vm2, %v2076_v54 }
 0x537   :  { %7025 = vmatpush3.bf16.msra.mxu0 %v8661_v33  ;;  %7033 = vmatpush3.bf16.msra.mxu1 %v8667_v34 }
 0x538   :  { %7026 = vmatprep.subr.bf16.mxu0 %v8076_v0  ;;  %7034 = vmatprep.subr.bf16.mxu1 %v8076_v0 }
 0x539   :  { %7028 = vmatprep.mubr.msk.bf16.mxu0 %vm8077_vm0, %v8076_v0  ;;  %7036 = vmatprep.mubr.msk.bf16.mxu1 %vm8077_vm0, %v8076_v0 }
 0x53b   :  { %7027 = vmatpush3.bf16.msra.mxu0 %v8679_v13  ;;  %7035 = vmatpush3.bf16.msra.mxu1 %v8685_v35 }
 0x53c   :  { %7040 = vmatprep.subr.bf16.mxu0 %v8076_v0  ;;  %7048 = vmatprep.subr.bf16.mxu1 %v8076_v0 }
 0x53e   :  { %7029 = vmatmul.mubr.msk.bf16.vlgmr.msra.gmra.mxu0 %vm162_vm2, %v2076_v54  ;;  %7037 = vmatmul.mubr.msk.bf16.vlgmr.msra.gmra.mxu1 %vm162_vm2, %v2076_v54 }
 0x53f   :  { %7041 = vmatpush3.bf16.msra.mxu0 %v8577_v18  ;;  %7049 = vmatpush3.bf16.msra.mxu1 %v8583_v19 }
 0x540   :  { %7042 = vmatprep.subr.bf16.mxu0 %v8076_v0  ;;  %7050 = vmatprep.subr.bf16.mxu1 %v8076_v0 }
 0x541   :  { %7044 = vmatprep.mubr.msk.bf16.mxu0 %vm8077_vm0, %v8076_v0  ;;  %7052 = vmatprep.mubr.msk.bf16.mxu1 %vm8077_vm0, %v8076_v0 }
 0x543   :  { %7043 = vmatpush3.bf16.msra.mxu0 %v8595_v21  ;;  %7051 = vmatpush3.bf16.msra.mxu1 %v8601_v23 }
 0x544   :  { %7056 = vmatprep.subr.bf16.mxu0 %v8076_v0  ;;  %7064 = vmatprep.subr.bf16.mxu1 %v8076_v0 }
 0x5ee   :  { %v2114_v32 = vpop.f32.mrf.mxu0  ;;  %v2154_v55 = vpop.f32.mrf.mxu1 }
 0x5ef   :  { %v2161_v57 = vadd.f32 %v2160_v31, %v2114_v32  ;;  %v2169_v2 = vadd.f32 %v2168_v61, %v2154_v55  ;;  %v8768_v31 = vld [vmem:[#allocation10] ss:$0 sm:$0xff] }
 0x5f0   :  { %v6998_v10 = vpop.f32.mrf.mxu0  ;;  %v7006_v11 = vpop.f32.mrf.mxu1 }
 0x5f1   :  { %v6174_v37 = vmul.f32 -1.442695, %v2161_v57  ;;  %v6175_v17 = vmul.f32 -1.442695, %v2169_v2  ;;  %v2323_v11 = vld [vmem:[#allocation3 + $0x24] sm:$0x3] }
 0x5f2   :  { %v2117_v58 = vpop.f32.mrf.mxu0  ;;  %v2157_v59 = vpop.f32.mrf.mxu1 }
 0x5f3   :  { %7758 = vpow2.f32 %v6174_v37 }
 0x5f4   :  { %v6999_v62 = vpop.f32.mrf.mxu0  ;;  %v7007_v63 = vpop.f32.mrf.mxu1 }
 0x5f6   :  { %v2211_v3 = vpop.f32.mrf.mxu0  ;;  %v2261_v4 = vpop.f32.mrf.mxu1 }
 0x5f7   :  { %v2308_v50 = vadd.f32 %v2307_v12, %v2261_v4  ;;  %v2212_v5 = vadd.f32 %v8765_v48, %v2211_v3 }
 0x5f8   :  { %v7014_v6 = vpop.f32.mrf.mxu0  ;;  %v7022_v24 = vpop.f32.mrf.mxu1 }
 0x5f9   :  { %v6179_v25 = vmul.f32 -1.442695, %v2308_v50 }
 0x5fa   :  { %v2214_v56 = vpop.f32.mrf.mxu0  ;;  %v2264_v14 = vpop.f32.mrf.mxu1 }
 0x5fb   :  { %7760 = vpow2.f32 %v6179_v25 }
 0x5fc   :  { %v7015_v8 = vpop.f32.mrf.mxu0  ;;  %7762 = vpow2.f32 %v6175_v17  ;;  %v7023_v9 = vpop.f32.mrf.mxu1 }
 0x5fe   :  { %v2301_v16 = vpop.f32.mrf.mxu0  ;;  %v2358_v28 = vpop.f32.mrf.mxu1 }
 0x5ff   :  { %v2316_v27 = vadd.f32 %v2315_v26, %v2301_v16  ;;  %v2359_v55 = vadd.f32 %v8768_v31, %v2358_v28  ;;  %v2466_v26 = vld [vmem:[#allocation2 + $0x1c] sm:$0x3] }
 0x600   :  { %v7759_v15 = vpop.eup %7758  ;;  %v7030_v36 = vpop.f32.mrf.mxu0 }
 0x601   :  { %v2165_v38 = vadd.f32 1.0, %v7759_v15  ;;  %v7038_v20 = vpop.f32.mrf.mxu1  ;;  %v6180_v39 = vmul.f32 -1.442695, %v2316_v27  ;;  %v2605_v36 = vld [vmem:[#allocation3 + $0x2] sm:$0x3] }
 0x602   :  { %v2304_v40 = vpop.f32.mrf.mxu0 }
 0x603   :  { %7764 = vrcp.f32 %v2165_v38  ;;  %v2361_v41 = vpop.f32.mrf.mxu1 }
 0x604   :  { %v7031_v42 = vpop.f32.mrf.mxu0  ;;  %7766 = vpow2.f32 %v6180_v39 }
 0x605   :  { %v7039_v43 = vpop.f32.mrf.mxu1 }
 0x608   :  { %v7761_v44 = vpop.eup %7760 }
 0x609   :  { %v7763_v45 = vpop.eup %7762  ;;  %v2312_v60 = vadd.f32 1.0, %v7761_v44 }
 0x60a   :  { %v2173_v46 = vadd.f32 1.0, %v7763_v45 }
 0x60b   :  { %7768 = vrcp.f32 %v2312_v60 }
 0x60c   :  { %7770 = vrcp.f32 %v2173_v46  ;;  %v2613_v46 = vld [vmem:[#allocation3 + $0x12] sm:$0x3] }
 0x610   :  { %v7765_v49 = vpop.eup %7764 }
 0x611   :  { %v2217_v51 = vmul.f32 %v7765_v49, %v2212_v5  ;;  %v7767_v52 = vpop.eup %7766 }
 0x612   :  { %v2320_v32 = vadd.f32 1.0, %v7767_v52 }
 0x613   :  { %v2218_v54 = vadd.f32 %v2217_v51, %v2176_v7 }
 0x615   :  { %7772 = vtanh.f32 %v2218_v54 }
 0x616   :  { %7774 = vrcp.f32 %v2320_v32 }
 0x618   :  { %v7769_v57 = vpop.eup %7768 }
 0x619   :  { %v2364_v10 = vmul.f32 %v7769_v57, %v2359_v55  ;;  %v7771_v58 = vpop.eup %7770 }
 0x61a   :  { %v2220_v59 = vsub.f32 1.0, %v7771_v58  ;;  %v2222_v63 = vmul.f32 %v7771_v58, %v8707_v47 }
 0x61b   :  { %v2365_v37 = vadd.f32 %v2364_v10, %v2323_v11 }
 0x61d   :  { %7776 = vtanh.f32 %v2365_v37 }
 0x622   :  { %v7773_v61 = vpop.eup %7772 }
 0x623   :  { %v2221_v62 = vmul.f32 %v7773_v61, %v2220_v59  ;;  %v7775_v3 = vpop.eup %7774 }
 0x624   :  { %v2367_v12 = vsub.f32 1.0, %v7775_v3  ;;  %v2369_v6 = vmul.f32 %v7775_v3, %v8726_v53 }
 0x625   :  { %v8772_v2 = vadd.f32 %v2222_v63, %v2221_v62 }
 0x627   :  { %2371 = vst.msk [vmem:[#allocation4 + $0xa] sm:$0x3] %vm880_vm3, %v8772_v2  ;;  %v2373_v4 = vpack.c.bf16 %v8772_v2, %v8772_v2 }
 0x629   :  { %7045 = vmatmul.mubr.msk.bf16.vlgmr.msra.gmra.mxu0 %vm162_vm2, %v2373_v4  ;;  %7053 = vmatmul.mubr.msk.bf16.vlgmr.msra.gmra.mxu1 %vm162_vm2, %v2373_v4 }
 0x62a   :  { %7057 = vmatpush3.bf16.msra.mxu0 %v8620_v22  ;;  %7065 = vmatpush3.bf16.msra.mxu1 %v8626_v1  ;;  %v7777_v50 = vpop.eup %7776 }
 0x62b   :  { %7058 = vmatprep.subr.bf16.mxu0 %v8076_v0  ;;  %7066 = vmatprep.subr.bf16.mxu1 %v8076_v0  ;;  %v2368_v47 = vmul.f32 %v7777_v50, %v2367_v12 }
 0x62c   :  { %7060 = vmatprep.mubr.msk.bf16.mxu0 %vm8077_vm0, %v8076_v0  ;;  %7068 = vmatprep.mubr.msk.bf16.mxu1 %vm8077_vm0, %v8076_v0 }
 0x62d   :  { %v8791_v17 = vadd.f32 %v2369_v6, %v2368_v47 }
 0x62e   :  { %7059 = vmatpush3.bf16.msra.mxu0 %v8639_v29  ;;  %7067 = vmatpush3.bf16.msra.mxu1 %v8645_v30 }
 0x62f   :  { %7072 = vmatprep.subr.bf16.mxu0 %v8076_v0  ;;  %7080 = vmatprep.subr.bf16.mxu1 %v8076_v0  ;;  %2372 = vst.msk [vmem:[#allocation5 + $0x4] sm:$0x3] %vm880_vm3, %v8791_v17  ;;  %v2374_v24 = vpack.c.bf16 %v8791_v17, %v8791_v17 }
 0x631   :  { %7061 = vmatmul.mubr.msk.bf16.vlgmr.msra.gmra.mxu0 %vm162_vm2, %v2373_v4  ;;  %7069 = vmatmul.mubr.msk.bf16.vlgmr.msra.gmra.mxu1 %vm162_vm2, %v2374_v24  ;;  %v2474_v4 = vld [vmem:[#allocation2 + $0x2c] sm:$0x3] }
 0x632   :  { %7073 = vmatpush3.bf16.msra.mxu0 %v8661_v33  ;;  %7081 = vmatpush3.bf16.msra.mxu1 %v8667_v34 }
 0x633   :  { %7074 = vmatprep.subr.bf16.mxu0 %v8076_v0  ;;  %7082 = vmatprep.subr.bf16.mxu1 %v8076_v0 }
 0x634   :  { %7076 = vmatprep.mubr.msk.bf16.mxu0 %vm8077_vm0, %v8076_v0  ;;  %7084 = vmatprep.mubr.msk.bf16.mxu1 %vm8077_vm0, %v8076_v0 }
 0x636   :  { %7075 = vmatpush3.bf16.msra.mxu0 %v8679_v13  ;;  %7083 = vmatpush3.bf16.msra.mxu1 %v8685_v35 }
 0x637   :  { %7088 = vmatprep.subr.bf16.mxu0 %v8076_v0  ;;  %7096 = vmatprep.subr.bf16.mxu1 %v8076_v0 }
 0x639   :  { %7077 = vmatmul.mubr.msk.bf16.vlgmr.msra.gmra.mxu0 %vm162_vm2, %v2374_v24  ;;  %7085 = vmatmul.mubr.msk.bf16.vlgmr.msra.gmra.mxu1 %vm162_vm2, %v2374_v24 }
 0x63a   :  { %7089 = vmatpush3.bf16.msra.mxu0 %v8577_v18  ;;  %7097 = vmatpush3.bf16.msra.mxu1 %v8583_v19  ;;  %v2458_v19 = vld [vmem:[#allocation2 + $0xc] sm:$0x3] }
 0x63b   :  { %7090 = vmatprep.subr.bf16.mxu0 %v8076_v0  ;;  %7098 = vmatprep.subr.bf16.mxu1 %v8076_v0 }
 0x63c   :  { %7092 = vmatprep.mubr.msk.bf16.mxu0 %vm8077_vm0, %v8076_v0  ;;  %7100 = vmatprep.mubr.msk.bf16.mxu1 %vm8077_vm0, %v8076_v0 }
 0x63e   :  { %7091 = vmatpush3.bf16.msra.mxu0 %v8595_v21  ;;  %7099 = vmatpush3.bf16.msra.mxu1 %v8601_v23 }
 0x63f   :  { %7104 = vmatprep.subr.bf16.mxu0 %v8076_v0  ;;  %7112 = vmatprep.subr.bf16.mxu1 %v8076_v0 }
 0x6e9   :  { %v2412_v18 = vpop.f32.mrf.mxu0  ;;  %v2452_v53 = vpop.f32.mrf.mxu1 }
 0x6ea   :  { %v2459_v25 = vadd.f32 %v2458_v19, %v2412_v18  ;;  %v2467_v21 = vadd.f32 %v2466_v26, %v2452_v53  ;;  %v2621_v19 = vld [vmem:[#allocation3 + $0x22] sm:$0x3] }
 0x6eb   :  { %v7046_v56 = vpop.f32.mrf.mxu0  ;;  %v7054_v14 = vpop.f32.mrf.mxu1 }
 0x6ec   :  { %v6184_v8 = vmul.f32 -1.442695, %v2459_v25  ;;  %v6185_v39 = vmul.f32 -1.442695, %v2467_v21 }
 0x6ed   :  { %v2415_v9 = vpop.f32.mrf.mxu0  ;;  %v2455_v16 = vpop.f32.mrf.mxu1 }
 0x6ee   :  { %7778 = vpow2.f32 %v6184_v8 }
 0x6ef   :  { %v7047_v27 = vpop.f32.mrf.mxu0  ;;  %v7055_v28 = vpop.f32.mrf.mxu1 }
 0x6f1   :  { %v2509_v15 = vpop.f32.mrf.mxu0  ;;  %v2559_v23 = vpop.f32.mrf.mxu1 }
 0x6f2   :  { %v2606_v38 = vadd.f32 %v2605_v36, %v2559_v23  ;;  %v2510_v62 = vadd.f32 %v8765_v48, %v2509_v15  ;;  %v2756_v23 = vld [vmem:[#allocation2 + $0xe] sm:$0x3] }
 0x6f3   :  { %v7062_v20 = vpop.f32.mrf.mxu0  ;;  %v7070_v40 = vpop.f32.mrf.mxu1 }
 0x6f4   :  { %v6189_v41 = vmul.f32 -1.442695, %v2606_v38 }
 0x6f5   :  { %v2512_v42 = vpop.f32.mrf.mxu0  ;;  %v2562_v43 = vpop.f32.mrf.mxu1 }
 0x6f6   :  { %7780 = vpow2.f32 %v6189_v41  ;;  %v2764_v43 = vld [vmem:[#allocation2 + $0x1e] sm:$0x3] }
 0x6f7   :  { %v7063_v44 = vpop.f32.mrf.mxu0  ;;  %7782 = vpow2.f32 %v6185_v39  ;;  %v7071_v45 = vpop.f32.mrf.mxu1 }
 0x6f9   :  { %v2599_v60 = vpop.f32.mrf.mxu0  ;;  %v2656_v49 = vpop.f32.mrf.mxu1 }
 0x6fa   :  { %v2614_v5 = vadd.f32 %v2613_v46, %v2599_v60  ;;  %v2657_v6 = vadd.f32 %v8768_v31, %v2656_v49  ;;  %v2903_v49 = vld [vmem:[#allocation3] sm:$0x3] }
 0x6fb   :  { %v7779_v51 = vpop.eup %7778  ;;  %v7078_v7 = vpop.f32.mrf.mxu0 }
 0x6fc   :  { %v2463_v52 = vadd.f32 1.0, %v7779_v51  ;;  %v7086_v54 = vpop.f32.mrf.mxu1  ;;  %v6190_v32 = vmul.f32 -1.442695, %v2614_v5 }
 0x6fd   :  { %v2602_v55 = vpop.f32.mrf.mxu0 }
 0x6fe   :  { %7784 = vrcp.f32 %v2463_v52  ;;  %v2659_v57 = vpop.f32.mrf.mxu1 }
 0x6ff   :  { %v7079_v10 = vpop.f32.mrf.mxu0  ;;  %7786 = vpow2.f32 %v6190_v32 }
 0x700   :  { %v7087_v11 = vpop.f32.mrf.mxu1 }
 0x703   :  { %v7781_v37 = vpop.eup %7780 }
 0x704   :  { %v7783_v58 = vpop.eup %7782  ;;  %v2610_v59 = vadd.f32 1.0, %v7781_v37 }
 0x705   :  { %v2471_v61 = vadd.f32 1.0, %v7783_v58  ;;  %v2911_v58 = vld [vmem:[#allocation3 + $0x10] sm:$0x3] }
 0x706   :  { %7788 = vrcp.f32 %v2610_v59 }
 0x707   :  { %7790 = vrcp.f32 %v2471_v61 }
 0x70b   :  { %v7785_v63 = vpop.eup %7784 }
 0x70c   :  { %v2515_v3 = vmul.f32 %v7785_v63, %v2510_v62  ;;  %v7787_v12 = vpop.eup %7786 }
 0x70d   :  { %v2618_v47 = vadd.f32 1.0, %v7787_v12 }
 0x70e   :  { %v2516_v50 = vadd.f32 %v2515_v3, %v2474_v4 }
 0x710   :  { %7792 = vtanh.f32 %v2516_v50 }
 0x711   :  { %7794 = vrcp.f32 %v2618_v47 }
 0x713   :  { %v7789_v24 = vpop.eup %7788 }
 0x714   :  { %v2662_v18 = vmul.f32 %v7789_v24, %v2657_v6  ;;  %v7791_v25 = vpop.eup %7790 }
 0x715   :  { %v2518_v56 = vsub.f32 1.0, %v7791_v25  ;;  %v2520_v9 = vmul.f32 %v7791_v25, %v8772_v2 }
 0x716   :  { %v2663_v53 = vadd.f32 %v2662_v18, %v2621_v19 }
 0x718   :  { %7796 = vtanh.f32 %v2663_v53 }
 0x71d   :  { %v7793_v14 = vpop.eup %7792 }
 0x71e   :  { %v2519_v8 = vmul.f32 %v7793_v14, %v2518_v56  ;;  %v7795_v26 = vpop.eup %7794 }
 0x71f   :  { %v2665_v28 = vsub.f32 1.0, %v7795_v26  ;;  %v2667_v15 = vmul.f32 %v7795_v26, %v8791_v17 }
 0x720   :  { %v8830_v16 = vadd.f32 %v2520_v9, %v2519_v8  ;;  %v2772_v9 = vld [vmem:[#allocation2 + $0x2e] sm:$0x3] }
 0x722   :  { %2669 = vst.msk [vmem:[#allocation4 + $0xc] sm:$0x3] %vm880_vm3, %v8830_v16  ;;  %v2671_v27 = vpack.c.bf16 %v8830_v16, %v8830_v16 }
 0x724   :  { %7093 = vmatmul.mubr.msk.bf16.vlgmr.msra.gmra.mxu0 %vm162_vm2, %v2671_v27  ;;  %7101 = vmatmul.mubr.msk.bf16.vlgmr.msra.gmra.mxu1 %vm162_vm2, %v2671_v27 }
 0x725   :  { %7105 = vmatpush3.bf16.msra.mxu0 %v8620_v22  ;;  %7113 = vmatpush3.bf16.msra.mxu1 %v8626_v1  ;;  %v7797_v21 = vpop.eup %7796 }
 0x726   :  { %7106 = vmatprep.subr.bf16.mxu0 %v8076_v0  ;;  %7114 = vmatprep.subr.bf16.mxu1 %v8076_v0  ;;  %v2666_v2 = vmul.f32 %v7797_v21, %v2665_v28 }
 0x727   :  { %7108 = vmatprep.mubr.msk.bf16.mxu0 %vm8077_vm0, %v8076_v0  ;;  %7116 = vmatprep.mubr.msk.bf16.mxu1 %vm8077_vm0, %v8076_v0 }
 0x728   :  { %v8849_v22 = vadd.f32 %v2667_v15, %v2666_v2 }
 0x729   :  { %7107 = vmatpush3.bf16.msra.mxu0 %v8639_v29  ;;  %7115 = vmatpush3.bf16.msra.mxu1 %v8645_v30  ;;  %v7622_v29 = vld [vmem:[%s9669_s10 + $0x18] sm:$0xff]  }
 0x72a   :  { %7120 = vmatprep.subr.bf16.mxu0 %v8076_v0  ;;  %7128 = vmatprep.subr.bf16.mxu1 %v8076_v0  ;;  %2670 = vst.msk [vmem:[#allocation5 + $0x2] sm:$0x3] %vm880_vm3, %v8849_v22  ;;  %v2672_v1 = vpack.c.bf16 %v8849_v22, %v8849_v22  ;;  %v7623_v30 = vld [vmem:[%s9669_s10 + $0x38] sm:$0xff]  }
 0x72c   :  { %7109 = vmatmul.mubr.msk.bf16.vlgmr.msra.gmra.mxu0 %vm162_vm2, %v2671_v27  ;;  %7117 = vmatmul.mubr.msk.bf16.vlgmr.msra.gmra.mxu1 %vm162_vm2, %v2672_v1 }
 0x72d   :  { %7121 = vmatpush3.bf16.msra.mxu0 %v8661_v33  ;;  %7129 = vmatpush3.bf16.msra.mxu1 %v8667_v34  ;;  %v7624_v33 = vld [vmem:[%s9669_s10 + $0x10] sm:$0xff]  }
 0x72e   :  { %7122 = vmatprep.subr.bf16.mxu0 %v8076_v0  ;;  %7130 = vmatprep.subr.bf16.mxu1 %v8076_v0  ;;  %v7625_v34 = vld [vmem:[%s9669_s10 + $0x30] sm:$0xff]  }
 0x72f   :  { %7124 = vmatprep.mubr.msk.bf16.mxu0 %vm8077_vm0, %v8076_v0  ;;  %7132 = vmatprep.mubr.msk.bf16.mxu1 %vm8077_vm0, %v8076_v0 }
 0x731   :  { %7123 = vmatpush3.bf16.msra.mxu0 %v8679_v13  ;;  %7131 = vmatpush3.bf16.msra.mxu1 %v8685_v35  ;;  %v7626_v13 = vld [vmem:[%s9669_s10 + $0x8] sm:$0xff]  }
 0x732   :  { %7136 = vmatprep.subr.bf16.mxu0 %v8076_v0  ;;  %7148 = vmatprep.subr.bf16.mxu1 %v8076_v0  ;;  %v7627_v35 = vld [vmem:[%s9669_s10 + $0x28] sm:$0xff]  }
 0x734   :  { %7125 = vmatmul.mubr.msk.bf16.vlgmr.msra.gmra.mxu0 %vm162_vm2, %v2672_v1  ;;  %7133 = vmatmul.mubr.msk.bf16.vlgmr.msra.gmra.mxu1 %vm162_vm2, %v2672_v1  ;;  %v2919_v1 = vld [vmem:[#allocation3 + $0x20] sm:$0x3] }
 0x735   :  { %7144 = vmatprep.mubr.msk.bf16.mxu0 %vm8077_vm0, %v8076_v0  ;;  %7156 = vmatprep.mubr.msk.bf16.mxu1 %vm8077_vm0, %v8076_v0 }
 0x736   :  { %7137 = vmatpush3.bf16.msra.mxu0 %v7622_v29  ;;  %7149 = vmatpush3.bf16.msra.mxu1 %v7623_v30 }
 0x737   :  { %7138 = vmatprep.subr.bf16.mxu0 %v8076_v0  ;;  %7150 = vmatprep.subr.bf16.mxu1 %v8076_v0 }
 0x73a   :  { %7139 = vmatpush3.bf16.msra.mxu0 %v7624_v33  ;;  %7151 = vmatpush3.bf16.msra.mxu1 %v7625_v34 }
 0x73b   :  { %7140 = vmatprep.subr.bf16.mxu0 %v8076_v0  ;;  %7152 = vmatprep.subr.bf16.mxu1 %v8076_v0 }
 0x73e   :  { %7141 = vmatpush3.bf16.msra.mxu0 %v7626_v13  ;;  %7153 = vmatpush3.bf16.msra.mxu1 %v7627_v35 }
 0x73f   :  { %7142 = vmatprep.subr.bf16.mxu0 %v8076_v0  ;;  %7154 = vmatprep.subr.bf16.mxu1 %v8076_v0 }
 0x7e4   :  { %v2710_v17 = vpop.f32.mrf.mxu0  ;;  %v2750_v36 = vpop.f32.mrf.mxu1 }
 0x7e5   :  { %v2757_v38 = vadd.f32 %v2756_v23, %v2710_v17  ;;  %v2765_v60 = vadd.f32 %v2764_v43, %v2750_v36 }
 0x7e6   :  { %v7094_v20 = vpop.f32.mrf.mxu0  ;;  %v7102_v39 = vpop.f32.mrf.mxu1 }
 0x7e7   :  { %v6194_v40 = vmul.f32 -1.442695, %v2757_v38  ;;  %v6195_v52 = vmul.f32 -1.442695, %v2765_v60  ;;  %v7628_v39 = vld [vmem:[%s9669_s10] sm:$0xff]  }
 0x7e8   :  { %v2713_v41 = vpop.f32.mrf.mxu0  ;;  %v2753_v42 = vpop.f32.mrf.mxu1  ;;  %7143 = vmatpush3.bf16.msra.mxu0 %v7628_v39 }
 0x7e9   :  { %7798 = vpow2.f32 %v6194_v40  ;;  %7160 = vmatprep.subr.bf16.mxu0 %v8076_v0  ;;  %v2975_v40 = vld [vmem:[#allocation5 + $0x8] sm:$0xff] }
 0x7ea   :  { %v7095_v44 = vpop.f32.mrf.mxu0  ;;  %v7103_v45 = vpop.f32.mrf.mxu1 }
 0x7eb   :  { %v2972_v45 = vld [vmem:[#allocation4] sm:$0xff] }
 0x7ec   :  { %v2807_v46 = vpop.f32.mrf.mxu0  ;;  %v2857_v5 = vpop.f32.mrf.mxu1 }
 0x7ed   :  { %v2904_v51 = vadd.f32 %v2903_v49, %v2857_v5  ;;  %v2808_v56 = vadd.f32 %v8765_v48, %v2807_v46  ;;  %v7630_v49 = vld [vmem:[%s9669_s10 + $0x58] sm:$0xff]  }
 0x7ee   :  { %v7110_v7 = vpop.f32.mrf.mxu0  ;;  %v7118_v54 = vpop.f32.mrf.mxu1 }
 0x7ef   :  { %v6199_v32 = vmul.f32 -1.442695, %v2904_v51  ;;  %v7631_v51 = vld [vmem:[%s9673_s14 + $0x18] sm:$0xff]   ;;  %v7633_v54 = vld [vmem:[%s9673_s14 + $0x10] sm:$0xff]  }
 0x7f0   :  { %v2810_v55 = vpop.f32.mrf.mxu0  ;;  %v2860_v57 = vpop.f32.mrf.mxu1 }
 0x7f1   :  { %7800 = vpow2.f32 %v6199_v32  ;;  %v7634_v32 = vld [vmem:[%s9669_s10 + $0x48] sm:$0xff]   ;;  %v7636_v57 = vld [vmem:[%s9669_s10 + $0x40] sm:$0xff]  }
 0x7f2   :  { %v7111_v10 = vpop.f32.mrf.mxu0  ;;  %7802 = vpow2.f32 %v6195_v52  ;;  %v7119_v11 = vpop.f32.mrf.mxu1  ;;  %v7632_v52 = vld [vmem:[%s9669_s10 + $0x50] sm:$0xff]   ;;  %v7635_v55 = vld [vmem:[%s9673_s14 + $0x8] sm:$0xff]  }
 0x7f3   :  { %v7637_v10 = vld [vmem:[%s9673_s14] sm:$0xff]   ;;  %v7638_v11 = vld [vmem:[%s9673_s14 + $0x38] sm:$0xff]  }
 0x7f4   :  { %v2897_v37 = vpop.f32.mrf.mxu0  ;;  %v2954_v61 = vpop.f32.mrf.mxu1 }
 0x7f5   :  { %v2912_v59 = vadd.f32 %v2911_v58, %v2897_v37  ;;  %v2955_v21 = vadd.f32 %v8768_v31, %v2954_v61  ;;  %v7639_v37 = vld [vmem:[%s9673_s14 + $0x58] sm:$0xff]   ;;  %v7640_v58 = vld [vmem:[%s9673_s14 + $0x30] sm:$0xff]   ;;  %v7642_v61 = vld [vmem:[%s9673_s14 + $0x28] sm:$0xff]  }
 0x7f6   :  { %v7799_v62 = vpop.eup %7798  ;;  %v7126_v63 = vpop.f32.mrf.mxu0 }
 0x7f7   :  { %v2761_v3 = vadd.f32 1.0, %v7799_v62  ;;  %v7134_v4 = vpop.f32.mrf.mxu1  ;;  %v6200_v12 = vmul.f32 -1.442695, %v2912_v59  ;;  %v7641_v59 = vld [vmem:[%s9673_s14 + $0x50] sm:$0xff]   ;;  %v7643_v62 = vld [vmem:[%s9673_s14 + $0x48] sm:$0xff]   ;;  %v7644_v63 = vld [vmem:[%s9673_s14 + $0x20] sm:$0xff]  }
 0x7f8   :  { %v2900_v50 = vpop.f32.mrf.mxu0  ;;  %v8997_v4 = vld [vmem:[%s9670_s11 + $0x8] sm:$0xff]  }
 0x7f9   :  { %7804 = vrcp.f32 %v2761_v3  ;;  %v2957_v47 = vpop.f32.mrf.mxu1  ;;  %v7645_v3 = vld [vmem:[%s9673_s14 + $0x40] sm:$0xff]  }
 0x7fa   :  { %v7127_v6 = vpop.f32.mrf.mxu0  ;;  %7806 = vpow2.f32 %v6200_v12  ;;  %v9002_v12 = vld [vmem:[%s9670_s11 + $0x18] sm:$0xff]   ;;  %v9013_v50 = vld [vmem:[%s9670_s11] sm:$0xff]   ;;  %v9018_v47 = vld [vmem:[%s9670_s11 + $0x10] sm:$0xff]  }
 0x7fb   :  { %v7135_v24 = vpop.f32.mrf.mxu1  ;;  %v9020_v6 = vld [vmem:[#allocation7 + $0x4] sm:$0x3] }
 0x7fc   :  { %v3525_v24 = vpack.c.bf16 %v9020_v6, %v9020_v6 }
 0x7fe   :  { %v7801_v18 = vpop.eup %7800 }
 0x7ff   :  { %v7803_v19 = vpop.eup %7802  ;;  %v2908_v53 = vadd.f32 1.0, %v7801_v18  ;;  %v9035_v18 = vld [vmem:[%s9670_s11 + $0x28] sm:$0xff]  }
 0x800   :  { %v2769_v25 = vadd.f32 1.0, %v7803_v19  ;;  %v9040_v19 = vld [vmem:[%s9674_s15 + $0x8] sm:$0xff]  }
 0x801   :  { %7808 = vrcp.f32 %v2908_v53  ;;  %v9051_v53 = vld [vmem:[%s9670_s11 + $0x20] sm:$0xff]  }
 0x802   :  { %7810 = vrcp.f32 %v2769_v25  ;;  %v9056_v25 = vld [vmem:[%s9674_s15] sm:$0xff]  }
 0x806   :  { %v7805_v14 = vpop.eup %7804 }
 0x807   :  { %v2813_v8 = vmul.f32 %v7805_v14, %v2808_v56  ;;  %v7807_v26 = vpop.eup %7806  ;;  %v9058_v56 = vld [vmem:[#allocation7 + $0x6] sm:$0x3] }
 0x808   :  { %v2916_v28 = vadd.f32 1.0, %v7807_v26  ;;  %v3526_v14 = vpack.c.bf16 %v9058_v56, %v9058_v56  ;;  %v9088_v26 = vld [vmem:[%s9674_s15 + $0x10] sm:$0xff]  }
 0x809   :  { %v2814_v27 = vadd.f32 %v2813_v8, %v2772_v9  ;;  %v9073_v8 = vld [vmem:[%s9674_s15 + $0x18] sm:$0xff]   ;;  %v9080_v9 = vld [vmem:[%s9674_s15 + $0x28] sm:$0xff]  }
 0x80b   :  { %7812 = vtanh.f32 %v2814_v27  ;;  %v9097_v27 = vld [vmem:[%s9674_s15 + $0x20] sm:$0xff]  }
 0x80c   :  { %7814 = vrcp.f32 %v2916_v28  ;;  %v6202_v28 = vld [vmem:[%s9671_s12] ss:$0 sm:$0xff] }
 0x80e   :  { %v7809_v2 = vpop.eup %7808 }
 0x80f   :  { %v2960_v15 = vmul.f32 %v7809_v2, %v2955_v21  ;;  %v7811_v30 = vpop.eup %7810  ;;  %v6217_v21 = vld [vmem:[%s9671_s12 + $0x1] ss:$0 sm:$0xff] }
 0x810   :  { %v2816_v33 = vsub.f32 1.0, %v7811_v30  ;;  %v2818_v48 = vmul.f32 %v7811_v30, %v8830_v16  ;;  %v7629_v16 = vld [vmem:[%s9669_s10 + $0x20] sm:$0xff]  }
 0x811   :  { %v2961_v29 = vadd.f32 %v2960_v15, %v2919_v1  ;;  %7155 = vmatpush3.bf16.msra.mxu1 %v7629_v16 }
 0x812   :  { %7172 = vmatprep.subr.bf16.mxu1 %v8076_v0 }
 0x813   :  { %7816 = vtanh.f32 %v2961_v29 }
 0x818   :  { %v7813_v34 = vpop.eup %7812 }
 0x819   :  { %v2817_v13 = vmul.f32 %v7813_v34, %v2816_v33  ;;  %v7815_v17 = vpop.eup %7814 }
 0x81a   :  { %v2963_v23 = vsub.f32 1.0, %v7815_v17  ;;  %v2965_v36 = vmul.f32 %v7815_v17, %v8849_v22 }
 0x81b   :  { %v2819_v35 = vadd.f32 %v2818_v48, %v2817_v13 }
 0x81d   :  { %2967 = vst.msk [vmem:[#allocation4 + $0xe] sm:$0x3] %vm880_vm3, %v2819_v35  ;;  %2969 = vst.msk [vmem:[#allocation12] sm:$0x3] %vm880_vm3, %v2819_v35 }
 0x820   :  { %v7817_v31 = vpop.eup %7816 }
 0x821   :  { %v2964_v38 = vmul.f32 %v7817_v31, %v2963_v23  ;;  %v6232_v31 = vld [vmem:[%s9671_s12 + $0x2] ss:$0 sm:$0xff] }
 0x823   :  { %v2966_v20 = vadd.f32 %v2965_v36, %v2964_v38  ;;  %v6238_v36 = vld [vmem:[%s9675_s16] ss:$0 sm:$0xff] }
 0x824   :  { %v2973_v60 = vld [vmem:[#allocation4 + $0x8] sm:$0xff] }
 0x825   :  { %2968 = vst.msk [vmem:[#allocation5] sm:$0x3] %vm880_vm3, %v2966_v20  ;;  %2971 = vst.msk [vmem:[#allocation12 + $0x2] sm:$0x3] %vm880_vm3, %v2966_v20 }
 0x82c   :  { %v2974_v22 = vld [vmem:[#allocation5] sm:$0xff] }
 0x82d   :  { %v7599_v41 = vpack.i.bf16 %v2975_v40, %v2974_v22 }
 0x82f   :  { %7600 = vrot.lane.b32.xlu0 %v7599_v41, %s8073_s30 }
 0x8a1   :  { %v7601_v42 = vpop.permute.xlu0 %7600 }
 0x8a2   :  { %v7603_v43 = vunpack.i.h.bf16 %v7601_v42  ;;  %v7602_v44 = vunpack.i.l.bf16 %v7601_v42 }
 0x8a4   :  { %v2985_v46 = vsel %vm162_vm2, %v2973_v60, %v7603_v43  ;;  %v2984_v5 = vsel %vm162_vm2, %v2972_v45, %v7602_v44 }
 0x8a5   :  { %v2986_v7 = vpack.c.bf16 %v2985_v46, %v2984_v5  ;;  %v6253_v46 = vld [vmem:[%s9675_s16 + $0x1] ss:$0 sm:$0xff]  ;;  %v6268_v5 = vld [vmem:[%s9675_s16 + $0x2] ss:$0 sm:$0xff] }
 0x8a7   :  { %7145 = vmatmul.mubr.msk.bf16.vlgmr.msra.gmra.mxu0 %vm3026_vm4, %v2986_v7  ;;  %7157 = vmatmul.mubr.msk.bf16.vlgmr.msra.gmra.mxu1 %vm3026_vm4, %v2986_v7 }
 0x8a8   :  { %7161 = vmatpush3.bf16.msra.mxu0 %v7630_v49  ;;  %7173 = vmatpush3.bf16.msra.mxu1 %v7631_v51 }
 0x8a9   :  { %7162 = vmatprep.subr.bf16.mxu0 %v8076_v0  ;;  %7174 = vmatprep.subr.bf16.mxu1 %v8076_v0 }
 0x8aa   :  { %7168 = vmatprep.mubr.msk.bf16.mxu0 %vm8077_vm0, %v8076_v0  ;;  %7180 = vmatprep.mubr.msk.bf16.mxu1 %vm8077_vm0, %v8076_v0 }
 0x8ac   :  { %7163 = vmatpush3.bf16.msra.mxu0 %v7632_v52  ;;  %7175 = vmatpush3.bf16.msra.mxu1 %v7633_v54 }
 0x8ad   :  { %7164 = vmatprep.subr.bf16.mxu0 %v8076_v0  ;;  %7176 = vmatprep.subr.bf16.mxu1 %v8076_v0 }
 0x8b0   :  { %7165 = vmatpush3.bf16.msra.mxu0 %v7634_v32  ;;  %7177 = vmatpush3.bf16.msra.mxu1 %v7635_v55 }
 0x8b1   :  { %7166 = vmatprep.subr.bf16.mxu0 %v8076_v0  ;;  %7178 = vmatprep.subr.bf16.mxu1 %v8076_v0 }
 0x8b4   :  { %7167 = vmatpush3.bf16.msra.mxu0 %v7636_v57  ;;  %7179 = vmatpush3.bf16.msra.mxu1 %v7637_v10 }
 0x8b5   :  { %7184 = vmatprep.subr.bf16.mxu0 %v8076_v0  ;;  %7196 = vmatprep.subr.bf16.mxu1 %v8076_v0 }
 0x8b7   :  { %7169 = vmatmul.mubr.msk.bf16.vlgmr.msra.gmra.mxu0 %vm3026_vm4, %v2986_v7  ;;  %7181 = vmatmul.mubr.msk.bf16.vlgmr.msra.gmra.mxu1 %vm3026_vm4, %v2986_v7 }
 0x8b8   :  { %7185 = vmatpush3.bf16.msra.mxu0 %v7638_v11  ;;  %7197 = vmatpush3.bf16.msra.mxu1 %v7639_v37 }
 0x8b9   :  { %7186 = vmatprep.subr.bf16.mxu0 %v8076_v0  ;;  %7198 = vmatprep.subr.bf16.mxu1 %v8076_v0 }
 0x8ba   :  { %7192 = vmatprep.mubr.msk.bf16.mxu0 %vm8077_vm0, %v8076_v0  ;;  %7204 = vmatprep.mubr.msk.bf16.mxu1 %vm8077_vm0, %v8076_v0 }
 0x8bc   :  { %7187 = vmatpush3.bf16.msra.mxu0 %v7640_v58  ;;  %7199 = vmatpush3.bf16.msra.mxu1 %v7641_v59 }
 0x8bd   :  { %7188 = vmatprep.subr.bf16.mxu0 %v8076_v0  ;;  %7200 = vmatprep.subr.bf16.mxu1 %v8076_v0 }
 0x8c0   :  { %7189 = vmatpush3.bf16.msra.mxu0 %v7642_v61  ;;  %7201 = vmatpush3.bf16.msra.mxu1 %v7643_v62 }
 0x8c1   :  { %7190 = vmatprep.subr.bf16.mxu0 %v8076_v0  ;;  %7202 = vmatprep.subr.bf16.mxu1 %v8076_v0 }
 0x8c4   :  { %7191 = vmatpush3.bf16.msra.mxu0 %v7644_v63  ;;  %7203 = vmatpush3.bf16.msra.mxu1 %v7645_v3 }
 0x8c5   :  { %7208 = vmatprep.subr.bf16.mxu0 %v8076_v0  ;;  %7216 = vmatprep.subr.bf16.mxu1 %v8076_v0 }
 0x8c7   :  { %7193 = vmatmul.mubr.msk.bf16.vlgmr.msra.gmra.mxu0 %vm3026_vm4, %v2986_v7  ;;  %7205 = vmatmul.mubr.msk.bf16.vlgmr.msra.gmra.mxu1 %vm3026_vm4, %v2986_v7 }
 0x8c8   :  { %7209 = vmatpush3.bf16.msra.mxu0 %v8997_v4  ;;  %7217 = vmatpush3.bf16.msra.mxu1 %v9002_v12 }
 0x8c9   :  { %7210 = vmatprep.subr.bf16.mxu0 %v8076_v0  ;;  %7218 = vmatprep.subr.bf16.mxu1 %v8076_v0 }
 0x8ca   :  { %7212 = vmatprep.mubr.msk.bf16.mxu0 %vm8077_vm0, %v8076_v0  ;;  %7220 = vmatprep.mubr.msk.bf16.mxu1 %vm8077_vm0, %v8076_v0 }
 0x8cc   :  { %7211 = vmatpush3.bf16.msra.mxu0 %v9013_v50  ;;  %7219 = vmatpush3.bf16.msra.mxu1 %v9018_v47 }
 0x8cd   :  { %7224 = vmatprep.subr.bf16.mxu0 %v8076_v0  ;;  %7232 = vmatprep.subr.bf16.mxu1 %v8076_v0 }
 0x8cf   :  { %7213 = vmatmul.mubr.msk.bf16.vlgmr.msra.gmra.mxu0 %vm162_vm2, %v3525_v24  ;;  %7221 = vmatmul.mubr.msk.bf16.vlgmr.msra.gmra.mxu1 %vm162_vm2, %v3525_v24 }
 0x8d0   :  { %7225 = vmatpush3.bf16.msra.mxu0 %v9035_v18  ;;  %7233 = vmatpush3.bf16.msra.mxu1 %v9040_v19 }
 0x8d1   :  { %7226 = vmatprep.subr.bf16.mxu0 %v8076_v0  ;;  %7234 = vmatprep.subr.bf16.mxu1 %v8076_v0 }
 0x8d2   :  { %7228 = vmatprep.mubr.msk.bf16.mxu0 %vm8077_vm0, %v8076_v0  ;;  %7236 = vmatprep.mubr.msk.bf16.mxu1 %vm8077_vm0, %v8076_v0 }
 0x8d4   :  { %7227 = vmatpush3.bf16.msra.mxu0 %v9051_v53  ;;  %7235 = vmatpush3.bf16.msra.mxu1 %v9056_v25 }
 0x8d5   :  { %7240 = vmatprep.subr.bf16.mxu0 %v8076_v0  ;;  %7248 = vmatprep.subr.bf16.mxu1 %v8076_v0 }
 0x8d7   :  { %7229 = vmatmul.mubr.msk.bf16.vlgmr.msra.gmra.mxu0 %vm162_vm2, %v3525_v24  ;;  %7237 = vmatmul.mubr.msk.bf16.vlgmr.msra.gmra.mxu1 %vm162_vm2, %v3526_v14 }
 0x8d8   :  { %7241 = vmatpush3.bf16.msra.mxu0 %v9073_v8  ;;  %7244 = vmatprep.mubr.msk.bf16.mxu0 %vm8077_vm0, %v8076_v0 }
 0x8d9   :  { %7242 = vmatprep.subr.bf16.mxu0 %v8076_v0  ;;  %7249 = vmatpush3.bf16.msra.mxu1 %v9080_v9 }
 0x8da   :  { %7250 = vmatprep.subr.bf16.mxu1 %v8076_v0  ;;  %7252 = vmatprep.mubr.msk.bf16.mxu1 %vm8077_vm0, %v8076_v0 }
 0x8dc   :  { %7243 = vmatpush3.bf16.msra.mxu0 %v9088_v26 }
 0x8dd   :  { %7251 = vmatpush3.bf16.msra.mxu1 %v9097_v27  ;;  %7256 = vmatprep.subr.bf16.mxu0 %v8076_v0 }
 0x8de   :  { %7264 = vmatprep.subr.bf16.mxu1 %v8076_v0 }
 0x8df   :  { %7245 = vmatmul.mubr.msk.bf16.vlgmr.msra.gmra.mxu0 %vm162_vm2, %v3526_v14 }
 0x8e0   :  { %7253 = vmatmul.mubr.msk.bf16.vlgmr.msra.gmra.mxu1 %vm162_vm2, %v3526_v14  ;;  %7257 = vmatpush3.bf16.msra.mxu0 %v8997_v4 }
 0x8e1   :  { %7265 = vmatpush3.bf16.msra.mxu1 %v9002_v12  ;;  %7258 = vmatprep.subr.bf16.mxu0 %v8076_v0 }
 0x8e2   :  { %7266 = vmatprep.subr.bf16.mxu1 %v8076_v0  ;;  %7260 = vmatprep.mubr.msk.bf16.mxu0 %vm8077_vm0, %v8076_v0 }
 0x8e3   :  { %7268 = vmatprep.mubr.msk.bf16.mxu1 %vm8077_vm0, %v8076_v0 }
 0x8e4   :  { %7259 = vmatpush3.bf16.msra.mxu0 %v9013_v50 }
 0x8e5   :  { %7267 = vmatpush3.bf16.msra.mxu1 %v9018_v47  ;;  %7272 = vmatprep.subr.bf16.mxu0 %v8076_v0 }
 0x8e6   :  { %7280 = vmatprep.subr.bf16.mxu1 %v8076_v0 }
 0x967   :  { %v3064_v2 = vpop.f32.mrf.mxu0  ;;  %v3148_v15 = vpop.f32.mrf.mxu1 }
 0x968   :  { %v3065_v1 = vadd.f32 %v6202_v28, %v3064_v2  ;;  %v3149_v29 = vadd.f32 %v6217_v21, %v3148_v15 }
 0x969   :  { %v7146_v30 = vpop.f32.mrf.mxu0  ;;  %v7158_v33 = vpop.f32.mrf.mxu1 }
 0x96a   :  { %3071 = vst.msk [vmem:[#allocation2] sm:$0xff] %vm162_vm2, %v3065_v1  ;;  %3155 = vst.msk [vmem:[#allocation2 + $0x10] sm:$0xff] %vm162_vm2, %v3149_v29 }
 0x96b   :  { %v3067_v34 = vpop.f32.mrf.mxu0  ;;  %v3151_v48 = vpop.f32.mrf.mxu1 }
 0x96c   :  { %v3068_v13 = vadd.f32 %v6202_v28, %v3067_v34  ;;  %v3152_v35 = vadd.f32 %v6217_v21, %v3151_v48 }
 0x96d   :  { %v7147_v17 = vpop.f32.mrf.mxu0  ;;  %v7159_v23 = vpop.f32.mrf.mxu1 }
 0x96e   :  { %3072 = vst.msk [vmem:[#allocation2 + $0x8] sm:$0xff] %vm162_vm2, %v3068_v13  ;;  %3156 = vst.msk [vmem:[#allocation2 + $0x18] sm:$0xff] %vm162_vm2, %v3152_v35 }
 0x971   :  { %v3634_v61 = vld [vmem:[#allocation2] sm:$0x3]  ;;  %v3642_v2 = vld [vmem:[#allocation2 + $0x10] sm:$0x3] }
 0x977   :  { %v3232_v38 = vpop.f32.mrf.mxu0  ;;  %v3314_v20 = vpop.f32.mrf.mxu1 }
 0x978   :  { %v3233_v39 = vadd.f32 %v6232_v31, %v3232_v38  ;;  %v3315_v16 = vadd.f32 %v6238_v36, %v3314_v20 }
 0x979   :  { %v7170_v22 = vpop.f32.mrf.mxu0  ;;  %v7182_v40 = vpop.f32.mrf.mxu1 }
 0x97a   :  { %3239 = vst.msk [vmem:[#allocation2 + $0x20] sm:$0xff] %vm162_vm2, %v3233_v39  ;;  %3321 = vst.msk [vmem:[#allocation3] sm:$0xff] %vm162_vm2, %v3315_v16 }
 0x97b   :  { %v3235_v41 = vpop.f32.mrf.mxu0  ;;  %v3317_v42 = vpop.f32.mrf.mxu1 }
 0x97c   :  { %v3236_v43 = vadd.f32 %v6232_v31, %v3235_v41  ;;  %v3318_v44 = vadd.f32 %v6238_v36, %v3317_v42 }
 0x97d   :  { %v7171_v45 = vpop.f32.mrf.mxu0  ;;  %v7183_v60 = vpop.f32.mrf.mxu1 }
 0x97e   :  { %3240 = vst.msk [vmem:[#allocation2 + $0x28] sm:$0xff] %vm162_vm2, %v3236_v43  ;;  %3322 = vst.msk [vmem:[#allocation3 + $0x8] sm:$0xff] %vm162_vm2, %v3318_v44 }
 0x985   :  { %v3823_v34 = vld [vmem:[#allocation3 + $0xe] sm:$0x3] }
 0x987   :  { %v3398_v49 = vpop.f32.mrf.mxu0  ;;  %v3482_v51 = vpop.f32.mrf.mxu1 }
 0x988   :  { %v3399_v7 = vadd.f32 %v6253_v46, %v3398_v49  ;;  %v3483_v52 = vadd.f32 %v6268_v5, %v3482_v51 }
 0x989   :  { %v7194_v54 = vpop.f32.mrf.mxu0  ;;  %v7206_v32 = vpop.f32.mrf.mxu1 }
 0x98a   :  { %3405 = vst.msk [vmem:[#allocation3 + $0x10] sm:$0xff] %vm162_vm2, %v3399_v7  ;;  %3489 = vst.msk [vmem:[#allocation3 + $0x20] sm:$0xff] %vm162_vm2, %v3483_v52  ;;  %v9153_v54 = vld [vmem:[%s9672_s13] ss:$0 sm:$0xff] }
 0x98b   :  { %v3401_v55 = vpop.f32.mrf.mxu0  ;;  %v3485_v57 = vpop.f32.mrf.mxu1 }
 0x98c   :  { %v3402_v10 = vadd.f32 %v6253_v46, %v3401_v55  ;;  %v3486_v11 = vadd.f32 %v6268_v5, %v3485_v57 }
 0x98d   :  { %v7195_v37 = vpop.f32.mrf.mxu0  ;;  %v7207_v58 = vpop.f32.mrf.mxu1 }
 0x98e   :  { %3406 = vst.msk [vmem:[#allocation3 + $0x18] sm:$0xff] %vm162_vm2, %v3402_v10  ;;  %3490 = vst.msk [vmem:[#allocation3 + $0x28] sm:$0xff] %vm162_vm2, %v3486_v11  ;;  %v3650_v37 = vld [vmem:[#allocation2 + $0x20] sm:$0x3] }
 0x98f   :  { %v3576_v59 = vpop.f32.mrf.mxu0  ;;  %v3628_v62 = vpop.f32.mrf.mxu1  ;;  %v9159_v58 = vld [vmem:[%s9676_s17] ss:$0 sm:$0xff] }
 0x990   :  { %v3635_v63 = vadd.f32 %v3634_v61, %v3576_v59  ;;  %v3643_v29 = vadd.f32 %v3642_v2, %v3628_v62 }
 0x991   :  { %v7214_v3 = vpop.f32.mrf.mxu0  ;;  %v7222_v24 = vpop.f32.mrf.mxu1 }
 0x992   :  { %v6296_v14 = vmul.f32 -1.442695, %v3635_v63  ;;  %v6297_v17 = vmul.f32 -1.442695, %v3643_v29 }
 0x993   :  { %v3579_v28 = vpop.f32.mrf.mxu0  ;;  %v3631_v21 = vpop.f32.mrf.mxu1 }
 0x994   :  { %7818 = vpow2.f32 %v6296_v14 }
 0x995   :  { %v7215_v15 = vpop.f32.mrf.mxu0  ;;  %v7223_v1 = vpop.f32.mrf.mxu1  ;;  %v3831_v16 = vld [vmem:[#allocation3 + $0x1e] sm:$0x3]  ;;  %v3839_v24 = vld [vmem:[#allocation3 + $0x2e] sm:$0x3] }
 0x997   :  { %v3703_v30 = vpop.f32.mrf.mxu0  ;;  %v3765_v33 = vpop.f32.mrf.mxu1 }
 0x998   :  { %v3824_v48 = vadd.f32 %v3823_v34, %v3765_v33  ;;  %v3704_v55 = vadd.f32 %v9153_v54, %v3703_v30 }
 0x999   :  { %v7230_v13 = vpop.f32.mrf.mxu0  ;;  %v7238_v35 = vpop.f32.mrf.mxu1 }
 0x99a   :  { %v6308_v23 = vmul.f32 -1.442695, %v3824_v48 }
 0x99b   :  { %v3706_v31 = vpop.f32.mrf.mxu0  ;;  %v3768_v36 = vpop.f32.mrf.mxu1 }
 0x99c   :  { %7820 = vpow2.f32 %v6308_v23  ;;  %v3992_v23 = vld [vmem:[#allocation2 + $0x2] sm:$0x3] }
 0x99d   :  { %v7231_v38 = vpop.f32.mrf.mxu0  ;;  %v7239_v20 = vpop.f32.mrf.mxu1  ;;  %7822 = vpow2.f32 %v6297_v17 }
 0x99f   :  { %v3817_v39 = vpop.f32.mrf.mxu0 }
 0x9a0   :  { %v3832_v22 = vadd.f32 %v3831_v16, %v3817_v39  ;;  %v3892_v40 = vpop.f32.mrf.mxu1 }
 0x9a1   :  { %v7819_v41 = vpop.eup %7818  ;;  %v7246_v42 = vpop.f32.mrf.mxu0  ;;  %v3893_v62 = vadd.f32 %v9159_v58, %v3892_v40  ;;  %v4000_v40 = vld [vmem:[#allocation2 + $0x12] sm:$0x3] }
 0x9a2   :  { %v3639_v43 = vadd.f32 1.0, %v7819_v41  ;;  %v6309_v44 = vmul.f32 -1.442695, %v3832_v22  ;;  %v7254_v45 = vpop.f32.mrf.mxu1 }
 0x9a3   :  { %v3820_v60 = vpop.f32.mrf.mxu0 }
 0x9a4   :  { %7824 = vrcp.f32 %v3639_v43  ;;  %v3895_v46 = vpop.f32.mrf.mxu1  ;;  %v4139_v60 = vld [vmem:[#allocation3 + $0xc] sm:$0x3] }
 0x9a5   :  { %v7247_v5 = vpop.f32.mrf.mxu0  ;;  %7826 = vpow2.f32 %v6309_v44 }
 0x9a6   :  { %v7255_v49 = vpop.f32.mrf.mxu1 }
 0x9a9   :  { %v7821_v51 = vpop.eup %7820 }
 0x9aa   :  { %v3828_v7 = vadd.f32 1.0, %v7821_v51  ;;  %v7823_v52 = vpop.eup %7822 }
 0x9ab   :  { %v3647_v32 = vadd.f32 1.0, %v7823_v52 }
 0x9ac   :  { %7828 = vrcp.f32 %v3828_v7 }
 0x9ad   :  { %7830 = vrcp.f32 %v3647_v32 }
 0x9b1   :  { %v7825_v57 = vpop.eup %7824 }
 0x9b2   :  { %v3709_v10 = vmul.f32 %v7825_v57, %v3704_v55  ;;  %v7827_v11 = vpop.eup %7826 }
 0x9b3   :  { %v3836_v61 = vadd.f32 1.0, %v7827_v11  ;;  %v4147_v11 = vld [vmem:[#allocation3 + $0x1c] sm:$0x3] }
 0x9b4   :  { %v3710_v59 = vadd.f32 %v3709_v10, %v3650_v37 }
 0x9b6   :  { %7832 = vtanh.f32 %v3710_v59 }
 0x9b7   :  { %7834 = vrcp.f32 %v3836_v61 }
 0x9b9   :  { %v7829_v63 = vpop.eup %7828 }
 0x9ba   :  { %v3898_v3 = vmul.f32 %v7829_v63, %v3893_v62  ;;  %v7831_v28 = vpop.eup %7830 }
 0x9bb   :  { %v3712_v21 = vsub.f32 1.0, %v7831_v28  ;;  %v3714_v15 = vmul.f32 %v7831_v28, %v9020_v6 }
 0x9bc   :  { %v3899_v14 = vadd.f32 %v3898_v3, %v3839_v24 }
 0x9be   :  { %7836 = vtanh.f32 %v3899_v14 }
 0x9c3   :  { %v7833_v2 = vpop.eup %7832 }
 0x9c4   :  { %v3713_v1 = vmul.f32 %v7833_v2, %v3712_v21  ;;  %v7835_v30 = vpop.eup %7834 }
 0x9c5   :  { %v3901_v34 = vsub.f32 1.0, %v7835_v30  ;;  %v3903_v6 = vmul.f32 %v7835_v30, %v9058_v56 }
 0x9c6   :  { %v9163_v29 = vadd.f32 %v3714_v15, %v3713_v1 }
 0x9c8   :  { %3905 = vst.msk [vmem:[#allocation4] sm:$0x3] %vm880_vm3, %v9163_v29  ;;  %v3907_v33 = vpack.c.bf16 %v9163_v29, %v9163_v29 }
 0x9ca   :  { %7261 = vmatmul.mubr.msk.bf16.vlgmr.msra.gmra.mxu0 %vm162_vm2, %v3907_v33  ;;  %7269 = vmatmul.mubr.msk.bf16.vlgmr.msra.gmra.mxu1 %vm162_vm2, %v3907_v33 }
 0x9cb   :  { %v7837_v48 = vpop.eup %7836  ;;  %7273 = vmatpush3.bf16.msra.mxu0 %v9035_v18  ;;  %7281 = vmatpush3.bf16.msra.mxu1 %v9040_v19 }
 0x9cc   :  { %v3902_v13 = vmul.f32 %v7837_v48, %v3901_v34  ;;  %7274 = vmatprep.subr.bf16.mxu0 %v8076_v0  ;;  %7282 = vmatprep.subr.bf16.mxu1 %v8076_v0 }
 0x9cd   :  { %7276 = vmatprep.mubr.msk.bf16.mxu0 %vm8077_vm0, %v8076_v0  ;;  %7284 = vmatprep.mubr.msk.bf16.mxu1 %vm8077_vm0, %v8076_v0 }
 0x9ce   :  { %v9180_v35 = vadd.f32 %v3903_v6, %v3902_v13 }
 0x9cf   :  { %7275 = vmatpush3.bf16.msra.mxu0 %v9051_v53  ;;  %7283 = vmatpush3.bf16.msra.mxu1 %v9056_v25 }
 0x9d0   :  { %3906 = vst.msk [vmem:[#allocation5 + $0xe] sm:$0x3] %vm880_vm3, %v9180_v35  ;;  %v3908_v56 = vpack.c.bf16 %v9180_v35, %v9180_v35  ;;  %7288 = vmatprep.subr.bf16.mxu0 %v8076_v0  ;;  %7296 = vmatprep.subr.bf16.mxu1 %v8076_v0 }
 0x9d2   :  { %7277 = vmatmul.mubr.msk.bf16.vlgmr.msra.gmra.mxu0 %vm162_vm2, %v3907_v33  ;;  %7285 = vmatmul.mubr.msk.bf16.vlgmr.msra.gmra.mxu1 %vm162_vm2, %v3908_v56 }
 0x9d3   :  { %7289 = vmatpush3.bf16.msra.mxu0 %v9073_v8  ;;  %7297 = vmatpush3.bf16.msra.mxu1 %v9080_v9 }
 0x9d4   :  { %7290 = vmatprep.subr.bf16.mxu0 %v8076_v0  ;;  %7298 = vmatprep.subr.bf16.mxu1 %v8076_v0 }
 0x9d5   :  { %7292 = vmatprep.mubr.msk.bf16.mxu0 %vm8077_vm0, %v8076_v0  ;;  %7300 = vmatprep.mubr.msk.bf16.mxu1 %vm8077_vm0, %v8076_v0 }
 0x9d7   :  { %7291 = vmatpush3.bf16.msra.mxu0 %v9088_v26  ;;  %7299 = vmatpush3.bf16.msra.mxu1 %v9097_v27 }
 0x9d8   :  { %7304 = vmatprep.subr.bf16.mxu0 %v8076_v0  ;;  %7312 = vmatprep.subr.bf16.mxu1 %v8076_v0 }
 0x9da   :  { %7293 = vmatmul.mubr.msk.bf16.vlgmr.msra.gmra.mxu0 %vm162_vm2, %v3908_v56  ;;  %7301 = vmatmul.mubr.msk.bf16.vlgmr.msra.gmra.mxu1 %vm162_vm2, %v3908_v56  ;;  %v4008_v56 = vld [vmem:[#allocation2 + $0x22] sm:$0x3] }
 0x9db   :  { %7305 = vmatpush3.bf16.msra.mxu0 %v8997_v4  ;;  %7313 = vmatpush3.bf16.msra.mxu1 %v9002_v12 }
 0x9dc   :  { %7306 = vmatprep.subr.bf16.mxu0 %v8076_v0  ;;  %7314 = vmatprep.subr.bf16.mxu1 %v8076_v0 }
 0x9dd   :  { %7308 = vmatprep.mubr.msk.bf16.mxu0 %vm8077_vm0, %v8076_v0  ;;  %7316 = vmatprep.mubr.msk.bf16.mxu1 %vm8077_vm0, %v8076_v0 }
 0x9df   :  { %7307 = vmatpush3.bf16.msra.mxu0 %v9013_v50  ;;  %7315 = vmatpush3.bf16.msra.mxu1 %v9018_v47 }
 0x9e0   :  { %7320 = vmatprep.subr.bf16.mxu0 %v8076_v0  ;;  %7328 = vmatprep.subr.bf16.mxu1 %v8076_v0 }
 0xa8a   :  { %v3946_v17 = vpop.f32.mrf.mxu0  ;;  %v3986_v31 = vpop.f32.mrf.mxu1 }
 0xa8b   :  { %v3993_v36 = vadd.f32 %v3992_v23, %v3946_v17  ;;  %v4001_v43 = vadd.f32 %v4000_v40, %v3986_v31 }
 0xa8c   :  { %v7262_v38 = vpop.f32.mrf.mxu0  ;;  %v7270_v20 = vpop.f32.mrf.mxu1 }
 0xa8d   :  { %v6316_v39 = vmul.f32 -1.442695, %v3993_v36  ;;  %v6317_v51 = vmul.f32 -1.442695, %v4001_v43  ;;  %v4155_v20 = vld [vmem:[#allocation3 + $0x2c] sm:$0x3] }
 0xa8e   :  { %v3949_v16 = vpop.f32.mrf.mxu0  ;;  %v3989_v22 = vpop.f32.mrf.mxu1 }
 0xa8f   :  { %7838 = vpow2.f32 %v6316_v39 }
 0xa90   :  { %v7263_v41 = vpop.f32.mrf.mxu0  ;;  %v7271_v42 = vpop.f32.mrf.mxu1 }
 0xa92   :  { %v4043_v44 = vpop.f32.mrf.mxu0  ;;  %v4093_v45 = vpop.f32.mrf.mxu1 }
 0xa93   :  { %v4140_v46 = vadd.f32 %v4139_v60, %v4093_v45  ;;  %v4044_v34 = vadd.f32 %v9153_v54, %v4043_v44 }
 0xa94   :  { %v7278_v5 = vpop.f32.mrf.mxu0  ;;  %v7286_v49 = vpop.f32.mrf.mxu1 }
 0xa95   :  { %v6321_v7 = vmul.f32 -1.442695, %v4140_v46 }
 0xa96   :  { %v4046_v52 = vpop.f32.mrf.mxu0  ;;  %v4096_v32 = vpop.f32.mrf.mxu1 }
 0xa97   :  { %7840 = vpow2.f32 %v6321_v7  ;;  %v4290_v7 = vld [vmem:[#allocation2 + $0x4] sm:$0x3] }
 0xa98   :  { %v7279_v55 = vpop.f32.mrf.mxu0  ;;  %v7287_v57 = vpop.f32.mrf.mxu1  ;;  %7842 = vpow2.f32 %v6317_v51 }
 0xa9a   :  { %v4133_v10 = vpop.f32.mrf.mxu0  ;;  %v4190_v37 = vpop.f32.mrf.mxu1 }
 0xa9b   :  { %v4148_v59 = vadd.f32 %v4147_v11, %v4133_v10  ;;  %v4191_v31 = vadd.f32 %v9159_v58, %v4190_v37 }
 0xa9c   :  { %v7839_v61 = vpop.eup %7838  ;;  %v7294_v62 = vpop.f32.mrf.mxu0 }
 0xa9d   :  { %v7302_v63 = vpop.f32.mrf.mxu1  ;;  %v3997_v3 = vadd.f32 1.0, %v7839_v61  ;;  %v6322_v24 = vmul.f32 -1.442695, %v4148_v59  ;;  %v4298_v59 = vld [vmem:[#allocation2 + $0x14] sm:$0x3] }
 0xa9e   :  { %v4136_v14 = vpop.f32.mrf.mxu0 }
 0xa9f   :  { %v4193_v28 = vpop.f32.mrf.mxu1  ;;  %7844 = vrcp.f32 %v3997_v3  ;;  %v4437_v14 = vld [vmem:[#allocation3 + $0xa] sm:$0x3] }
 0xaa0   :  { %v7295_v21 = vpop.f32.mrf.mxu0  ;;  %7846 = vpow2.f32 %v6322_v24 }
 0xaa1   :  { %v7303_v2 = vpop.f32.mrf.mxu1 }
 0xaa4   :  { %v7841_v15 = vpop.eup %7840 }
 0xaa5   :  { %v4144_v1 = vadd.f32 1.0, %v7841_v15  ;;  %v7843_v30 = vpop.eup %7842 }
 0xaa6   :  { %v4005_v33 = vadd.f32 1.0, %v7843_v30 }
 0xaa7   :  { %7848 = vrcp.f32 %v4144_v1 }
 0xaa8   :  { %7850 = vrcp.f32 %v4005_v33 }
 0xaac   :  { %v7845_v48 = vpop.eup %7844 }
 0xaad   :  { %v4049_v6 = vmul.f32 %v7845_v48, %v4044_v34  ;;  %v7847_v13 = vpop.eup %7846 }
 0xaae   :  { %v4152_v23 = vadd.f32 1.0, %v7847_v13  ;;  %v4445_v13 = vld [vmem:[#allocation3 + $0x1a] sm:$0x3] }
 0xaaf   :  { %v4050_v17 = vadd.f32 %v4049_v6, %v4008_v56 }
 0xab1   :  { %7852 = vtanh.f32 %v4050_v17 }
 0xab2   :  { %7854 = vrcp.f32 %v4152_v23 }
 0xab4   :  { %v7849_v36 = vpop.eup %7848 }
 0xab5   :  { %v4196_v38 = vmul.f32 %v7849_v36, %v4191_v31  ;;  %v7851_v16 = vpop.eup %7850 }
 0xab6   :  { %v4052_v22 = vsub.f32 1.0, %v7851_v16  ;;  %v4054_v41 = vmul.f32 %v7851_v16, %v9163_v29 }
 0xab7   :  { %v4197_v39 = vadd.f32 %v4196_v38, %v4155_v20 }
 0xab9   :  { %7856 = vtanh.f32 %v4197_v39 }
 0xabe   :  { %v7853_v40 = vpop.eup %7852 }
 0xabf   :  { %v4053_v42 = vmul.f32 %v7853_v40, %v4052_v22  ;;  %v7855_v44 = vpop.eup %7854 }
 0xac0   :  { %v4199_v60 = vsub.f32 1.0, %v7855_v44  ;;  %v4201_v29 = vmul.f32 %v7855_v44, %v9180_v35 }
 0xac1   :  { %v9221_v43 = vadd.f32 %v4054_v41, %v4053_v42 }
 0xac3   :  { %4203 = vst.msk [vmem:[#allocation4 + $0x2] sm:$0x3] %vm880_vm3, %v9221_v43  ;;  %v4205_v45 = vpack.c.bf16 %v9221_v43, %v9221_v43 }
 0xac5   :  { %7309 = vmatmul.mubr.msk.bf16.vlgmr.msra.gmra.mxu0 %vm162_vm2, %v4205_v45  ;;  %7317 = vmatmul.mubr.msk.bf16.vlgmr.msra.gmra.mxu1 %vm162_vm2, %v4205_v45 }
 0xac6   :  { %v7857_v46 = vpop.eup %7856  ;;  %7321 = vmatpush3.bf16.msra.mxu0 %v9035_v18  ;;  %7329 = vmatpush3.bf16.msra.mxu1 %v9040_v19 }
 0xac7   :  { %v4200_v5 = vmul.f32 %v7857_v46, %v4199_v60  ;;  %7322 = vmatprep.subr.bf16.mxu0 %v8076_v0  ;;  %7330 = vmatprep.subr.bf16.mxu1 %v8076_v0 }
 0xac8   :  { %7324 = vmatprep.mubr.msk.bf16.mxu0 %vm8077_vm0, %v8076_v0  ;;  %7332 = vmatprep.mubr.msk.bf16.mxu1 %vm8077_vm0, %v8076_v0 }
 0xac9   :  { %v9238_v49 = vadd.f32 %v4201_v29, %v4200_v5 }
 0xaca   :  { %7323 = vmatpush3.bf16.msra.mxu0 %v9051_v53  ;;  %7331 = vmatpush3.bf16.msra.mxu1 %v9056_v25 }
 0xacb   :  { %4204 = vst.msk [vmem:[#allocation5 + $0xc] sm:$0x3] %vm880_vm3, %v9238_v49  ;;  %v4206_v35 = vpack.c.bf16 %v9238_v49, %v9238_v49  ;;  %7336 = vmatprep.subr.bf16.mxu0 %v8076_v0  ;;  %7344 = vmatprep.subr.bf16.mxu1 %v8076_v0 }
 0xacd   :  { %7325 = vmatmul.mubr.msk.bf16.vlgmr.msra.gmra.mxu0 %vm162_vm2, %v4205_v45  ;;  %7333 = vmatmul.mubr.msk.bf16.vlgmr.msra.gmra.mxu1 %vm162_vm2, %v4206_v35 }
 0xace   :  { %7337 = vmatpush3.bf16.msra.mxu0 %v9073_v8  ;;  %7345 = vmatpush3.bf16.msra.mxu1 %v9080_v9 }
 0xacf   :  { %7338 = vmatprep.subr.bf16.mxu0 %v8076_v0  ;;  %7346 = vmatprep.subr.bf16.mxu1 %v8076_v0 }
 0xad0   :  { %7340 = vmatprep.mubr.msk.bf16.mxu0 %vm8077_vm0, %v8076_v0  ;;  %7348 = vmatprep.mubr.msk.bf16.mxu1 %vm8077_vm0, %v8076_v0 }
 0xad2   :  { %7339 = vmatpush3.bf16.msra.mxu0 %v9088_v26  ;;  %7347 = vmatpush3.bf16.msra.mxu1 %v9097_v27 }
 0xad3   :  { %7352 = vmatprep.subr.bf16.mxu0 %v8076_v0  ;;  %7360 = vmatprep.subr.bf16.mxu1 %v8076_v0 }
 0xad5   :  { %7341 = vmatmul.mubr.msk.bf16.vlgmr.msra.gmra.mxu0 %vm162_vm2, %v4206_v35  ;;  %7349 = vmatmul.mubr.msk.bf16.vlgmr.msra.gmra.mxu1 %vm162_vm2, %v4206_v35  ;;  %v4306_v35 = vld [vmem:[#allocation2 + $0x24] sm:$0x3] }
 0xad6   :  { %7353 = vmatpush3.bf16.msra.mxu0 %v8997_v4  ;;  %7361 = vmatpush3.bf16.msra.mxu1 %v9002_v12 }
 0xad7   :  { %7354 = vmatprep.subr.bf16.mxu0 %v8076_v0  ;;  %7362 = vmatprep.subr.bf16.mxu1 %v8076_v0 }
 0xad8   :  { %7356 = vmatprep.mubr.msk.bf16.mxu0 %vm8077_vm0, %v8076_v0  ;;  %7364 = vmatprep.mubr.msk.bf16.mxu1 %vm8077_vm0, %v8076_v0 }
 0xada   :  { %7355 = vmatpush3.bf16.msra.mxu0 %v9013_v50  ;;  %7363 = vmatpush3.bf16.msra.mxu1 %v9018_v47 }
 0xadb   :  { %7368 = vmatprep.subr.bf16.mxu0 %v8076_v0  ;;  %7376 = vmatprep.subr.bf16.mxu1 %v8076_v0 }
 0xb85   :  { %v4244_v51 = vpop.f32.mrf.mxu0  ;;  %v4284_v52 = vpop.f32.mrf.mxu1 }
 0xb86   :  { %v4291_v32 = vadd.f32 %v4290_v7, %v4244_v51  ;;  %v4299_v63 = vadd.f32 %v4298_v59, %v4284_v52 }
 0xb87   :  { %v7310_v55 = vpop.f32.mrf.mxu0  ;;  %v7318_v57 = vpop.f32.mrf.mxu1 }
 0xb88   :  { %v6326_v10 = vmul.f32 -1.442695, %v4291_v32  ;;  %v6327_v15 = vmul.f32 -1.442695, %v4299_v63  ;;  %v4453_v57 = vld [vmem:[#allocation3 + $0x2a] sm:$0x3] }
 0xb89   :  { %v4247_v11 = vpop.f32.mrf.mxu0  ;;  %v4287_v37 = vpop.f32.mrf.mxu1 }
 0xb8a   :  { %7858 = vpow2.f32 %v6326_v10 }
 0xb8b   :  { %v7311_v61 = vpop.f32.mrf.mxu0  ;;  %v7319_v62 = vpop.f32.mrf.mxu1 }
 0xb8d   :  { %v4341_v3 = vpop.f32.mrf.mxu0  ;;  %v4391_v24 = vpop.f32.mrf.mxu1 }
 0xb8e   :  { %v4438_v28 = vadd.f32 %v4437_v14, %v4391_v24  ;;  %v4342_v60 = vadd.f32 %v9153_v54, %v4341_v3 }
 0xb8f   :  { %v7326_v21 = vpop.f32.mrf.mxu0  ;;  %v7334_v2 = vpop.f32.mrf.mxu1 }
 0xb90   :  { %v6331_v1 = vmul.f32 -1.442695, %v4438_v28 }
 0xb91   :  { %v4344_v30 = vpop.f32.mrf.mxu0  ;;  %v4394_v33 = vpop.f32.mrf.mxu1 }
 0xb92   :  { %7860 = vpow2.f32 %v6331_v1  ;;  %v4735_v33 = vld [vmem:[#allocation3 + $0x8] sm:$0x3] }
 0xb93   :  { %v7327_v34 = vpop.f32.mrf.mxu0  ;;  %v7335_v48 = vpop.f32.mrf.mxu1  ;;  %7862 = vpow2.f32 %v6327_v15 }
 0xb95   :  { %v4431_v6 = vpop.f32.mrf.mxu0  ;;  %v4488_v56 = vpop.f32.mrf.mxu1 }
 0xb96   :  { %v4446_v17 = vadd.f32 %v4445_v13, %v4431_v6  ;;  %v4489_v52 = vadd.f32 %v9159_v58, %v4488_v56 }
 0xb97   :  { %v7859_v23 = vpop.eup %7858  ;;  %v7342_v31 = vpop.f32.mrf.mxu0 }
 0xb98   :  { %v7350_v36 = vpop.f32.mrf.mxu1  ;;  %v4295_v38 = vadd.f32 1.0, %v7859_v23  ;;  %v6332_v20 = vmul.f32 -1.442695, %v4446_v17 }
 0xb99   :  { %v4434_v39 = vpop.f32.mrf.mxu0 }
 0xb9a   :  { %v4491_v16 = vpop.f32.mrf.mxu1  ;;  %7864 = vrcp.f32 %v4295_v38 }
 0xb9b   :  { %v7343_v22 = vpop.f32.mrf.mxu0  ;;  %7866 = vpow2.f32 %v6332_v20  ;;  %v4743_v20 = vld [vmem:[#allocation3 + $0x18] sm:$0x3] }
 0xb9c   :  { %v7351_v40 = vpop.f32.mrf.mxu1 }
 0xb9f   :  { %v7861_v41 = vpop.eup %7860 }
 0xba0   :  { %v4442_v42 = vadd.f32 1.0, %v7861_v41  ;;  %v7863_v44 = vpop.eup %7862 }
 0xba1   :  { %v4303_v45 = vadd.f32 1.0, %v7863_v44 }
 0xba2   :  { %7868 = vrcp.f32 %v4442_v42 }
 0xba3   :  { %7870 = vrcp.f32 %v4303_v45 }
 0xba7   :  { %v7865_v46 = vpop.eup %7864 }
 0xba8   :  { %v4347_v29 = vmul.f32 %v7865_v46, %v4342_v60  ;;  %v7867_v5 = vpop.eup %7866 }
 0xba9   :  { %v4450_v7 = vadd.f32 1.0, %v7867_v5 }
 0xbaa   :  { %v4348_v51 = vadd.f32 %v4347_v29, %v4306_v35 }
 0xbac   :  { %7872 = vtanh.f32 %v4348_v51 }
 0xbad   :  { %7874 = vrcp.f32 %v4450_v7 }
 0xbaf   :  { %v7869_v32 = vpop.eup %7868 }
 0xbb0   :  { %v4494_v55 = vmul.f32 %v7869_v32, %v4489_v52  ;;  %v7871_v11 = vpop.eup %7870 }
 0xbb1   :  { %v4350_v37 = vsub.f32 1.0, %v7871_v11  ;;  %v4352_v61 = vmul.f32 %v7871_v11, %v9221_v43 }
 0xbb2   :  { %v4495_v10 = vadd.f32 %v4494_v55, %v4453_v57 }
 0xbb4   :  { %7876 = vtanh.f32 %v4495_v10  ;;  %v4604_v10 = vld [vmem:[#allocation2 + $0x26] sm:$0x3] }
 0xbb9   :  { %v7873_v59 = vpop.eup %7872 }
 0xbba   :  { %v4351_v62 = vmul.f32 %v7873_v59, %v4350_v37  ;;  %v7875_v3 = vpop.eup %7874 }
 0xbbb   :  { %v4497_v14 = vsub.f32 1.0, %v7875_v3  ;;  %v4499_v43 = vmul.f32 %v7875_v3, %v9238_v49  ;;  %v4596_v49 = vld [vmem:[#allocation2 + $0x16] sm:$0x3]  ;;  %v4751_v3 = vld [vmem:[#allocation3 + $0x28] sm:$0x3] }
 0xbbc   :  { %v9279_v63 = vadd.f32 %v4352_v61, %v4351_v62 }
 0xbbe   :  { %4501 = vst.msk [vmem:[#allocation4 + $0x4] sm:$0x3] %vm880_vm3, %v9279_v63  ;;  %v4503_v24 = vpack.c.bf16 %v9279_v63, %v9279_v63 }
 0xbc0   :  { %7357 = vmatmul.mubr.msk.bf16.vlgmr.msra.gmra.mxu0 %vm162_vm2, %v4503_v24  ;;  %7365 = vmatmul.mubr.msk.bf16.vlgmr.msra.gmra.mxu1 %vm162_vm2, %v4503_v24 }
 0xbc1   :  { %v7877_v28 = vpop.eup %7876  ;;  %7369 = vmatpush3.bf16.msra.mxu0 %v9035_v18  ;;  %7377 = vmatpush3.bf16.msra.mxu1 %v9040_v19 }
 0xbc2   :  { %v4498_v21 = vmul.f32 %v7877_v28, %v4497_v14  ;;  %7370 = vmatprep.subr.bf16.mxu0 %v8076_v0  ;;  %7378 = vmatprep.subr.bf16.mxu1 %v8076_v0 }
 0xbc3   :  { %7372 = vmatprep.mubr.msk.bf16.mxu0 %vm8077_vm0, %v8076_v0  ;;  %7380 = vmatprep.mubr.msk.bf16.mxu1 %vm8077_vm0, %v8076_v0 }
 0xbc4   :  { %v9296_v2 = vadd.f32 %v4499_v43, %v4498_v21 }
 0xbc5   :  { %7371 = vmatpush3.bf16.msra.mxu0 %v9051_v53  ;;  %7379 = vmatpush3.bf16.msra.mxu1 %v9056_v25 }
 0xbc6   :  { %4502 = vst.msk [vmem:[#allocation5 + $0xa] sm:$0x3] %vm880_vm3, %v9296_v2  ;;  %v4504_v18 = vpack.c.bf16 %v9296_v2, %v9296_v2  ;;  %7384 = vmatprep.subr.bf16.mxu0 %v8076_v0  ;;  %7392 = vmatprep.subr.bf16.mxu1 %v8076_v0 }
 0xbc8   :  { %7373 = vmatmul.mubr.msk.bf16.vlgmr.msra.gmra.mxu0 %vm162_vm2, %v4503_v24  ;;  %7381 = vmatmul.mubr.msk.bf16.vlgmr.msra.gmra.mxu1 %vm162_vm2, %v4504_v18 }
 0xbc9   :  { %7385 = vmatpush3.bf16.msra.mxu0 %v9073_v8  ;;  %7393 = vmatpush3.bf16.msra.mxu1 %v9080_v9 }
 0xbca   :  { %7386 = vmatprep.subr.bf16.mxu0 %v8076_v0  ;;  %7394 = vmatprep.subr.bf16.mxu1 %v8076_v0 }
 0xbcb   :  { %7388 = vmatprep.mubr.msk.bf16.mxu0 %vm8077_vm0, %v8076_v0  ;;  %7396 = vmatprep.mubr.msk.bf16.mxu1 %vm8077_vm0, %v8076_v0 }
 0xbcd   :  { %7387 = vmatpush3.bf16.msra.mxu0 %v9088_v26  ;;  %7395 = vmatpush3.bf16.msra.mxu1 %v9097_v27 }
 0xbce   :  { %7400 = vmatprep.subr.bf16.mxu0 %v8076_v0  ;;  %7408 = vmatprep.subr.bf16.mxu1 %v8076_v0 }
 0xbd0   :  { %7389 = vmatmul.mubr.msk.bf16.vlgmr.msra.gmra.mxu0 %vm162_vm2, %v4504_v18  ;;  %7397 = vmatmul.mubr.msk.bf16.vlgmr.msra.gmra.mxu1 %vm162_vm2, %v4504_v18 }
 0xbd1   :  { %7401 = vmatpush3.bf16.msra.mxu0 %v8997_v4  ;;  %7409 = vmatpush3.bf16.msra.mxu1 %v9002_v12  ;;  %v4588_v12 = vld [vmem:[#allocation2 + $0x6] sm:$0x3] }
 0xbd2   :  { %7402 = vmatprep.subr.bf16.mxu0 %v8076_v0  ;;  %7410 = vmatprep.subr.bf16.mxu1 %v8076_v0 }
 0xbd3   :  { %7404 = vmatprep.mubr.msk.bf16.mxu0 %vm8077_vm0, %v8076_v0  ;;  %7412 = vmatprep.mubr.msk.bf16.mxu1 %vm8077_vm0, %v8076_v0 }
 0xbd5   :  { %7403 = vmatpush3.bf16.msra.mxu0 %v9013_v50  ;;  %7411 = vmatpush3.bf16.msra.mxu1 %v9018_v47 }
 0xbd6   :  { %7416 = vmatprep.subr.bf16.mxu0 %v8076_v0  ;;  %7424 = vmatprep.subr.bf16.mxu1 %v8076_v0 }
 0xc80   :  { %v4542_v4 = vpop.f32.mrf.mxu0  ;;  %v4582_v19 = vpop.f32.mrf.mxu1 }
 0xc81   :  { %v4589_v53 = vadd.f32 %v4588_v12, %v4542_v4  ;;  %v4597_v50 = vadd.f32 %v4596_v49, %v4582_v19 }
 0xc82   :  { %v7358_v25 = vpop.f32.mrf.mxu0  ;;  %v7366_v8 = vpop.f32.mrf.mxu1 }
 0xc83   :  { %v6336_v9 = vmul.f32 -1.442695, %v4589_v53  ;;  %v6337_v13 = vmul.f32 -1.442695, %v4597_v50  ;;  %v9354_v8 = vld [vmem:[%s9674_s15 + $0x8] sm:$0xff]  }
 0xc84   :  { %v4545_v26 = vpop.f32.mrf.mxu0  ;;  %v4585_v27 = vpop.f32.mrf.mxu1 }
 0xc85   :  { %7878 = vpow2.f32 %v6336_v9  ;;  %v9367_v27 = vld [vmem:[%s9677_s18] ss:$0 sm:$0xff] }
 0xc86   :  { %v7359_v15 = vpop.f32.mrf.mxu0  ;;  %v7367_v1 = vpop.f32.mrf.mxu1 }
 0xc87   :  { %v9380_v15 = vld [vmem:[%s9674_s15] sm:$0xff]  }
 0xc88   :  { %v4639_v30 = vpop.f32.mrf.mxu0  ;;  %v4689_v47 = vpop.f32.mrf.mxu1 }
 0xc89   :  { %v4736_v34 = vadd.f32 %v4735_v33, %v4689_v47  ;;  %v4640_v52 = vadd.f32 %v9153_v54, %v4639_v30  ;;  %v9396_v33 = vld [vmem:[%s9674_s15 + $0x18] sm:$0xff]  }
 0xc8a   :  { %v7374_v48 = vpop.f32.mrf.mxu0  ;;  %v7382_v6 = vpop.f32.mrf.mxu1 }
 0xc8b   :  { %v6341_v56 = vmul.f32 -1.442695, %v4736_v34  ;;  %v9402_v34 = vld [vmem:[%s9674_s15 + $0x28] sm:$0xff]   ;;  %v9414_v48 = vld [vmem:[%s9674_s15 + $0x10] sm:$0xff]   ;;  %v9420_v6 = vld [vmem:[%s9674_s15 + $0x20] sm:$0xff]  }
 0xc8c   :  { %v4642_v17 = vpop.f32.mrf.mxu0  ;;  %v4692_v23 = vpop.f32.mrf.mxu1 }
 0xc8d   :  { %7880 = vpow2.f32 %v6341_v56  ;;  %v9436_v56 = vld [vmem:[%s9670_s11 + $0x18] sm:$0xff]   ;;  %v9448_v17 = vld [vmem:[%s9670_s11] sm:$0xff]   ;;  %v9454_v23 = vld [vmem:[%s9670_s11 + $0x10] sm:$0xff]  }
 0xc8e   :  { %v7375_v31 = vpop.f32.mrf.mxu0  ;;  %v7383_v36 = vpop.f32.mrf.mxu1  ;;  %7882 = vpow2.f32 %v6337_v13  ;;  %v9430_v13 = vld [vmem:[%s9670_s11 + $0x8] sm:$0xff]  }
 0xc8f   :  { %v4886_v36 = vld [vmem:[#allocation2 + $0x8] sm:$0x3] }
 0xc90   :  { %v4729_v38 = vpop.f32.mrf.mxu0  ;;  %v4786_v39 = vpop.f32.mrf.mxu1 }
 0xc91   :  { %v4744_v16 = vadd.f32 %v4743_v20, %v4729_v38  ;;  %v4787_v59 = vadd.f32 %v9159_v58, %v4786_v39 }
 0xc92   :  { %v7879_v22 = vpop.eup %7878  ;;  %v7390_v40 = vpop.f32.mrf.mxu0 }
 0xc93   :  { %v7398_v41 = vpop.f32.mrf.mxu1  ;;  %v4593_v42 = vadd.f32 1.0, %v7879_v22  ;;  %v6342_v44 = vmul.f32 -1.442695, %v4744_v16 }
 0xc94   :  { %v4732_v45 = vpop.f32.mrf.mxu0 }
 0xc95   :  { %v4789_v60 = vpop.f32.mrf.mxu1  ;;  %7884 = vrcp.f32 %v4593_v42  ;;  %v4894_v42 = vld [vmem:[#allocation2 + $0x18] sm:$0x3] }
 0xc96   :  { %v7391_v46 = vpop.f32.mrf.mxu0  ;;  %7886 = vpow2.f32 %v6342_v44 }
 0xc97   :  { %v7399_v29 = vpop.f32.mrf.mxu1 }
 0xc9a   :  { %v7881_v5 = vpop.eup %7880 }
 0xc9b   :  { %v4740_v35 = vadd.f32 1.0, %v7881_v5  ;;  %v7883_v51 = vpop.eup %7882  ;;  %v5033_v5 = vld [vmem:[#allocation3 + $0x6] sm:$0x3] }
 0xc9c   :  { %v4601_v7 = vadd.f32 1.0, %v7883_v51 }
 0xc9d   :  { %7888 = vrcp.f32 %v4740_v35 }
 0xc9e   :  { %7890 = vrcp.f32 %v4601_v7 }
 0xca2   :  { %v7885_v32 = vpop.eup %7884 }
 0xca3   :  { %v4645_v55 = vmul.f32 %v7885_v32, %v4640_v52  ;;  %v7887_v57 = vpop.eup %7886 }
 0xca4   :  { %v4748_v37 = vadd.f32 1.0, %v7887_v57 }
 0xca5   :  { %v4646_v11 = vadd.f32 %v4645_v55, %v4604_v10 }
 0xca7   :  { %7892 = vtanh.f32 %v4646_v11 }
 0xca8   :  { %7894 = vrcp.f32 %v4748_v37 }
 0xcaa   :  { %v7889_v61 = vpop.eup %7888 }
 0xcab   :  { %v4792_v62 = vmul.f32 %v7889_v61, %v4787_v59  ;;  %v7891_v14 = vpop.eup %7890  ;;  %v5041_v59 = vld [vmem:[#allocation3 + $0x16] sm:$0x3] }
 0xcac   :  { %v4648_v28 = vsub.f32 1.0, %v7891_v14  ;;  %v4650_v21 = vmul.f32 %v7891_v14, %v9279_v63  ;;  %v9348_v63 = vld [vmem:[%s9670_s11 + $0x28] sm:$0xff]  }
 0xcad   :  { %v4793_v24 = vadd.f32 %v4792_v62, %v4751_v3 }
 0xcaf   :  { %7896 = vtanh.f32 %v4793_v24 }
 0xcb4   :  { %v7893_v43 = vpop.eup %7892 }
 0xcb5   :  { %v4649_v18 = vmul.f32 %v7893_v43, %v4648_v28  ;;  %v7895_v12 = vpop.eup %7894 }
 0xcb6   :  { %v4795_v53 = vsub.f32 1.0, %v7895_v12  ;;  %v4797_v9 = vmul.f32 %v7895_v12, %v9296_v2  ;;  %v9374_v2 = vld [vmem:[%s9670_s11 + $0x20] sm:$0xff]  }
 0xcb7   :  { %v9337_v4 = vadd.f32 %v4650_v21, %v4649_v18 }
 0xcb9   :  { %4799 = vst.msk [vmem:[#allocation4 + $0x6] sm:$0x3] %vm880_vm3, %v9337_v4  ;;  %v4801_v19 = vpack.c.bf16 %v9337_v4, %v9337_v4 }
 0xcbb   :  { %7405 = vmatmul.mubr.msk.bf16.vlgmr.msra.gmra.mxu0 %vm162_vm2, %v4801_v19  ;;  %7413 = vmatmul.mubr.msk.bf16.vlgmr.msra.gmra.mxu1 %vm162_vm2, %v4801_v19 }
 0xcbc   :  { %v7897_v25 = vpop.eup %7896  ;;  %7417 = vmatpush3.bf16.msra.mxu0 %v9348_v63  ;;  %7425 = vmatpush3.bf16.msra.mxu1 %v9354_v8 }
 0xcbd   :  { %v4796_v26 = vmul.f32 %v7897_v25, %v4795_v53  ;;  %7418 = vmatprep.subr.bf16.mxu0 %v8076_v0  ;;  %7426 = vmatprep.subr.bf16.mxu1 %v8076_v0 }
 0xcbe   :  { %7420 = vmatprep.mubr.msk.bf16.mxu0 %vm8077_vm0, %v8076_v0  ;;  %7428 = vmatprep.mubr.msk.bf16.mxu1 %vm8077_vm0, %v8076_v0 }
 0xcbf   :  { %v9369_v49 = vadd.f32 %v4797_v9, %v4796_v26 }
 0xcc0   :  { %7419 = vmatpush3.bf16.msra.mxu0 %v9374_v2  ;;  %7427 = vmatpush3.bf16.msra.mxu1 %v9380_v15  ;;  %v5997_v1 = vld [vmem:[#allocation4] sm:$0xff] }
 0xcc1   :  { %4800 = vst.msk [vmem:[#allocation5 + $0x8] sm:$0x3] %vm880_vm3, %v9369_v49  ;;  %v4802_v50 = vpack.c.bf16 %v9369_v49, %v9369_v49  ;;  %7432 = vmatprep.subr.bf16.mxu0 %v8076_v0  ;;  %7440 = vmatprep.subr.bf16.mxu1 %v8076_v0  ;;  %v6006_v30 = vmul.f32 %v9367_v27, %v5997_v1 }
 0xcc3   :  { %7421 = vmatmul.mubr.msk.bf16.vlgmr.msra.gmra.mxu0 %vm162_vm2, %v4801_v19  ;;  %7429 = vmatmul.mubr.msk.bf16.vlgmr.msra.gmra.mxu1 %vm162_vm2, %v4802_v50  ;;  %v6008_v47 = vsel %vm162_vm2, %v6006_v30, 0.0 }
 0xcc4   :  { %7433 = vmatpush3.bf16.msra.mxu0 %v9396_v33  ;;  %6009 = vadd.xlane.f32.xlu0 %v6008_v47 }
 0xcc5   :  { %7441 = vmatpush3.bf16.msra.mxu1 %v9402_v34  ;;  %7434 = vmatprep.subr.bf16.mxu0 %v8076_v0 }
 0xcc6   :  { %7442 = vmatprep.subr.bf16.mxu1 %v8076_v0  ;;  %7436 = vmatprep.mubr.msk.bf16.mxu0 %vm8077_vm0, %v8076_v0 }
 0xcc7   :  { %7444 = vmatprep.mubr.msk.bf16.mxu1 %vm8077_vm0, %v8076_v0 }
 0xcc8   :  { %7435 = vmatpush3.bf16.msra.mxu0 %v9414_v48 }
 0xcc9   :  { %7443 = vmatpush3.bf16.msra.mxu1 %v9420_v6  ;;  %7448 = vmatprep.subr.bf16.mxu0 %v8076_v0 }
 0xcca   :  { %7456 = vmatprep.subr.bf16.mxu1 %v8076_v0 }
 0xccb   :  { %7437 = vmatmul.mubr.msk.bf16.vlgmr.msra.gmra.mxu0 %vm162_vm2, %v4802_v50 }
 0xccc   :  { %7445 = vmatmul.mubr.msk.bf16.vlgmr.msra.gmra.mxu1 %vm162_vm2, %v4802_v50  ;;  %7449 = vmatpush3.bf16.msra.mxu0 %v9430_v13 }
 0xccd   :  { %7457 = vmatpush3.bf16.msra.mxu1 %v9436_v56  ;;  %7450 = vmatprep.subr.bf16.mxu0 %v8076_v0 }
 0xcce   :  { %7458 = vmatprep.subr.bf16.mxu1 %v8076_v0  ;;  %7452 = vmatprep.mubr.msk.bf16.mxu0 %vm8077_vm0, %v8076_v0 }
 0xccf   :  { %7460 = vmatprep.mubr.msk.bf16.mxu1 %vm8077_vm0, %v8076_v0 }
 0xcd0   :  { %7451 = vmatpush3.bf16.msra.mxu0 %v9448_v17 }
 0xcd1   :  { %7459 = vmatpush3.bf16.msra.mxu1 %v9454_v23  ;;  %7464 = vmatprep.subr.bf16.mxu0 %v8076_v0 }
 0xcd2   :  { %7472 = vmatprep.subr.bf16.mxu1 %v8076_v0 }
 0xd7b   :  { %v4840_v31 = vpop.f32.mrf.mxu0  ;;  %v4880_v38 = vpop.f32.mrf.mxu1 }
 0xd7c   :  { %v4887_v20 = vadd.f32 %v4886_v36, %v4840_v31  ;;  %v4895_v60 = vadd.f32 %v4894_v42, %v4880_v38  ;;  %v4902_v31 = vld [vmem:[#allocation2 + $0x28] sm:$0x3] }
 0xd7d   :  { %v7406_v39 = vpop.f32.mrf.mxu0  ;;  %v7414_v16 = vpop.f32.mrf.mxu1 }
 0xd7e   :  { %v6346_v22 = vmul.f32 -1.442695, %v4887_v20  ;;  %v6347_v52 = vmul.f32 -1.442695, %v4895_v60 }
 0xd7f   :  { %v4843_v40 = vpop.f32.mrf.mxu0  ;;  %v4883_v41 = vpop.f32.mrf.mxu1 }
 0xd80   :  { %7898 = vpow2.f32 %v6346_v22  ;;  %v5049_v22 = vld [vmem:[#allocation3 + $0x26] sm:$0x3] }
 0xd81   :  { %v7407_v44 = vpop.f32.mrf.mxu0  ;;  %v7415_v45 = vpop.f32.mrf.mxu1 }
 0xd83   :  { %v4937_v46 = vpop.f32.mrf.mxu0  ;;  %v4987_v29 = vpop.f32.mrf.mxu1 }
 0xd84   :  { %v5034_v35 = vadd.f32 %v5033_v5, %v4987_v29  ;;  %v4938_v1 = vadd.f32 %v9153_v54, %v4937_v46 }
 0xd85   :  { %v7422_v51 = vpop.f32.mrf.mxu0  ;;  %v7430_v7 = vpop.f32.mrf.mxu1 }
 0xd86   :  { %v6351_v32 = vmul.f32 -1.442695, %v5034_v35 }
 0xd87   :  { %v4940_v55 = vpop.f32.mrf.mxu0  ;;  %v4990_v57 = vpop.f32.mrf.mxu1 }
 0xd88   :  { %7900 = vpow2.f32 %v6351_v32 }
 0xd89   :  { %v7423_v10 = vpop.f32.mrf.mxu0  ;;  %v7431_v11 = vpop.f32.mrf.mxu1  ;;  %7902 = vpow2.f32 %v6347_v52  ;;  %v5184_v52 = vld [vmem:[#allocation2 + $0xa] sm:$0x3] }
 0xd8b   :  { %v5027_v37 = vpop.f32.mrf.mxu0 }
 0xd8c   :  { %v5042_v61 = vadd.f32 %v5041_v59, %v5027_v37  ;;  %v5084_v62 = vpop.f32.mrf.mxu1 }
 0xd8d   :  { %v7899_v3 = vpop.eup %7898  ;;  %v7438_v24 = vpop.f32.mrf.mxu0  ;;  %v5085_v20 = vadd.f32 %v9159_v58, %v5084_v62 }
 0xd8e   :  { %v4891_v14 = vadd.f32 1.0, %v7899_v3  ;;  %v6352_v28 = vmul.f32 -1.442695, %v5042_v61  ;;  %v7446_v43 = vpop.f32.mrf.mxu1  ;;  %v5192_v61 = vld [vmem:[#allocation2 + $0x1a] sm:$0x3] }
 0xd8f   :  { %v5030_v21 = vpop.f32.mrf.mxu0  ;;  %v5331_v43 = vld [vmem:[#allocation3 + $0x4] sm:$0x3] }
 0xd90   :  { %7904 = vrcp.f32 %v4891_v14  ;;  %v5087_v18 = vpop.f32.mrf.mxu1 }
 0xd91   :  { %v7439_v12 = vpop.f32.mrf.mxu0  ;;  %7906 = vpow2.f32 %v6352_v28 }
 0xd92   :  { %v7447_v19 = vpop.f32.mrf.mxu1 }
 0xd95   :  { %v7901_v53 = vpop.eup %7900 }
 0xd96   :  { %v5038_v25 = vadd.f32 1.0, %v7901_v53  ;;  %v7903_v9 = vpop.eup %7902 }
 0xd97   :  { %v4899_v26 = vadd.f32 1.0, %v7903_v9 }
 0xd98   :  { %7908 = vrcp.f32 %v5038_v25 }
 0xd99   :  { %7910 = vrcp.f32 %v4899_v26 }
 0xd9d   :  { %v7905_v50 = vpop.eup %7904 }
 0xd9e   :  { %v4943_v30 = vmul.f32 %v7905_v50, %v4938_v1  ;;  %v7907_v47 = vpop.eup %7906 }
 0xd9f   :  { %v5046_v38 = vadd.f32 1.0, %v7907_v47 }
 0xda0   :  { %v4944_v36 = vadd.f32 %v4943_v30, %v4902_v31  ;;  %v5339_v30 = vld [vmem:[#allocation3 + $0x14] sm:$0x3] }
 0xda2   :  { %7912 = vtanh.f32 %v4944_v36 }
 0xda3   :  { %7914 = vrcp.f32 %v5046_v38 }
 0xda5   :  { %v7909_v39 = vpop.eup %7908 }
 0xda6   :  { %v5090_v16 = vmul.f32 %v7909_v39, %v5085_v20  ;;  %v7911_v41 = vpop.eup %7910 }
 0xda7   :  { %v4946_v42 = vsub.f32 1.0, %v7911_v41  ;;  %v4948_v54 = vmul.f32 %v7911_v41, %v9337_v4 }
 0xda8   :  { %v5091_v40 = vadd.f32 %v5090_v16, %v5049_v22 }
 0xdaa   :  { %7916 = vtanh.f32 %v5091_v40 }
 0xdaf   :  { %v7913_v44 = vpop.eup %7912 }
 0xdb0   :  { %v4947_v45 = vmul.f32 %v7913_v44, %v4946_v42  ;;  %v7915_v46 = vpop.eup %7914 }
 0xdb1   :  { %v5093_v29 = vsub.f32 1.0, %v7915_v46  ;;  %v5095_v4 = vmul.f32 %v7915_v46, %v9369_v49 }
 0xdb2   :  { %v9462_v60 = vadd.f32 %v4948_v54, %v4947_v45 }
 0xdb4   :  { %5097 = vst.msk [vmem:[#allocation4 + $0x8] sm:$0x3] %vm880_vm3, %v9462_v60  ;;  %v5099_v58 = vpack.c.bf16 %v9462_v60, %v9462_v60 }
 0xdb6   :  { %7453 = vmatmul.mubr.msk.bf16.vlgmr.msra.gmra.mxu0 %vm162_vm2, %v5099_v58  ;;  %7461 = vmatmul.mubr.msk.bf16.vlgmr.msra.gmra.mxu1 %vm162_vm2, %v5099_v58 }
 0xdb7   :  { %v7917_v5 = vpop.eup %7916  ;;  %7465 = vmatpush3.bf16.msra.mxu0 %v9348_v63  ;;  %7473 = vmatpush3.bf16.msra.mxu1 %v9354_v8 }
 0xdb8   :  { %v5094_v35 = vmul.f32 %v7917_v5, %v5093_v29  ;;  %7466 = vmatprep.subr.bf16.mxu0 %v8076_v0  ;;  %7474 = vmatprep.subr.bf16.mxu1 %v8076_v0 }
 0xdb9   :  { %7468 = vmatprep.mubr.msk.bf16.mxu0 %vm8077_vm0, %v8076_v0  ;;  %7476 = vmatprep.mubr.msk.bf16.mxu1 %vm8077_vm0, %v8076_v0 }
 0xdba   :  { %v9479_v51 = vadd.f32 %v5095_v4, %v5094_v35 }
 0xdbb   :  { %7467 = vmatpush3.bf16.msra.mxu0 %v9374_v2  ;;  %7475 = vmatpush3.bf16.msra.mxu1 %v9380_v15 }
 0xdbc   :  { %5098 = vst.msk [vmem:[#allocation5 + $0x6] sm:$0x3] %vm880_vm3, %v9479_v51  ;;  %v5100_v49 = vpack.c.bf16 %v9479_v51, %v9479_v51  ;;  %7480 = vmatprep.subr.bf16.mxu0 %v8076_v0  ;;  %7488 = vmatprep.subr.bf16.mxu1 %v8076_v0 }
 0xdbe   :  { %7469 = vmatmul.mubr.msk.bf16.vlgmr.msra.gmra.mxu0 %vm162_vm2, %v5099_v58  ;;  %7477 = vmatmul.mubr.msk.bf16.vlgmr.msra.gmra.mxu1 %vm162_vm2, %v5100_v49  ;;  %v9520_v58 = vld [vmem:[%s9672_s13] ss:$0 sm:$0xff] }
 0xdbf   :  { %7481 = vmatpush3.bf16.msra.mxu0 %v9396_v33  ;;  %7489 = vmatpush3.bf16.msra.mxu1 %v9402_v34 }
 0xdc0   :  { %7482 = vmatprep.subr.bf16.mxu0 %v8076_v0  ;;  %7490 = vmatprep.subr.bf16.mxu1 %v8076_v0 }
 0xdc1   :  { %7484 = vmatprep.mubr.msk.bf16.mxu0 %vm8077_vm0, %v8076_v0  ;;  %7492 = vmatprep.mubr.msk.bf16.mxu1 %vm8077_vm0, %v8076_v0 }
 0xdc3   :  { %7483 = vmatpush3.bf16.msra.mxu0 %v9414_v48  ;;  %7491 = vmatpush3.bf16.msra.mxu1 %v9420_v6 }
 0xdc4   :  { %7496 = vmatprep.subr.bf16.mxu0 %v8076_v0  ;;  %7504 = vmatprep.subr.bf16.mxu1 %v8076_v0 }
 0xdc6   :  { %7485 = vmatmul.mubr.msk.bf16.vlgmr.msra.gmra.mxu0 %vm162_vm2, %v5100_v49  ;;  %7493 = vmatmul.mubr.msk.bf16.vlgmr.msra.gmra.mxu1 %vm162_vm2, %v5100_v49  ;;  %v5200_v49 = vld [vmem:[#allocation2 + $0x2a] sm:$0x3] }
 0xdc7   :  { %7497 = vmatpush3.bf16.msra.mxu0 %v9430_v13  ;;  %7505 = vmatpush3.bf16.msra.mxu1 %v9436_v56 }
 0xdc8   :  { %7498 = vmatprep.subr.bf16.mxu0 %v8076_v0  ;;  %7506 = vmatprep.subr.bf16.mxu1 %v8076_v0 }
 0xdc9   :  { %7500 = vmatprep.mubr.msk.bf16.mxu0 %vm8077_vm0, %v8076_v0  ;;  %7508 = vmatprep.mubr.msk.bf16.mxu1 %vm8077_vm0, %v8076_v0 }
 0xdcb   :  { %7499 = vmatpush3.bf16.msra.mxu0 %v9448_v17  ;;  %7507 = vmatpush3.bf16.msra.mxu1 %v9454_v23 }
 0xdcc   :  { %7512 = vmatprep.subr.bf16.mxu0 %v8076_v0  ;;  %7520 = vmatprep.subr.bf16.mxu1 %v8076_v0 }
 0xe76   :  { %v5138_v7 = vpop.f32.mrf.mxu0  ;;  %v5178_v32 = vpop.f32.mrf.mxu1 }
 0xe77   :  { %v5185_v55 = vadd.f32 %v5184_v52, %v5138_v7  ;;  %v5193_v24 = vadd.f32 %v5192_v61, %v5178_v32  ;;  %v9526_v32 = vld [vmem:[%s9676_s17] ss:$0 sm:$0xff] }
 0xe78   :  { %v7454_v57 = vpop.f32.mrf.mxu0  ;;  %v7462_v10 = vpop.f32.mrf.mxu1 }
 0xe79   :  { %v6356_v11 = vmul.f32 -1.442695, %v5185_v55  ;;  %v6357_v19 = vmul.f32 -1.442695, %v5193_v24 }
 0xe7a   :  { %v5141_v37 = vpop.f32.mrf.mxu0  ;;  %v5181_v59 = vpop.f32.mrf.mxu1 }
 0xe7b   :  { %7918 = vpow2.f32 %v6356_v11  ;;  %v5347_v11 = vld [vmem:[#allocation3 + $0x24] sm:$0x3] }
 0xe7c   :  { %v7455_v62 = vpop.f32.mrf.mxu0  ;;  %v7463_v3 = vpop.f32.mrf.mxu1 }
 0xe7e   :  { %v5235_v14 = vpop.f32.mrf.mxu0  ;;  %v5285_v28 = vpop.f32.mrf.mxu1 }
 0xe7f   :  { %v5332_v21 = vadd.f32 %v5331_v43, %v5285_v28  ;;  %v5236_v29 = vadd.f32 %v9520_v58, %v5235_v14 }
 0xe80   :  { %v7470_v18 = vpop.f32.mrf.mxu0  ;;  %v7478_v12 = vpop.f32.mrf.mxu1 }
 0xe81   :  { %v6361_v53 = vmul.f32 -1.442695, %v5332_v21 }
 0xe82   :  { %v5238_v25 = vpop.f32.mrf.mxu0  ;;  %v5288_v9 = vpop.f32.mrf.mxu1 }
 0xe83   :  { %7920 = vpow2.f32 %v6361_v53 }
 0xe84   :  { %v7471_v26 = vpop.f32.mrf.mxu0  ;;  %v7479_v1 = vpop.f32.mrf.mxu1  ;;  %7922 = vpow2.f32 %v6357_v19 }
 0xe86   :  { %v5325_v50 = vpop.f32.mrf.mxu0  ;;  %v5382_v47 = vpop.f32.mrf.mxu1 }
 0xe87   :  { %v5340_v31 = vadd.f32 %v5339_v30, %v5325_v50  ;;  %v5383_v55 = vadd.f32 %v9526_v32, %v5382_v47  ;;  %v5490_v47 = vld [vmem:[#allocation2 + $0x1c] sm:$0x3] }
 0xe88   :  { %v7919_v36 = vpop.eup %7918  ;;  %v7486_v38 = vpop.f32.mrf.mxu0 }
 0xe89   :  { %v7494_v20 = vpop.f32.mrf.mxu1  ;;  %v5189_v39 = vadd.f32 1.0, %v7919_v36  ;;  %v6362_v16 = vmul.f32 -1.442695, %v5340_v31 }
 0xe8a   :  { %v5328_v22 = vpop.f32.mrf.mxu0  ;;  %v5629_v20 = vld [vmem:[#allocation3 + $0x2] sm:$0x3] }
 0xe8b   :  { %v5385_v40 = vpop.f32.mrf.mxu1  ;;  %7924 = vrcp.f32 %v5189_v39 }
 0xe8c   :  { %v7487_v41 = vpop.f32.mrf.mxu0  ;;  %7926 = vpow2.f32 %v6362_v16 }
 0xe8d   :  { %v7495_v42 = vpop.f32.mrf.mxu1 }
 0xe90   :  { %v7921_v44 = vpop.eup %7920 }
 0xe91   :  { %v5336_v54 = vadd.f32 1.0, %v7921_v44  ;;  %v7923_v45 = vpop.eup %7922 }
 0xe92   :  { %v5197_v46 = vadd.f32 1.0, %v7923_v45 }
 0xe93   :  { %7928 = vrcp.f32 %v5336_v54 }
 0xe94   :  { %7930 = vrcp.f32 %v5197_v46 }
 0xe98   :  { %v7925_v5 = vpop.eup %7924 }
 0xe99   :  { %v5241_v4 = vmul.f32 %v7925_v5, %v5236_v29  ;;  %v7927_v35 = vpop.eup %7926  ;;  %v5637_v29 = vld [vmem:[#allocation3 + $0x12] sm:$0x3] }
 0xe9a   :  { %v5344_v52 = vadd.f32 1.0, %v7927_v35 }
 0xe9b   :  { %v5242_v7 = vadd.f32 %v5241_v4, %v5200_v49 }
 0xe9d   :  { %7932 = vtanh.f32 %v5242_v7 }
 0xe9e   :  { %7934 = vrcp.f32 %v5344_v52 }
 0xea0   :  { %v7929_v57 = vpop.eup %7928 }
 0xea1   :  { %v5388_v10 = vmul.f32 %v7929_v57, %v5383_v55  ;;  %v7931_v59 = vpop.eup %7930 }
 0xea2   :  { %v5244_v61 = vsub.f32 1.0, %v7931_v59  ;;  %v5246_v3 = vmul.f32 %v7931_v59, %v9462_v60 }
 0xea3   :  { %v5389_v37 = vadd.f32 %v5388_v10, %v5347_v11 }
 0xea5   :  { %7936 = vtanh.f32 %v5389_v37 }
 0xeaa   :  { %v7933_v62 = vpop.eup %7932 }
 0xeab   :  { %v5245_v24 = vmul.f32 %v7933_v62, %v5244_v61  ;;  %v7935_v28 = vpop.eup %7934 }
 0xeac   :  { %v5391_v21 = vsub.f32 1.0, %v7935_v28  ;;  %v5393_v60 = vmul.f32 %v7935_v28, %v9479_v51 }
 0xead   :  { %v9530_v14 = vadd.f32 %v5246_v3, %v5245_v24 }
 0xeaf   :  { %5395 = vst.msk [vmem:[#allocation4 + $0xa] sm:$0x3] %vm880_vm3, %v9530_v14  ;;  %v5397_v43 = vpack.c.bf16 %v9530_v14, %v9530_v14 }
 0xeb1   :  { %7501 = vmatmul.mubr.msk.bf16.vlgmr.msra.gmra.mxu0 %vm162_vm2, %v5397_v43  ;;  %7509 = vmatmul.mubr.msk.bf16.vlgmr.msra.gmra.mxu1 %vm162_vm2, %v5397_v43 }
 0xeb2   :  { %v7937_v18 = vpop.eup %7936  ;;  %7513 = vmatpush3.bf16.msra.mxu0 %v9348_v63  ;;  %7521 = vmatpush3.bf16.msra.mxu1 %v9354_v8 }
 0xeb3   :  { %v5392_v12 = vmul.f32 %v7937_v18, %v5391_v21  ;;  %7514 = vmatprep.subr.bf16.mxu0 %v8076_v0  ;;  %7522 = vmatprep.subr.bf16.mxu1 %v8076_v0  ;;  %v5498_v18 = vld [vmem:[#allocation2 + $0x2c] sm:$0x3] }
 0xeb4   :  { %7516 = vmatprep.mubr.msk.bf16.mxu0 %vm8077_vm0, %v8076_v0  ;;  %7524 = vmatprep.mubr.msk.bf16.mxu1 %vm8077_vm0, %v8076_v0 }
 0xeb5   :  { %v9547_v19 = vadd.f32 %v5393_v60, %v5392_v12 }
 0xeb6   :  { %7515 = vmatpush3.bf16.msra.mxu0 %v9374_v2  ;;  %7523 = vmatpush3.bf16.msra.mxu1 %v9380_v15 }
 0xeb7   :  { %5396 = vst.msk [vmem:[#allocation5 + $0x4] sm:$0x3] %vm880_vm3, %v9547_v19  ;;  %v5398_v51 = vpack.c.bf16 %v9547_v19, %v9547_v19  ;;  %7528 = vmatprep.subr.bf16.mxu0 %v8076_v0  ;;  %7536 = vmatprep.subr.bf16.mxu1 %v8076_v0 }
 0xeb9   :  { %7517 = vmatmul.mubr.msk.bf16.vlgmr.msra.gmra.mxu0 %vm162_vm2, %v5397_v43  ;;  %7525 = vmatmul.mubr.msk.bf16.vlgmr.msra.gmra.mxu1 %vm162_vm2, %v5398_v51 }
 0xeba   :  { %7529 = vmatpush3.bf16.msra.mxu0 %v9396_v33  ;;  %7537 = vmatpush3.bf16.msra.mxu1 %v9402_v34 }
 0xebb   :  { %7530 = vmatprep.subr.bf16.mxu0 %v8076_v0  ;;  %7538 = vmatprep.subr.bf16.mxu1 %v8076_v0 }
 0xebc   :  { %7532 = vmatprep.mubr.msk.bf16.mxu0 %vm8077_vm0, %v8076_v0  ;;  %7540 = vmatprep.mubr.msk.bf16.mxu1 %vm8077_vm0, %v8076_v0 }
 0xebe   :  { %7531 = vmatpush3.bf16.msra.mxu0 %v9414_v48  ;;  %7539 = vmatpush3.bf16.msra.mxu1 %v9420_v6 }
 0xebf   :  { %7544 = vmatprep.subr.bf16.mxu0 %v8076_v0  ;;  %7552 = vmatprep.subr.bf16.mxu1 %v8076_v0 }
 0xec1   :  { %7533 = vmatmul.mubr.msk.bf16.vlgmr.msra.gmra.mxu0 %vm162_vm2, %v5398_v51  ;;  %7541 = vmatmul.mubr.msk.bf16.vlgmr.msra.gmra.mxu1 %vm162_vm2, %v5398_v51 }
 0xec2   :  { %7545 = vmatpush3.bf16.msra.mxu0 %v9430_v13  ;;  %7553 = vmatpush3.bf16.msra.mxu1 %v9436_v56  ;;  %v5482_v56 = vld [vmem:[#allocation2 + $0xc] sm:$0x3] }
 0xec3   :  { %7546 = vmatprep.subr.bf16.mxu0 %v8076_v0  ;;  %7554 = vmatprep.subr.bf16.mxu1 %v8076_v0 }
 0xec4   :  { %7548 = vmatprep.mubr.msk.bf16.mxu0 %vm8077_vm0, %v8076_v0  ;;  %7556 = vmatprep.mubr.msk.bf16.mxu1 %vm8077_vm0, %v8076_v0 }
 0xec6   :  { %7547 = vmatpush3.bf16.msra.mxu0 %v9448_v17  ;;  %7555 = vmatpush3.bf16.msra.mxu1 %v9454_v23 }
 0xec7   :  { %7560 = vmatprep.subr.bf16.mxu0 %v8076_v0  ;;  %7568 = vmatprep.subr.bf16.mxu1 %v8076_v0 }
 0xf71   :  { %v5436_v13 = vpop.f32.mrf.mxu0  ;;  %v5476_v53 = vpop.f32.mrf.mxu1 }
 0xf72   :  { %v5483_v25 = vadd.f32 %v5482_v56, %v5436_v13  ;;  %v5491_v17 = vadd.f32 %v5490_v47, %v5476_v53  ;;  %v5645_v53 = vld [vmem:[#allocation3 + $0x22] sm:$0x3] }
 0xf73   :  { %v7502_v9 = vpop.f32.mrf.mxu0  ;;  %v7510_v26 = vpop.f32.mrf.mxu1 }
 0xf74   :  { %v6366_v1 = vmul.f32 -1.442695, %v5483_v25  ;;  %v6367_v40 = vmul.f32 -1.442695, %v5491_v17 }
 0xf75   :  { %v5439_v50 = vpop.f32.mrf.mxu0  ;;  %v5479_v30 = vpop.f32.mrf.mxu1 }
 0xf76   :  { %7938 = vpow2.f32 %v6366_v1 }
 0xf77   :  { %v7503_v31 = vpop.f32.mrf.mxu0  ;;  %v7511_v36 = vpop.f32.mrf.mxu1 }
 0xf79   :  { %v5533_v38 = vpop.f32.mrf.mxu0  ;;  %v5583_v23 = vpop.f32.mrf.mxu1 }
 0xf7a   :  { %v5630_v39 = vadd.f32 %v5629_v20, %v5583_v23  ;;  %v5534_v24 = vadd.f32 %v9520_v58, %v5533_v38 }
 0xf7b   :  { %v7518_v16 = vpop.f32.mrf.mxu0  ;;  %v7526_v22 = vpop.f32.mrf.mxu1 }
 0xf7c   :  { %v6371_v41 = vmul.f32 -1.442695, %v5630_v39 }
 0xf7d   :  { %v5536_v42 = vpop.f32.mrf.mxu0  ;;  %v5586_v44 = vpop.f32.mrf.mxu1 }
 0xf7e   :  { %7940 = vpow2.f32 %v6371_v41  ;;  %v5927_v44 = vld [vmem:[#allocation3] sm:$0x3] }
 0xf7f   :  { %v7519_v54 = vpop.f32.mrf.mxu0  ;;  %v7527_v45 = vpop.f32.mrf.mxu1  ;;  %7942 = vpow2.f32 %v6367_v40  ;;  %v5788_v40 = vld [vmem:[#allocation2 + $0x1e] sm:$0x3] }
 0xf81   :  { %v5623_v46 = vpop.f32.mrf.mxu0  ;;  %v5680_v5 = vpop.f32.mrf.mxu1 }
 0xf82   :  { %v5638_v4 = vadd.f32 %v5637_v29, %v5623_v46  ;;  %v5681_v51 = vadd.f32 %v9526_v32, %v5680_v5 }
 0xf83   :  { %v7939_v35 = vpop.eup %7938  ;;  %v7534_v49 = vpop.f32.mrf.mxu0 }
 0xf84   :  { %v7542_v7 = vpop.f32.mrf.mxu1  ;;  %v5487_v52 = vadd.f32 1.0, %v7939_v35  ;;  %v6372_v55 = vmul.f32 -1.442695, %v5638_v4 }
 0xf85   :  { %v5626_v57 = vpop.f32.mrf.mxu0 }
 0xf86   :  { %v5683_v10 = vpop.f32.mrf.mxu1  ;;  %7944 = vrcp.f32 %v5487_v52 }
 0xf87   :  { %v7535_v11 = vpop.f32.mrf.mxu0  ;;  %7946 = vpow2.f32 %v6372_v55  ;;  %v5935_v55 = vld [vmem:[#allocation3 + $0x10] sm:$0x3] }
 0xf88   :  { %v7543_v37 = vpop.f32.mrf.mxu1 }
 0xf8b   :  { %v7941_v59 = vpop.eup %7940 }
 0xf8c   :  { %v5634_v61 = vadd.f32 1.0, %v7941_v59  ;;  %v7943_v62 = vpop.eup %7942 }
 0xf8d   :  { %v5495_v3 = vadd.f32 1.0, %v7943_v62 }
 0xf8e   :  { %7948 = vrcp.f32 %v5634_v61 }
 0xf8f   :  { %7950 = vrcp.f32 %v5495_v3 }
 0xf93   :  { %v7945_v28 = vpop.eup %7944 }
 0xf94   :  { %v5539_v43 = vmul.f32 %v7945_v28, %v5534_v24  ;;  %v7947_v21 = vpop.eup %7946 }
 0xf95   :  { %v5642_v12 = vadd.f32 1.0, %v7947_v21 }
 0xf96   :  { %v5540_v60 = vadd.f32 %v5539_v43, %v5498_v18 }
 0xf98   :  { %7952 = vtanh.f32 %v5540_v60 }
 0xf99   :  { %7954 = vrcp.f32 %v5642_v12 }
 0xf9b   :  { %v7949_v13 = vpop.eup %7948 }
 0xf9c   :  { %v5686_v56 = vmul.f32 %v7949_v13, %v5681_v51  ;;  %v7951_v9 = vpop.eup %7950 }
 0xf9d   :  { %v5542_v26 = vsub.f32 1.0, %v7951_v9  ;;  %v5544_v50 = vmul.f32 %v7951_v9, %v9530_v14 }
 0xf9e   :  { %v5687_v25 = vadd.f32 %v5686_v56, %v5645_v53 }
 0xfa0   :  { %7956 = vtanh.f32 %v5687_v25  ;;  %v5796_v25 = vld [vmem:[#allocation2 + $0x2e] sm:$0x3] }
 0xfa5   :  { %v7953_v1 = vpop.eup %7952 }
 0xfa6   :  { %v5543_v30 = vmul.f32 %v7953_v1, %v5542_v26  ;;  %v7955_v31 = vpop.eup %7954 }
 0xfa7   :  { %v5689_v17 = vsub.f32 1.0, %v7955_v31  ;;  %v5691_v14 = vmul.f32 %v7955_v31, %v9547_v19  ;;  %v5943_v31 = vld [vmem:[#allocation3 + $0x20] sm:$0x3] }
 0xfa8   :  { %v9588_v47 = vadd.f32 %v5544_v50, %v5543_v30 }
 0xfaa   :  { %5693 = vst.msk [vmem:[#allocation4 + $0xc] sm:$0x3] %vm880_vm3, %v9588_v47  ;;  %v5695_v36 = vpack.c.bf16 %v9588_v47, %v9588_v47 }
 0xfac   :  { %7549 = vmatmul.mubr.msk.bf16.vlgmr.msra.gmra.mxu0 %vm162_vm2, %v5695_v36  ;;  %7557 = vmatmul.mubr.msk.bf16.vlgmr.msra.gmra.mxu1 %vm162_vm2, %v5695_v36 }
 0xfad   :  { %v7957_v38 = vpop.eup %7956  ;;  %7561 = vmatpush3.bf16.msra.mxu0 %v9348_v63  ;;  %7569 = vmatpush3.bf16.msra.mxu1 %v9354_v8 }
 0xfae   :  { %v5690_v23 = vmul.f32 %v7957_v38, %v5689_v17  ;;  %7562 = vmatprep.subr.bf16.mxu0 %v8076_v0  ;;  %7570 = vmatprep.subr.bf16.mxu1 %v8076_v0 }
 0xfaf   :  { %7564 = vmatprep.mubr.msk.bf16.mxu0 %vm8077_vm0, %v8076_v0  ;;  %7572 = vmatprep.mubr.msk.bf16.mxu1 %vm8077_vm0, %v8076_v0 }
 0xfb0   :  { %v9605_v20 = vadd.f32 %v5691_v14, %v5690_v23 }
 0xfb1   :  { %7563 = vmatpush3.bf16.msra.mxu0 %v9374_v2  ;;  %7571 = vmatpush3.bf16.msra.mxu1 %v9380_v15  ;;  %v5780_v2 = vld [vmem:[#allocation2 + $0xe] sm:$0x3] }
 0xfb2   :  { %5694 = vst.msk [vmem:[#allocation5 + $0x2] sm:$0x3] %vm880_vm3, %v9605_v20  ;;  %v5696_v63 = vpack.c.bf16 %v9605_v20, %v9605_v20  ;;  %7576 = vmatprep.subr.bf16.mxu0 %v8076_v0  ;;  %7584 = vmatprep.subr.bf16.mxu1 %v8076_v0 }
 0xfb4   :  { %7565 = vmatmul.mubr.msk.bf16.vlgmr.msra.gmra.mxu0 %vm162_vm2, %v5695_v36  ;;  %7573 = vmatmul.mubr.msk.bf16.vlgmr.msra.gmra.mxu1 %vm162_vm2, %v5696_v63 }
 0xfb5   :  { %7577 = vmatpush3.bf16.msra.mxu0 %v9396_v33  ;;  %7585 = vmatpush3.bf16.msra.mxu1 %v9402_v34 }
 0xfb6   :  { %7578 = vmatprep.subr.bf16.mxu0 %v8076_v0  ;;  %7586 = vmatprep.subr.bf16.mxu1 %v8076_v0 }
 0xfb7   :  { %7580 = vmatprep.mubr.msk.bf16.mxu0 %vm8077_vm0, %v8076_v0  ;;  %7588 = vmatprep.mubr.msk.bf16.mxu1 %vm8077_vm0, %v8076_v0 }
 0xfb9   :  { %7579 = vmatpush3.bf16.msra.mxu0 %v9414_v48  ;;  %7587 = vmatpush3.bf16.msra.mxu1 %v9420_v6 }
 0xfbc   :  { %7581 = vmatmul.mubr.msk.bf16.vlgmr.msra.gmra.mxu0 %vm162_vm2, %v5696_v63  ;;  %7589 = vmatmul.mubr.msk.bf16.vlgmr.msra.gmra.mxu1 %vm162_vm2, %v5696_v63 }
0x106c   :  { %v5734_v8 = vpop.f32.mrf.mxu0  ;;  %v5774_v15 = vpop.f32.mrf.mxu1 }
0x106d   :  { %v5781_v33 = vadd.f32 %v5780_v2, %v5734_v8  ;;  %v5789_v48 = vadd.f32 %v5788_v40, %v5774_v15  ;;  %v6015_v40 = vld [vmem:[#allocation5 + $0x8] sm:$0xff] }
0x106e   :  { %v7550_v34 = vpop.f32.mrf.mxu0  ;;  %v7558_v19 = vpop.f32.mrf.mxu1 }
0x106f   :  { %v6376_v39 = vmul.f32 -1.442695, %v5781_v33  ;;  %v6377_v29 = vmul.f32 -1.442695, %v5789_v48 }
0x1070   :  { %v5737_v16 = vpop.f32.mrf.mxu0  ;;  %v5777_v22 = vpop.f32.mrf.mxu1 }
0x1071   :  { %7958 = vpow2.f32 %v6376_v39  ;;  %v6385_v22 = vld [vmem:[%s9678_s19] ss:$0 sm:$0xff] }
0x1072   :  { %v7551_v0 = vpop.f32.mrf.mxu0  ;;  %v7559_v41 = vpop.f32.mrf.mxu1 }
0x1073   :  { %v6024_v41 = vmul.f32 %v6385_v22, %v6015_v40 }
0x1074   :  { %v5831_v42 = vpop.f32.mrf.mxu0  ;;  %v5881_v6 = vpop.f32.mrf.mxu1 }
0x1075   :  { %v5928_v54 = vadd.f32 %v5927_v44, %v5881_v6  ;;  %v5832_v51 = vadd.f32 %v9520_v58, %v5831_v42  ;;  %v6028_v48 = vsel %vm162_vm2, %v6024_v41, 0.0 }
0x1076   :  { %v7566_v45 = vpop.f32.mrf.mxu0  ;;  %v7574_v46 = vpop.f32.mrf.mxu1 }
0x1077   :  { %v6381_v5 = vmul.f32 -1.442695, %v5928_v54 }
0x1078   :  { %v5834_v4 = vpop.f32.mrf.mxu0  ;;  %v5884_v35 = vpop.f32.mrf.mxu1 }
0x1079   :  { %7960 = vpow2.f32 %v6381_v5 }
0x107a   :  { %v7567_v49 = vpop.f32.mrf.mxu0  ;;  %v7575_v7 = vpop.f32.mrf.mxu1  ;;  %7962 = vpow2.f32 %v6377_v29 }
0x107c   :  { %v5921_v52 = vpop.f32.mrf.mxu0  ;;  %v5978_v57 = vpop.f32.mrf.mxu1 }
0x107d   :  { %v5936_v10 = vadd.f32 %v5935_v55, %v5921_v52  ;;  %v5979_v1 = vadd.f32 %v9526_v32, %v5978_v57 }
0x107e   :  { %v7959_v11 = vpop.eup %7958  ;;  %v7582_v37 = vpop.f32.mrf.mxu0 }
0x107f   :  { %v7590_v59 = vpop.f32.mrf.mxu1  ;;  %v5785_v61 = vadd.f32 1.0, %v7959_v11  ;;  %v6382_v62 = vmul.f32 -1.442695, %v5936_v10 }
0x1080   :  { %v5924_v3 = vpop.f32.mrf.mxu0 }
0x1081   :  { %v5981_v24 = vpop.f32.mrf.mxu1  ;;  %7964 = vrcp.f32 %v5785_v61 }
0x1082   :  { %v7583_v28 = vpop.f32.mrf.mxu0  ;;  %7966 = vpow2.f32 %v6382_v62 }
0x1083   :  { %v7591_v43 = vpop.f32.mrf.mxu1 }
0x1086   :  { %v7961_v21 = vpop.eup %7960 }
0x1087   :  { %v5932_v18 = vadd.f32 1.0, %v7961_v21  ;;  %v7963_v60 = vpop.eup %7962 }
0x1088   :  { %v5793_v12 = vadd.f32 1.0, %v7963_v60 }
0x1089   :  { %7968 = vrcp.f32 %v5932_v18 }
0x108a   :  { %7970 = vrcp.f32 %v5793_v12 }
0x108e   :  { %v7965_v13 = vpop.eup %7964 }
0x108f   :  { %v5837_v56 = vmul.f32 %v7965_v13, %v5832_v51  ;;  %v7967_v53 = vpop.eup %7966 }
0x1090   :  { %v5940_v26 = vadd.f32 1.0, %v7967_v53 }
0x1091   :  { %v5838_v9 = vadd.f32 %v5837_v56, %v5796_v25 }
0x1093   :  { %7972 = vtanh.f32 %v5838_v9 }
0x1094   :  { %7974 = vrcp.f32 %v5940_v26 }
0x1096   :  { %v7969_v50 = vpop.eup %7968 }
0x1097   :  { %v5984_v30 = vmul.f32 %v7969_v50, %v5979_v1  ;;  %v7971_v17 = vpop.eup %7970 }
0x1098   :  { %v5840_v38 = vsub.f32 1.0, %v7971_v17  ;;  %v5842_v58 = vmul.f32 %v7971_v17, %v9588_v47 }
0x1099   :  { %v5985_v36 = vadd.f32 %v5984_v30, %v5943_v31 }
0x109b   :  { %7976 = vtanh.f32 %v5985_v36 }
0x10a0   :  { %v7973_v14 = vpop.eup %7972 }
0x10a1   :  { %v5841_v23 = vmul.f32 %v7973_v14, %v5840_v38  ;;  %v7975_v8 = vpop.eup %7974 }
0x10a2   :  { %v5987_v2 = vsub.f32 1.0, %v7975_v8  ;;  %v5989_v15 = vmul.f32 %v7975_v8, %v9605_v20 }
0x10a3   :  { %v5843_v63 = vadd.f32 %v5842_v58, %v5841_v23 }
0x10a5   :  { %5991 = vst.msk [vmem:[#allocation4 + $0xe] sm:$0x3] %vm880_vm3, %v5843_v63  ;;  %5994 = vst.msk [vmem:[#allocation12 + $0x4] sm:$0x3] %vm880_vm3, %v5843_v63 }
0x10a8   :  { %v7977_v32 = vpop.eup %7976 }
0x10a9   :  { %v5988_v33 = vmul.f32 %v7977_v32, %v5987_v2 }
0x10ab   :  { %v5990_v34 = vadd.f32 %v5989_v15, %v5988_v33 }
0x10ac   :  { %v5998_v19 = vld [vmem:[#allocation4 + $0x8] sm:$0xff] }
0x10ad   :  { %5992 = vst.msk [vmem:[#allocation5] sm:$0x3] %vm880_vm3, %v5990_v34  ;;  %5996 = vst.msk [vmem:[#allocation12 + $0x6] sm:$0x3] %vm880_vm3, %v5990_v34  ;;  %v6007_v47 = vmul.f32 %v9367_v27, %v5998_v19 }
0x10af   :  { %v6011_v39 = vsel %vm162_vm2, %v6007_v47, 0.0 }
0x10b0   :  { %6012 = vadd.xlane.f32.xlu1 %v6011_v39 }
0x10b4   :  { %v6014_v16 = vld [vmem:[#allocation5] sm:$0xff] }
0x10b5   :  { %v6023_v0 = vmul.f32 %v6385_v22, %v6014_v16 }
0x10b7   :  { %v6025_v20 = vsel %vm162_vm2, %v6023_v0, 0.0 }
0x10b8   :  { %6026 = vadd.xlane.f32.xlu1 %v6025_v20 }
0x10bc   :  { %6029 = vadd.xlane.f32.xlu1 %v6028_v48 }
0x10bd   :  { %8057 = shalt.err (!%p8054_p0)
}
0x10be   :  { %6053 = dma.vmem_to_hbm [thread:$0]  %s6048_s24, 128, %s9681_s22, [#allocation9], %s8073_s30, %s8073_s30, %s8074_s4   ;;  %v6010_v42 = vpop.xlane.xlu0 %6009  ;;  %vm6037_vm5 = vcmask 7168  }
0x10bf   :  { %v6034_v6 = vstv %s9679_s20 }
0x1139   :  { %v6013_v27 = vpop.xlane.xlu1 %6012 }
0x1141   :  { %v6027_v44 = vpop.xlane.xlu1 %6026 }
0x1142   :  { %v6031_v54 = vadd.f32 %v6027_v44, %v6010_v42 }
0x1144   :  { %v6035_v45 = vadd.f32 %v6034_v6, %v6031_v54 }
0x1145   :  { %v6030_v46 = vpop.xlane.xlu1 %6029 }
0x1146   :  { %6038 = vst.msk [vmem:[%s9680_s21] sm:$0xff] %vm6037_vm5, %v6035_v45  ;;  %v6032_v29 = vadd.f32 %v6030_v46, %v6013_v27 }
0x1148   :  { %v6036_v5 = vadd.f32 %v6034_v6, %v6032_v29 }
0x114a   :  { %6039 = vst.msk [vmem:[%s9680_s21 + $0x8] sm:$0xff] %vm6037_vm5, %v6036_v5 }
0x114b   :  { %8070 = dma.done.wait [#allocation9], 128  }
0x114c   :  { %8071 = vsyncadd [#allocation9], 4294967168 }
0x114d   :  { %6059 = vsyncpa [#allocation8], 1 }
0x114e   :  { %6060 = vsyncpa [#allocation11], 1 }
0x114f   :  { %6061 = vsyncpa [#allocation9], 1 }

</bundles_post_ra>
